<compile_context>
chip_gen: v5e
topology: v5e:2x2
jax: 0.10.0
libtpu: 0.0.40
codegen_flags: <defaults>
</compile_context>

<pallas_src>
import jax
import jax.numpy as jnp
from jax.experimental import pallas as pl
from jax.experimental.pallas import tpu as pltpu


# ----------------------------------------------------------------------------
# Static plan: the whole encoder works on one flattened H*W grid ("slab") of
# row pitch S = W.  After each pool the valid points sit on a stride-d
# lattice (d doubles); convs then use dilated tap offsets d*(kh*S + kw).
# ----------------------------------------------------------------------------
def _encoder_plan(channels, H, W):
    S = W
    L = H * W
    d = 1
    h, w = H, W
    n_blocks = len(channels) - 1
    blocks = []
    for bi in range(n_blocks):
        cin, cout = channels[bi], channels[bi + 1]
        blk = {"cin": cin, "cout": cout, "d": d}
        L1 = L - (2 * d * S + 2 * d)          # conv1 (valid 3x3, dilation d)
        L2 = L1 - (2 * d * S + 2 * d)         # conv2
        h, w = h - 4, w - 4
        if L2 <= 0 or h <= 0 or w <= 0:
            raise ValueError("spatial size too small for this encoder depth")
        blk.update(L_in=L, L_c1=L1, L_c2=L2, out_h=h, out_w=w)
        L = L2
        if bi < n_blocks - 1:                 # 2x2/2 max-pool between blocks
            Lp = L - (d * S + d)
            blk["L_pool"] = Lp
            L = Lp
            h, w = h // 2, w // 2
            d *= 2
        blocks.append(blk)
    return S, blocks


# ----------------------------------------------------------------------------
# Fused encoder kernel (one batch element per grid step)
# ----------------------------------------------------------------------------
def _make_encoder_kernel(S, blocks):
    n_blocks = len(blocks)

    def kernel(*refs):
        x_ref = refs[0]
        w_refs = refs[1:1 + 4 * n_blocks]            # (w1,b1,w2,b2) per block
        out_final = refs[1 + 4 * n_blocks]
        out_skips = refs[2 + 4 * n_blocks:]

        def conv3x3_relu(a, w_ref, b_ref, d, l_out):
            # a: (Cin, L_in) slab; w_ref: (9, Cout, Cin); b_ref: (Cout, 1)
            cout = w_ref.shape[1]
            acc = jnp.zeros((cout, l_out), jnp.float32)
            for kh in range(3):
                for kw in range(3):
                    off = d * (kh * S + kw)
                    acc = acc + jnp.dot(
                        w_ref[kh * 3 + kw],               # (Cout, Cin)
                        a[:, off:off + l_out],            # (Cin, L_out)
                        preferred_element_type=jnp.float32)
            return jnp.maximum(acc + b_ref[...], 0.0)

        def maxpool2x2(a, d, l_out):
            return jnp.maximum(
                jnp.maximum(a[:, 0:l_out], a[:, d:d + l_out]),
                jnp.maximum(a[:, d * S:d * S + l_out],
                            a[:, d * S + d:d * S + d + l_out]))

        act = x_ref[0].astype(jnp.float32)               # (Cin, H*W)
        for bi, blk in enumerate(blocks):
            w1, b1, w2, b2 = w_refs[4 * bi:4 * bi + 4]
            d = blk["d"]
            act = conv3x3_relu(act, w1, b1, d, blk["L_c1"])
            act = conv3x3_relu(act, w2, b2, d, blk["L_c2"])
            if bi < n_blocks - 1:
                out_skips[bi][0] = act.astype(out_skips[bi].dtype)
                act = maxpool2x2(act, d, blk["L_pool"])
        out_final[0] = act.astype(out_final.dtype)

    return kernel


# ----------------------------------------------------------------------------
# Wrapper: one pallas_call for the whole encoder, tiny XLA glue for cropping.
# ----------------------------------------------------------------------------
def encoder_forward(params, x_nchw):
    """Matches Encoder.forward: returns (x, layer_output_list[:-1]) in NCHW."""
    N, cin0, H, W = x_nchw.shape
    channels = [cin0] + [p[0].shape[-1] for p in params]
    S, blocks = _encoder_plan(channels, H, W)
    n_blocks = len(blocks)

    # NCHW consumed directly; reshape of an HBM array is free metadata.
    inputs = [x_nchw.reshape(N, cin0, H * W)]
    in_specs = [pl.BlockSpec((1, cin0, H * W), lambda i: (i, 0, 0))]
    for (w1, b1, w2, b2) in params:
        for wt, bt in ((w1, b1), (w2, b2)):
            ci, co = wt.shape[2], wt.shape[3]
            # HWIO -> (9, Cout, Cin) so each tap is a ready-to-use (Cout,Cin) lhs.
            inputs.append(jnp.transpose(wt, (0, 1, 3, 2)).reshape(9, co, ci))
            inputs.append(bt.reshape(co, 1))
            in_specs.append(pl.BlockSpec((9, co, ci), lambda i: (0, 0, 0)))
            in_specs.append(pl.BlockSpec((co, 1), lambda i: (0, 0)))

    # Outputs: final slab + one skip slab per block except the last.
    out_shapes = [jax.ShapeDtypeStruct(
        (N, blocks[-1]["cout"], blocks[-1]["L_c2"]), x_nchw.dtype)]
    out_specs = [pl.BlockSpec(
        (1, blocks[-1]["cout"], blocks[-1]["L_c2"]), lambda i: (i, 0, 0))]
    for bi in range(n_blocks - 1):
        co, L = blocks[bi]["cout"], blocks[bi]["L_c2"]
        out_shapes.append(jax.ShapeDtypeStruct((N, co, L), x_nchw.dtype))
        out_specs.append(pl.BlockSpec((1, co, L), lambda i: (i, 0, 0)))

    outs = pl.pallas_call(
        _make_encoder_kernel(S, blocks),
        out_shape=tuple(out_shapes),
        grid=(N,),
        in_specs=in_specs,
        out_specs=tuple(out_specs),
        compiler_params=pltpu.CompilerParams(
            dimension_semantics=("parallel",)),
    )(*inputs)
    final_slab, skip_slabs = outs[0], outs[1:]

    def extract(slab, blk):
        # slab: (N, C, L) over the flat HxW grid (row pitch S); real conv
        # output lives on the stride-d lattice -> gather + reshape = NCHW.
        d, h, w = blk["d"], blk["out_h"], blk["out_w"]
        idx = (d * jnp.arange(h)[:, None] * S
               + d * jnp.arange(w)[None, :]).reshape(-1)
        g = jnp.take(slab, idx, axis=2)
        return g.reshape(slab.shape[0], slab.shape[1], h, w)

    x_out = extract(final_slab, blocks[-1])
    skips = [extract(skip_slabs[bi], blocks[bi]) for bi in range(n_blocks - 1)]
    return x_out, skips


# ----------------------------------------------------------------------------
# Parameters (deterministic init, HWIO weight layout like the JAX reference)
# ----------------------------------------------------------------------------
def init_encoder_params(channels, key):
    params = []
    for i in range(len(channels) - 1):
        cin, cout = channels[i], channels[i + 1]
        block = []
        for ci, co in ((cin, cout), (cout, cout)):
            key, kw, kb = jax.random.split(key, 3)
            bound = 1.0 / jnp.sqrt(jnp.float32(ci * 9))
            w = jax.random.uniform(kw, (3, 3, ci, co), jnp.float32, -bound, bound)
            b = jax.random.uniform(kb, (co,), jnp.float32, -bound, bound)
            block.extend([w, b])
        params.append(tuple(block))
    return params


# ----------------------------------------------------------------------------
# Pure-JAX reference (for correctness check)
# ----------------------------------------------------------------------------
def _ref_forward(params, x_nchw):
    x = jnp.transpose(x_nchw, (0, 2, 3, 1))

    def conv(x, w, b):
        y = jax.lax.conv_general_dilated(
            x, w, window_strides=(1, 1), padding="VALID",
            dimension_numbers=("NHWC", "HWIO", "NHWC"))
        return jnp.maximum(y + b, 0.0)

    def pool(x):
        return jax.lax.reduce_window(
            x, -jnp.inf, jax.lax.max, (1, 2, 2, 1), (1, 2, 2, 1), "VALID")

    outs = []
    first = True
    for (w1, b1, w2, b2) in params:
        if not first:
            x = pool(x)
        else:
            first = False
        x = conv(conv(x, w1, b1), w2, b2)
        outs.append(x)
    outs.pop()
    return (jnp.transpose(x, (0, 3, 1, 2)),
            [jnp.transpose(o, (0, 3, 1, 2)) for o in outs])


# ----------------------------------------------------------------------------
if __name__ == "__main__":
    channels = [4, 8, 16, 32]                  # Encoder(channels): 3 blocks
    key = jax.random.PRNGKey(0)
    key, kx = jax.random.split(key)
    # 32x32 is the smallest spatial size that survives 3 valid-conv blocks.
    x = jax.random.normal(kx, (2, 4, 32, 32), jnp.float32)   # NCHW input
    params = init_encoder_params(channels, key)

    fwd = jax.jit(encoder_forward)
    out, skips = fwd(params, x)
    out = jax.block_until_ready(out)
    skips = [jax.block_until_ready(s) for s in skips]

    # sanity check against a plain-JAX reference
    ref_out, ref_skips = _ref_forward(params, x)
    ok = bool(jnp.allclose(out, ref_out, rtol=2e-4, atol=2e-4))
    for s, rs in zip(skips, ref_skips):
        ok = ok and s.shape == rs.shape and bool(
            jnp.allclose(s, rs, rtol=2e-4, atol=2e-4))

    assert out.shape == (2, 32, 1, 1), out.shape
    assert [s.shape for s in skips] == [(2, 8, 28, 28), (2, 16, 10, 10)]
    assert ok, "Pallas encoder does not match JAX reference"
    print("KERNEL_OK")
</pallas_src>

<mosaic_0001>
module attributes {stable_mosaic.version = 11 : i64} {
  func.func @kernel(%arg0: i32, %arg1: memref<1x4x1024xf32, #tpu.memory_space<vmem>>, %arg2: memref<9x8x4xf32, #tpu.memory_space<vmem>>, %arg3: memref<8x1xf32, #tpu.memory_space<vmem>>, %arg4: memref<9x8x8xf32, #tpu.memory_space<vmem>>, %arg5: memref<8x1xf32, #tpu.memory_space<vmem>>, %arg6: memref<9x16x8xf32, #tpu.memory_space<vmem>>, %arg7: memref<16x1xf32, #tpu.memory_space<vmem>>, %arg8: memref<9x16x16xf32, #tpu.memory_space<vmem>>, %arg9: memref<16x1xf32, #tpu.memory_space<vmem>>, %arg10: memref<9x32x16xf32, #tpu.memory_space<vmem>>, %arg11: memref<32x1xf32, #tpu.memory_space<vmem>>, %arg12: memref<9x32x32xf32, #tpu.memory_space<vmem>>, %arg13: memref<32x1xf32, #tpu.memory_space<vmem>>, %arg14: memref<1x32x1xf32, #tpu.memory_space<vmem>>, %arg15: memref<1x8x892xf32, #tpu.memory_space<vmem>>, %arg16: memref<1x16x595xf32, #tpu.memory_space<vmem>>) attributes {dimension_semantics = [#tpu.dimension_semantics<parallel>], iteration_bounds = array<i64: 2>, scalar_prefetch = 0 : i64, scratch_operands = 0 : i64, tpu.core_type = #tpu.core_type<tc>, window_params = [{transform_indices = @transform_0, window_bounds = array<i64: 1, 4, 1024>}, {pipeline_mode = #tpu.pipeline_mode<synchronous>, transform_indices = @transform_1, window_bounds = array<i64: 9, 8, 4>}, {pipeline_mode = #tpu.pipeline_mode<synchronous>, transform_indices = @transform_2, window_bounds = array<i64: 8, 1>}, {pipeline_mode = #tpu.pipeline_mode<synchronous>, transform_indices = @transform_3, window_bounds = array<i64: 9, 8, 8>}, {pipeline_mode = #tpu.pipeline_mode<synchronous>, transform_indices = @transform_4, window_bounds = array<i64: 8, 1>}, {pipeline_mode = #tpu.pipeline_mode<synchronous>, transform_indices = @transform_5, window_bounds = array<i64: 9, 16, 8>}, {pipeline_mode = #tpu.pipeline_mode<synchronous>, transform_indices = @transform_6, window_bounds = array<i64: 16, 1>}, {pipeline_mode = #tpu.pipeline_mode<synchronous>, transform_indices = @transform_7, window_bounds = array<i64: 9, 16, 16>}, {pipeline_mode = #tpu.pipeline_mode<synchronous>, transform_indices = @transform_8, window_bounds = array<i64: 16, 1>}, {pipeline_mode = #tpu.pipeline_mode<synchronous>, transform_indices = @transform_9, window_bounds = array<i64: 9, 32, 16>}, {pipeline_mode = #tpu.pipeline_mode<synchronous>, transform_indices = @transform_10, window_bounds = array<i64: 32, 1>}, {pipeline_mode = #tpu.pipeline_mode<synchronous>, transform_indices = @transform_11, window_bounds = array<i64: 9, 32, 32>}, {pipeline_mode = #tpu.pipeline_mode<synchronous>, transform_indices = @transform_12, window_bounds = array<i64: 32, 1>}, {transform_indices = @transform_13, window_bounds = array<i64: 1, 32, 1>}, {transform_indices = @transform_14, window_bounds = array<i64: 1, 8, 892>}, {transform_indices = @transform_15, window_bounds = array<i64: 1, 16, 595>}]} {
    %c0 = arith.constant 0 : index
    %c0_0 = arith.constant 0 : index
    %c0_1 = arith.constant 0 : index
    %0 = vector.load %arg1[%c0, %c0_0, %c0_1] : memref<1x4x1024xf32, #tpu.memory_space<vmem>>, vector<1x4x1024xf32>
    %1 = vector.shape_cast %0 : vector<1x4x1024xf32> to vector<4x1024xf32>
    %cst = arith.constant 0.000000e+00 : f32
    %2 = vector.broadcast %cst : f32 to vector<8x958xf32>
    %c0_2 = arith.constant 0 : index
    %c0_3 = arith.constant 0 : index
    %c0_4 = arith.constant 0 : index
    %3 = vector.load %arg2[%c0_2, %c0_3, %c0_4] : memref<9x8x4xf32, #tpu.memory_space<vmem>>, vector<1x8x4xf32>
    %4 = vector.shape_cast %3 : vector<1x8x4xf32> to vector<8x4xf32>
    %5 = vector.extract_strided_slice %1 {offsets = [0, 0], sizes = [4, 958], strides = [1, 1]} : vector<4x1024xf32> to vector<4x958xf32>
    %cst_5 = arith.constant dense<0.000000e+00> : vector<8x958xf32>
    %6 = tpu.matmul %4, %5, %cst_5 {dimension_numbers = #tpu.dot_dimension_numbers<[1], [0], [0], [1], [0, 0, 1, 1], [], []>} : vector<8x4xf32>, vector<4x958xf32>, vector<8x958xf32> -> vector<8x958xf32>
    %7 = arith.addf %2, %6 : vector<8x958xf32>
    %c1 = arith.constant 1 : index
    %c0_6 = arith.constant 0 : index
    %c0_7 = arith.constant 0 : index
    %8 = vector.load %arg2[%c1, %c0_6, %c0_7] : memref<9x8x4xf32, #tpu.memory_space<vmem>>, vector<1x8x4xf32>
    %9 = vector.shape_cast %8 : vector<1x8x4xf32> to vector<8x4xf32>
    %10 = vector.extract_strided_slice %1 {offsets = [0, 1], sizes = [4, 958], strides = [1, 1]} : vector<4x1024xf32> to vector<4x958xf32>
    %cst_8 = arith.constant dense<0.000000e+00> : vector<8x958xf32>
    %11 = tpu.matmul %9, %10, %cst_8 {dimension_numbers = #tpu.dot_dimension_numbers<[1], [0], [0], [1], [0, 0, 1, 1], [], []>} : vector<8x4xf32>, vector<4x958xf32>, vector<8x958xf32> -> vector<8x958xf32>
    %12 = arith.addf %7, %11 : vector<8x958xf32>
    %c2 = arith.constant 2 : index
    %c0_9 = arith.constant 0 : index
    %c0_10 = arith.constant 0 : index
    %13 = vector.load %arg2[%c2, %c0_9, %c0_10] : memref<9x8x4xf32, #tpu.memory_space<vmem>>, vector<1x8x4xf32>
    %14 = vector.shape_cast %13 : vector<1x8x4xf32> to vector<8x4xf32>
    %15 = vector.extract_strided_slice %1 {offsets = [0, 2], sizes = [4, 958], strides = [1, 1]} : vector<4x1024xf32> to vector<4x958xf32>
    %cst_11 = arith.constant dense<0.000000e+00> : vector<8x958xf32>
    %16 = tpu.matmul %14, %15, %cst_11 {dimension_numbers = #tpu.dot_dimension_numbers<[1], [0], [0], [1], [0, 0, 1, 1], [], []>} : vector<8x4xf32>, vector<4x958xf32>, vector<8x958xf32> -> vector<8x958xf32>
    %17 = arith.addf %12, %16 : vector<8x958xf32>
    %c3 = arith.constant 3 : index
    %c0_12 = arith.constant 0 : index
    %c0_13 = arith.constant 0 : index
    %18 = vector.load %arg2[%c3, %c0_12, %c0_13] : memref<9x8x4xf32, #tpu.memory_space<vmem>>, vector<1x8x4xf32>
    %19 = vector.shape_cast %18 : vector<1x8x4xf32> to vector<8x4xf32>
    %20 = vector.extract_strided_slice %1 {offsets = [0, 32], sizes = [4, 958], strides = [1, 1]} : vector<4x1024xf32> to vector<4x958xf32>
    %cst_14 = arith.constant dense<0.000000e+00> : vector<8x958xf32>
    %21 = tpu.matmul %19, %20, %cst_14 {dimension_numbers = #tpu.dot_dimension_numbers<[1], [0], [0], [1], [0, 0, 1, 1], [], []>} : vector<8x4xf32>, vector<4x958xf32>, vector<8x958xf32> -> vector<8x958xf32>
    %22 = arith.addf %17, %21 : vector<8x958xf32>
    %c4 = arith.constant 4 : index
    %c0_15 = arith.constant 0 : index
    %c0_16 = arith.constant 0 : index
    %23 = vector.load %arg2[%c4, %c0_15, %c0_16] : memref<9x8x4xf32, #tpu.memory_space<vmem>>, vector<1x8x4xf32>
    %24 = vector.shape_cast %23 : vector<1x8x4xf32> to vector<8x4xf32>
    %25 = vector.extract_strided_slice %1 {offsets = [0, 33], sizes = [4, 958], strides = [1, 1]} : vector<4x1024xf32> to vector<4x958xf32>
    %cst_17 = arith.constant dense<0.000000e+00> : vector<8x958xf32>
    %26 = tpu.matmul %24, %25, %cst_17 {dimension_numbers = #tpu.dot_dimension_numbers<[1], [0], [0], [1], [0, 0, 1, 1], [], []>} : vector<8x4xf32>, vector<4x958xf32>, vector<8x958xf32> -> vector<8x958xf32>
    %27 = arith.addf %22, %26 : vector<8x958xf32>
    %c5 = arith.constant 5 : index
    %c0_18 = arith.constant 0 : index
    %c0_19 = arith.constant 0 : index
    %28 = vector.load %arg2[%c5, %c0_18, %c0_19] : memref<9x8x4xf32, #tpu.memory_space<vmem>>, vector<1x8x4xf32>
    %29 = vector.shape_cast %28 : vector<1x8x4xf32> to vector<8x4xf32>
    %30 = vector.extract_strided_slice %1 {offsets = [0, 34], sizes = [4, 958], strides = [1, 1]} : vector<4x1024xf32> to vector<4x958xf32>
    %cst_20 = arith.constant dense<0.000000e+00> : vector<8x958xf32>
    %31 = tpu.matmul %29, %30, %cst_20 {dimension_numbers = #tpu.dot_dimension_numbers<[1], [0], [0], [1], [0, 0, 1, 1], [], []>} : vector<8x4xf32>, vector<4x958xf32>, vector<8x958xf32> -> vector<8x958xf32>
    %32 = arith.addf %27, %31 : vector<8x958xf32>
    %c6 = arith.constant 6 : index
    %c0_21 = arith.constant 0 : index
    %c0_22 = arith.constant 0 : index
    %33 = vector.load %arg2[%c6, %c0_21, %c0_22] : memref<9x8x4xf32, #tpu.memory_space<vmem>>, vector<1x8x4xf32>
    %34 = vector.shape_cast %33 : vector<1x8x4xf32> to vector<8x4xf32>
    %35 = vector.extract_strided_slice %1 {offsets = [0, 64], sizes = [4, 958], strides = [1, 1]} : vector<4x1024xf32> to vector<4x958xf32>
    %cst_23 = arith.constant dense<0.000000e+00> : vector<8x958xf32>
    %36 = tpu.matmul %34, %35, %cst_23 {dimension_numbers = #tpu.dot_dimension_numbers<[1], [0], [0], [1], [0, 0, 1, 1], [], []>} : vector<8x4xf32>, vector<4x958xf32>, vector<8x958xf32> -> vector<8x958xf32>
    %37 = arith.addf %32, %36 : vector<8x958xf32>
    %c7 = arith.constant 7 : index
    %c0_24 = arith.constant 0 : index
    %c0_25 = arith.constant 0 : index
    %38 = vector.load %arg2[%c7, %c0_24, %c0_25] : memref<9x8x4xf32, #tpu.memory_space<vmem>>, vector<1x8x4xf32>
    %39 = vector.shape_cast %38 : vector<1x8x4xf32> to vector<8x4xf32>
    %40 = vector.extract_strided_slice %1 {offsets = [0, 65], sizes = [4, 958], strides = [1, 1]} : vector<4x1024xf32> to vector<4x958xf32>
    %cst_26 = arith.constant dense<0.000000e+00> : vector<8x958xf32>
    %41 = tpu.matmul %39, %40, %cst_26 {dimension_numbers = #tpu.dot_dimension_numbers<[1], [0], [0], [1], [0, 0, 1, 1], [], []>} : vector<8x4xf32>, vector<4x958xf32>, vector<8x958xf32> -> vector<8x958xf32>
    %42 = arith.addf %37, %41 : vector<8x958xf32>
    %c8 = arith.constant 8 : index
    %c0_27 = arith.constant 0 : index
    %c0_28 = arith.constant 0 : index
    %43 = vector.load %arg2[%c8, %c0_27, %c0_28] : memref<9x8x4xf32, #tpu.memory_space<vmem>>, vector<1x8x4xf32>
    %44 = vector.shape_cast %43 : vector<1x8x4xf32> to vector<8x4xf32>
    %45 = vector.extract_strided_slice %1 {offsets = [0, 66], sizes = [4, 958], strides = [1, 1]} : vector<4x1024xf32> to vector<4x958xf32>
    %cst_29 = arith.constant dense<0.000000e+00> : vector<8x958xf32>
    %46 = tpu.matmul %44, %45, %cst_29 {dimension_numbers = #tpu.dot_dimension_numbers<[1], [0], [0], [1], [0, 0, 1, 1], [], []>} : vector<8x4xf32>, vector<4x958xf32>, vector<8x958xf32> -> vector<8x958xf32>
    %47 = arith.addf %42, %46 : vector<8x958xf32>
    %c0_30 = arith.constant 0 : index
    %c0_31 = arith.constant 0 : index
    %48 = vector.load %arg3[%c0_30, %c0_31] : memref<8x1xf32, #tpu.memory_space<vmem>>, vector<8x1xf32>
    %49 = vector.broadcast %48 : vector<8x1xf32> to vector<8x958xf32>
    %50 = arith.addf %47, %49 : vector<8x958xf32>
    %cst_32 = arith.constant 0.000000e+00 : f32
    %51 = vector.broadcast %cst_32 : f32 to vector<8x958xf32>
    %52 = arith.maximumf %50, %51 : vector<8x958xf32>
    %cst_33 = arith.constant 0.000000e+00 : f32
    %53 = vector.broadcast %cst_33 : f32 to vector<8x892xf32>
    %c0_34 = arith.constant 0 : index
    %c0_35 = arith.constant 0 : index
    %c0_36 = arith.constant 0 : index
    %54 = vector.load %arg4[%c0_34, %c0_35, %c0_36] : memref<9x8x8xf32, #tpu.memory_space<vmem>>, vector<1x8x8xf32>
    %55 = vector.shape_cast %54 : vector<1x8x8xf32> to vector<8x8xf32>
    %56 = vector.extract_strided_slice %52 {offsets = [0, 0], sizes = [8, 892], strides = [1, 1]} : vector<8x958xf32> to vector<8x892xf32>
    %cst_37 = arith.constant dense<0.000000e+00> : vector<8x892xf32>
    %57 = tpu.matmul %55, %56, %cst_37 {dimension_numbers = #tpu.dot_dimension_numbers<[1], [0], [0], [1], [0, 0, 1, 1], [], []>} : vector<8x8xf32>, vector<8x892xf32>, vector<8x892xf32> -> vector<8x892xf32>
    %58 = arith.addf %53, %57 : vector<8x892xf32>
    %c1_38 = arith.constant 1 : index
    %c0_39 = arith.constant 0 : index
    %c0_40 = arith.constant 0 : index
    %59 = vector.load %arg4[%c1_38, %c0_39, %c0_40] : memref<9x8x8xf32, #tpu.memory_space<vmem>>, vector<1x8x8xf32>
    %60 = vector.shape_cast %59 : vector<1x8x8xf32> to vector<8x8xf32>
    %61 = vector.extract_strided_slice %52 {offsets = [0, 1], sizes = [8, 892], strides = [1, 1]} : vector<8x958xf32> to vector<8x892xf32>
    %cst_41 = arith.constant dense<0.000000e+00> : vector<8x892xf32>
    %62 = tpu.matmul %60, %61, %cst_41 {dimension_numbers = #tpu.dot_dimension_numbers<[1], [0], [0], [1], [0, 0, 1, 1], [], []>} : vector<8x8xf32>, vector<8x892xf32>, vector<8x892xf32> -> vector<8x892xf32>
    %63 = arith.addf %58, %62 : vector<8x892xf32>
    %c2_42 = arith.constant 2 : index
    %c0_43 = arith.constant 0 : index
    %c0_44 = arith.constant 0 : index
    %64 = vector.load %arg4[%c2_42, %c0_43, %c0_44] : memref<9x8x8xf32, #tpu.memory_space<vmem>>, vector<1x8x8xf32>
    %65 = vector.shape_cast %64 : vector<1x8x8xf32> to vector<8x8xf32>
    %66 = vector.extract_strided_slice %52 {offsets = [0, 2], sizes = [8, 892], strides = [1, 1]} : vector<8x958xf32> to vector<8x892xf32>
    %cst_45 = arith.constant dense<0.000000e+00> : vector<8x892xf32>
    %67 = tpu.matmul %65, %66, %cst_45 {dimension_numbers = #tpu.dot_dimension_numbers<[1], [0], [0], [1], [0, 0, 1, 1], [], []>} : vector<8x8xf32>, vector<8x892xf32>, vector<8x892xf32> -> vector<8x892xf32>
    %68 = arith.addf %63, %67 : vector<8x892xf32>
    %c3_46 = arith.constant 3 : index
    %c0_47 = arith.constant 0 : index
    %c0_48 = arith.constant 0 : index
    %69 = vector.load %arg4[%c3_46, %c0_47, %c0_48] : memref<9x8x8xf32, #tpu.memory_space<vmem>>, vector<1x8x8xf32>
    %70 = vector.shape_cast %69 : vector<1x8x8xf32> to vector<8x8xf32>
    %71 = vector.extract_strided_slice %52 {offsets = [0, 32], sizes = [8, 892], strides = [1, 1]} : vector<8x958xf32> to vector<8x892xf32>
    %cst_49 = arith.constant dense<0.000000e+00> : vector<8x892xf32>
    %72 = tpu.matmul %70, %71, %cst_49 {dimension_numbers = #tpu.dot_dimension_numbers<[1], [0], [0], [1], [0, 0, 1, 1], [], []>} : vector<8x8xf32>, vector<8x892xf32>, vector<8x892xf32> -> vector<8x892xf32>
    %73 = arith.addf %68, %72 : vector<8x892xf32>
    %c4_50 = arith.constant 4 : index
    %c0_51 = arith.constant 0 : index
    %c0_52 = arith.constant 0 : index
    %74 = vector.load %arg4[%c4_50, %c0_51, %c0_52] : memref<9x8x8xf32, #tpu.memory_space<vmem>>, vector<1x8x8xf32>
    %75 = vector.shape_cast %74 : vector<1x8x8xf32> to vector<8x8xf32>
    %76 = vector.extract_strided_slice %52 {offsets = [0, 33], sizes = [8, 892], strides = [1, 1]} : vector<8x958xf32> to vector<8x892xf32>
    %cst_53 = arith.constant dense<0.000000e+00> : vector<8x892xf32>
    %77 = tpu.matmul %75, %76, %cst_53 {dimension_numbers = #tpu.dot_dimension_numbers<[1], [0], [0], [1], [0, 0, 1, 1], [], []>} : vector<8x8xf32>, vector<8x892xf32>, vector<8x892xf32> -> vector<8x892xf32>
    %78 = arith.addf %73, %77 : vector<8x892xf32>
    %c5_54 = arith.constant 5 : index
    %c0_55 = arith.constant 0 : index
    %c0_56 = arith.constant 0 : index
    %79 = vector.load %arg4[%c5_54, %c0_55, %c0_56] : memref<9x8x8xf32, #tpu.memory_space<vmem>>, vector<1x8x8xf32>
    %80 = vector.shape_cast %79 : vector<1x8x8xf32> to vector<8x8xf32>
    %81 = vector.extract_strided_slice %52 {offsets = [0, 34], sizes = [8, 892], strides = [1, 1]} : vector<8x958xf32> to vector<8x892xf32>
    %cst_57 = arith.constant dense<0.000000e+00> : vector<8x892xf32>
    %82 = tpu.matmul %80, %81, %cst_57 {dimension_numbers = #tpu.dot_dimension_numbers<[1], [0], [0], [1], [0, 0, 1, 1], [], []>} : vector<8x8xf32>, vector<8x892xf32>, vector<8x892xf32> -> vector<8x892xf32>
    %83 = arith.addf %78, %82 : vector<8x892xf32>
    %c6_58 = arith.constant 6 : index
    %c0_59 = arith.constant 0 : index
    %c0_60 = arith.constant 0 : index
    %84 = vector.load %arg4[%c6_58, %c0_59, %c0_60] : memref<9x8x8xf32, #tpu.memory_space<vmem>>, vector<1x8x8xf32>
    %85 = vector.shape_cast %84 : vector<1x8x8xf32> to vector<8x8xf32>
    %86 = vector.extract_strided_slice %52 {offsets = [0, 64], sizes = [8, 892], strides = [1, 1]} : vector<8x958xf32> to vector<8x892xf32>
    %cst_61 = arith.constant dense<0.000000e+00> : vector<8x892xf32>
    %87 = tpu.matmul %85, %86, %cst_61 {dimension_numbers = #tpu.dot_dimension_numbers<[1], [0], [0], [1], [0, 0, 1, 1], [], []>} : vector<8x8xf32>, vector<8x892xf32>, vector<8x892xf32> -> vector<8x892xf32>
    %88 = arith.addf %83, %87 : vector<8x892xf32>
    %c7_62 = arith.constant 7 : index
    %c0_63 = arith.constant 0 : index
    %c0_64 = arith.constant 0 : index
    %89 = vector.load %arg4[%c7_62, %c0_63, %c0_64] : memref<9x8x8xf32, #tpu.memory_space<vmem>>, vector<1x8x8xf32>
    %90 = vector.shape_cast %89 : vector<1x8x8xf32> to vector<8x8xf32>
    %91 = vector.extract_strided_slice %52 {offsets = [0, 65], sizes = [8, 892], strides = [1, 1]} : vector<8x958xf32> to vector<8x892xf32>
    %cst_65 = arith.constant dense<0.000000e+00> : vector<8x892xf32>
    %92 = tpu.matmul %90, %91, %cst_65 {dimension_numbers = #tpu.dot_dimension_numbers<[1], [0], [0], [1], [0, 0, 1, 1], [], []>} : vector<8x8xf32>, vector<8x892xf32>, vector<8x892xf32> -> vector<8x892xf32>
    %93 = arith.addf %88, %92 : vector<8x892xf32>
    %c8_66 = arith.constant 8 : index
    %c0_67 = arith.constant 0 : index
    %c0_68 = arith.constant 0 : index
    %94 = vector.load %arg4[%c8_66, %c0_67, %c0_68] : memref<9x8x8xf32, #tpu.memory_space<vmem>>, vector<1x8x8xf32>
    %95 = vector.shape_cast %94 : vector<1x8x8xf32> to vector<8x8xf32>
    %96 = vector.extract_strided_slice %52 {offsets = [0, 66], sizes = [8, 892], strides = [1, 1]} : vector<8x958xf32> to vector<8x892xf32>
    %cst_69 = arith.constant dense<0.000000e+00> : vector<8x892xf32>
    %97 = tpu.matmul %95, %96, %cst_69 {dimension_numbers = #tpu.dot_dimension_numbers<[1], [0], [0], [1], [0, 0, 1, 1], [], []>} : vector<8x8xf32>, vector<8x892xf32>, vector<8x892xf32> -> vector<8x892xf32>
    %98 = arith.addf %93, %97 : vector<8x892xf32>
    %c0_70 = arith.constant 0 : index
    %c0_71 = arith.constant 0 : index
    %99 = vector.load %arg5[%c0_70, %c0_71] : memref<8x1xf32, #tpu.memory_space<vmem>>, vector<8x1xf32>
    %100 = vector.broadcast %99 : vector<8x1xf32> to vector<8x892xf32>
    %101 = arith.addf %98, %100 : vector<8x892xf32>
    %cst_72 = arith.constant 0.000000e+00 : f32
    %102 = vector.broadcast %cst_72 : f32 to vector<8x892xf32>
    %103 = arith.maximumf %101, %102 : vector<8x892xf32>
    %c0_73 = arith.constant 0 : index
    %c0_74 = arith.constant 0 : index
    %c0_75 = arith.constant 0 : index
    %104 = vector.load %arg15[%c0_73, %c0_74, %c0_75] : memref<1x8x892xf32, #tpu.memory_space<vmem>>, vector<1x8x892xf32>
    %105 = vector.shape_cast %104 : vector<1x8x892xf32> to vector<8x892xf32>
    %106 = vector.shape_cast %103 : vector<8x892xf32> to vector<1x8x892xf32>
    tpu.vector_store %arg15[%c0_73, %c0_74, %c0_75], %106 {strides = array<i32>} : memref<1x8x892xf32, #tpu.memory_space<vmem>>, vector<1x8x892xf32>,
    %107 = vector.extract_strided_slice %103 {offsets = [0, 0], sizes = [8, 859], strides = [1, 1]} : vector<8x892xf32> to vector<8x859xf32>
    %108 = vector.extract_strided_slice %103 {offsets = [0, 1], sizes = [8, 859], strides = [1, 1]} : vector<8x892xf32> to vector<8x859xf32>
    %109 = arith.maximumf %107, %108 : vector<8x859xf32>
    %110 = vector.extract_strided_slice %103 {offsets = [0, 32], sizes = [8, 859], strides = [1, 1]} : vector<8x892xf32> to vector<8x859xf32>
    %111 = vector.extract_strided_slice %103 {offsets = [0, 33], sizes = [8, 859], strides = [1, 1]} : vector<8x892xf32> to vector<8x859xf32>
    %112 = arith.maximumf %110, %111 : vector<8x859xf32>
    %113 = arith.maximumf %109, %112 : vector<8x859xf32>
    %cst_76 = arith.constant 0.000000e+00 : f32
    %114 = vector.broadcast %cst_76 : f32 to vector<16x727xf32>
    %c0_77 = arith.constant 0 : index
    %c0_78 = arith.constant 0 : index
    %c0_79 = arith.constant 0 : index
    %115 = vector.load %arg6[%c0_77, %c0_78, %c0_79] : memref<9x16x8xf32, #tpu.memory_space<vmem>>, vector<1x16x8xf32>
    %116 = vector.shape_cast %115 : vector<1x16x8xf32> to vector<16x8xf32>
    %117 = vector.extract_strided_slice %113 {offsets = [0, 0], sizes = [8, 727], strides = [1, 1]} : vector<8x859xf32> to vector<8x727xf32>
    %cst_80 = arith.constant dense<0.000000e+00> : vector<16x727xf32>
    %118 = tpu.matmul %116, %117, %cst_80 {dimension_numbers = #tpu.dot_dimension_numbers<[1], [0], [0], [1], [0, 0, 1, 1], [], []>} : vector<16x8xf32>, vector<8x727xf32>, vector<16x727xf32> -> vector<16x727xf32>
    %119 = arith.addf %114, %118 : vector<16x727xf32>
    %c1_81 = arith.constant 1 : index
    %c0_82 = arith.constant 0 : index
    %c0_83 = arith.constant 0 : index
    %120 = vector.load %arg6[%c1_81, %c0_82, %c0_83] : memref<9x16x8xf32, #tpu.memory_space<vmem>>, vector<1x16x8xf32>
    %121 = vector.shape_cast %120 : vector<1x16x8xf32> to vector<16x8xf32>
    %122 = vector.extract_strided_slice %113 {offsets = [0, 2], sizes = [8, 727], strides = [1, 1]} : vector<8x859xf32> to vector<8x727xf32>
    %cst_84 = arith.constant dense<0.000000e+00> : vector<16x727xf32>
    %123 = tpu.matmul %121, %122, %cst_84 {dimension_numbers = #tpu.dot_dimension_numbers<[1], [0], [0], [1], [0, 0, 1, 1], [], []>} : vector<16x8xf32>, vector<8x727xf32>, vector<16x727xf32> -> vector<16x727xf32>
    %124 = arith.addf %119, %123 : vector<16x727xf32>
    %c2_85 = arith.constant 2 : index
    %c0_86 = arith.constant 0 : index
    %c0_87 = arith.constant 0 : index
    %125 = vector.load %arg6[%c2_85, %c0_86, %c0_87] : memref<9x16x8xf32, #tpu.memory_space<vmem>>, vector<1x16x8xf32>
    %126 = vector.shape_cast %125 : vector<1x16x8xf32> to vector<16x8xf32>
    %127 = vector.extract_strided_slice %113 {offsets = [0, 4], sizes = [8, 727], strides = [1, 1]} : vector<8x859xf32> to vector<8x727xf32>
    %cst_88 = arith.constant dense<0.000000e+00> : vector<16x727xf32>
    %128 = tpu.matmul %126, %127, %cst_88 {dimension_numbers = #tpu.dot_dimension_numbers<[1], [0], [0], [1], [0, 0, 1, 1], [], []>} : vector<16x8xf32>, vector<8x727xf32>, vector<16x727xf32> -> vector<16x727xf32>
    %129 = arith.addf %124, %128 : vector<16x727xf32>
    %c3_89 = arith.constant 3 : index
    %c0_90 = arith.constant 0 : index
    %c0_91 = arith.constant 0 : index
    %130 = vector.load %arg6[%c3_89, %c0_90, %c0_91] : memref<9x16x8xf32, #tpu.memory_space<vmem>>, vector<1x16x8xf32>
    %131 = vector.shape_cast %130 : vector<1x16x8xf32> to vector<16x8xf32>
    %132 = vector.extract_strided_slice %113 {offsets = [0, 64], sizes = [8, 727], strides = [1, 1]} : vector<8x859xf32> to vector<8x727xf32>
    %cst_92 = arith.constant dense<0.000000e+00> : vector<16x727xf32>
    %133 = tpu.matmul %131, %132, %cst_92 {dimension_numbers = #tpu.dot_dimension_numbers<[1], [0], [0], [1], [0, 0, 1, 1], [], []>} : vector<16x8xf32>, vector<8x727xf32>, vector<16x727xf32> -> vector<16x727xf32>
    %134 = arith.addf %129, %133 : vector<16x727xf32>
    %c4_93 = arith.constant 4 : index
    %c0_94 = arith.constant 0 : index
    %c0_95 = arith.constant 0 : index
    %135 = vector.load %arg6[%c4_93, %c0_94, %c0_95] : memref<9x16x8xf32, #tpu.memory_space<vmem>>, vector<1x16x8xf32>
    %136 = vector.shape_cast %135 : vector<1x16x8xf32> to vector<16x8xf32>
    %137 = vector.extract_strided_slice %113 {offsets = [0, 66], sizes = [8, 727], strides = [1, 1]} : vector<8x859xf32> to vector<8x727xf32>
    %cst_96 = arith.constant dense<0.000000e+00> : vector<16x727xf32>
    %138 = tpu.matmul %136, %137, %cst_96 {dimension_numbers = #tpu.dot_dimension_numbers<[1], [0], [0], [1], [0, 0, 1, 1], [], []>} : vector<16x8xf32>, vector<8x727xf32>, vector<16x727xf32> -> vector<16x727xf32>
    %139 = arith.addf %134, %138 : vector<16x727xf32>
    %c5_97 = arith.constant 5 : index
    %c0_98 = arith.constant 0 : index
    %c0_99 = arith.constant 0 : index
    %140 = vector.load %arg6[%c5_97, %c0_98, %c0_99] : memref<9x16x8xf32, #tpu.memory_space<vmem>>, vector<1x16x8xf32>
    %141 = vector.shape_cast %140 : vector<1x16x8xf32> to vector<16x8xf32>
    %142 = vector.extract_strided_slice %113 {offsets = [0, 68], sizes = [8, 727], strides = [1, 1]} : vector<8x859xf32> to vector<8x727xf32>
    %cst_100 = arith.constant dense<0.000000e+00> : vector<16x727xf32>
    %143 = tpu.matmul %141, %142, %cst_100 {dimension_numbers = #tpu.dot_dimension_numbers<[1], [0], [0], [1], [0, 0, 1, 1], [], []>} : vector<16x8xf32>, vector<8x727xf32>, vector<16x727xf32> -> vector<16x727xf32>
    %144 = arith.addf %139, %143 : vector<16x727xf32>
    %c6_101 = arith.constant 6 : index
    %c0_102 = arith.constant 0 : index
    %c0_103 = arith.constant 0 : index
    %145 = vector.load %arg6[%c6_101, %c0_102, %c0_103] : memref<9x16x8xf32, #tpu.memory_space<vmem>>, vector<1x16x8xf32>
    %146 = vector.shape_cast %145 : vector<1x16x8xf32> to vector<16x8xf32>
    %147 = vector.extract_strided_slice %113 {offsets = [0, 128], sizes = [8, 727], strides = [1, 1]} : vector<8x859xf32> to vector<8x727xf32>
    %cst_104 = arith.constant dense<0.000000e+00> : vector<16x727xf32>
    %148 = tpu.matmul %146, %147, %cst_104 {dimension_numbers = #tpu.dot_dimension_numbers<[1], [0], [0], [1], [0, 0, 1, 1], [], []>} : vector<16x8xf32>, vector<8x727xf32>, vector<16x727xf32> -> vector<16x727xf32>
    %149 = arith.addf %144, %148 : vector<16x727xf32>
    %c7_105 = arith.constant 7 : index
    %c0_106 = arith.constant 0 : index
    %c0_107 = arith.constant 0 : index
    %150 = vector.load %arg6[%c7_105, %c0_106, %c0_107] : memref<9x16x8xf32, #tpu.memory_space<vmem>>, vector<1x16x8xf32>
    %151 = vector.shape_cast %150 : vector<1x16x8xf32> to vector<16x8xf32>
    %152 = vector.extract_strided_slice %113 {offsets = [0, 130], sizes = [8, 727], strides = [1, 1]} : vector<8x859xf32> to vector<8x727xf32>
    %cst_108 = arith.constant dense<0.000000e+00> : vector<16x727xf32>
    %153 = tpu.matmul %151, %152, %cst_108 {dimension_numbers = #tpu.dot_dimension_numbers<[1], [0], [0], [1], [0, 0, 1, 1], [], []>} : vector<16x8xf32>, vector<8x727xf32>, vector<16x727xf32> -> vector<16x727xf32>
    %154 = arith.addf %149, %153 : vector<16x727xf32>
    %c8_109 = arith.constant 8 : index
    %c0_110 = arith.constant 0 : index
    %c0_111 = arith.constant 0 : index
    %155 = vector.load %arg6[%c8_109, %c0_110, %c0_111] : memref<9x16x8xf32, #tpu.memory_space<vmem>>, vector<1x16x8xf32>
    %156 = vector.shape_cast %155 : vector<1x16x8xf32> to vector<16x8xf32>
    %157 = vector.extract_strided_slice %113 {offsets = [0, 132], sizes = [8, 727], strides = [1, 1]} : vector<8x859xf32> to vector<8x727xf32>
    %cst_112 = arith.constant dense<0.000000e+00> : vector<16x727xf32>
    %158 = tpu.matmul %156, %157, %cst_112 {dimension_numbers = #tpu.dot_dimension_numbers<[1], [0], [0], [1], [0, 0, 1, 1], [], []>} : vector<16x8xf32>, vector<8x727xf32>, vector<16x727xf32> -> vector<16x727xf32>
    %159 = arith.addf %154, %158 : vector<16x727xf32>
    %c0_113 = arith.constant 0 : index
    %c0_114 = arith.constant 0 : index
    %160 = vector.load %arg7[%c0_113, %c0_114] : memref<16x1xf32, #tpu.memory_space<vmem>>, vector<16x1xf32>
    %161 = vector.broadcast %160 : vector<16x1xf32> to vector<16x727xf32>
    %162 = arith.addf %159, %161 : vector<16x727xf32>
    %cst_115 = arith.constant 0.000000e+00 : f32
    %163 = vector.broadcast %cst_115 : f32 to vector<16x727xf32>
    %164 = arith.maximumf %162, %163 : vector<16x727xf32>
    %cst_116 = arith.constant 0.000000e+00 : f32
    %165 = vector.broadcast %cst_116 : f32 to vector<16x595xf32>
    %c0_117 = arith.constant 0 : index
    %c0_118 = arith.constant 0 : index
    %c0_119 = arith.constant 0 : index
    %166 = vector.load %arg8[%c0_117, %c0_118, %c0_119] : memref<9x16x16xf32, #tpu.memory_space<vmem>>, vector<1x16x16xf32>
    %167 = vector.shape_cast %166 : vector<1x16x16xf32> to vector<16x16xf32>
    %168 = vector.extract_strided_slice %164 {offsets = [0, 0], sizes = [16, 595], strides = [1, 1]} : vector<16x727xf32> to vector<16x595xf32>
    %cst_120 = arith.constant dense<0.000000e+00> : vector<16x595xf32>
    %169 = tpu.matmul %167, %168, %cst_120 {dimension_numbers = #tpu.dot_dimension_numbers<[1], [0], [0], [1], [0, 0, 1, 1], [], []>} : vector<16x16xf32>, vector<16x595xf32>, vector<16x595xf32> -> vector<16x595xf32>
    %170 = arith.addf %165, %169 : vector<16x595xf32>
    %c1_121 = arith.constant 1 : index
    %c0_122 = arith.constant 0 : index
    %c0_123 = arith.constant 0 : index
    %171 = vector.load %arg8[%c1_121, %c0_122, %c0_123] : memref<9x16x16xf32, #tpu.memory_space<vmem>>, vector<1x16x16xf32>
    %172 = vector.shape_cast %171 : vector<1x16x16xf32> to vector<16x16xf32>
    %173 = vector.extract_strided_slice %164 {offsets = [0, 2], sizes = [16, 595], strides = [1, 1]} : vector<16x727xf32> to vector<16x595xf32>
    %cst_124 = arith.constant dense<0.000000e+00> : vector<16x595xf32>
    %174 = tpu.matmul %172, %173, %cst_124 {dimension_numbers = #tpu.dot_dimension_numbers<[1], [0], [0], [1], [0, 0, 1, 1], [], []>} : vector<16x16xf32>, vector<16x595xf32>, vector<16x595xf32> -> vector<16x595xf32>
    %175 = arith.addf %170, %174 : vector<16x595xf32>
    %c2_125 = arith.constant 2 : index
    %c0_126 = arith.constant 0 : index
    %c0_127 = arith.constant 0 : index
    %176 = vector.load %arg8[%c2_125, %c0_126, %c0_127] : memref<9x16x16xf32, #tpu.memory_space<vmem>>, vector<1x16x16xf32>
    %177 = vector.shape_cast %176 : vector<1x16x16xf32> to vector<16x16xf32>
    %178 = vector.extract_strided_slice %164 {offsets = [0, 4], sizes = [16, 595], strides = [1, 1]} : vector<16x727xf32> to vector<16x595xf32>
    %cst_128 = arith.constant dense<0.000000e+00> : vector<16x595xf32>
    %179 = tpu.matmul %177, %178, %cst_128 {dimension_numbers = #tpu.dot_dimension_numbers<[1], [0], [0], [1], [0, 0, 1, 1], [], []>} : vector<16x16xf32>, vector<16x595xf32>, vector<16x595xf32> -> vector<16x595xf32>
    %180 = arith.addf %175, %179 : vector<16x595xf32>
    %c3_129 = arith.constant 3 : index
    %c0_130 = arith.constant 0 : index
    %c0_131 = arith.constant 0 : index
    %181 = vector.load %arg8[%c3_129, %c0_130, %c0_131] : memref<9x16x16xf32, #tpu.memory_space<vmem>>, vector<1x16x16xf32>
    %182 = vector.shape_cast %181 : vector<1x16x16xf32> to vector<16x16xf32>
    %183 = vector.extract_strided_slice %164 {offsets = [0, 64], sizes = [16, 595], strides = [1, 1]} : vector<16x727xf32> to vector<16x595xf32>
    %cst_132 = arith.constant dense<0.000000e+00> : vector<16x595xf32>
    %184 = tpu.matmul %182, %183, %cst_132 {dimension_numbers = #tpu.dot_dimension_numbers<[1], [0], [0], [1], [0, 0, 1, 1], [], []>} : vector<16x16xf32>, vector<16x595xf32>, vector<16x595xf32> -> vector<16x595xf32>
    %185 = arith.addf %180, %184 : vector<16x595xf32>
    %c4_133 = arith.constant 4 : index
    %c0_134 = arith.constant 0 : index
    %c0_135 = arith.constant 0 : index
    %186 = vector.load %arg8[%c4_133, %c0_134, %c0_135] : memref<9x16x16xf32, #tpu.memory_space<vmem>>, vector<1x16x16xf32>
    %187 = vector.shape_cast %186 : vector<1x16x16xf32> to vector<16x16xf32>
    %188 = vector.extract_strided_slice %164 {offsets = [0, 66], sizes = [16, 595], strides = [1, 1]} : vector<16x727xf32> to vector<16x595xf32>
    %cst_136 = arith.constant dense<0.000000e+00> : vector<16x595xf32>
    %189 = tpu.matmul %187, %188, %cst_136 {dimension_numbers = #tpu.dot_dimension_numbers<[1], [0], [0], [1], [0, 0, 1, 1], [], []>} : vector<16x16xf32>, vector<16x595xf32>, vector<16x595xf32> -> vector<16x595xf32>
    %190 = arith.addf %185, %189 : vector<16x595xf32>
    %c5_137 = arith.constant 5 : index
    %c0_138 = arith.constant 0 : index
    %c0_139 = arith.constant 0 : index
    %191 = vector.load %arg8[%c5_137, %c0_138, %c0_139] : memref<9x16x16xf32, #tpu.memory_space<vmem>>, vector<1x16x16xf32>
    %192 = vector.shape_cast %191 : vector<1x16x16xf32> to vector<16x16xf32>
    %193 = vector.extract_strided_slice %164 {offsets = [0, 68], sizes = [16, 595], strides = [1, 1]} : vector<16x727xf32> to vector<16x595xf32>
    %cst_140 = arith.constant dense<0.000000e+00> : vector<16x595xf32>
    %194 = tpu.matmul %192, %193, %cst_140 {dimension_numbers = #tpu.dot_dimension_numbers<[1], [0], [0], [1], [0, 0, 1, 1], [], []>} : vector<16x16xf32>, vector<16x595xf32>, vector<16x595xf32> -> vector<16x595xf32>
    %195 = arith.addf %190, %194 : vector<16x595xf32>
    %c6_141 = arith.constant 6 : index
    %c0_142 = arith.constant 0 : index
    %c0_143 = arith.constant 0 : index
    %196 = vector.load %arg8[%c6_141, %c0_142, %c0_143] : memref<9x16x16xf32, #tpu.memory_space<vmem>>, vector<1x16x16xf32>
    %197 = vector.shape_cast %196 : vector<1x16x16xf32> to vector<16x16xf32>
    %198 = vector.extract_strided_slice %164 {offsets = [0, 128], sizes = [16, 595], strides = [1, 1]} : vector<16x727xf32> to vector<16x595xf32>
    %cst_144 = arith.constant dense<0.000000e+00> : vector<16x595xf32>
    %199 = tpu.matmul %197, %198, %cst_144 {dimension_numbers = #tpu.dot_dimension_numbers<[1], [0], [0], [1], [0, 0, 1, 1], [], []>} : vector<16x16xf32>, vector<16x595xf32>, vector<16x595xf32> -> vector<16x595xf32>
    %200 = arith.addf %195, %199 : vector<16x595xf32>
    %c7_145 = arith.constant 7 : index
    %c0_146 = arith.constant 0 : index
    %c0_147 = arith.constant 0 : index
    %201 = vector.load %arg8[%c7_145, %c0_146, %c0_147] : memref<9x16x16xf32, #tpu.memory_space<vmem>>, vector<1x16x16xf32>
    %202 = vector.shape_cast %201 : vector<1x16x16xf32> to vector<16x16xf32>
    %203 = vector.extract_strided_slice %164 {offsets = [0, 130], sizes = [16, 595], strides = [1, 1]} : vector<16x727xf32> to vector<16x595xf32>
    %cst_148 = arith.constant dense<0.000000e+00> : vector<16x595xf32>
    %204 = tpu.matmul %202, %203, %cst_148 {dimension_numbers = #tpu.dot_dimension_numbers<[1], [0], [0], [1], [0, 0, 1, 1], [], []>} : vector<16x16xf32>, vector<16x595xf32>, vector<16x595xf32> -> vector<16x595xf32>
    %205 = arith.addf %200, %204 : vector<16x595xf32>
    %c8_149 = arith.constant 8 : index
    %c0_150 = arith.constant 0 : index
    %c0_151 = arith.constant 0 : index
    %206 = vector.load %arg8[%c8_149, %c0_150, %c0_151] : memref<9x16x16xf32, #tpu.memory_space<vmem>>, vector<1x16x16xf32>
    %207 = vector.shape_cast %206 : vector<1x16x16xf32> to vector<16x16xf32>
    %208 = vector.extract_strided_slice %164 {offsets = [0, 132], sizes = [16, 595], strides = [1, 1]} : vector<16x727xf32> to vector<16x595xf32>
    %cst_152 = arith.constant dense<0.000000e+00> : vector<16x595xf32>
    %209 = tpu.matmul %207, %208, %cst_152 {dimension_numbers = #tpu.dot_dimension_numbers<[1], [0], [0], [1], [0, 0, 1, 1], [], []>} : vector<16x16xf32>, vector<16x595xf32>, vector<16x595xf32> -> vector<16x595xf32>
    %210 = arith.addf %205, %209 : vector<16x595xf32>
    %c0_153 = arith.constant 0 : index
    %c0_154 = arith.constant 0 : index
    %211 = vector.load %arg9[%c0_153, %c0_154] : memref<16x1xf32, #tpu.memory_space<vmem>>, vector<16x1xf32>
    %212 = vector.broadcast %211 : vector<16x1xf32> to vector<16x595xf32>
    %213 = arith.addf %210, %212 : vector<16x595xf32>
    %cst_155 = arith.constant 0.000000e+00 : f32
    %214 = vector.broadcast %cst_155 : f32 to vector<16x595xf32>
    %215 = arith.maximumf %213, %214 : vector<16x595xf32>
    %c0_156 = arith.constant 0 : index
    %c0_157 = arith.constant 0 : index
    %c0_158 = arith.constant 0 : index
    %216 = vector.load %arg16[%c0_156, %c0_157, %c0_158] : memref<1x16x595xf32, #tpu.memory_space<vmem>>, vector<1x16x595xf32>
    %217 = vector.shape_cast %216 : vector<1x16x595xf32> to vector<16x595xf32>
    %218 = vector.shape_cast %215 : vector<16x595xf32> to vector<1x16x595xf32>
    tpu.vector_store %arg16[%c0_156, %c0_157, %c0_158], %218 {strides = array<i32>} : memref<1x16x595xf32, #tpu.memory_space<vmem>>, vector<1x16x595xf32>,
    %219 = vector.extract_strided_slice %215 {offsets = [0, 0], sizes = [16, 529], strides = [1, 1]} : vector<16x595xf32> to vector<16x529xf32>
    %220 = vector.extract_strided_slice %215 {offsets = [0, 2], sizes = [16, 529], strides = [1, 1]} : vector<16x595xf32> to vector<16x529xf32>
    %221 = arith.maximumf %219, %220 : vector<16x529xf32>
    %222 = vector.extract_strided_slice %215 {offsets = [0, 64], sizes = [16, 529], strides = [1, 1]} : vector<16x595xf32> to vector<16x529xf32>
    %223 = vector.extract_strided_slice %215 {offsets = [0, 66], sizes = [16, 529], strides = [1, 1]} : vector<16x595xf32> to vector<16x529xf32>
    %224 = arith.maximumf %222, %223 : vector<16x529xf32>
    %225 = arith.maximumf %221, %224 : vector<16x529xf32>
    %cst_159 = arith.constant 0.000000e+00 : f32
    %226 = vector.broadcast %cst_159 : f32 to vector<32x265xf32>
    %c0_160 = arith.constant 0 : index
    %c0_161 = arith.constant 0 : index
    %c0_162 = arith.constant 0 : index
    %227 = vector.load %arg10[%c0_160, %c0_161, %c0_162] : memref<9x32x16xf32, #tpu.memory_space<vmem>>, vector<1x32x16xf32>
    %228 = vector.shape_cast %227 : vector<1x32x16xf32> to vector<32x16xf32>
    %229 = vector.extract_strided_slice %225 {offsets = [0, 0], sizes = [16, 265], strides = [1, 1]} : vector<16x529xf32> to vector<16x265xf32>
    %cst_163 = arith.constant dense<0.000000e+00> : vector<32x265xf32>
    %230 = tpu.matmul %228, %229, %cst_163 {dimension_numbers = #tpu.dot_dimension_numbers<[1], [0], [0], [1], [0, 0, 1, 1], [], []>} : vector<32x16xf32>, vector<16x265xf32>, vector<32x265xf32> -> vector<32x265xf32>
    %231 = arith.addf %226, %230 : vector<32x265xf32>
    %c1_164 = arith.constant 1 : index
    %c0_165 = arith.constant 0 : index
    %c0_166 = arith.constant 0 : index
    %232 = vector.load %arg10[%c1_164, %c0_165, %c0_166] : memref<9x32x16xf32, #tpu.memory_space<vmem>>, vector<1x32x16xf32>
    %233 = vector.shape_cast %232 : vector<1x32x16xf32> to vector<32x16xf32>
    %234 = vector.extract_strided_slice %225 {offsets = [0, 4], sizes = [16, 265], strides = [1, 1]} : vector<16x529xf32> to vector<16x265xf32>
    %cst_167 = arith.constant dense<0.000000e+00> : vector<32x265xf32>
    %235 = tpu.matmul %233, %234, %cst_167 {dimension_numbers = #tpu.dot_dimension_numbers<[1], [0], [0], [1], [0, 0, 1, 1], [], []>} : vector<32x16xf32>, vector<16x265xf32>, vector<32x265xf32> -> vector<32x265xf32>
    %236 = arith.addf %231, %235 : vector<32x265xf32>
    %c2_168 = arith.constant 2 : index
    %c0_169 = arith.constant 0 : index
    %c0_170 = arith.constant 0 : index
    %237 = vector.load %arg10[%c2_168, %c0_169, %c0_170] : memref<9x32x16xf32, #tpu.memory_space<vmem>>, vector<1x32x16xf32>
    %238 = vector.shape_cast %237 : vector<1x32x16xf32> to vector<32x16xf32>
    %239 = vector.extract_strided_slice %225 {offsets = [0, 8], sizes = [16, 265], strides = [1, 1]} : vector<16x529xf32> to vector<16x265xf32>
    %cst_171 = arith.constant dense<0.000000e+00> : vector<32x265xf32>
    %240 = tpu.matmul %238, %239, %cst_171 {dimension_numbers = #tpu.dot_dimension_numbers<[1], [0], [0], [1], [0, 0, 1, 1], [], []>} : vector<32x16xf32>, vector<16x265xf32>, vector<32x265xf32> -> vector<32x265xf32>
    %241 = arith.addf %236, %240 : vector<32x265xf32>
    %c3_172 = arith.constant 3 : index
    %c0_173 = arith.constant 0 : index
    %c0_174 = arith.constant 0 : index
    %242 = vector.load %arg10[%c3_172, %c0_173, %c0_174] : memref<9x32x16xf32, #tpu.memory_space<vmem>>, vector<1x32x16xf32>
    %243 = vector.shape_cast %242 : vector<1x32x16xf32> to vector<32x16xf32>
    %244 = vector.extract_strided_slice %225 {offsets = [0, 128], sizes = [16, 265], strides = [1, 1]} : vector<16x529xf32> to vector<16x265xf32>
    %cst_175 = arith.constant dense<0.000000e+00> : vector<32x265xf32>
    %245 = tpu.matmul %243, %244, %cst_175 {dimension_numbers = #tpu.dot_dimension_numbers<[1], [0], [0], [1], [0, 0, 1, 1], [], []>} : vector<32x16xf32>, vector<16x265xf32>, vector<32x265xf32> -> vector<32x265xf32>
    %246 = arith.addf %241, %245 : vector<32x265xf32>
    %c4_176 = arith.constant 4 : index
    %c0_177 = arith.constant 0 : index
    %c0_178 = arith.constant 0 : index
    %247 = vector.load %arg10[%c4_176, %c0_177, %c0_178] : memref<9x32x16xf32, #tpu.memory_space<vmem>>, vector<1x32x16xf32>
    %248 = vector.shape_cast %247 : vector<1x32x16xf32> to vector<32x16xf32>
    %249 = vector.extract_strided_slice %225 {offsets = [0, 132], sizes = [16, 265], strides = [1, 1]} : vector<16x529xf32> to vector<16x265xf32>
    %cst_179 = arith.constant dense<0.000000e+00> : vector<32x265xf32>
    %250 = tpu.matmul %248, %249, %cst_179 {dimension_numbers = #tpu.dot_dimension_numbers<[1], [0], [0], [1], [0, 0, 1, 1], [], []>} : vector<32x16xf32>, vector<16x265xf32>, vector<32x265xf32> -> vector<32x265xf32>
    %251 = arith.addf %246, %250 : vector<32x265xf32>
    %c5_180 = arith.constant 5 : index
    %c0_181 = arith.constant 0 : index
    %c0_182 = arith.constant 0 : index
    %252 = vector.load %arg10[%c5_180, %c0_181, %c0_182] : memref<9x32x16xf32, #tpu.memory_space<vmem>>, vector<1x32x16xf32>
    %253 = vector.shape_cast %252 : vector<1x32x16xf32> to vector<32x16xf32>
    %254 = vector.extract_strided_slice %225 {offsets = [0, 136], sizes = [16, 265], strides = [1, 1]} : vector<16x529xf32> to vector<16x265xf32>
    %cst_183 = arith.constant dense<0.000000e+00> : vector<32x265xf32>
    %255 = tpu.matmul %253, %254, %cst_183 {dimension_numbers = #tpu.dot_dimension_numbers<[1], [0], [0], [1], [0, 0, 1, 1], [], []>} : vector<32x16xf32>, vector<16x265xf32>, vector<32x265xf32> -> vector<32x265xf32>
    %256 = arith.addf %251, %255 : vector<32x265xf32>
    %c6_184 = arith.constant 6 : index
    %c0_185 = arith.constant 0 : index
    %c0_186 = arith.constant 0 : index
    %257 = vector.load %arg10[%c6_184, %c0_185, %c0_186] : memref<9x32x16xf32, #tpu.memory_space<vmem>>, vector<1x32x16xf32>
    %258 = vector.shape_cast %257 : vector<1x32x16xf32> to vector<32x16xf32>
    %259 = vector.extract_strided_slice %225 {offsets = [0, 256], sizes = [16, 265], strides = [1, 1]} : vector<16x529xf32> to vector<16x265xf32>
    %cst_187 = arith.constant dense<0.000000e+00> : vector<32x265xf32>
    %260 = tpu.matmul %258, %259, %cst_187 {dimension_numbers = #tpu.dot_dimension_numbers<[1], [0], [0], [1], [0, 0, 1, 1], [], []>} : vector<32x16xf32>, vector<16x265xf32>, vector<32x265xf32> -> vector<32x265xf32>
    %261 = arith.addf %256, %260 : vector<32x265xf32>
    %c7_188 = arith.constant 7 : index
    %c0_189 = arith.constant 0 : index
    %c0_190 = arith.constant 0 : index
    %262 = vector.load %arg10[%c7_188, %c0_189, %c0_190] : memref<9x32x16xf32, #tpu.memory_space<vmem>>, vector<1x32x16xf32>
    %263 = vector.shape_cast %262 : vector<1x32x16xf32> to vector<32x16xf32>
    %264 = vector.extract_strided_slice %225 {offsets = [0, 260], sizes = [16, 265], strides = [1, 1]} : vector<16x529xf32> to vector<16x265xf32>
    %cst_191 = arith.constant dense<0.000000e+00> : vector<32x265xf32>
    %265 = tpu.matmul %263, %264, %cst_191 {dimension_numbers = #tpu.dot_dimension_numbers<[1], [0], [0], [1], [0, 0, 1, 1], [], []>} : vector<32x16xf32>, vector<16x265xf32>, vector<32x265xf32> -> vector<32x265xf32>
    %266 = arith.addf %261, %265 : vector<32x265xf32>
    %c8_192 = arith.constant 8 : index
    %c0_193 = arith.constant 0 : index
    %c0_194 = arith.constant 0 : index
    %267 = vector.load %arg10[%c8_192, %c0_193, %c0_194] : memref<9x32x16xf32, #tpu.memory_space<vmem>>, vector<1x32x16xf32>
    %268 = vector.shape_cast %267 : vector<1x32x16xf32> to vector<32x16xf32>
    %269 = vector.extract_strided_slice %225 {offsets = [0, 264], sizes = [16, 265], strides = [1, 1]} : vector<16x529xf32> to vector<16x265xf32>
    %cst_195 = arith.constant dense<0.000000e+00> : vector<32x265xf32>
    %270 = tpu.matmul %268, %269, %cst_195 {dimension_numbers = #tpu.dot_dimension_numbers<[1], [0], [0], [1], [0, 0, 1, 1], [], []>} : vector<32x16xf32>, vector<16x265xf32>, vector<32x265xf32> -> vector<32x265xf32>
    %271 = arith.addf %266, %270 : vector<32x265xf32>
    %c0_196 = arith.constant 0 : index
    %c0_197 = arith.constant 0 : index
    %272 = vector.load %arg11[%c0_196, %c0_197] : memref<32x1xf32, #tpu.memory_space<vmem>>, vector<32x1xf32>
    %273 = vector.broadcast %272 : vector<32x1xf32> to vector<32x265xf32>
    %274 = arith.addf %271, %273 : vector<32x265xf32>
    %cst_198 = arith.constant 0.000000e+00 : f32
    %275 = vector.broadcast %cst_198 : f32 to vector<32x265xf32>
    %276 = arith.maximumf %274, %275 : vector<32x265xf32>
    %cst_199 = arith.constant 0.000000e+00 : f32
    %277 = vector.broadcast %cst_199 : f32 to vector<32x1xf32>
    %c0_200 = arith.constant 0 : index
    %c0_201 = arith.constant 0 : index
    %c0_202 = arith.constant 0 : index
    %278 = vector.load %arg12[%c0_200, %c0_201, %c0_202] : memref<9x32x32xf32, #tpu.memory_space<vmem>>, vector<1x32x32xf32>
    %279 = vector.shape_cast %278 : vector<1x32x32xf32> to vector<32x32xf32>
    %280 = vector.extract_strided_slice %276 {offsets = [0, 0], sizes = [32, 1], strides = [1, 1]} : vector<32x265xf32> to vector<32x1xf32>
    %cst_203 = arith.constant dense<0.000000e+00> : vector<32x1xf32>
    %281 = tpu.matmul %279, %280, %cst_203 {dimension_numbers = #tpu.dot_dimension_numbers<[1], [0], [0], [1], [0, 0, 1, 1], [], []>} : vector<32x32xf32>, vector<32x1xf32>, vector<32x1xf32> -> vector<32x1xf32>
    %282 = arith.addf %277, %281 : vector<32x1xf32>
    %c1_204 = arith.constant 1 : index
    %c0_205 = arith.constant 0 : index
    %c0_206 = arith.constant 0 : index
    %283 = vector.load %arg12[%c1_204, %c0_205, %c0_206] : memref<9x32x32xf32, #tpu.memory_space<vmem>>, vector<1x32x32xf32>
    %284 = vector.shape_cast %283 : vector<1x32x32xf32> to vector<32x32xf32>
    %285 = vector.extract_strided_slice %276 {offsets = [0, 4], sizes = [32, 1], strides = [1, 1]} : vector<32x265xf32> to vector<32x1xf32>
    %cst_207 = arith.constant dense<0.000000e+00> : vector<32x1xf32>
    %286 = tpu.matmul %284, %285, %cst_207 {dimension_numbers = #tpu.dot_dimension_numbers<[1], [0], [0], [1], [0, 0, 1, 1], [], []>} : vector<32x32xf32>, vector<32x1xf32>, vector<32x1xf32> -> vector<32x1xf32>
    %287 = arith.addf %282, %286 : vector<32x1xf32>
    %c2_208 = arith.constant 2 : index
    %c0_209 = arith.constant 0 : index
    %c0_210 = arith.constant 0 : index
    %288 = vector.load %arg12[%c2_208, %c0_209, %c0_210] : memref<9x32x32xf32, #tpu.memory_space<vmem>>, vector<1x32x32xf32>
    %289 = vector.shape_cast %288 : vector<1x32x32xf32> to vector<32x32xf32>
    %290 = vector.extract_strided_slice %276 {offsets = [0, 8], sizes = [32, 1], strides = [1, 1]} : vector<32x265xf32> to vector<32x1xf32>
    %cst_211 = arith.constant dense<0.000000e+00> : vector<32x1xf32>
    %291 = tpu.matmul %289, %290, %cst_211 {dimension_numbers = #tpu.dot_dimension_numbers<[1], [0], [0], [1], [0, 0, 1, 1], [], []>} : vector<32x32xf32>, vector<32x1xf32>, vector<32x1xf32> -> vector<32x1xf32>
    %292 = arith.addf %287, %291 : vector<32x1xf32>
    %c3_212 = arith.constant 3 : index
    %c0_213 = arith.constant 0 : index
    %c0_214 = arith.constant 0 : index
    %293 = vector.load %arg12[%c3_212, %c0_213, %c0_214] : memref<9x32x32xf32, #tpu.memory_space<vmem>>, vector<1x32x32xf32>
    %294 = vector.shape_cast %293 : vector<1x32x32xf32> to vector<32x32xf32>
    %295 = vector.extract_strided_slice %276 {offsets = [0, 128], sizes = [32, 1], strides = [1, 1]} : vector<32x265xf32> to vector<32x1xf32>
    %cst_215 = arith.constant dense<0.000000e+00> : vector<32x1xf32>
    %296 = tpu.matmul %294, %295, %cst_215 {dimension_numbers = #tpu.dot_dimension_numbers<[1], [0], [0], [1], [0, 0, 1, 1], [], []>} : vector<32x32xf32>, vector<32x1xf32>, vector<32x1xf32> -> vector<32x1xf32>
    %297 = arith.addf %292, %296 : vector<32x1xf32>
    %c4_216 = arith.constant 4 : index
    %c0_217 = arith.constant 0 : index
    %c0_218 = arith.constant 0 : index
    %298 = vector.load %arg12[%c4_216, %c0_217, %c0_218] : memref<9x32x32xf32, #tpu.memory_space<vmem>>, vector<1x32x32xf32>
    %299 = vector.shape_cast %298 : vector<1x32x32xf32> to vector<32x32xf32>
    %300 = vector.extract_strided_slice %276 {offsets = [0, 132], sizes = [32, 1], strides = [1, 1]} : vector<32x265xf32> to vector<32x1xf32>
    %cst_219 = arith.constant dense<0.000000e+00> : vector<32x1xf32>
    %301 = tpu.matmul %299, %300, %cst_219 {dimension_numbers = #tpu.dot_dimension_numbers<[1], [0], [0], [1], [0, 0, 1, 1], [], []>} : vector<32x32xf32>, vector<32x1xf32>, vector<32x1xf32> -> vector<32x1xf32>
    %302 = arith.addf %297, %301 : vector<32x1xf32>
    %c5_220 = arith.constant 5 : index
    %c0_221 = arith.constant 0 : index
    %c0_222 = arith.constant 0 : index
    %303 = vector.load %arg12[%c5_220, %c0_221, %c0_222] : memref<9x32x32xf32, #tpu.memory_space<vmem>>, vector<1x32x32xf32>
    %304 = vector.shape_cast %303 : vector<1x32x32xf32> to vector<32x32xf32>
    %305 = vector.extract_strided_slice %276 {offsets = [0, 136], sizes = [32, 1], strides = [1, 1]} : vector<32x265xf32> to vector<32x1xf32>
    %cst_223 = arith.constant dense<0.000000e+00> : vector<32x1xf32>
    %306 = tpu.matmul %304, %305, %cst_223 {dimension_numbers = #tpu.dot_dimension_numbers<[1], [0], [0], [1], [0, 0, 1, 1], [], []>} : vector<32x32xf32>, vector<32x1xf32>, vector<32x1xf32> -> vector<32x1xf32>
    %307 = arith.addf %302, %306 : vector<32x1xf32>
    %c6_224 = arith.constant 6 : index
    %c0_225 = arith.constant 0 : index
    %c0_226 = arith.constant 0 : index
    %308 = vector.load %arg12[%c6_224, %c0_225, %c0_226] : memref<9x32x32xf32, #tpu.memory_space<vmem>>, vector<1x32x32xf32>
    %309 = vector.shape_cast %308 : vector<1x32x32xf32> to vector<32x32xf32>
    %310 = vector.extract_strided_slice %276 {offsets = [0, 256], sizes = [32, 1], strides = [1, 1]} : vector<32x265xf32> to vector<32x1xf32>
    %cst_227 = arith.constant dense<0.000000e+00> : vector<32x1xf32>
    %311 = tpu.matmul %309, %310, %cst_227 {dimension_numbers = #tpu.dot_dimension_numbers<[1], [0], [0], [1], [0, 0, 1, 1], [], []>} : vector<32x32xf32>, vector<32x1xf32>, vector<32x1xf32> -> vector<32x1xf32>
    %312 = arith.addf %307, %311 : vector<32x1xf32>
    %c7_228 = arith.constant 7 : index
    %c0_229 = arith.constant 0 : index
    %c0_230 = arith.constant 0 : index
    %313 = vector.load %arg12[%c7_228, %c0_229, %c0_230] : memref<9x32x32xf32, #tpu.memory_space<vmem>>, vector<1x32x32xf32>
    %314 = vector.shape_cast %313 : vector<1x32x32xf32> to vector<32x32xf32>
    %315 = vector.extract_strided_slice %276 {offsets = [0, 260], sizes = [32, 1], strides = [1, 1]} : vector<32x265xf32> to vector<32x1xf32>
    %cst_231 = arith.constant dense<0.000000e+00> : vector<32x1xf32>
    %316 = tpu.matmul %314, %315, %cst_231 {dimension_numbers = #tpu.dot_dimension_numbers<[1], [0], [0], [1], [0, 0, 1, 1], [], []>} : vector<32x32xf32>, vector<32x1xf32>, vector<32x1xf32> -> vector<32x1xf32>
    %317 = arith.addf %312, %316 : vector<32x1xf32>
    %c8_232 = arith.constant 8 : index
    %c0_233 = arith.constant 0 : index
    %c0_234 = arith.constant 0 : index
    %318 = vector.load %arg12[%c8_232, %c0_233, %c0_234] : memref<9x32x32xf32, #tpu.memory_space<vmem>>, vector<1x32x32xf32>
    %319 = vector.shape_cast %318 : vector<1x32x32xf32> to vector<32x32xf32>
    %320 = vector.extract_strided_slice %276 {offsets = [0, 264], sizes = [32, 1], strides = [1, 1]} : vector<32x265xf32> to vector<32x1xf32>
    %cst_235 = arith.constant dense<0.000000e+00> : vector<32x1xf32>
    %321 = tpu.matmul %319, %320, %cst_235 {dimension_numbers = #tpu.dot_dimension_numbers<[1], [0], [0], [1], [0, 0, 1, 1], [], []>} : vector<32x32xf32>, vector<32x1xf32>, vector<32x1xf32> -> vector<32x1xf32>
    %322 = arith.addf %317, %321 : vector<32x1xf32>
    %c0_236 = arith.constant 0 : index
    %c0_237 = arith.constant 0 : index
    %323 = vector.load %arg13[%c0_236, %c0_237] : memref<32x1xf32, #tpu.memory_space<vmem>>, vector<32x1xf32>
    %324 = arith.addf %322, %323 : vector<32x1xf32>
    %cst_238 = arith.constant 0.000000e+00 : f32
    %325 = vector.broadcast %cst_238 : f32 to vector<32x1xf32>
    %326 = arith.maximumf %324, %325 : vector<32x1xf32>
    %c0_239 = arith.constant 0 : index
    %c0_240 = arith.constant 0 : index
    %c0_241 = arith.constant 0 : index
    %327 = vector.load %arg14[%c0_239, %c0_240, %c0_241] : memref<1x32x1xf32, #tpu.memory_space<vmem>>, vector<1x32x1xf32>
    %328 = vector.shape_cast %327 : vector<1x32x1xf32> to vector<32x1xf32>
    %329 = vector.shape_cast %326 : vector<32x1xf32> to vector<1x32x1xf32>
    tpu.vector_store %arg14[%c0_239, %c0_240, %c0_241], %329 {strides = array<i32>} : memref<1x32x1xf32, #tpu.memory_space<vmem>>, vector<1x32x1xf32>,
    return
  }
  func.func @transform_0(%arg0: i32) -> (i32, i32, i32) {
    %c0_i32 = arith.constant 0 : i32
    %c0_i32_0 = arith.constant 0 : i32
    %c0_i32_1 = arith.constant 0 : i32
    return %arg0, %c0_i32, %c0_i32_0 : i32, i32, i32
  }
  func.func @transform_1(%arg0: i32) -> (i32, i32, i32) {
    %c0_i32 = arith.constant 0 : i32
    %c0_i32_0 = arith.constant 0 : i32
    %c0_i32_1 = arith.constant 0 : i32
    %c0_i32_2 = arith.constant 0 : i32
    return %c0_i32, %c0_i32_0, %c0_i32_1 : i32, i32, i32
  }
  func.func @transform_2(%arg0: i32) -> (i32, i32) {
    %c0_i32 = arith.constant 0 : i32
    %c0_i32_0 = arith.constant 0 : i32
    %c0_i32_1 = arith.constant 0 : i32
    return %c0_i32, %c0_i32_0 : i32, i32
  }
  func.func @transform_3(%arg0: i32) -> (i32, i32, i32) {
    %c0_i32 = arith.constant 0 : i32
    %c0_i32_0 = arith.constant 0 : i32
    %c0_i32_1 = arith.constant 0 : i32
    %c0_i32_2 = arith.constant 0 : i32
    return %c0_i32, %c0_i32_0, %c0_i32_1 : i32, i32, i32
  }
  func.func @transform_4(%arg0: i32) -> (i32, i32) {
    %c0_i32 = arith.constant 0 : i32
    %c0_i32_0 = arith.constant 0 : i32
    %c0_i32_1 = arith.constant 0 : i32
    return %c0_i32, %c0_i32_0 : i32, i32
  }
  func.func @transform_5(%arg0: i32) -> (i32, i32, i32) {
    %c0_i32 = arith.constant 0 : i32
    %c0_i32_0 = arith.constant 0 : i32
    %c0_i32_1 = arith.constant 0 : i32
    %c0_i32_2 = arith.constant 0 : i32
    return %c0_i32, %c0_i32_0, %c0_i32_1 : i32, i32, i32
  }
  func.func @transform_6(%arg0: i32) -> (i32, i32) {
    %c0_i32 = arith.constant 0 : i32
    %c0_i32_0 = arith.constant 0 : i32
    %c0_i32_1 = arith.constant 0 : i32
    return %c0_i32, %c0_i32_0 : i32, i32
  }
  func.func @transform_7(%arg0: i32) -> (i32, i32, i32) {
    %c0_i32 = arith.constant 0 : i32
    %c0_i32_0 = arith.constant 0 : i32
    %c0_i32_1 = arith.constant 0 : i32
    %c0_i32_2 = arith.constant 0 : i32
    return %c0_i32, %c0_i32_0, %c0_i32_1 : i32, i32, i32
  }
  func.func @transform_8(%arg0: i32) -> (i32, i32) {
    %c0_i32 = arith.constant 0 : i32
    %c0_i32_0 = arith.constant 0 : i32
    %c0_i32_1 = arith.constant 0 : i32
    return %c0_i32, %c0_i32_0 : i32, i32
  }
  func.func @transform_9(%arg0: i32) -> (i32, i32, i32) {
    %c0_i32 = arith.constant 0 : i32
    %c0_i32_0 = arith.constant 0 : i32
    %c0_i32_1 = arith.constant 0 : i32
    %c0_i32_2 = arith.constant 0 : i32
    return %c0_i32, %c0_i32_0, %c0_i32_1 : i32, i32, i32
  }
  func.func @transform_10(%arg0: i32) -> (i32, i32) {
    %c0_i32 = arith.constant 0 : i32
    %c0_i32_0 = arith.constant 0 : i32
    %c0_i32_1 = arith.constant 0 : i32
    return %c0_i32, %c0_i32_0 : i32, i32
  }
  func.func @transform_11(%arg0: i32) -> (i32, i32, i32) {
    %c0_i32 = arith.constant 0 : i32
    %c0_i32_0 = arith.constant 0 : i32
    %c0_i32_1 = arith.constant 0 : i32
    %c0_i32_2 = arith.constant 0 : i32
    return %c0_i32, %c0_i32_0, %c0_i32_1 : i32, i32, i32
  }
  func.func @transform_12(%arg0: i32) -> (i32, i32) {
    %c0_i32 = arith.constant 0 : i32
    %c0_i32_0 = arith.constant 0 : i32
    %c0_i32_1 = arith.constant 0 : i32
    return %c0_i32, %c0_i32_0 : i32, i32
  }
  func.func @transform_13(%arg0: i32) -> (i32, i32, i32) {
    %c0_i32 = arith.constant 0 : i32
    %c0_i32_0 = arith.constant 0 : i32
    %c0_i32_1 = arith.constant 0 : i32
    return %arg0, %c0_i32, %c0_i32_0 : i32, i32, i32
  }
  func.func @transform_14(%arg0: i32) -> (i32, i32, i32) {
    %c0_i32 = arith.constant 0 : i32
    %c0_i32_0 = arith.constant 0 : i32
    %c0_i32_1 = arith.constant 0 : i32
    return %arg0, %c0_i32, %c0_i32_0 : i32, i32, i32
  }
  func.func @transform_15(%arg0: i32) -> (i32, i32, i32) {
    %c0_i32 = arith.constant 0 : i32
    %c0_i32_0 = arith.constant 0 : i32
    %c0_i32_1 = arith.constant 0 : i32
    return %arg0, %c0_i32, %c0_i32_0 : i32, i32, i32
  }
}

</mosaic_0001>

<bundles_post_ra>
// kernel: encoder_forward.1
= control target key start
LH: loop header
LB: loop body
LE: loop exit
PB: predicated region body
PF: predicated region fallthrough
CT: control target
= control target key end

     0   :  { %s10620_s18 = smov 0   ;;  %s13556_s0 = inlined_call_operand.vmem [shape: f32[2,4,1024], index: 0, kind: input, shape index: {}]   ;;  %s13557_s1 = inlined_call_operand.vmem [shape: f32[9,8,4], index: 1, kind: input, shape index: {}]   ;;  %s13558_s2 = inlined_call_operand.vmem [shape: f32[8,1], index: 2, kind: input, shape index: {}]   ;;  %s13559_s3 = inlined_call_operand.vmem [shape: f32[9,8,8], index: 3, kind: input, shape index: {}]   ;;  %s13560_s4 = inlined_call_operand.vmem [shape: f32[8,1], index: 4, kind: input, shape index: {}]   ;;  %s13561_s5 = inlined_call_operand.vmem [shape: f32[9,16,8], index: 5, kind: input, shape index: {}]   ;;  %s13562_s6 = inlined_call_operand.vmem [shape: f32[16,1], index: 6, kind: input, shape index: {}]   ;;  %s13563_s7 = inlined_call_operand.vmem [shape: f32[9,16,16], index: 7, kind: input, shape index: {}]   ;;  %s13564_s8 = inlined_call_operand.vmem [shape: f32[16,1], index: 8, kind: input, shape index: {}]   ;;  %s13565_s9 = inlined_call_operand.vmem [shape: f32[9,32,16], index: 9, kind: input, shape index: {}]   ;;  %s13566_s10 = inlined_call_operand.vmem [shape: f32[32,1], index: 10, kind: input, shape index: {}]   ;;  %s13567_s11 = inlined_call_operand.vmem [shape: f32[9,32,32], index: 11, kind: input, shape index: {}]   ;;  %s13568_s12 = inlined_call_operand.vmem [shape: f32[32,1], index: 12, kind: input, shape index: {}]   ;;  %s13569_s13 = inlined_call_operand.vmem [shape: f32[2,32,1], index: 13, kind: output, shape index: {0}]   ;;  %s13570_s14 = inlined_call_operand.vmem [shape: f32[2,8,892], index: 14, kind: output, shape index: {1}]   ;;  %s13571_s15 = inlined_call_operand.vmem [shape: f32[2,16,595], index: 15, kind: output, shape index: {2}]  }
   0x1 LB: > { %s9264_s19 = sadd.s32 4294967295, %s10526_s18   ;;  %p9268_p0 = scmp.ge.s32.totalorder %s10526_s18, 1  ;;  %s10526_s18 = sphi %s10620_s18, %s26_s18  }
   0x2   : > { %p442_p1 = scmp.lt.s32.totalorder %s10526_s18, 3 }
   0x4   : > { %p443_p2 = pnand %p9268_p0, %p442_p1 }
   0x6   : > { %446 = sbr.rel (%p443_p2) target bundleno = 3026 (0xbd2), region = 72 }
   0xb   : > { %p500_p3 = scmp.lt.s32.totalorder %s9264_s19, 1  ;;  %s10528_s24 = smov 127   ;;  %vm562_vm0 = vcmask 1039360   ;;  %vm574_vm1 = vcmask 1043456   ;;  %v10734_v62 = vld [vmem:[%s13557_s1 + $0x8] sm:$0xff]  ;;  %vm570_vm2 = vcmask 31744  }
   0xc   : > { %s10529_s25 = smov 126   ;;  %s10530_s26 = smov 96   ;;  %vm978_vm3 = vcmask 1031168   ;;  %vm1206_vm4 = vcmask 785408   ;;  %vm1434_vm5 = vcmask 777216   ;;  %vm1662_vm6 = vcmask 769024  }
   0xd   : > { %s13725_s19 = smov (!%p500_p3, %s9264_s19), 1  ;;  %s10531_s27 = smov 95   ;;  %vm1890_vm7 = vcmask 523264   ;;  %vm2118_vm8 = vcmask 515072   ;;  %vm2346_vm9 = vcmask 506880   ;;  %vm2600_vm10 = vcmask 64512  }
   0xe   : > { %s9938_s20 = sshll.u32 %s13725_s19, 5  ;;  %s10532_s28 = smov 94   ;;  %vm4185_vm11 = vcmask 1014784   ;;  %vm5161_vm12 = vcmask 490496   ;;  %vm5906_vm13 = vcmask 130048   ;;  %vm7315_vm14 = vcmask 678912  }
   0xf   : > { %s504_s23 = scalar_lea.vmem %s13556_s0, %s9938_s20  ;;  %s10533_s16 = smov 64   ;;  %vm7690_vm15 = vcmask 982016  }
  0x10   : > { %v10636_v0 = vld [vmem:[%s504_s23 + $0x8] sm:$0xff]  ;;  %v10638_v1 = vld [vmem:[%s504_s23] sm:$0xff]  ;;  %v10640_v2 = vld [vmem:[%s504_s23 + $0x10] sm:$0xff]  ;;  %s10534_s22 = smov 63   ;;  %s10535_s30 = smov 62  }
  0x11   : > { %533 = vst [vmem:[#allocation1 + $0x10] ss:$2 sm:$0xff] %v10636_v0  ;;  %v10643_v3 = vld [vmem:[%s504_s23 + $0x18] sm:$0xff]  ;;  %s9940_s21 = smul.u32 56, %s13725_s19  ;;  %s13534_s23 = scalar_lea.vmem %s13569_s13, %s9938_s20 }
  0x12   : > { %531 = vst [vmem:[#allocation1] ss:$2 sm:$0xff] %v10638_v1 }
  0x13   : > { %535 = vst [vmem:[#allocation1 + $0x20] ss:$2 sm:$0xff] %v10640_v2 }
  0x14   : > { %537 = vst [vmem:[#allocation1 + $0x30] ss:$2 sm:$0xff] %v10643_v3 }
  0x18   : > { %v540_v4 = vld.sshfl [vmem:[#allocation1 + $0x10] sm:$0xff pattern:$0x75316420]  ;;  %v541_v5 = vld.sshfl [vmem:[#allocation1 + $0x18] sm:$0xff pattern:$0x75316420] }
  0x19   : > { %550 = vrot.lane.b32.xlu1 %v540_v4, %s10528_s24  ;;  %v538_v6 = vld.sshfl [vmem:[#allocation1] sm:$0xff pattern:$0x75316420]  ;;  %753 = vst [vmem:[#allocation1 + $0x10] ss:$2 sm:$0xff] %v10636_v0 }
  0x1a   : > { %546 = vrot.lane.b32.xlu0 %v538_v6, %s10528_s24  ;;  %v539_v7 = vld.sshfl [vmem:[#allocation1 + $0x8] sm:$0xff pattern:$0x75316420]  ;;  %v542_v8 = vld.sshfl [vmem:[#allocation1 + $0x20] sm:$0xff pattern:$0x75316420] }
  0x1b   : > { %751 = vst [vmem:[#allocation1] ss:$2 sm:$0xff] %v10638_v1  ;;  %554 = vrot.lane.b32.xlu2 %v542_v8, %s10528_s24  ;;  %v545_v9 = vld.sshfl [vmem:[#allocation1 + $0x38] sm:$0xff pattern:$0x75316420] }
  0x1c   : > { %v544_v10 = vld.sshfl [vmem:[#allocation1 + $0x30] sm:$0xff pattern:$0x75316420]  ;;  %v543_v11 = vld.sshfl [vmem:[#allocation1 + $0x28] sm:$0xff pattern:$0x75316420] }
  0x1d   : > { %757 = vst [vmem:[#allocation1 + $0x30] ss:$2 sm:$0xff] %v10643_v3 }
  0x1e   : > { %755 = vst [vmem:[#allocation1 + $0x20] ss:$2 sm:$0xff] %v10640_v2 }
  0x20   : > { %v10655_v12 = vld.sshfl [vmem:[#allocation1 + $0x10] sm:$0xff pattern:$0x75316420]  ;;  %v10657_v13 = vld.sshfl [vmem:[#allocation1 + $0x18] sm:$0xff pattern:$0x75316420] }
  0x21   : > { %552 = vrot.lane.b32.xlu1 %v541_v5, %s10528_s24  ;;  %949 = vst [vmem:[#allocation1 + $0x10] ss:$2 sm:$0xff] %v10636_v0  ;;  %v10750_v5 = vld [vmem:[%s13557_s1] sm:$0xff] }
  0x22   : > { %548 = vrot.lane.b32.xlu0 %v539_v7, %s10528_s24  ;;  %v10662_v14 = vld.sshfl [vmem:[#allocation1] sm:$0xff pattern:$0x75316420]  ;;  %v10664_v15 = vld.sshfl [vmem:[#allocation1 + $0x8] sm:$0xff pattern:$0x75316420] }
  0x23   : > { %947 = vst [vmem:[#allocation1] ss:$2 sm:$0xff] %v10638_v1  ;;  %556 = vrot.lane.b32.xlu2 %v543_v11, %s10528_s24 }
  0x24   : > { %v10668_v16 = vld.sshfl [vmem:[#allocation1 + $0x30] sm:$0xff pattern:$0x75316420]  ;;  %v10670_v17 = vld.sshfl [vmem:[#allocation1 + $0x38] sm:$0xff pattern:$0x75316420] }
  0x25   : > { %953 = vst [vmem:[#allocation1 + $0x30] ss:$2 sm:$0xff] %v10643_v3  ;;  %v10673_v18 = vld.sshfl [vmem:[#allocation1 + $0x20] sm:$0xff pattern:$0x75316420] }
  0x26   : > { %v10675_v19 = vld.sshfl [vmem:[#allocation1 + $0x28] sm:$0xff pattern:$0x75316420] }
  0x27   : > { %951 = vst [vmem:[#allocation1 + $0x20] ss:$2 sm:$0xff] %v10640_v2 }
  0x28   : > { %v956_v20 = vld.sshfl [vmem:[#allocation1 + $0x10] sm:$0xff pattern:$0x75316420]  ;;  %v957_v21 = vld.sshfl [vmem:[#allocation1 + $0x18] sm:$0xff pattern:$0x75316420] }
  0x29   : > { %560 = vrot.lane.b32.xlu1 %v545_v9, %s10528_s24  ;;  %1177 = vst [vmem:[#allocation1 + $0x10] ss:$2 sm:$0xff] %v10636_v0 }
  0x2a   : > { %558 = vrot.lane.b32.xlu0 %v544_v10, %s10528_s24  ;;  %v955_v22 = vld.sshfl [vmem:[#allocation1 + $0x8] sm:$0xff pattern:$0x75316420]  ;;  %v954_v23 = vld.sshfl [vmem:[#allocation1] sm:$0xff pattern:$0x75316420] }
  0x2b   : > { %962 = vrot.lane.b32.xlu2 %v954_v23, %s10529_s25  ;;  %1175 = vst [vmem:[#allocation1] ss:$2 sm:$0xff] %v10638_v1 }
  0x2c   : > { %v961_v24 = vld.sshfl [vmem:[#allocation1 + $0x38] sm:$0xff pattern:$0x75316420]  ;;  %v960_v25 = vld.sshfl [vmem:[#allocation1 + $0x30] sm:$0xff pattern:$0x75316420] }
  0x2d   : > { %1181 = vst [vmem:[#allocation1 + $0x30] ss:$2 sm:$0xff] %v10643_v3 }
  0x2e   : > { %v959_v26 = vld.sshfl [vmem:[#allocation1 + $0x28] sm:$0xff pattern:$0x75316420]  ;;  %v958_v27 = vld.sshfl [vmem:[#allocation1 + $0x20] sm:$0xff pattern:$0x75316420] }
  0x2f   : > { %1179 = vst [vmem:[#allocation1 + $0x20] ss:$2 sm:$0xff] %v10640_v2 }
  0x30   : > { %v1184_v28 = vld.sshfl [vmem:[#allocation1 + $0x10] sm:$0xff pattern:$0x75316420]  ;;  %v1185_v29 = vld.sshfl [vmem:[#allocation1 + $0x18] sm:$0xff pattern:$0x75316420] }
  0x31   : > { %966 = vrot.lane.b32.xlu1 %v956_v20, %s10529_s25  ;;  %1405 = vst [vmem:[#allocation1 + $0x10] ss:$2 sm:$0xff] %v10636_v0 }
  0x32   : > { %964 = vrot.lane.b32.xlu0 %v955_v22, %s10529_s25  ;;  %v1182_v30 = vld.sshfl [vmem:[#allocation1] sm:$0xff pattern:$0x75316420]  ;;  %v1183_v31 = vld.sshfl [vmem:[#allocation1 + $0x8] sm:$0xff pattern:$0x75316420] }
  0x33   : > { %968 = vrot.lane.b32.xlu2 %v957_v21, %s10529_s25  ;;  %1403 = vst [vmem:[#allocation1] ss:$2 sm:$0xff] %v10638_v1 }
  0x34   : > { %v1188_v36 = vld.sshfl [vmem:[#allocation1 + $0x30] sm:$0xff pattern:$0x75316420]  ;;  %v1189_v37 = vld.sshfl [vmem:[#allocation1 + $0x38] sm:$0xff pattern:$0x75316420] }
  0x35   : > { %1409 = vst [vmem:[#allocation1 + $0x30] ss:$2 sm:$0xff] %v10643_v3 }
  0x36   : > { %v1186_v32 = vld.sshfl [vmem:[#allocation1 + $0x20] sm:$0xff pattern:$0x75316420]  ;;  %v1187_v35 = vld.sshfl [vmem:[#allocation1 + $0x28] sm:$0xff pattern:$0x75316420] }
  0x37   : > { %1407 = vst [vmem:[#allocation1 + $0x20] ss:$2 sm:$0xff] %v10640_v2 }
  0x38   : > { %v1413_v38 = vld.sshfl [vmem:[#allocation1 + $0x18] sm:$0xff pattern:$0x75316420]  ;;  %v1412_v41 = vld.sshfl [vmem:[#allocation1 + $0x10] sm:$0xff pattern:$0x75316420] }
  0x39   : > { %972 = vrot.lane.b32.xlu1 %v959_v26, %s10529_s25  ;;  %1633 = vst [vmem:[#allocation1 + $0x10] ss:$2 sm:$0xff] %v10636_v0 }
  0x3a   : > { %970 = vrot.lane.b32.xlu0 %v958_v27, %s10529_s25  ;;  %v1411_v33 = vld.sshfl [vmem:[#allocation1 + $0x8] sm:$0xff pattern:$0x75316420]  ;;  %v1410_v34 = vld.sshfl [vmem:[#allocation1] sm:$0xff pattern:$0x75316420] }
  0x3b   : > { %974 = vrot.lane.b32.xlu2 %v960_v25, %s10529_s25  ;;  %1631 = vst [vmem:[#allocation1] ss:$2 sm:$0xff] %v10638_v1 }
  0x3c   : > { %v1417_v39 = vld.sshfl [vmem:[#allocation1 + $0x38] sm:$0xff pattern:$0x75316420]  ;;  %v1416_v40 = vld.sshfl [vmem:[#allocation1 + $0x30] sm:$0xff pattern:$0x75316420] }
  0x3d   : > { %1637 = vst [vmem:[#allocation1 + $0x30] ss:$2 sm:$0xff] %v10643_v3 }
  0x3e   : > { %v1415_v42 = vld.sshfl [vmem:[#allocation1 + $0x28] sm:$0xff pattern:$0x75316420]  ;;  %v1414_v45 = vld.sshfl [vmem:[#allocation1 + $0x20] sm:$0xff pattern:$0x75316420] }
  0x3f   : > { %1635 = vst [vmem:[#allocation1 + $0x20] ss:$2 sm:$0xff] %v10640_v2 }
  0x40   : > { %v1640_v43 = vld.sshfl [vmem:[#allocation1 + $0x10] sm:$0xff pattern:$0x75316420]  ;;  %v1641_v44 = vld.sshfl [vmem:[#allocation1 + $0x18] sm:$0xff pattern:$0x75316420] }
  0x41   : > { %1190 = vrot.lane.b32.xlu1 %v1182_v30, %s10530_s26  ;;  %1861 = vst [vmem:[#allocation1 + $0x10] ss:$2 sm:$0xff] %v10636_v0 }
  0x42   : > { %976 = vrot.lane.b32.xlu0 %v961_v24, %s10529_s25  ;;  %v1639_v46 = vld.sshfl [vmem:[#allocation1 + $0x8] sm:$0xff pattern:$0x75316420]  ;;  %v1638_v47 = vld.sshfl [vmem:[#allocation1] sm:$0xff pattern:$0x75316420] }
  0x43   : > { %1192 = vrot.lane.b32.xlu2 %v1183_v31, %s10530_s26  ;;  %1859 = vst [vmem:[#allocation1] ss:$2 sm:$0xff] %v10638_v1 }
  0x44   : > { %v1644_v52 = vld.sshfl [vmem:[#allocation1 + $0x30] sm:$0xff pattern:$0x75316420]  ;;  %v1645_v53 = vld.sshfl [vmem:[#allocation1 + $0x38] sm:$0xff pattern:$0x75316420] }
  0x45   : > { %1865 = vst [vmem:[#allocation1 + $0x30] ss:$2 sm:$0xff] %v10643_v3 }
  0x46   : > { %v1643_v48 = vld.sshfl [vmem:[#allocation1 + $0x28] sm:$0xff pattern:$0x75316420]  ;;  %v1642_v49 = vld.sshfl [vmem:[#allocation1 + $0x20] sm:$0xff pattern:$0x75316420] }
  0x47   : > { %1863 = vst [vmem:[#allocation1 + $0x20] ss:$2 sm:$0xff] %v10640_v2 }
  0x48   : > { %v1868_v50 = vld.sshfl [vmem:[#allocation1 + $0x10] sm:$0xff pattern:$0x75316420]  ;;  %v1869_v51 = vld.sshfl [vmem:[#allocation1 + $0x18] sm:$0xff pattern:$0x75316420] }
  0x49   : > { %1196 = vrot.lane.b32.xlu1 %v1185_v29, %s10530_s26  ;;  %2089 = vst [vmem:[#allocation1 + $0x10] ss:$2 sm:$0xff] %v10636_v0 }
  0x4a   : > { %1194 = vrot.lane.b32.xlu0 %v1184_v28, %s10530_s26  ;;  %v1866_v54 = vld.sshfl [vmem:[#allocation1] sm:$0xff pattern:$0x75316420]  ;;  %v1867_v55 = vld.sshfl [vmem:[#allocation1 + $0x8] sm:$0xff pattern:$0x75316420] }
  0x4b   : > { %1198 = vrot.lane.b32.xlu2 %v1186_v32, %s10530_s26  ;;  %2087 = vst [vmem:[#allocation1] ss:$2 sm:$0xff] %v10638_v1 }
  0x4c   : > { %v1873_v4 = vld.sshfl [vmem:[#allocation1 + $0x38] sm:$0xff pattern:$0x75316420] }
  0x4e   : > { %v1871_v57 = vld.sshfl [vmem:[#allocation1 + $0x28] sm:$0xff pattern:$0x75316420]  ;;  %v1870_v60 = vld.sshfl [vmem:[#allocation1 + $0x20] sm:$0xff pattern:$0x75316420] }
  0x4f   : > { %2091 = vst [vmem:[#allocation1 + $0x20] ss:$2 sm:$0xff] %v10640_v2 }
  0x50   : > { %v2096_v8 = vld.sshfl [vmem:[#allocation1 + $0x10] sm:$0xff pattern:$0x75316420] }
  0x51   : > { %1202 = vrot.lane.b32.xlu1 %v1188_v36, %s10530_s26 }
  0x52   : > { %1200 = vrot.lane.b32.xlu0 %v1187_v35, %s10530_s26  ;;  %v2095_v58 = vld.sshfl [vmem:[#allocation1 + $0x8] sm:$0xff pattern:$0x75316420]  ;;  %v2094_v59 = vld.sshfl [vmem:[#allocation1] sm:$0xff pattern:$0x75316420] }
  0x53   : > { %1204 = vrot.lane.b32.xlu2 %v1189_v37, %s10530_s26  ;;  %2315 = vst [vmem:[#allocation1] ss:$2 sm:$0xff] %v10638_v1  ;;  %v1872_v1 = vld.sshfl [vmem:[#allocation1 + $0x30] sm:$0xff pattern:$0x75316420] }
  0x54   : > { %2093 = vst [vmem:[#allocation1 + $0x30] ss:$2 sm:$0xff] %v10643_v3 }
  0x56   : > { %v2098_v21 = vld.sshfl [vmem:[#allocation1 + $0x20] sm:$0xff pattern:$0x75316420]  ;;  %v2099_v22 = vld.sshfl [vmem:[#allocation1 + $0x28] sm:$0xff pattern:$0x75316420] }
  0x57   : > { %2319 = vst [vmem:[#allocation1 + $0x20] ss:$2 sm:$0xff] %v10640_v2 }
  0x59   : > { %1420 = vrot.lane.b32.xlu1 %v1411_v33, %s10531_s27 }
  0x5a   : > { %1418 = vrot.lane.b32.xlu0 %v1410_v34, %s10531_s27 }
  0x5b   : > { %1422 = vrot.lane.b32.xlu2 %v1412_v41, %s10531_s27  ;;  %v10760_v10 = vld.sshfl [vmem:[#allocation1 + $0x38] sm:$0xff pattern:$0x75316420]  ;;  %v10762_v11 = vld.sshfl [vmem:[#allocation1 + $0x30] sm:$0xff pattern:$0x75316420] }
  0x5c   : > { %2321 = vst [vmem:[#allocation1 + $0x30] ss:$2 sm:$0xff] %v10643_v3 }
  0x61   : > { %1426 = vrot.lane.b32.xlu1 %v1414_v45, %s10531_s27 }
  0x62   : > { %1424 = vrot.lane.b32.xlu0 %v1413_v38, %s10531_s27 }
  0x63   : > { %1428 = vrot.lane.b32.xlu2 %v1415_v42, %s10531_s27 }
  0x69   : > { %1432 = vrot.lane.b32.xlu1 %v1417_v39, %s10531_s27 }
  0x6a   : > { %1430 = vrot.lane.b32.xlu0 %v1416_v40, %s10531_s27  ;;  %v2323_v40 = vld.sshfl [vmem:[#allocation1 + $0x8] sm:$0xff pattern:$0x75316420] }
  0x6b   : > { %1646 = vrot.lane.b32.xlu2 %v1638_v47, %s10532_s28  ;;  %v9325_v47 = vld [vmem:[%s13557_s1 + $0x18] sm:$0xff] }
  0x71   : > { %1650 = vrot.lane.b32.xlu1 %v1640_v43, %s10532_s28 }
  0x72   : > { %1648 = vrot.lane.b32.xlu0 %v1639_v46, %s10532_s28 }
  0x73   : > { %1652 = vrot.lane.b32.xlu2 %v1641_v44, %s10532_s28 }
  0x75   : > { %v555_v56 = vpop.permute.xlu2 %554 }
  0x79   : > { %1656 = vrot.lane.b32.xlu1 %v1643_v48, %s10532_s28  ;;  %v2327_v48 = vld.sshfl [vmem:[#allocation1 + $0x28] sm:$0xff pattern:$0x75316420] }
  0x7a   : > { %1654 = vrot.lane.b32.xlu0 %v1642_v49, %s10532_s28  ;;  %v2326_v49 = vld.sshfl [vmem:[#allocation1 + $0x20] sm:$0xff pattern:$0x75316420] }
  0x7b   : > { %1658 = vrot.lane.b32.xlu2 %v1644_v52, %s10532_s28 }
  0x7d   : > { %v557_v61 = vpop.permute.xlu2 %556 }
  0x7e   : > { %v567_v63 = vsel %vm562_vm0, %v555_v56, %v557_v61 }
  0x7f   : > { %9284 = vmatpush.msk.msra.mxu0 %vm574_vm1, %v567_v63 }
  0x80   : > { %9285 = vmatmul.msk.f32.vlgmr.msra.gmra.mxu0 %vm570_vm2, %v10734_v62 }
  0x81   : > { %1874 = vrot.lane.b32.xlu1 %v1866_v54, %s10533_s16  ;;  %9292 = vmatpush.msk.msrb.mxu0 %vm574_vm1, %v10662_v14  ;;  %v2097_v14 = vld.sshfl [vmem:[#allocation1 + $0x18] sm:$0xff pattern:$0x75316420] }
  0x82   : > { %1660 = vrot.lane.b32.xlu0 %v1645_v53, %s10532_s28  ;;  %2317 = vst [vmem:[#allocation1 + $0x10] ss:$2 sm:$0xff] %v10636_v0 }
  0x83   : > { %9300 = vmatpush.msk.msra.mxu0 %vm574_vm1, %v10673_v18  ;;  %1876 = vrot.lane.b32.xlu2 %v1867_v55, %s10533_s16 }
  0x85   : > { %v10752_v6 = vpop.permute.xlu2 %962 }
  0x88   : > { %9293 = vmatmul.msk.f32.vlgmr.msrb.gmra.mxu0 %vm570_vm2, %v10750_v5 }
  0x89   : > { %1880 = vrot.lane.b32.xlu1 %v1869_v51, %s10533_s16  ;;  %v2324_v39 = vld.sshfl [vmem:[#allocation1 + $0x10] sm:$0xff pattern:$0x75316420]  ;;  %v2325_v41 = vld.sshfl [vmem:[#allocation1 + $0x18] sm:$0xff pattern:$0x75316420] }
  0x8a   : > { %1878 = vrot.lane.b32.xlu0 %v1868_v50, %s10533_s16  ;;  %v2328_v50 = vld.sshfl [vmem:[#allocation1 + $0x30] sm:$0xff pattern:$0x75316420] }
  0x8b   : > { %v551_v7 = vpop.permute.xlu1 %550  ;;  %1882 = vrot.lane.b32.xlu2 %v1870_v60, %s10533_s16 }
  0x8c   : > { %v547_v9 = vpop.permute.xlu0 %546 }
  0x8d   : > { %v10764_v18 = vpop.permute.xlu2 %968 }
  0x90   : > { %9301 = vmatmul.msk.f32.vlgmr.msra.gmra.mxu0 %vm570_vm2, %v10750_v5 }
  0x91   : > { %1886 = vrot.lane.b32.xlu1 %v1872_v1, %s10533_s16 }
  0x92   : > { %1884 = vrot.lane.b32.xlu0 %v1871_v57, %s10533_s16  ;;  %v2329_v57 = vld.sshfl [vmem:[#allocation1 + $0x38] sm:$0xff pattern:$0x75316420] }
  0x93   : > { %v553_v20 = vpop.permute.xlu1 %552  ;;  %1888 = vrot.lane.b32.xlu2 %v1873_v4, %s10533_s16 }
  0x94   : > { %v549_v23 = vpop.permute.xlu0 %548  ;;  %v566_v24 = vsel %vm562_vm0, %v553_v20, %v555_v56  ;;  %v565_v25 = vsel %vm562_vm0, %v551_v7, %v553_v20 }
  0x95   : > { %v563_v3 = vsel %vm562_vm0, %v547_v9, %v549_v23  ;;  %v564_v0 = vsel %vm562_vm0, %v549_v23, %v551_v7  ;;  %9282 = vmatpush.msk.msra.mxu3 %vm574_vm1, %v566_v24  ;;  %v10779_v26 = vpop.permute.xlu2 %974  ;;  %v9342_v7 = vld [vmem:[%s13557_s1 + $0x20] sm:$0xff] }
  0x96   : > { %9276 = vmatpush.msk.msra.mxu2 %vm574_vm1, %v563_v3  ;;  %9278 = vmatpush.msk.msra.mxu1 %vm574_vm1, %v564_v0 }
  0x97   : > { %9277 = vmatmul.msk.f32.vlgmr.msra.gmra.mxu2 %vm570_vm2, %v10734_v62  ;;  %9279 = vmatmul.msk.f32.vlgmr.msra.gmra.mxu1 %vm570_vm2, %v10734_v62 }
  0x98   : > { %9280 = vmatpush.msk.msrb.mxu2 %vm574_vm1, %v565_v25  ;;  %9283 = vmatmul.msk.f32.vlgmr.msra.gmra.mxu3 %vm570_vm2, %v10734_v62 }
  0x99   : > { %2104 = vrot.lane.b32.xlu1 %v2095_v58, %s10534_s22 }
  0x9a   : > { %2102 = vrot.lane.b32.xlu0 %v2094_v59, %s10534_s22 }
  0x9b   : > { %v561_v2 = vpop.permute.xlu1 %560  ;;  %2106 = vrot.lane.b32.xlu2 %v2096_v8, %s10534_s22 }
  0x9c   : > { %v559_v27 = vpop.permute.xlu0 %558  ;;  %9290 = vmatpush.msk.msrb.mxu3 %vm574_vm1, %v561_v2 }
  0x9d   : > { %v569_v28 = vsel %vm562_vm0, %v559_v27, %v561_v2  ;;  %v568_v29 = vsel %vm562_vm0, %v557_v61, %v559_v27  ;;  %v10798_v30 = vpop.permute.xlu2 %1192  ;;  %v9359_v2 = vld [vmem:[%s13557_s1 + $0x28] sm:$0xff] }
  0x9e   : > { %9298 = vmatpush.msk.msra.mxu3 %vm574_vm1, %v10657_v13  ;;  %9286 = vmatpush.msk.msrb.mxu1 %vm574_vm1, %v568_v29 }
  0x9f   : > { %9288 = vmatpush.msk.msra.mxu2 %vm574_vm1, %v569_v28  ;;  %9287 = vmatmul.msk.f32.vlgmr.msrb.gmra.mxu1 %vm570_vm2, %v10734_v62 }
  0xa0   : > { %9281 = vmatmul.msk.f32.vlgmr.msrb.gmra.mxu2 %vm570_vm2, %v10734_v62  ;;  %9291 = vmatmul.msk.f32.vlgmr.msrb.gmra.mxu3 %vm570_vm2, %v10734_v62 }
  0xa1   : > { %9294 = vmatpush.msk.msra.mxu1 %vm574_vm1, %v10664_v15  ;;  %2110 = vrot.lane.b32.xlu1 %v2098_v21, %s10534_s22 }
  0xa2   : > { %2108 = vrot.lane.b32.xlu0 %v2097_v14, %s10534_s22  ;;  %9296 = vmatpush.msk.msrb.mxu2 %vm574_vm1, %v10655_v12  ;;  %v2322_v12 = vld.sshfl [vmem:[#allocation1] sm:$0xff pattern:$0x75316420] }
  0xa3   : > { %9302 = vmatpush.msk.msrb.mxu1 %vm574_vm1, %v10675_v19  ;;  %v967_v13 = vpop.permute.xlu1 %966  ;;  %9306 = vmatpush.msk.msrb.mxu3 %vm574_vm1, %v10670_v17  ;;  %v10824_v19 = vld [vmem:[%s13557_s1 + $0x10] sm:$0xff] }
  0xa4   : > { %2112 = vrot.lane.b32.xlu2 %v2099_v22, %s10534_s22  ;;  %v965_v31 = vpop.permute.xlu0 %964  ;;  %v981_v35 = vsel %vm978_vm3, %v967_v13, %v10764_v18 }
  0xa5   : > { %v979_v15 = vsel %vm978_vm3, %v10752_v6, %v965_v31  ;;  %v10826_v32 = vpop.permute.xlu2 %1198  ;;  %v980_v33 = vsel %vm978_vm3, %v965_v31, %v967_v13 }
  0xa6   : > { %9309 = vmatpush.msk.msrb.mxu0 %vm574_vm1, %v979_v15 }
  0xa7   : > { %9295 = vmatmul.msk.f32.vlgmr.msra.gmra.mxu1 %vm570_vm2, %v10750_v5  ;;  %9310 = vmatmul.msk.f32.vlgmr.msrb.gmra.mxu0 %vm570_vm2, %v10824_v19 }
  0xa8   : > { %9289 = vmatmul.msk.f32.vlgmr.msra.gmra.mxu2 %vm570_vm2, %v10734_v62  ;;  %9299 = vmatmul.msk.f32.vlgmr.msra.gmra.mxu3 %vm570_vm2, %v10750_v5 }
  0xa9   : > { %9311 = vmatpush.msk.msra.mxu1 %vm574_vm1, %v980_v33  ;;  %2116 = vrot.lane.b32.xlu1 %v10760_v10, %s10534_s22 }
  0xaa   : > { %2114 = vrot.lane.b32.xlu0 %v10762_v11, %s10534_s22  ;;  %9304 = vmatpush.msk.msra.mxu2 %vm574_vm1, %v10668_v16 }
  0xab   : > { %v973_v17 = vpop.permute.xlu1 %972 }
  0xac   : > { %2330 = vrot.lane.b32.xlu2 %v2322_v12, %s10535_s30  ;;  %v971_v34 = vpop.permute.xlu0 %970  ;;  %v984_v16 = vsel %vm978_vm3, %v973_v17, %v10779_v26 }
  0xad   : > { %v982_v36 = vsel %vm978_vm3, %v10764_v18, %v971_v34  ;;  %v983_v37 = vsel %vm978_vm3, %v971_v34, %v973_v17  ;;  %v1205_v38 = vpop.permute.xlu2 %1204  ;;  %v9376_v34 = vld [vmem:[%s13557_s1 + $0x30] sm:$0xff] }
  0xae   : > { %9315 = vmatpush.msk.msra.mxu3 %vm574_vm1, %v982_v36  ;;  %9317 = vmatpush.msk.msra.mxu0 %vm574_vm1, %v983_v37 }
  0xaf   : > { %9303 = vmatmul.msk.f32.vlgmr.msrb.gmra.mxu1 %vm570_vm2, %v10750_v5  ;;  %9318 = vmatmul.msk.f32.vlgmr.msra.gmra.mxu0 %vm570_vm2, %v10824_v19 }
  0xb0   : > { %9297 = vmatmul.msk.f32.vlgmr.msrb.gmra.mxu2 %vm570_vm2, %v10750_v5  ;;  %9307 = vmatmul.msk.f32.vlgmr.msrb.gmra.mxu3 %vm570_vm2, %v10750_v5 }
  0xb1   : > { %9313 = vmatpush.msk.msrb.mxu2 %vm574_vm1, %v981_v35  ;;  %2334 = vrot.lane.b32.xlu1 %v2324_v39, %s10535_s30 }
  0xb2   : > { %2332 = vrot.lane.b32.xlu0 %v2323_v40, %s10535_s30  ;;  %9319 = vmatpush.msk.msrb.mxu1 %vm574_vm1, %v984_v16 }
  0xb3   : > { %v1191_v42 = vpop.permute.xlu1 %1190 }
  0xb4   : > { %2336 = vrot.lane.b32.xlu2 %v2325_v41, %s10535_s30  ;;  %v977_v43 = vpop.permute.xlu0 %976  ;;  %v1207_v44 = vsel %vm1206_vm4, %v1191_v42, %v10798_v30 }
  0xb5   : > { %v985_v45 = vsel %vm978_vm3, %v10779_v26, %v977_v43  ;;  %9323 = vmatpush.msk.msrb.mxu3 %vm574_vm1, %v977_v43  ;;  %9326 = vmatpush.msk.msrb.mxu0 %vm574_vm1, %v1207_v44  ;;  %v1423_v46 = vpop.permute.xlu2 %1422 }
  0xb7   : > { %9312 = vmatmul.msk.f32.vlgmr.msra.gmra.mxu1 %vm570_vm2, %v10824_v19  ;;  %9327 = vmatmul.msk.f32.vlgmr.msrb.gmra.mxu0 %vm570_vm2, %v9325_v47 }
  0xb8   : > { %9305 = vmatmul.msk.f32.vlgmr.msra.gmra.mxu2 %vm570_vm2, %v10750_v5  ;;  %9316 = vmatmul.msk.f32.vlgmr.msra.gmra.mxu3 %vm570_vm2, %v10824_v19 }
  0xb9   : > { %9321 = vmatpush.msk.msra.mxu2 %vm574_vm1, %v985_v45  ;;  %2340 = vrot.lane.b32.xlu1 %v2327_v48, %s10535_s30 }
  0xba   : > { %2338 = vrot.lane.b32.xlu0 %v2326_v49, %s10535_s30 }
  0xbb   : > { %v1197_v51 = vpop.permute.xlu1 %1196 }
  0xbc   : > { %2342 = vrot.lane.b32.xlu2 %v2328_v50, %s10535_s30  ;;  %v1195_v52 = vpop.permute.xlu0 %1194  ;;  %v1210_v53 = vsel %vm1206_vm4, %v1197_v51, %v10826_v32  ;;  %v9393_v50 = vld [vmem:[%s13557_s1 + $0x38] sm:$0xff] }
  0xbd   : > { %v1208_v54 = vsel %vm1206_vm4, %v10798_v30, %v1195_v52  ;;  %v1209_v55 = vsel %vm1206_vm4, %v1195_v52, %v1197_v51  ;;  %9332 = vmatpush.msk.msra.mxu3 %vm574_vm1, %v1210_v53  ;;  %v1429_v56 = vpop.permute.xlu2 %1428 }
  0xbe   : > { %9328 = vmatpush.msk.msra.mxu1 %vm574_vm1, %v1208_v54 }
  0xbf   : > { %9320 = vmatmul.msk.f32.vlgmr.msrb.gmra.mxu1 %vm570_vm2, %v10824_v19 }
  0xc0   : > { %9314 = vmatmul.msk.f32.vlgmr.msrb.gmra.mxu2 %vm570_vm2, %v10824_v19  ;;  %9324 = vmatmul.msk.f32.vlgmr.msrb.gmra.mxu3 %vm570_vm2, %v10824_v19 }
  0xc1   : > { %9330 = vmatpush.msk.msrb.mxu2 %vm574_vm1, %v1209_v55  ;;  %9340 = vmatpush.msk.msrb.mxu3 %vm574_vm1, %v1205_v38 }
  0xc2   : > { %2344 = vrot.lane.b32.xlu0 %v2329_v57, %s10535_s30 }
  0xc3   : > { %v1203_v58 = vpop.permute.xlu1 %1202 }
  0xc4   : > { %v1201_v59 = vpop.permute.xlu0 %1200  ;;  %v1213_v63 = vsel %vm1206_vm4, %v1203_v58, %v1205_v38 }
  0xc5   : > { %v1211_v60 = vsel %vm1206_vm4, %v10826_v32, %v1201_v59  ;;  %v1212_v61 = vsel %vm1206_vm4, %v1201_v59, %v1203_v58  ;;  %v1647_v62 = vpop.permute.xlu2 %1646  ;;  %v10536_v59 = vmov 0  }
  0xc6   : > { %9334 = vmatpush.msk.msra.mxu0 %vm574_vm1, %v1211_v60  ;;  %9336 = vmatpush.msk.msrb.mxu1 %vm574_vm1, %v1212_v61  ;;  %v2541_v60 = vld [vmem:[%s13558_s2] sm:$0xff] }
  0xc7   : > { %9329 = vmatmul.msk.f32.vlgmr.msra.gmra.mxu1 %vm570_vm2, %v9325_v47  ;;  %9335 = vmatmul.msk.f32.vlgmr.msra.gmra.mxu0 %vm570_vm2, %v9325_v47 }
  0xc8   : > { %9322 = vmatmul.msk.f32.vlgmr.msra.gmra.mxu2 %vm570_vm2, %v10824_v19  ;;  %9333 = vmatmul.msk.f32.vlgmr.msra.gmra.mxu3 %vm570_vm2, %v9325_v47 }
  0xc9   : > { %9338 = vmatpush.msk.msra.mxu2 %vm574_vm1, %v1213_v63  ;;  %9962 = vset.pattern.permute.xlu1 %v10536_v59 }
  0xca   : > { %2544 = vperm.xlu1 %9962, %v2541_v60   ;;  %10108 = vset.pattern.permute.xlu2 %v10536_v59 }
  0xcb   : > { %v1421_v1 = vpop.permute.xlu1 %1420  ;;  %10209 = vset.pattern.permute.xlu0 %v10536_v59 }
  0xcc   : > { %v1436_v4 = vsel %vm1434_vm5, %v1421_v1, %v1423_v46  ;;  %v1419_v5 = vpop.permute.xlu0 %1418 }
  0xcd   : > { %v1435_v6 = vsel %vm1434_vm5, %v1419_v5, %v1421_v1  ;;  %9345 = vmatpush.msk.msra.mxu1 %vm574_vm1, %v1436_v4  ;;  %v1653_v8 = vpop.permute.xlu2 %1652 }
  0xce   : > { %9343 = vmatpush.msk.msrb.mxu0 %vm574_vm1, %v1435_v6 }
  0xcf   : > { %9337 = vmatmul.msk.f32.vlgmr.msrb.gmra.mxu1 %vm570_vm2, %v9325_v47  ;;  %9344 = vmatmul.msk.f32.vlgmr.msrb.gmra.mxu0 %vm570_vm2, %v9342_v7 }
  0xd0   : > { %9331 = vmatmul.msk.f32.vlgmr.msrb.gmra.mxu2 %vm570_vm2, %v9325_v47  ;;  %9341 = vmatmul.msk.f32.vlgmr.msrb.gmra.mxu3 %vm570_vm2, %v9325_v47 }
  0xd3   : > { %v1427_v9 = vpop.permute.xlu1 %1426 }
  0xd4   : > { %v1439_v10 = vsel %vm1434_vm5, %v1427_v9, %v1429_v56  ;;  %v1425_v11 = vpop.permute.xlu0 %1424 }
  0xd5   : > { %v1437_v14 = vsel %vm1434_vm5, %v1423_v46, %v1425_v11  ;;  %v1438_v18 = vsel %vm1434_vm5, %v1425_v11, %v1427_v9  ;;  %9351 = vmatpush.msk.msra.mxu0 %vm574_vm1, %v1439_v10  ;;  %v1659_v20 = vpop.permute.xlu2 %1658 }
  0xd6   : > { %9347 = vmatpush.msk.msrb.mxu2 %vm574_vm1, %v1437_v14  ;;  %9349 = vmatpush.msk.msra.mxu3 %vm574_vm1, %v1438_v18 }
  0xd7   : > { %9346 = vmatmul.msk.f32.vlgmr.msra.gmra.mxu1 %vm570_vm2, %v9342_v7  ;;  %9352 = vmatmul.msk.f32.vlgmr.msra.gmra.mxu0 %vm570_vm2, %v9342_v7 }
  0xd8   : > { %9339 = vmatmul.msk.f32.vlgmr.msra.gmra.mxu2 %vm570_vm2, %v9325_v47  ;;  %9350 = vmatmul.msk.f32.vlgmr.msra.gmra.mxu3 %vm570_vm2, %v9342_v7 }
  0xdb   : > { %v1433_v21 = vpop.permute.xlu1 %1432 }
  0xdc   : > { %v1431_v22 = vpop.permute.xlu0 %1430  ;;  %9357 = vmatpush.msk.msrb.mxu3 %vm574_vm1, %v1433_v21 }
  0xdd   : > { %v1440_v23 = vsel %vm1434_vm5, %v1429_v56, %v1431_v22  ;;  %v1441_v24 = vsel %vm1434_vm5, %v1431_v22, %v1433_v21  ;;  %v1877_v0 = vpop.permute.xlu2 %1876  ;;  %v9410_v22 = vld [vmem:[%s13557_s1 + $0x40] sm:$0xff] }
  0xde   : > { %9353 = vmatpush.msk.msrb.mxu1 %vm574_vm1, %v1440_v23  ;;  %9355 = vmatpush.msk.msra.mxu2 %vm574_vm1, %v1441_v24 }
  0xdf   : > { %9354 = vmatmul.msk.f32.vlgmr.msrb.gmra.mxu1 %vm570_vm2, %v9342_v7 }
  0xe0   : > { %9348 = vmatmul.msk.f32.vlgmr.msrb.gmra.mxu2 %vm570_vm2, %v9342_v7  ;;  %9358 = vmatmul.msk.f32.vlgmr.msrb.gmra.mxu3 %vm570_vm2, %v9342_v7 }
  0xe3   : > { %v1651_v3 = vpop.permute.xlu1 %1650 }
  0xe4   : > { %v1649_v25 = vpop.permute.xlu0 %1648  ;;  %v1665_v26 = vsel %vm1662_vm6, %v1651_v3, %v1653_v8 }
  0xe5   : > { %v1663_v27 = vsel %vm1662_vm6, %v1647_v62, %v1649_v25  ;;  %v1664_v28 = vsel %vm1662_vm6, %v1649_v25, %v1651_v3  ;;  %9364 = vmatpush.msk.msrb.mxu2 %vm574_vm1, %v1665_v26  ;;  %v1883_v19 = vpop.permute.xlu2 %1882 }
  0xe6   : > { %9360 = vmatpush.msk.msrb.mxu0 %vm574_vm1, %v1663_v27  ;;  %9362 = vmatpush.msk.msra.mxu1 %vm574_vm1, %v1664_v28 }
  0xe7   : > { %9361 = vmatmul.msk.f32.vlgmr.msrb.gmra.mxu0 %vm570_vm2, %v9359_v2  ;;  %9363 = vmatmul.msk.f32.vlgmr.msra.gmra.mxu1 %vm570_vm2, %v9359_v2 }
  0xe8   : > { %9356 = vmatmul.msk.f32.vlgmr.msra.gmra.mxu2 %vm570_vm2, %v9342_v7 }
  0xeb   : > { %v1657_v29 = vpop.permute.xlu1 %1656 }
  0xec   : > { %v1655_v30 = vpop.permute.xlu0 %1654  ;;  %v1668_v13 = vsel %vm1662_vm6, %v1657_v29, %v1659_v20 }
  0xed   : > { %v1666_v31 = vsel %vm1662_vm6, %v1653_v8, %v1655_v30  ;;  %v1667_v15 = vsel %vm1662_vm6, %v1655_v30, %v1657_v29  ;;  %9370 = vmatpush.msk.msrb.mxu1 %vm574_vm1, %v1668_v13  ;;  %v1889_v35 = vpop.permute.xlu2 %1888 }
  0xee   : > { %9366 = vmatpush.msk.msra.mxu3 %vm574_vm1, %v1666_v31  ;;  %9368 = vmatpush.msk.msra.mxu0 %vm574_vm1, %v1667_v15 }
  0xef   : > { %9367 = vmatmul.msk.f32.vlgmr.msra.gmra.mxu3 %vm570_vm2, %v9359_v2  ;;  %9369 = vmatmul.msk.f32.vlgmr.msra.gmra.mxu0 %vm570_vm2, %v9359_v2 }
  0xf0   : > { %9365 = vmatmul.msk.f32.vlgmr.msrb.gmra.mxu2 %vm570_vm2, %v9359_v2  ;;  %9371 = vmatmul.msk.f32.vlgmr.msrb.gmra.mxu1 %vm570_vm2, %v9359_v2 }
  0xf3   : > { %v1875_v32 = vpop.permute.xlu1 %1874 }
  0xf4   : > { %v1661_v33 = vpop.permute.xlu0 %1660  ;;  %v1891_v12 = vsel %vm1890_vm7, %v1875_v32, %v1877_v0 }
  0xf5   : > { %v1669_v17 = vsel %vm1662_vm6, %v1659_v20, %v1661_v33  ;;  %9374 = vmatpush.msk.msrb.mxu3 %vm574_vm1, %v1661_v33  ;;  %9377 = vmatpush.msk.msrb.mxu0 %vm574_vm1, %v1891_v12  ;;  %v2107_v40 = vpop.permute.xlu2 %2106 }
  0xf6   : > { %9372 = vmatpush.msk.msra.mxu2 %vm574_vm1, %v1669_v17 }
  0xf7   : > { %9375 = vmatmul.msk.f32.vlgmr.msrb.gmra.mxu3 %vm570_vm2, %v9359_v2  ;;  %9378 = vmatmul.msk.f32.vlgmr.msrb.gmra.mxu0 %vm570_vm2, %v9376_v34 }
  0xf8   : > { %9373 = vmatmul.msk.f32.vlgmr.msra.gmra.mxu2 %vm570_vm2, %v9359_v2 }
  0xfb   : > { %v1881_v36 = vpop.permute.xlu1 %1880 }
  0xfc   : > { %v1879_v37 = vpop.permute.xlu0 %1878  ;;  %v1894_v38 = vsel %vm1890_vm7, %v1881_v36, %v1883_v19 }
  0xfd   : > { %v1892_v39 = vsel %vm1890_vm7, %v1877_v0, %v1879_v37  ;;  %v1893_v16 = vsel %vm1890_vm7, %v1879_v37, %v1881_v36  ;;  %9383 = vmatpush.msk.msra.mxu3 %vm574_vm1, %v1894_v38  ;;  %v11016_v61 = vpop.f32.mrf.mxu0 }
  0xfe   : > { %9379 = vmatpush.msk.msra.mxu1 %vm574_vm1, %v1892_v39  ;;  %9381 = vmatpush.msk.msrb.mxu2 %vm574_vm1, %v1893_v16  ;;  %v2113_v47 = vpop.permute.xlu2 %2112 }
  0xff   : > { %9380 = vmatmul.msk.f32.vlgmr.msra.gmra.mxu1 %vm570_vm2, %v9376_v34  ;;  %9384 = vmatmul.msk.f32.vlgmr.msra.gmra.mxu3 %vm570_vm2, %v9376_v34 }
 0x100   : > { %9382 = vmatmul.msk.f32.vlgmr.msrb.gmra.mxu2 %vm570_vm2, %v9376_v34  ;;  %9391 = vmatpush.msk.msrb.mxu3 %vm574_vm1, %v1889_v35 }
 0x103   : > { %v1887_v41 = vpop.permute.xlu1 %1886 }
 0x104   : > { %v1885_v42 = vpop.permute.xlu0 %1884  ;;  %v1897_v43 = vsel %vm1890_vm7, %v1887_v41, %v1889_v35 }
 0x105   : > { %v1895_v44 = vsel %vm1890_vm7, %v1883_v19, %v1885_v42  ;;  %v1896_v45 = vsel %vm1890_vm7, %v1885_v42, %v1887_v41  ;;  %9389 = vmatpush.msk.msra.mxu2 %vm574_vm1, %v1897_v43  ;;  %v11036_v9 = vpop.f32.mrf.mxu0 }
 0x106   : > { %9385 = vmatpush.msk.msra.mxu0 %vm574_vm1, %v1895_v44  ;;  %9387 = vmatpush.msk.msrb.mxu1 %vm574_vm1, %v1896_v45  ;;  %v2331_v58 = vpop.permute.xlu2 %2330 }
 0x107   : > { %9386 = vmatmul.msk.f32.vlgmr.msra.gmra.mxu0 %vm570_vm2, %v9376_v34  ;;  %9388 = vmatmul.msk.f32.vlgmr.msrb.gmra.mxu1 %vm570_vm2, %v9376_v34 }
 0x108   : > { %9390 = vmatmul.msk.f32.vlgmr.msra.gmra.mxu2 %vm570_vm2, %v9376_v34  ;;  %9392 = vmatmul.msk.f32.vlgmr.msrb.gmra.mxu3 %vm570_vm2, %v9376_v34 }
 0x10b   : > { %v2105_v46 = vpop.permute.xlu1 %2104 }
 0x10c   : > { %v2120_v48 = vsel %vm2118_vm8, %v2105_v46, %v2107_v40  ;;  %v2103_v49 = vpop.permute.xlu0 %2102 }
 0x10d   : > { %v2119_v51 = vsel %vm2118_vm8, %v2103_v49, %v2105_v46  ;;  %9396 = vmatpush.msk.msra.mxu1 %vm574_vm1, %v2120_v48  ;;  %v11057_v0 = vpop.f32.mrf.mxu0 }
 0x10e   : > { %9394 = vmatpush.msk.msrb.mxu0 %vm574_vm1, %v2119_v51  ;;  %v2337_v8 = vpop.permute.xlu2 %2336 }
 0x10f   : > { %9395 = vmatmul.msk.f32.vlgmr.msrb.gmra.mxu0 %vm570_vm2, %v9393_v50  ;;  %9397 = vmatmul.msk.f32.vlgmr.msra.gmra.mxu1 %vm570_vm2, %v9393_v50 }
 0x113   : > { %v2111_v52 = vpop.permute.xlu1 %2110 }
 0x114   : > { %v11007_v53 = vpop.f32.mrf.mxu1  ;;  %v2123_v54 = vsel %vm2118_vm8, %v2111_v52, %v2113_v47  ;;  %v2109_v55 = vpop.permute.xlu0 %2108 }
 0x115   : > { %v2121_v56 = vsel %vm2118_vm8, %v2107_v40, %v2109_v55  ;;  %v2122_v57 = vsel %vm2118_vm8, %v2109_v55, %v2111_v52  ;;  %9402 = vmatpush.msk.msra.mxu0 %vm574_vm1, %v2123_v54 }
 0x116   : > { %9398 = vmatpush.msk.msrb.mxu2 %vm574_vm1, %v2121_v56  ;;  %9400 = vmatpush.msk.msra.mxu3 %vm574_vm1, %v2122_v57  ;;  %v2343_v3 = vpop.permute.xlu2 %2342 }
 0x117   : > { %9399 = vmatmul.msk.f32.vlgmr.msrb.gmra.mxu2 %vm570_vm2, %v9393_v50  ;;  %9401 = vmatmul.msk.f32.vlgmr.msra.gmra.mxu3 %vm570_vm2, %v9393_v50 }
 0x118   : > { %9403 = vmatmul.msk.f32.vlgmr.msra.gmra.mxu0 %vm570_vm2, %v9393_v50 }
 0x11a   : > { %v11023_v62 = vpop.f32.mrf.mxu2 }
 0x11b   : > { %v11025_v63 = vpop.f32.mrf.mxu3  ;;  %v2117_v1 = vpop.permute.xlu1 %2116 }
 0x11c   : > { %v11027_v4 = vpop.f32.mrf.mxu1  ;;  %v2115_v5 = vpop.permute.xlu0 %2114  ;;  %9408 = vmatpush.msk.msrb.mxu3 %vm574_vm1, %v2117_v1 }
 0x11d   : > { %v2124_v6 = vsel %vm2118_vm8, %v2113_v47, %v2115_v5  ;;  %v2125_v7 = vsel %vm2118_vm8, %v2115_v5, %v2117_v1 }
 0x11e   : > { %9404 = vmatpush.msk.msrb.mxu1 %vm574_vm1, %v2124_v6  ;;  %9406 = vmatpush.msk.msra.mxu2 %vm574_vm1, %v2125_v7 }
 0x11f   : > { %9405 = vmatmul.msk.f32.vlgmr.msrb.gmra.mxu1 %vm570_vm2, %v9393_v50  ;;  %9407 = vmatmul.msk.f32.vlgmr.msra.gmra.mxu2 %vm570_vm2, %v9393_v50 }
 0x120   : > { %9409 = vmatmul.msk.f32.vlgmr.msrb.gmra.mxu3 %vm570_vm2, %v9393_v50 }
 0x123   : > { %v11039_v10 = vpop.f32.mrf.mxu2  ;;  %v11041_v11 = vpop.f32.mrf.mxu3 }
 0x124   : > { %13572 = vst [vmem:[#allocation2_spill] sm:$0xff] %v11041_v11  ;;  %v2335_v14 = vpop.permute.xlu1 %2334  ;;  %v11043_v18 = vpop.f32.mrf.mxu1 }
 0x125   : > { %v2333_v20 = vpop.permute.xlu0 %2332  ;;  %v2349_v21 = vsel %vm2346_vm9, %v2335_v14, %v2337_v8  ;;  %v1022_v15 = vpop.f32.mrf.mxu0 }
 0x126   : > { %v2347_v23 = vsel %vm2346_vm9, %v2331_v58, %v2333_v20  ;;  %v2348_v24 = vsel %vm2346_vm9, %v2333_v20, %v2335_v14  ;;  %9415 = vmatpush.msk.msrb.mxu2 %vm574_vm1, %v2349_v21 }
 0x127   : > { %9411 = vmatpush.msk.msrb.mxu0 %vm574_vm1, %v2347_v23  ;;  %9413 = vmatpush.msk.msra.mxu1 %vm574_vm1, %v2348_v24 }
 0x128   : > { %9412 = vmatmul.msk.f32.vlgmr.msrb.gmra.mxu0 %vm570_vm2, %v9410_v22  ;;  %9414 = vmatmul.msk.f32.vlgmr.msra.gmra.mxu1 %vm570_vm2, %v9410_v22 }
 0x129   : > { %9416 = vmatmul.msk.f32.vlgmr.msrb.gmra.mxu2 %vm570_vm2, %v9410_v22 }
 0x12b   : > { %v11059_v25 = vpop.f32.mrf.mxu2  ;;  %v11061_v2 = vpop.f32.mrf.mxu3 }
 0x12c   : > { %v2341_v26 = vpop.permute.xlu1 %2340  ;;  %v11064_v29 = vpop.f32.mrf.mxu1 }
 0x12d   : > { %v2339_v27 = vpop.permute.xlu0 %2338  ;;  %v2352_v28 = vsel %vm2346_vm9, %v2341_v26, %v2343_v3  ;;  %v1102_v34 = vpop.f32.mrf.mxu0 }
 0x12e   : > { %v2350_v30 = vsel %vm2346_vm9, %v2337_v8, %v2339_v27  ;;  %v2351_v13 = vsel %vm2346_vm9, %v2339_v27, %v2341_v26  ;;  %9421 = vmatpush.msk.msrb.mxu1 %vm574_vm1, %v2352_v28  ;;  %v803_v26 = vadd.f32 %v11036_v9, %v11023_v62 }
 0x12f   : > { %9417 = vmatpush.msk.msra.mxu3 %vm574_vm1, %v2350_v30  ;;  %9419 = vmatpush.msk.msra.mxu0 %vm574_vm1, %v2351_v13  ;;  %v883_v13 = vadd.f32 %v11057_v0, %v11016_v61 }
 0x130   : > { %9418 = vmatmul.msk.f32.vlgmr.msra.gmra.mxu3 %vm570_vm2, %v9410_v22  ;;  %9420 = vmatmul.msk.f32.vlgmr.msra.gmra.mxu0 %vm570_vm2, %v9410_v22 }
 0x131   : > { %9422 = vmatmul.msk.f32.vlgmr.msrb.gmra.mxu1 %vm570_vm2, %v9410_v22 }
 0x133   : > { %v842_v31 = vpop.f32.mrf.mxu2  ;;  %v11076_v33 = vpop.f32.mrf.mxu3 }
 0x134   : > { %13573 = vst [vmem:[#allocation3_spill] sm:$0xff] %v11076_v33  ;;  %v1042_v12 = vpop.f32.mrf.mxu1 }
 0x135   : > { %v2345_v19 = vpop.permute.xlu0 %2344  ;;  %v1250_v38 = vpop.f32.mrf.mxu0 }
 0x136   : > { %v2353_v32 = vsel %vm2346_vm9, %v2343_v3, %v2345_v19  ;;  %9425 = vmatpush.msk.msrb.mxu3 %vm574_vm1, %v2345_v19  ;;  %v1165_v19 = vadd.f32 %v1022_v15, %v803_v26 }
 0x137   : > { %9423 = vmatpush.msk.msra.mxu2 %vm574_vm1, %v2353_v32  ;;  %v823_v32 = vadd.f32 %v11043_v18, %v11007_v53  ;;  %vm9138_vm1 = vcmask 7168  }
 0x138   : > { %9424 = vmatmul.msk.f32.vlgmr.msra.gmra.mxu2 %vm570_vm2, %v9410_v22  ;;  %9426 = vmatmul.msk.f32.vlgmr.msrb.gmra.mxu3 %vm570_vm2, %v9410_v22 }
 0x139   : > { %v1166_v11 = vadd.f32 %v1042_v12, %v823_v32 }
 0x13b   : > { %v11081_v17 = vpop.f32.mrf.mxu2  ;;  %v1082_v35 = vpop.f32.mrf.mxu3 }
 0x13c   : > { %v11083_v36 = vpop.f32.mrf.mxu1 }
 0x143   : > { %v1062_v37 = vpop.f32.mrf.mxu2  ;;  %v11085_v39 = vpop.f32.mrf.mxu3 }
 0x144   : > { %13574 = vst [vmem:[#allocation4_spill] sm:$0xff] %v11085_v39  ;;  %v1270_v40 = vpop.f32.mrf.mxu1  ;;  %v1330_v41 = vpop.f32.mrf.mxu0  ;;  %v1169_v39 = vadd.f32 %v1102_v34, %v883_v13 }
 0x145   : > { %v1394_v26 = vadd.f32 %v1270_v40, %v1166_v11 }
 0x14b   : > { %v11087_v16 = vpop.f32.mrf.mxu2  ;;  %v1310_v43 = vpop.f32.mrf.mxu3 }
 0x14c   : > { %v11089_v44 = vpop.f32.mrf.mxu1  ;;  %v1478_v45 = vpop.f32.mrf.mxu0 }
 0x153   : > { %v1290_v42 = vpop.f32.mrf.mxu2  ;;  %v11093_v47 = vpop.f32.mrf.mxu3 }
 0x154   : > { %13575 = vst [vmem:[#allocation5_spill] sm:$0xff] %v11093_v47  ;;  %v1498_v48 = vpop.f32.mrf.mxu1  ;;  %v1558_v50 = vpop.f32.mrf.mxu0 }
 0x15b   : > { %v11091_v46 = vpop.f32.mrf.mxu2  ;;  %v1538_v51 = vpop.f32.mrf.mxu3 }
 0x15c   : > { %v11095_v52 = vpop.f32.mrf.mxu1 }
 0x163   : > { %v1518_v49 = vpop.f32.mrf.mxu2  ;;  %v11099_v56 = vpop.f32.mrf.mxu3 }
 0x164   : > { %v1706_v55 = vpop.f32.mrf.mxu0  ;;  %13576 = vst [vmem:[#allocation6_spill] sm:$0xff] %v11099_v56  ;;  %v1726_v57 = vpop.f32.mrf.mxu1  ;;  %v863_v56 = vadd.f32 %v11061_v2, %v11025_v63 }
 0x166   : > { %v1168_v0 = vadd.f32 %v1082_v35, %v863_v56  ;;  %v11128_v35 = vpop.permute.xlu1 %2544 }
 0x16b   : > { %v11097_v54 = vpop.f32.mrf.mxu2 }
 0x16c   : > { %v1786_v59 = vpop.f32.mrf.mxu0 }
 0x16d   : > { %v11101_v1 = vpop.f32.mrf.mxu1 }
 0x172   : > { %v1766_v60 = vpop.f32.mrf.mxu3 }
 0x173   : > { %v1746_v58 = vpop.f32.mrf.mxu2 }
 0x174   : > { %v1934_v6 = vpop.f32.mrf.mxu0 }
 0x17a   : > { %v11105_v7 = vpop.f32.mrf.mxu3 }
 0x17b   : > { %v11103_v5 = vpop.f32.mrf.mxu2  ;;  %13577 = vst [vmem:[#allocation7_spill] sm:$0xff] %v11105_v7  ;;  %v1393_v7 = vadd.f32 %v1250_v38, %v1165_v19  ;;  %v1622_v19 = vadd.f32 %v1498_v48, %v1394_v26  ;;  %v923_v48 = vadd.f32 %v11081_v17, %v11059_v25 }
 0x17c   : > { %v1954_v8 = vpop.f32.mrf.mxu1 }
 0x17d   : > { %v1621_v33 = vadd.f32 %v1478_v45, %v1393_v7  ;;  %v1850_v45 = vadd.f32 %v1726_v57, %v1622_v19  ;;  %v1171_v57 = vadd.f32 %v11087_v16, %v923_v48 }
 0x17f   : > { %v1849_v61 = vadd.f32 %v1706_v55, %v1621_v33  ;;  %v2078_v11 = vadd.f32 %v1954_v8, %v1850_v45  ;;  %v1399_v25 = vadd.f32 %v11091_v46, %v1171_v57 }
 0x181   : > { %v2077_v38 = vadd.f32 %v1934_v6, %v1849_v61 }
 0x182   : > { %v1994_v21 = vpop.f32.mrf.mxu3 }
 0x183   : > { %v1974_v14 = vpop.f32.mrf.mxu2 }
 0x184   : > { %v2014_v20 = vpop.f32.mrf.mxu0  ;;  %v11107_v22 = vpop.f32.mrf.mxu1 }
 0x185   : > { %13578 = vst [vmem:[#allocation8_spill] sm:$0xff] %v11107_v22  ;;  %v1397_v22 = vadd.f32 %v1330_v41, %v1169_v39 }
 0x187   : > { %v1625_v18 = vadd.f32 %v1558_v50, %v1397_v22  ;;  %v1627_v22 = vadd.f32 %v11097_v54, %v1399_v25 }
 0x189   : > { %v1853_v2 = vadd.f32 %v1786_v59, %v1625_v18  ;;  %v13584_v18 = vld [vmem:[#allocation3_spill] sm:$0xff] }
 0x18b   : > { %v11109_v23 = vpop.f32.mrf.mxu2  ;;  %v11111_v3 = vpop.f32.mrf.mxu3  ;;  %v2081_v12 = vadd.f32 %v2014_v20, %v1853_v2 }
 0x18c   : > { %13579 = vst [vmem:[#allocation9_spill] sm:$0xff] %v11109_v23  ;;  %v2162_v24 = vpop.f32.mrf.mxu0  ;;  %v2182_v27 = vpop.f32.mrf.mxu1 }
 0x18d   : > { %13580 = vst [vmem:[#allocation10_spill] sm:$0xff] %v11111_v3  ;;  %v843_v3 = vadd.f32 %v842_v31, %v11039_v10  ;;  %v2305_v34 = vadd.f32 %v2162_v24, %v2077_v38  ;;  %v903_v10 = vadd.f32 %v11064_v29, %v11027_v4  ;;  %v1396_v31 = vadd.f32 %v1310_v43, %v1168_v0 }
 0x18e   : > { %v2306_v50 = vadd.f32 %v2182_v27, %v2078_v11  ;;  %v13588_v11 = vld [vmem:[#allocation7_spill] sm:$0xff] }
 0x18f   : > { %v1167_v23 = vadd.f32 %v1062_v37, %v843_v3  ;;  %v1624_v39 = vadd.f32 %v1538_v51, %v1396_v31 }
 0x191   : > { %v1395_v53 = vadd.f32 %v1290_v42, %v1167_v23  ;;  %v1852_v4 = vadd.f32 %v1766_v60, %v1624_v39 }
 0x193   : > { %v1623_v63 = vadd.f32 %v1518_v49, %v1395_v53  ;;  %v1170_v49 = vadd.f32 %v11083_v36, %v903_v10  ;;  %v2080_v59 = vadd.f32 %v1994_v21, %v1852_v4  ;;  %v13582_v54 = vld [vmem:[#allocation9_spill] sm:$0xff]  ;;  %v13583_v53 = vld [vmem:[#allocation2_spill] sm:$0xff] }
 0x194   : > { %v943_v38 = vadd.f32 %v13584_v18, %v13583_v53 }
 0x195   : > { %v2242_v30 = vpop.f32.mrf.mxu0  ;;  %v1851_v7 = vadd.f32 %v1746_v58, %v1623_v63  ;;  %v1398_v58 = vadd.f32 %v11089_v44, %v1170_v49 }
 0x196   : > { %v2309_v41 = vadd.f32 %v2242_v30, %v2081_v12 }
 0x197   : > { %v2079_v40 = vadd.f32 %v1974_v14, %v1851_v7  ;;  %v1626_v17 = vadd.f32 %v11095_v52, %v1398_v58  ;;  %v13581_v52 = vld [vmem:[#allocation8_spill] sm:$0xff]  ;;  %v13586_v7 = vld [vmem:[#allocation5_spill] sm:$0xff] }
 0x199   : > { %v1854_v16 = vadd.f32 %v11101_v1, %v1626_v17 }
 0x19a   : > { %v2202_v28 = vpop.f32.mrf.mxu2  ;;  %v2222_v47 = vpop.f32.mrf.mxu3 }
 0x19b   : > { %v2307_v55 = vadd.f32 %v2202_v28, %v2079_v40  ;;  %v2308_v36 = vadd.f32 %v2222_v47, %v2080_v59  ;;  %v1855_v47 = vadd.f32 %v11103_v5, %v1627_v22  ;;  %v2082_v3 = vadd.f32 %v13581_v52, %v1854_v16 }
 0x19c   : > { %v2262_v62 = vpop.f32.mrf.mxu1 }
 0x19d   : > { %v2083_v1 = vadd.f32 %v13582_v54, %v1855_v47  ;;  %v2310_v30 = vadd.f32 %v2262_v62, %v2082_v3 }
 0x1a2   : > { %v11122_v9 = vpop.f32.mrf.mxu2 }
 0x1a3   : > { %v11126_v33 = vpop.f32.mrf.mxu3  ;;  %v2311_v0 = vadd.f32 %v11122_v9, %v2083_v1  ;;  %v13585_v9 = vld [vmem:[#allocation4_spill] sm:$0xff] }
 0x1a5   : > { %v2390_v15 = vpop.f32.mrf.mxu0  ;;  %v2410_v42 = vpop.f32.mrf.mxu1 }
 0x1a6   : > { %v2533_v37 = vadd.f32 %v2390_v15, %v2305_v34  ;;  %v2534_v6 = vadd.f32 %v2410_v42, %v2306_v50  ;;  %v1172_v34 = vadd.f32 %v13585_v9, %v943_v38 }
 0x1a8   : > { %v2547_v51 = vadd.f32 %v11128_v35, %v2533_v37  ;;  %v2548_v44 = vadd.f32 %v11128_v35, %v2534_v6  ;;  %v1400_v12 = vadd.f32 %v13586_v7, %v1172_v34  ;;  %v13587_v37 = vld [vmem:[#allocation6_spill] sm:$0xff] }
 0x1aa   : > { %v11139_v60 = vmax.f32 %v2547_v51, 0.0  ;;  %v11157_v13 = vmax.f32 %v2548_v44, 0.0  ;;  %v1628_v39 = vadd.f32 %v13587_v37, %v1400_v12 }
 0x1ac   : > { %v2430_v29 = vpop.f32.mrf.mxu2  ;;  %v9978_v62 = vpack.i.bf16 %v11157_v13, %v11139_v60  ;;  %v1856_v40 = vadd.f32 %v13588_v11, %v1628_v39 }
 0x1ad   : > { %v2470_v43 = vpop.f32.mrf.mxu0  ;;  %v2535_v8 = vadd.f32 %v2430_v29, %v2307_v55 }
 0x1ae   : > { %v2537_v56 = vadd.f32 %v2470_v43, %v2309_v41  ;;  %v2490_v28 = vpop.f32.mrf.mxu1  ;;  %v13589_v41 = vld [vmem:[#allocation10_spill] sm:$0xff] }
 0x1af   : > { %v2549_v21 = vadd.f32 %v11128_v35, %v2535_v8  ;;  %v2538_v5 = vadd.f32 %v2490_v28, %v2310_v30  ;;  %v2084_v42 = vadd.f32 %v13589_v41, %v1856_v40 }
 0x1b0   : > { %v2551_v14 = vadd.f32 %v11128_v35, %v2537_v56 }
 0x1b1   : > { %v11159_v32 = vmax.f32 %v2549_v21, 0.0  ;;  %v2552_v63 = vadd.f32 %v11128_v35, %v2538_v5  ;;  %v2312_v29 = vadd.f32 %v11126_v33, %v2084_v42 }
 0x1b2   : > { %v11141_v20 = vmax.f32 %v2551_v14, 0.0 }
 0x1b3   : > { %v2450_v23 = vpop.f32.mrf.mxu3  ;;  %v11177_v31 = vmax.f32 %v2552_v63, 0.0  ;;  %v9988_v55 = vpack.i.bf16 %v11159_v32, %v11157_v13 }
 0x1b4   : > { %v2536_v24 = vadd.f32 %v2450_v23, %v2308_v36  ;;  %v11149_v46 = vpack.i.bf16 %v11139_v60, %v11141_v20  ;;  %v9983_v49 = vpack.i.bf16 %v11141_v20, %v11159_v32  ;;  %v9427_v36 = vld [vmem:[%s13559_s3 + $0x8] sm:$0xff] }
 0x1b5   : > { %v10043_v58 = vpack.i.bf16 %v11159_v32, %v11177_v31 }
 0x1b6   : > { %v2550_v27 = vadd.f32 %v11128_v35, %v2536_v24  ;;  %9969 = vrot.lane.b32.xlu0 %v11149_v46, %s10528_s24  ;;  %v11250_v24 = vld [vmem:[%s13559_s3] sm:$0xff] }
 0x1b8   : > { %v11161_v61 = vmax.f32 %v2550_v27, 0.0 }
 0x1ba   : > { %v9963_v15 = vpack.i.bf16 %v11161_v61, %v11159_v32  ;;  %v9998_v51 = vpack.i.bf16 %v11139_v60, %v11161_v61  ;;  %v10038_v57 = vpack.i.bf16 %v11141_v20, %v11161_v61 }
 0x1bb   : > { %v2510_v26 = vpop.f32.mrf.mxu2  ;;  %v2530_v4 = vpop.f32.mrf.mxu3 }
 0x1bc   : > { %v2539_v19 = vadd.f32 %v2510_v26, %v2311_v0  ;;  %9964 = vrot.lane.b32.xlu2 %v9963_v15, %s10528_s24  ;;  %v2540_v43 = vadd.f32 %v2530_v4, %v2312_v29 }
 0x1be   : > { %v2553_v2 = vadd.f32 %v11128_v35, %v2539_v19  ;;  %9979 = vrot.lane.b32.xlu0 %v9978_v62, %s10529_s25  ;;  %v2554_v50 = vadd.f32 %v11128_v35, %v2540_v43 }
 0x1c0   : > { %v11175_v10 = vmax.f32 %v2553_v2, 0.0  ;;  %v2562_v33 = vmax.f32 %v2554_v50, 0.0  ;;  %v9450_v50 = vld [vmem:[%s13559_s3 + $0x18] sm:$0xff] }
 0x1c2   : > { %v9973_v45 = vpack.i.bf16 %v11175_v10, %v11157_v13  ;;  %v9993_v48 = vpack.i.bf16 %v11175_v10, %v11177_v31  ;;  %v10003_v56 = vpack.i.bf16 %v11141_v20, %v2562_v33  ;;  %v10028_v35 = vpack.i.bf16 %v11177_v31, %v2562_v33 }
 0x1c3   : > { %v10058_v59 = vpack.i.bf16 %v2562_v33, %v11175_v10  ;;  %v10063_v6 = vpack.i.bf16 %v2562_v33, %v11161_v61 }
 0x1c4   : > { %9974 = vrot.lane.b32.xlu1 %v9973_v45, %s10528_s24  ;;  %2583 = vrot.lane.b32.xlu2 %v11177_v31, %s10528_s24 }
 0x1c6   : > { %2895 = vrot.lane.b32.xlu0 %v11161_v61, %s10529_s25 }
 0x1cc   : > { %9994 = vrot.lane.b32.xlu2 %v9993_v48, %s10529_s25  ;;  %9984 = vrot.lane.b32.xlu1 %v9983_v49, %s10529_s25 }
 0x1ce   : > { %10014 = vrot.lane.b32.xlu0 %v9993_v48, %s10530_s26 }
 0x1d4   : > { %9989 = vrot.lane.b32.xlu1 %v9988_v55, %s10530_s26  ;;  %9999 = vrot.lane.b32.xlu2 %v9998_v51, %s10530_s26 }
 0x1d6   : > { %10019 = vrot.lane.b32.xlu0 %v11149_v46, %s10531_s27 }
 0x1dc   : > { %10004 = vrot.lane.b32.xlu1 %v10003_v56, %s10530_s26  ;;  %10009 = vrot.lane.b32.xlu2 %v9963_v15, %s10531_s27 }
 0x1de   : > { %10034 = vrot.lane.b32.xlu0 %v9978_v62, %s10532_s28 }
 0x1e4   : > { %10024 = vrot.lane.b32.xlu1 %v9973_v45, %s10531_s27  ;;  %10029 = vrot.lane.b32.xlu2 %v10028_v35, %s10531_s27 }
 0x1e6   : > { %10049 = vrot.lane.b32.xlu0 %v9978_v62, %s10533_s16 }
 0x1ec   : > { %10039 = vrot.lane.b32.xlu1 %v10038_v57, %s10532_s28  ;;  %10044 = vrot.lane.b32.xlu2 %v10043_v58, %s10532_s28 }
 0x1ee   : > { %10074 = vrot.lane.b32.xlu0 %v9993_v48, %s10533_s16 }
 0x1f4   : > { %10054 = vrot.lane.b32.xlu1 %v9983_v49, %s10533_s16  ;;  %10059 = vrot.lane.b32.xlu2 %v10058_v59, %s10532_s28 }
 0x1f6   : > { %10079 = vrot.lane.b32.xlu0 %v9998_v51, %s10534_s22 }
 0x1fc   : > { %10064 = vrot.lane.b32.xlu1 %v10063_v6, %s10533_s16  ;;  %10069 = vrot.lane.b32.xlu2 %v9988_v55, %s10534_s22 }
 0x1fe   : > { %10089 = vrot.lane.b32.xlu0 %v9963_v15, %s10535_s30 }
 0x204   : > { %10094 = vrot.lane.b32.xlu1 %v9993_v48, %s10534_s22  ;;  %10084 = vrot.lane.b32.xlu2 %v10003_v56, %s10534_s22  ;;  %s11515_s22 = scalar_lea.vmem %s13570_s14, %s9940_s21 }
 0x206   : > { %3993 = vrot.lane.b32.xlu0 %v2562_v33, %s10535_s30 }
 0x20c   : > { %10099 = vrot.lane.b32.xlu1 %v11149_v46, %s10535_s30  ;;  %10104 = vrot.lane.b32.xlu2 %v9973_v45, %s10535_s30 }
 0x214   : > { %3989 = vrot.lane.b32.xlu1 %v11177_v31, %s10535_s30 }
 0x216   : > { %v9965_v8 = vpop.permute.xlu2 %9964 }
 0x217   : > { %v9967_v14 = vunpack.i.h.bf16 %v9965_v8  ;;  %v9966_v25 = vunpack.i.l.bf16 %v9965_v8 }
 0x219   : > { %v2589_v17 = vsel %vm562_vm0, %v9966_v25, %v9967_v14 }
 0x21a   : > { %2659 = vmatpush.msrb.mxu2 %v2589_v17 }
 0x21b   : > { %9430 = vmatmul.msk.f32.vlgmr.msrb.gmra.mxu2 %vm2600_vm10, %v9427_v36 }
 0x21e   : > { %v2584_v44 = vpop.permute.xlu2 %2583 }
 0x226   : > { %v11254_v27 = vpop.permute.xlu2 %9994 }
 0x227   : > { %v9996_v26 = vunpack.i.l.bf16 %v11254_v27  ;;  %v9997_v18 = vunpack.i.h.bf16 %v11254_v27  ;;  %v9458_v27 = vld [vmem:[%s13559_s3 + $0x20] sm:$0xff] }
 0x228   : > { %v9970_v22 = vpop.permute.xlu0 %9969 }
 0x229   : > { %v9971_v16 = vunpack.i.l.bf16 %v9970_v22  ;;  %v9972_v47 = vunpack.i.h.bf16 %v9970_v22  ;;  %v2908_v63 = vsel %vm978_vm3, %v9996_v26, %v9997_v18 }
 0x22b   : > { %v2590_v23 = vsel %vm562_vm0, %v9967_v14, %v9971_v16  ;;  %v2591_v0 = vsel %vm562_vm0, %v9971_v16, %v2584_v44 }
 0x22c   : > { %2679 = vmatpush.msra.mxu3 %v2590_v23 }
 0x22d   : > { %9431 = vmatmul.msk.f32.vlgmr.msra.gmra.mxu3 %vm2600_vm10, %v9427_v36 }
 0x22e   : > { %2762 = vmatpush.msrb.mxu3 %v11139_v60  ;;  %v11273_v62 = vpop.permute.xlu2 %9999 }
 0x22f   : > { %v10001_v9 = vunpack.i.l.bf16 %v11273_v62  ;;  %v10002_v49 = vunpack.i.h.bf16 %v11273_v62 }
 0x230   : > { %2842 = vmatpush.msra.mxu3 %v11141_v20  ;;  %v9980_v21 = vpop.permute.xlu0 %9979 }
 0x231   : > { %v9982_v54 = vunpack.i.h.bf16 %v9980_v21  ;;  %v9981_v60 = vunpack.i.l.bf16 %v9980_v21 }
 0x233   : > { %v2903_v5 = vsel %vm978_vm3, %v9981_v60, %v9982_v54 }
 0x235   : > { %9435 = vmatmul.msk.f32.vlgmr.msrb.gmra.mxu3 %vm2600_vm10, %v11250_v24 }
 0x236   : > { %v9975_v46 = vpop.permute.xlu1 %9974  ;;  %v10010_v37 = vpop.permute.xlu2 %10009 }
 0x237   : > { %v9977_v52 = vunpack.i.h.bf16 %v9975_v46  ;;  %v9976_v3 = vunpack.i.l.bf16 %v9975_v46  ;;  %v10012_v55 = vunpack.i.h.bf16 %v10010_v37  ;;  %v10011_v33 = vunpack.i.l.bf16 %v10010_v37 }
 0x238   : > { %v2896_v28 = vpop.permute.xlu0 %2895 }
 0x239   : > { %2739 = vmatpush.msra.mxu2 %v9977_v52  ;;  %v2587_v20 = vsel %vm562_vm0, %v9972_v47, %v9976_v3  ;;  %v2588_v1 = vsel %vm562_vm0, %v9976_v3, %v9966_v25  ;;  %v2592_v30 = vsel %vm562_vm0, %v2584_v44, %v9977_v52  ;;  %v3269_v8 = vsel %vm1434_vm5, %v10011_v33, %v10012_v55 }
 0x23a   : > { %2619 = vmatpush.msrb.mxu0 %v2587_v20  ;;  %2639 = vmatpush.msra.mxu1 %v2588_v1 }
 0x23b   : > { %9434 = vmatmul.msk.f32.vlgmr.msra.gmra.mxu2 %vm2600_vm10, %v9427_v36  ;;  %9428 = vmatmul.msk.f32.vlgmr.msrb.gmra.mxu0 %vm2600_vm10, %v9427_v36 }
 0x23c   : > { %2822 = vmatpush.msrb.mxu2 %v11161_v61  ;;  %9429 = vmatmul.msk.f32.vlgmr.msra.gmra.mxu1 %vm2600_vm10, %v9427_v36 }
 0x23d   : > { %2699 = vmatpush.msra.mxu0 %v2591_v0  ;;  %2719 = vmatpush.msrb.mxu1 %v2592_v30 }
 0x23e   : > { %2934 = vmatpush.msra.mxu2 %v2903_v5  ;;  %v9985_v15 = vpop.permute.xlu1 %9984  ;;  %9439 = vmatmul.msk.f32.vlgmr.msra.gmra.mxu3 %vm2600_vm10, %v11250_v24  ;;  %v10030_v35 = vpop.permute.xlu2 %10029 }
 0x23f   : > { %2782 = vmatpush.msrb.mxu0 %v11157_v13  ;;  %2802 = vmatpush.msra.mxu1 %v11159_v32  ;;  %v9987_v61 = vunpack.i.h.bf16 %v9985_v15  ;;  %v9986_v53 = vunpack.i.l.bf16 %v9985_v15  ;;  %v11284_v32 = vld [vmem:[%s13559_s3 + $0x10] sm:$0xff]  ;;  %v10031_v23 = vunpack.i.l.bf16 %v10030_v35 }
 0x240   : > { %v11278_v13 = vpop.permute.xlu0 %10014 }
 0x241   : > { %v2904_v38 = vsel %vm978_vm3, %v9982_v54, %v9986_v53  ;;  %v2907_v19 = vsel %vm978_vm3, %v9987_v61, %v9996_v26  ;;  %v10017_v40 = vunpack.i.h.bf16 %v11278_v13  ;;  %v10016_v41 = vunpack.i.l.bf16 %v11278_v13  ;;  %v11372_v26 = vld [vmem:[%s13559_s3 + $0x28] sm:$0xff] }
 0x242   : > { %2954 = vmatpush.msrb.mxu3 %v2904_v38 }
 0x243   : > { %9438 = vmatmul.msk.f32.vlgmr.msrb.gmra.mxu2 %vm2600_vm10, %v11250_v24  ;;  %9432 = vmatmul.msk.f32.vlgmr.msra.gmra.mxu0 %vm2600_vm10, %v9427_v36  ;;  %v3090_v29 = vsel %vm1206_vm4, %v10016_v41, %v10017_v40 }
 0x244   : > { %3014 = vmatpush.msrb.mxu2 %v2907_v19  ;;  %9433 = vmatmul.msk.f32.vlgmr.msrb.gmra.mxu1 %vm2600_vm10, %v9427_v36 }
 0x245   : > { %2862 = vmatpush.msra.mxu0 %v11177_v31  ;;  %2882 = vmatpush.msrb.mxu1 %v11175_v10  ;;  %v2905_v10 = vsel %vm978_vm3, %v9986_v53, %v2896_v28  ;;  %v2906_v31 = vsel %vm978_vm3, %v2896_v28, %v9987_v61  ;;  %v10032_v28 = vunpack.i.h.bf16 %v10030_v35 }
 0x246   : > { %3034 = vmatpush.msra.mxu3 %v2908_v63  ;;  %v9990_v2 = vpop.permute.xlu1 %9989  ;;  %v11342_v44 = vpop.permute.xlu2 %10044 }
 0x247   : > { %9444 = vmatmul.msk.f32.vlgmr.msrb.gmra.mxu3 %vm2600_vm10, %v11284_v32  ;;  %v9992_v34 = vunpack.i.h.bf16 %v9990_v2  ;;  %v9991_v45 = vunpack.i.l.bf16 %v9990_v2  ;;  %v10046_v54 = vunpack.i.l.bf16 %v11342_v44  ;;  %v10047_v62 = vunpack.i.h.bf16 %v11342_v44 }
 0x248   : > { %v11302_v39 = vpop.permute.xlu0 %10019 }
 0x249   : > { %v3086_v7 = vsel %vm1206_vm4, %v9991_v45, %v9992_v34  ;;  %v3087_v12 = vsel %vm1206_vm4, %v9992_v34, %v10001_v9  ;;  %v10021_v4 = vunpack.i.l.bf16 %v11302_v39  ;;  %v3085_v43 = vsel %vm1206_vm4, %v10002_v49, %v9991_v45 }
 0x24a   : > { %3157 = vmatpush.msrb.mxu3 %v3087_v12  ;;  %v10022_v21 = vunpack.i.h.bf16 %v11302_v39 }
 0x24b   : > { %9443 = vmatmul.msk.f32.vlgmr.msra.gmra.mxu2 %vm2600_vm10, %v11284_v32  ;;  %9436 = vmatmul.msk.f32.vlgmr.msrb.gmra.mxu0 %vm2600_vm10, %v11250_v24  ;;  %v3270_v56 = vsel %vm1434_vm5, %v10012_v55, %v10021_v4  ;;  %v3271_v5 = vsel %vm1434_vm5, %v10021_v4, %v10032_v28 }
 0x24c   : > { %3137 = vmatpush.msra.mxu2 %v3086_v7  ;;  %9437 = vmatmul.msk.f32.vlgmr.msra.gmra.mxu1 %vm2600_vm10, %v11250_v24 }
 0x24d   : > { %2974 = vmatpush.msrb.mxu0 %v2905_v10  ;;  %2994 = vmatpush.msra.mxu1 %v2906_v31 }
 0x24e   : > { %v10005_v11 = vpop.permute.xlu1 %10004  ;;  %v10060_v53 = vpop.permute.xlu2 %10059 }
 0x24f   : > { %9448 = vmatmul.msk.f32.vlgmr.msra.gmra.mxu3 %vm2600_vm10, %v11284_v32  ;;  %v10006_v42 = vunpack.i.l.bf16 %v10005_v11  ;;  %v10007_v57 = vunpack.i.h.bf16 %v10005_v11  ;;  %v10062_v12 = vunpack.i.h.bf16 %v10060_v53  ;;  %v10061_v10 = vunpack.i.l.bf16 %v10060_v53 }
 0x250   : > { %v11326_v58 = vpop.permute.xlu0 %10034 }
 0x251   : > { %v3091_v48 = vsel %vm1206_vm4, %v10017_v40, %v10006_v42  ;;  %v10037_v59 = vunpack.i.h.bf16 %v11326_v58  ;;  %v10036_v6 = vunpack.i.l.bf16 %v11326_v58  ;;  %v3088_v14 = vsel %vm1206_vm4, %v10001_v9, %v10007_v57  ;;  %v11411_v42 = vld [vmem:[%s13559_s3 + $0x30] sm:$0xff] }
 0x252   : > { %3237 = vmatpush.msra.mxu3 %v3091_v48  ;;  %v3089_v25 = vsel %vm1206_vm4, %v10007_v57, %v10016_v41  ;;  %v3454_v40 = vsel %vm1662_vm6, %v10046_v54, %v10061_v10  ;;  %v3455_v41 = vsel %vm1662_vm6, %v10061_v10, %v10062_v12 }
 0x253   : > { %9447 = vmatmul.msk.f32.vlgmr.msrb.gmra.mxu2 %vm2600_vm10, %v11284_v32  ;;  %9440 = vmatmul.msk.f32.vlgmr.msra.gmra.mxu0 %vm2600_vm10, %v11250_v24  ;;  %v3449_v22 = vsel %vm1662_vm6, %v10036_v6, %v10037_v59  ;;  %v3450_v9 = vsel %vm1662_vm6, %v10037_v59, %v10047_v62 }
 0x254   : > { %3217 = vmatpush.msrb.mxu2 %v3090_v29  ;;  %9441 = vmatmul.msk.f32.vlgmr.msrb.gmra.mxu1 %vm2600_vm10, %v11250_v24 }
 0x255   : > { %3054 = vmatpush.msra.mxu0 %v9997_v18  ;;  %3117 = vmatpush.msrb.mxu1 %v3085_v43 }
 0x256   : > { %v10025_v51 = vpop.permute.xlu1 %10024  ;;  %v10070_v31 = vpop.permute.xlu2 %10069 }
 0x257   : > { %9453 = vmatmul.msk.f32.vlgmr.msrb.gmra.mxu3 %vm2600_vm10, %v9450_v50  ;;  %v10027_v36 = vunpack.i.h.bf16 %v10025_v51  ;;  %v10026_v16 = vunpack.i.l.bf16 %v10025_v51  ;;  %v10072_v48 = vunpack.i.h.bf16 %v10070_v31  ;;  %v10071_v4 = vunpack.i.l.bf16 %v10070_v31 }
 0x258   : > { %3359 = vmatpush.msrb.mxu3 %v3270_v56  ;;  %v10050_v47 = vpop.permute.xlu0 %10049 }
 0x259   : > { %v3273_v46 = vsel %vm1434_vm5, %v10027_v36, %v10031_v23  ;;  %v3267_v52 = vsel %vm1434_vm5, %v10022_v21, %v10026_v16  ;;  %v3268_v3 = vsel %vm1434_vm5, %v10026_v16, %v10011_v33  ;;  %v3272_v15 = vsel %vm1434_vm5, %v10032_v28, %v10027_v36  ;;  %v9482_v16 = vld [vmem:[%s13559_s3 + $0x38] sm:$0xff] }
 0x25a   : > { %v10052_v61 = vunpack.i.h.bf16 %v10050_v47  ;;  %v10051_v38 = vunpack.i.l.bf16 %v10050_v47  ;;  %v3814_v51 = vsel %vm2118_vm8, %v10071_v4, %v10072_v48 }
 0x25b   : > { %9452 = vmatmul.msk.f32.vlgmr.msra.gmra.mxu2 %vm2600_vm10, %v9450_v50  ;;  %9445 = vmatmul.msk.f32.vlgmr.msrb.gmra.mxu0 %vm2600_vm10, %v11284_v32 }
 0x25c   : > { %3339 = vmatpush.msra.mxu2 %v3269_v8  ;;  %9446 = vmatmul.msk.f32.vlgmr.msra.gmra.mxu1 %vm2600_vm10, %v11284_v32  ;;  %v3631_v63 = vsel %vm1890_vm7, %v10051_v38, %v10052_v61 }
 0x25d   : > { %3177 = vmatpush.msrb.mxu0 %v3088_v14  ;;  %3197 = vmatpush.msra.mxu1 %v3089_v25 }
 0x25e   : > { %v10040_v17 = vpop.permute.xlu1 %10039 }
 0x25f   : > { %9457 = vmatmul.msk.f32.vlgmr.msra.gmra.mxu3 %vm2600_vm10, %v9450_v50  ;;  %v10042_v24 = vunpack.i.h.bf16 %v10040_v17  ;;  %v10041_v60 = vunpack.i.l.bf16 %v10040_v17 }
 0x260   : > { %3481 = vmatpush.msra.mxu3 %v3449_v22  ;;  %v11374_v18 = vpop.permute.xlu0 %10074 }
 0x261   : > { %v3453_v20 = vsel %vm1662_vm6, %v10042_v24, %v10046_v54  ;;  %v3452_v0 = vsel %vm1662_vm6, %v10041_v60, %v10042_v24  ;;  %v10077_v13 = vunpack.i.h.bf16 %v11374_v18  ;;  %v3451_v34 = vsel %vm1662_vm6, %v10047_v62, %v10041_v60 }
 0x263   : > { %9456 = vmatmul.msk.f32.vlgmr.msrb.gmra.mxu2 %vm2600_vm10, %v9450_v50  ;;  %9449 = vmatmul.msk.f32.vlgmr.msra.gmra.mxu0 %vm2600_vm10, %v11284_v32  ;;  %v10076_v32 = vunpack.i.l.bf16 %v11374_v18 }
 0x264   : > { %3419 = vmatpush.msrb.mxu2 %v3273_v46  ;;  %9451 = vmatmul.msk.f32.vlgmr.msrb.gmra.mxu1 %vm2600_vm10, %v9450_v50 }
 0x265   : > { %3299 = vmatpush.msra.mxu0 %v3267_v52  ;;  %3319 = vmatpush.msrb.mxu1 %v3268_v3  ;;  %v3636_v7 = vsel %vm1890_vm7, %v10076_v32, %v10077_v13 }
 0x266   : > { %v11358_v1 = vpop.permute.xlu1 %10054 }
 0x267   : > { %9462 = vmatmul.msk.f32.vlgmr.msrb.gmra.mxu3 %vm2600_vm10, %v9458_v27  ;;  %v10056_v30 = vunpack.i.l.bf16 %v11358_v1  ;;  %v10057_v45 = vunpack.i.h.bf16 %v11358_v1 }
 0x268   : > { %3561 = vmatpush.msrb.mxu3 %v3453_v20  ;;  %v11398_v37 = vpop.permute.xlu0 %10079 }
 0x269   : > { %v3632_v19 = vsel %vm1890_vm7, %v10052_v61, %v10056_v30  ;;  %v10081_v39 = vunpack.i.l.bf16 %v11398_v37  ;;  %v3635_v11 = vsel %vm1890_vm7, %v10057_v45, %v10076_v32  ;;  %v10082_v59 = vunpack.i.h.bf16 %v11398_v37  ;;  %v4159_v61 = vld [vmem:[%s13560_s4] sm:$0xff] }
 0x26a   : > { %4162 = vperm.xlu2 %10108, %v4159_v61  }
 0x26b   : > { %9461 = vmatmul.msk.f32.vlgmr.msra.gmra.mxu2 %vm2600_vm10, %v9458_v27  ;;  %9454 = vmatmul.msk.f32.vlgmr.msrb.gmra.mxu0 %vm2600_vm10, %v9450_v50  ;;  %v3815_v29 = vsel %vm2118_vm8, %v10072_v48, %v10081_v39  ;;  %v3813_v22 = vsel %vm2118_vm8, %v10082_v59, %v10071_v4 }
 0x26c   : > { %3541 = vmatpush.msra.mxu2 %v3452_v0  ;;  %9455 = vmatmul.msk.f32.vlgmr.msra.gmra.mxu1 %vm2600_vm10, %v9450_v50  ;;  %v10085_v50 = vpop.permute.xlu2 %10084  ;;  %v9490_v0 = vld [vmem:[%s13559_s3 + $0x40] sm:$0xff] }
 0x26d   : > { %3379 = vmatpush.msrb.mxu0 %v3271_v5  ;;  %3399 = vmatpush.msra.mxu1 %v3272_v15  ;;  %v10086_v35 = vunpack.i.l.bf16 %v10085_v50  ;;  %v10087_v24 = vunpack.i.h.bf16 %v10085_v50 }
 0x26e   : > { %v10065_v2 = vpop.permute.xlu1 %10064 }
 0x26f   : > { %9467 = vmatmul.msk.f32.vlgmr.msra.gmra.mxu3 %vm2600_vm10, %v11372_v26  ;;  %v10066_v43 = vunpack.i.l.bf16 %v10065_v2  ;;  %v10067_v6 = vunpack.i.h.bf16 %v10065_v2  ;;  %v3816_v47 = vsel %vm2118_vm8, %v10081_v39, %v10087_v24 }
 0x270   : > { %3683 = vmatpush.msra.mxu3 %v3632_v19  ;;  %v10090_v14 = vpop.permute.xlu0 %10089 }
 0x271   : > { %v3633_v33 = vsel %vm1890_vm7, %v10056_v30, %v10066_v43  ;;  %v3634_v56 = vsel %vm1890_vm7, %v10066_v43, %v10057_v45  ;;  %v3637_v36 = vsel %vm1890_vm7, %v10077_v13, %v10067_v6  ;;  %v10092_v23 = vunpack.i.h.bf16 %v10090_v14 }
 0x272   : > { %v10091_v44 = vunpack.i.l.bf16 %v10090_v14 }
 0x273   : > { %9465 = vmatmul.msk.f32.vlgmr.msrb.gmra.mxu2 %vm2600_vm10, %v9458_v27  ;;  %9459 = vmatmul.msk.f32.vlgmr.msra.gmra.mxu0 %vm2600_vm10, %v9458_v27 }
 0x274   : > { %3663 = vmatpush.msrb.mxu2 %v3631_v63  ;;  %9460 = vmatmul.msk.f32.vlgmr.msrb.gmra.mxu1 %vm2600_vm10, %v9458_v27  ;;  %v3997_v46 = vsel %vm2346_vm9, %v10091_v44, %v10092_v23  ;;  %v10105_v3 = vpop.permute.xlu2 %10104 }
 0x275   : > { %3501 = vmatpush.msra.mxu0 %v3450_v9  ;;  %3521 = vmatpush.msrb.mxu1 %v3451_v34  ;;  %v10107_v60 = vunpack.i.h.bf16 %v10105_v3  ;;  %v10106_v20 = vunpack.i.l.bf16 %v10105_v3 }
 0x276   : > { %v10095_v49 = vpop.permute.xlu1 %10094 }
 0x277   : > { %9471 = vmatmul.msk.f32.vlgmr.msrb.gmra.mxu3 %vm2600_vm10, %v11372_v26  ;;  %v10097_v55 = vunpack.i.h.bf16 %v10095_v49  ;;  %v10096_v57 = vunpack.i.l.bf16 %v10095_v49  ;;  %v3996_v30 = vsel %vm2346_vm9, %v10106_v20, %v10091_v44 }
 0x278   : > { %3763 = vmatpush.msrb.mxu3 %v3636_v7 }
 0x279   : > { %v3819_v58 = vsel %vm2118_vm8, %v10097_v55, %v10086_v35  ;;  %v3818_v17 = vsel %vm2118_vm8, %v10096_v57, %v10097_v55  ;;  %v3817_v52 = vsel %vm2118_vm8, %v10087_v24, %v10096_v57 }
 0x27b   : > { %9470 = vmatmul.msk.f32.vlgmr.msra.gmra.mxu2 %vm2600_vm10, %v11372_v26  ;;  %9463 = vmatmul.msk.f32.vlgmr.msrb.gmra.mxu0 %vm2600_vm10, %v9458_v27 }
 0x27c   : > { %3743 = vmatpush.msra.mxu2 %v3635_v11  ;;  %9464 = vmatmul.msk.f32.vlgmr.msra.gmra.mxu1 %vm2600_vm10, %v9458_v27  ;;  %v3994_v27 = vpop.permute.xlu0 %3993 }
 0x27d   : > { %3581 = vmatpush.msrb.mxu0 %v3454_v40  ;;  %3601 = vmatpush.msra.mxu1 %v3455_v41  ;;  %v4001_v1 = vsel %vm2346_vm9, %v10107_v60, %v3994_v27 }
 0x27e   : > { %v10100_v8 = vpop.permute.xlu1 %10099 }
 0x27f   : > { %9476 = vmatmul.msk.f32.vlgmr.msra.gmra.mxu3 %vm2600_vm10, %v11411_v42  ;;  %v10101_v25 = vunpack.i.l.bf16 %v10100_v8  ;;  %v10102_v54 = vunpack.i.h.bf16 %v10100_v8 }
 0x280   : > { %3885 = vmatpush.msra.mxu3 %v3815_v29 }
 0x281   : > { %v3998_v21 = vsel %vm2346_vm9, %v10092_v23, %v10101_v25  ;;  %v3995_v28 = vsel %vm2346_vm9, %v10102_v54, %v10106_v20 }
 0x283   : > { %9475 = vmatmul.msk.f32.vlgmr.msrb.gmra.mxu2 %vm2600_vm10, %v11411_v42  ;;  %9468 = vmatmul.msk.f32.vlgmr.msra.gmra.mxu0 %vm2600_vm10, %v11372_v26 }
 0x284   : > { %3865 = vmatpush.msrb.mxu2 %v3814_v51  ;;  %9469 = vmatmul.msk.f32.vlgmr.msrb.gmra.mxu1 %vm2600_vm10, %v11372_v26 }
 0x285   : > { %3703 = vmatpush.msra.mxu0 %v3633_v33  ;;  %3723 = vmatpush.msrb.mxu1 %v3634_v56 }
 0x286   : > { %v3990_v5 = vpop.permute.xlu1 %3989 }
 0x287   : > { %9480 = vmatmul.msk.f32.vlgmr.msrb.gmra.mxu3 %vm2600_vm10, %v11411_v42  ;;  %v3999_v15 = vsel %vm2346_vm9, %v10101_v25, %v3990_v5 }
 0x288   : > { %3965 = vmatpush.msrb.mxu3 %v3819_v58 }
 0x28b   : > { %9479 = vmatmul.msk.f32.vlgmr.msra.gmra.mxu2 %vm2600_vm10, %v11411_v42  ;;  %9472 = vmatmul.msk.f32.vlgmr.msrb.gmra.mxu0 %vm2600_vm10, %v11372_v26 }
 0x28c   : > { %3945 = vmatpush.msra.mxu2 %v3818_v17  ;;  %9473 = vmatmul.msk.f32.vlgmr.msra.gmra.mxu1 %vm2600_vm10, %v11372_v26  ;;  %v4000_v26 = vsel %vm2346_vm9, %v3990_v5, %v10107_v60 }
 0x28d   : > { %3783 = vmatpush.msrb.mxu0 %v3637_v36  ;;  %3845 = vmatpush.msra.mxu1 %v3813_v22 }
 0x28f   : > { %9485 = vmatmul.msk.f32.vlgmr.msra.gmra.mxu3 %vm2600_vm10, %v9482_v16 }
 0x290   : > { %4087 = vmatpush.msra.mxu3 %v3998_v21 }
 0x293   : > { %9484 = vmatmul.msk.f32.vlgmr.msrb.gmra.mxu2 %vm2600_vm10, %v9482_v16  ;;  %9477 = vmatmul.msk.f32.vlgmr.msra.gmra.mxu0 %vm2600_vm10, %v11411_v42 }
 0x294   : > { %4067 = vmatpush.msrb.mxu2 %v3997_v46  ;;  %9478 = vmatmul.msk.f32.vlgmr.msrb.gmra.mxu1 %vm2600_vm10, %v11411_v42 }
 0x295   : > { %3905 = vmatpush.msra.mxu0 %v3816_v47  ;;  %3925 = vmatpush.msrb.mxu1 %v3817_v52 }
 0x297   : > { %9489 = vmatmul.msk.f32.vlgmr.msrb.gmra.mxu3 %vm2600_vm10, %v9482_v16 }
 0x29b   : > { %9488 = vmatmul.msk.f32.vlgmr.msra.gmra.mxu2 %vm2600_vm10, %v9482_v16  ;;  %9481 = vmatmul.msk.f32.vlgmr.msrb.gmra.mxu0 %vm2600_vm10, %v11411_v42 }
 0x29c   : > { %4147 = vmatpush.msra.mxu2 %v4001_v1  ;;  %9483 = vmatmul.msk.f32.vlgmr.msra.gmra.mxu1 %vm2600_vm10, %v9482_v16 }
 0x29d   : > { %4027 = vmatpush.msrb.mxu0 %v3995_v28  ;;  %4047 = vmatpush.msra.mxu1 %v3996_v30 }
 0x29e   : > { %v2661_v18 = vpop.f32.mrf.mxu2 }
 0x29f   : > { %9494 = vmatmul.msk.f32.vlgmr.msra.gmra.mxu3 %vm2600_vm10, %v9490_v0 }
 0x2a3   : > { %9493 = vmatmul.msk.f32.vlgmr.msrb.gmra.mxu2 %vm2600_vm10, %v9490_v0  ;;  %9486 = vmatmul.msk.f32.vlgmr.msra.gmra.mxu0 %vm2600_vm10, %v9482_v16 }
 0x2a4   : > { %9487 = vmatmul.msk.f32.vlgmr.msrb.gmra.mxu1 %vm2600_vm10, %v9482_v16  ;;  %4107 = vmatpush.msra.mxu0 %v3999_v15 }
 0x2a5   : > { %4127 = vmatpush.msrb.mxu1 %v4000_v26 }
 0x2ab   : > { %9497 = vmatmul.msk.f32.vlgmr.msra.gmra.mxu2 %vm2600_vm10, %v9490_v0  ;;  %9491 = vmatmul.msk.f32.vlgmr.msrb.gmra.mxu0 %vm2600_vm10, %v9490_v0 }
 0x2ac   : > { %9492 = vmatmul.msk.f32.vlgmr.msra.gmra.mxu1 %vm2600_vm10, %v9490_v0 }
 0x2b0   : > { %v2681_v53 = vpop.f32.mrf.mxu3 }
 0x2b3   : > { %9495 = vmatmul.msk.f32.vlgmr.msra.gmra.mxu0 %vm2600_vm10, %v9490_v0 }
 0x2b4   : > { %9496 = vmatmul.msk.f32.vlgmr.msrb.gmra.mxu1 %vm2600_vm10, %v9490_v0 }
 0x2b8   : > { %v2621_v38 = vpop.f32.mrf.mxu0  ;;  %v2764_v19 = vpop.f32.mrf.mxu3 }
 0x2b9   : > { %v2641_v62 = vpop.f32.mrf.mxu1  ;;  %v2765_v28 = vadd.f32 %v2764_v19, %v2621_v38 }
 0x2be   : > { %v2741_v13 = vpop.f32.mrf.mxu2 }
 0x2c0   : > { %v11480_v32 = vpop.f32.mrf.mxu0 }
 0x2c1   : > { %v11482_v63 = vpop.f32.mrf.mxu1  ;;  %v11484_v2 = vpop.f32.mrf.mxu3 }
 0x2c2   : > { %v2845_v38 = vadd.f32 %v11484_v2, %v11480_v32 }
 0x2c6   : > { %v2824_v9 = vpop.f32.mrf.mxu2 }
 0x2c7   : > { %v2825_v47 = vadd.f32 %v2824_v9, %v2681_v53 }
 0x2c8   : > { %v2784_v34 = vpop.f32.mrf.mxu0 }
 0x2c9   : > { %v2804_v45 = vpop.f32.mrf.mxu1  ;;  %v2785_v20 = vadd.f32 %v2784_v34, %v2641_v62 }
 0x2ca   : > { %v2956_v7 = vpop.f32.mrf.mxu3  ;;  %v2805_v52 = vadd.f32 %v2804_v45, %v2661_v18 }
 0x2cb   : > { %v3060_v61 = vadd.f32 %v2956_v7, %v2785_v20 }
 0x2ce   : > { %v2936_v12 = vpop.f32.mrf.mxu2 }
 0x2cf   : > { %v3059_v5 = vadd.f32 %v2936_v12, %v2765_v28 }
 0x2d0   : > { %v2864_v10 = vpop.f32.mrf.mxu0 }
 0x2d1   : > { %v2884_v31 = vpop.f32.mrf.mxu1  ;;  %v2865_v19 = vadd.f32 %v2864_v10, %v11482_v63 }
 0x2d2   : > { %v11486_v37 = vpop.f32.mrf.mxu3 }
 0x2d6   : > { %v11488_v39 = vpop.f32.mrf.mxu2 }
 0x2d8   : > { %v2976_v11 = vpop.f32.mrf.mxu0 }
 0x2d9   : > { %v2996_v40 = vpop.f32.mrf.mxu1  ;;  %v3061_v54 = vadd.f32 %v2976_v11, %v2805_v52 }
 0x2da   : > { %v3159_v41 = vpop.f32.mrf.mxu3  ;;  %v3062_v3 = vadd.f32 %v2996_v40, %v2825_v47 }
 0x2db   : > { %v3244_v15 = vadd.f32 %v3159_v41, %v3061_v54 }
 0x2de   : > { %v3139_v42 = vpop.f32.mrf.mxu2 }
 0x2e0   : > { %v3056_v48 = vpop.f32.mrf.mxu0 }
 0x2e1   : > { %v3119_v49 = vpop.f32.mrf.mxu1 }
 0x2e2   : > { %v3239_v4 = vpop.f32.mrf.mxu3 }
 0x2e6   : > { %v11490_v29 = vpop.f32.mrf.mxu2 }
 0x2e8   : > { %v3179_v43 = vpop.f32.mrf.mxu0 }
 0x2e9   : > { %v11492_v50 = vpop.f32.mrf.mxu1  ;;  %v3245_v60 = vadd.f32 %v3179_v43, %v3062_v3 }
 0x2ea   : > { %v3361_v55 = vpop.f32.mrf.mxu3 }
 0x2eb   : > { %v3427_v26 = vadd.f32 %v3361_v55, %v3245_v60  ;;  %v3064_v55 = vadd.f32 %v11486_v37, %v2865_v19 }
 0x2ee   : > { %v3341_v51 = vpop.f32.mrf.mxu2 }
 0x2f0   : > { %v3301_v33 = vpop.f32.mrf.mxu0 }
 0x2f1   : > { %v3321_v56 = vpop.f32.mrf.mxu1 }
 0x2f2   : > { %v3483_v35 = vpop.f32.mrf.mxu3 }
 0x2f6   : > { %v3421_v57 = vpop.f32.mrf.mxu2 }
 0x2f8   : > { %v3381_v58 = vpop.f32.mrf.mxu0 }
 0x2f9   : > { %v11494_v59 = vpop.f32.mrf.mxu1 }
 0x2fa   : > { %13590 = vst [vmem:[#allocation8_spill] sm:$0xff] %v11494_v59  ;;  %v11496_v6 = vpop.f32.mrf.mxu3  ;;  %v3243_v59 = vadd.f32 %v3139_v42, %v3060_v61  ;;  %v4163_v42 = vpop.permute.xlu2 %4162 }
 0x2fb   : > { %13591 = vst [vmem:[#allocation9_spill] sm:$0xff] %v11496_v6  ;;  %v3426_v6 = vadd.f32 %v3341_v51, %v3244_v15 }
 0x2fc   : > { %v3425_v62 = vadd.f32 %v3321_v56, %v3243_v59 }
 0x2fe   : > { %v3543_v8 = vpop.f32.mrf.mxu2 }
 0x300   : > { %v3503_v14 = vpop.f32.mrf.mxu0 }
 0x301   : > { %v3523_v25 = vpop.f32.mrf.mxu1  ;;  %v3607_v40 = vadd.f32 %v3503_v14, %v3425_v62 }
 0x302   : > { %v3685_v17 = vpop.f32.mrf.mxu3  ;;  %v3608_v45 = vadd.f32 %v3523_v25, %v3426_v6 }
 0x303   : > { %v3789_v59 = vadd.f32 %v3685_v17, %v3607_v40 }
 0x306   : > { %v3665_v36 = vpop.f32.mrf.mxu2 }
 0x308   : > { %v11498_v22 = vpop.f32.mrf.mxu0 }
 0x309   : > { %13592 = vst [vmem:[#allocation2_spill] sm:$0xff] %v11498_v22  ;;  %v3603_v16 = vpop.f32.mrf.mxu1  ;;  %v3609_v22 = vadd.f32 %v3543_v8, %v3427_v26 }
 0x30a   : > { %v11500_v23 = vpop.f32.mrf.mxu3 }
 0x30b   : > { %13593 = vst [vmem:[#allocation3_spill] sm:$0xff] %v11500_v23  ;;  %v2885_v23 = vadd.f32 %v2884_v31, %v2741_v13  ;;  %v3063_v31 = vadd.f32 %v11488_v39, %v2845_v38 }
 0x30d   : > { %v3065_v18 = vadd.f32 %v3056_v48, %v2885_v23  ;;  %v3246_v32 = vadd.f32 %v11492_v50, %v3063_v31  ;;  %v13595_v50 = vld [vmem:[#allocation8_spill] sm:$0xff] }
 0x30e   : > { %v11502_v44 = vpop.f32.mrf.mxu2 }
 0x30f   : > { %13594 = vst [vmem:[#allocation4_spill] sm:$0xff] %v11502_v44  ;;  %v3242_v44 = vadd.f32 %v3119_v49, %v3059_v5  ;;  %v3248_v48 = vadd.f32 %v3239_v4, %v3065_v18  ;;  %v3428_v56 = vadd.f32 %v3381_v58, %v3246_v32 }
 0x310   : > { %v3705_v21 = vpop.f32.mrf.mxu0 }
 0x311   : > { %v3725_v24 = vpop.f32.mrf.mxu1  ;;  %v3424_v9 = vadd.f32 %v3301_v33, %v3242_v44  ;;  %v3790_v12 = vadd.f32 %v3705_v21, %v3608_v45  ;;  %v3430_v2 = vadd.f32 %v3421_v57, %v3248_v48  ;;  %v3247_v33 = vadd.f32 %v11490_v29, %v3064_v55  ;;  %v13597_v44 = vld [vmem:[#allocation9_spill] sm:$0xff] }
 0x312   : > { %v3887_v46 = vpop.f32.mrf.mxu3  ;;  %v3791_v11 = vadd.f32 %v3725_v24, %v3609_v22  ;;  %v3610_v21 = vadd.f32 %v13597_v44, %v3428_v56  ;;  %v13599_v60 = vld [vmem:[#allocation3_spill] sm:$0xff] }
 0x313   : > { %v3606_v49 = vadd.f32 %v3483_v35, %v3424_v9  ;;  %v3972_v10 = vadd.f32 %v3887_v46, %v3790_v12  ;;  %v3612_v4 = vadd.f32 %v3603_v16, %v3430_v2  ;;  %v3429_v57 = vadd.f32 %v13595_v50, %v3247_v33 }
 0x315   : > { %v3788_v63 = vadd.f32 %v3665_v36, %v3606_v49  ;;  %v13596_v36 = vld [vmem:[#allocation2_spill] sm:$0xff] }
 0x316   : > { %v3867_v27 = vpop.f32.mrf.mxu2  ;;  %v3611_v22 = vadd.f32 %v13596_v36, %v3429_v57  ;;  %v13598_v47 = vld [vmem:[#allocation4_spill] sm:$0xff] }
 0x317   : > { %v3971_v8 = vadd.f32 %v3867_v27, %v3789_v59  ;;  %v3792_v52 = vadd.f32 %v13598_v47, %v3610_v21 }
 0x318   : > { %v3785_v1 = vpop.f32.mrf.mxu0  ;;  %v3793_v20 = vadd.f32 %v13599_v60, %v3611_v22 }
 0x319   : > { %v3847_v30 = vpop.f32.mrf.mxu1  ;;  %v3794_v25 = vadd.f32 %v3785_v1, %v3612_v4 }
 0x31a   : > { %v3967_v0 = vpop.f32.mrf.mxu3  ;;  %v3970_v35 = vadd.f32 %v3847_v30, %v3788_v63 }
 0x31b   : > { %v3976_v3 = vadd.f32 %v3967_v0, %v3794_v25 }
 0x31e   : > { %v3947_v53 = vpop.f32.mrf.mxu2 }
 0x31f   : > { %v3975_v15 = vadd.f32 %v3947_v53, %v3793_v20 }
 0x320   : > { %v3907_v34 = vpop.f32.mrf.mxu0 }
 0x321   : > { %v3973_v7 = vadd.f32 %v3907_v34, %v3791_v11  ;;  %v3927_v13 = vpop.f32.mrf.mxu1 }
 0x322   : > { %v4089_v41 = vpop.f32.mrf.mxu3  ;;  %v3974_v30 = vadd.f32 %v3927_v13, %v3792_v52 }
 0x323   : > { %v4155_v43 = vadd.f32 %v4089_v41, %v3973_v7 }
 0x325   : > { %v4168_v51 = vadd.f32 %v4163_v42, %v4155_v43 }
 0x326   : > { %v4069_v39 = vpop.f32.mrf.mxu2 }
 0x327   : > { %v4154_v37 = vadd.f32 %v4069_v39, %v3972_v10  ;;  %v4175_v6 = vmax.f32 %v4168_v51, 0.0 }
 0x328   : > { %v4029_v14 = vpop.f32.mrf.mxu0 }
 0x329   : > { %v4167_v29 = vadd.f32 %v4163_v42, %v4154_v37  ;;  %v4152_v58 = vadd.f32 %v4029_v14, %v3970_v35  ;;  %v4049_v17 = vpop.f32.mrf.mxu1  ;;  %4182 = vst [vmem:[%s11515_s22 + $0x18] sm:$0xff] %v4175_v6 }
 0x32a   : > { %v4153_v23 = vadd.f32 %v4049_v17, %v3971_v8 }
 0x32b   : > { %v4174_v16 = vmax.f32 %v4167_v29, 0.0  ;;  %v4165_v24 = vadd.f32 %v4163_v42, %v4152_v58 }
 0x32c   : > { %v4166_v46 = vadd.f32 %v4163_v42, %v4153_v23 }
 0x32d   : > { %4181 = vst [vmem:[%s11515_s22 + $0x10] sm:$0xff] %v4174_v16  ;;  %v4172_v27 = vmax.f32 %v4165_v24, 0.0  ;;  %v10114_v54 = vpack.i.bf16 %v4175_v6, %v4174_v16 }
 0x32e   : > { %v4173_v1 = vmax.f32 %v4166_v46, 0.0  ;;  %v4149_v28 = vpop.f32.mrf.mxu2 }
 0x32f   : > { %4179 = vst [vmem:[%s11515_s22] sm:$0xff] %v4172_v27  ;;  %v4158_v5 = vadd.f32 %v4149_v28, %v3976_v3  ;;  %10115 = vrot.lane.b32.xlu1 %v10114_v54, %s10528_s24 }
 0x330   : > { %4180 = vst [vmem:[%s11515_s22 + $0x8] sm:$0xff] %v4173_v1  ;;  %v4109_v26 = vpop.f32.mrf.mxu0  ;;  %v10109_v61 = vpack.i.bf16 %v4173_v1, %v4172_v27 }
 0x331   : > { %v4171_v0 = vadd.f32 %v4163_v42, %v4158_v5  ;;  %v4156_v18 = vadd.f32 %v4109_v26, %v3974_v30  ;;  %v4129_v9 = vpop.f32.mrf.mxu1 }
 0x332   : > { %v4157_v45 = vadd.f32 %v4129_v9, %v3975_v15  ;;  %10110 = vrot.lane.b32.xlu0 %v10109_v61, %s10528_s24  ;;  %v5818_v61 = vld [vmem:[%s13562_s6 + $0x8] sm:$0xff] }
 0x333   : > { %v4169_v11 = vadd.f32 %v4163_v42, %v4156_v18  ;;  %v4178_v38 = vmax.f32 %v4171_v0, 0.0 }
 0x334   : > { %v4170_v19 = vadd.f32 %v4163_v42, %v4157_v45 }
 0x335   : > { %v4176_v62 = vmax.f32 %v4169_v11, 0.0  ;;  %4186 = vst.msk [vmem:[%s11515_s22 + $0x30] sm:$0xff] %vm4185_vm11, %v4178_v38 }
 0x336   : > { %v4177_v34 = vmax.f32 %v4170_v19, 0.0 }
 0x337   : > { %4183 = vst [vmem:[%s11515_s22 + $0x20] sm:$0xff] %v4176_v62 }
 0x338   : > { %4184 = vst [vmem:[%s11515_s22 + $0x28] sm:$0xff] %v4177_v34  ;;  %v10119_v53 = vpack.i.bf16 %v4177_v34, %v4176_v62 }
 0x33a   : > { %10120 = vrot.lane.b32.xlu2 %v10119_v53, %s10528_s24  ;;  %4206 = vrot.lane.b32.xlu0 %v4178_v38, %s10528_s24  ;;  %s10537_s24 = smov 124  }
 0x394   : > { %v10121_v12 = vpop.permute.xlu2 %10120 }
 0x395   : > { %v10123_v7 = vunpack.i.h.bf16 %v10121_v12  ;;  %v10122_v13 = vunpack.i.l.bf16 %v10121_v12 }
 0x397   : > { %v4212_v31 = vsel %vm562_vm0, %v10122_v13, %v10123_v7 }
 0x398   : > { %v4225_v55 = vmax.f32 %v4176_v62, %v4212_v31 }
 0x3a1   : > { %v10116_v40 = vpop.permute.xlu1 %10115 }
 0x3a2   : > { %v10118_v41 = vunpack.i.h.bf16 %v10116_v40  ;;  %v10117_v48 = vunpack.i.l.bf16 %v10116_v40 }
 0x3a4   : > { %v4211_v42 = vsel %vm562_vm0, %v10118_v41, %v10122_v13  ;;  %v10111_v49 = vpop.permute.xlu0 %10110  ;;  %v4210_v43 = vsel %vm562_vm0, %v10117_v48, %v10118_v41  ;;  %v9499_v41 = vld [vmem:[%s13561_s5 + $0x18] sm:$0xff] }
 0x3a5   : > { %v10113_v32 = vunpack.i.h.bf16 %v10111_v49  ;;  %v10112_v2 = vunpack.i.l.bf16 %v10111_v49  ;;  %v4223_v63 = vmax.f32 %v4174_v16, %v4210_v43  ;;  %v4224_v10 = vmax.f32 %v4175_v6, %v4211_v42 }
 0x3a7   : > { %v4209_v51 = vsel %vm562_vm0, %v10113_v32, %v10117_v48  ;;  %v4208_v33 = vsel %vm562_vm0, %v10112_v2, %v10113_v32  ;;  %4239 = vrot.lane.b32.xlu2 %v4223_v63, %s10530_s26  ;;  %v10129_v56 = vpack.i.bf16 %v4225_v55, %v4224_v10 }
 0x3a8   : > { %v4221_v59 = vmax.f32 %v4172_v27, %v4208_v33  ;;  %v4222_v39 = vmax.f32 %v4173_v1, %v4209_v51  ;;  %v4269_v33 = vld [vmem:[%s13561_s5] sm:$0xff] }
 0x3a9   : > { %10130 = vrot.lane.b32.xlu0 %v10129_v56, %s10530_s26 }
 0x3aa   : > { %v10124_v4 = vpack.i.bf16 %v4222_v39, %v4221_v59 }
 0x3ac   : > { %v4207_v35 = vpop.permute.xlu0 %4206  ;;  %10125 = vrot.lane.b32.xlu1 %v10124_v4, %s10530_s26 }
 0x3ad   : > { %v4227_v37 = vmax.f32 %v4178_v38, %v4207_v35  ;;  %v4213_v50 = vsel %vm562_vm0, %v10123_v7, %v4207_v35  ;;  %v9498_v38 = vld [vmem:[%s13561_s5 + $0x10] sm:$0xff]  ;;  %vm8625_vm0 = vcmask 261120  }
 0x3ae   : > { %v4226_v6 = vmax.f32 %v4177_v34, %v4213_v50 }
 0x3af   : > { %4247 = vrot.lane.b32.xlu2 %v4227_v37, %s10530_s26 }
 0x3b4   : > { %4245 = vrot.lane.b32.xlu1 %v4226_v6, %s10530_s26  ;;  %s10538_s26 = smov 60  }
 0x401   : > { %v4240_v57 = vpop.permute.xlu2 %4239 }
 0x409   : > { %v4248_v46 = vpop.permute.xlu2 %4247 }
 0x40a   : > { %v11578_v5 = vmax.f32 %v4227_v37, %v4248_v46 }
 0x41b   : > { %v10131_v8 = vpop.permute.xlu0 %10130 }
 0x41c   : > { %v10133_v58 = vunpack.i.h.bf16 %v10131_v8  ;;  %v10132_v17 = vunpack.i.l.bf16 %v10131_v8 }
 0x41e   : > { %v10126_v14 = vpop.permute.xlu1 %10125  ;;  %v4251_v16 = vsel %vm1206_vm4, %v4240_v57, %v10132_v17  ;;  %v4252_v24 = vsel %vm1206_vm4, %v10132_v17, %v10133_v58  ;;  %v9524_v17 = vld [vmem:[%s13561_s5 + $0x20] sm:$0xff] }
 0x41f   : > { %v10128_v25 = vunpack.i.h.bf16 %v10126_v14  ;;  %v10127_v29 = vunpack.i.l.bf16 %v10126_v14  ;;  %v11558_v27 = vmax.f32 %v4223_v63, %v4251_v16  ;;  %v11560_v54 = vmax.f32 %v4224_v10, %v4252_v24 }
 0x421   : > { %v4250_v36 = vsel %vm1206_vm4, %v10128_v25, %v4240_v57  ;;  %v4249_v22 = vsel %vm1206_vm4, %v10127_v29, %v10128_v25 }
 0x422   : > { %v11547_v23 = vmax.f32 %v4222_v39, %v4250_v36  ;;  %v11549_v44 = vmax.f32 %v4221_v59, %v4249_v22  ;;  %v4270_v39 = vld [vmem:[%s13561_s5 + $0x8] sm:$0xff] }
 0x424   : > { %v10134_v21 = vpack.i.bf16 %v11547_v23, %v11549_v44  ;;  %v10164_v30 = vpack.i.bf16 %v11558_v27, %v11547_v23  ;;  %v10169_v26 = vpack.i.bf16 %v11560_v54, %v11549_v44 }
 0x426   : > { %v4246_v47 = vpop.permute.xlu1 %4245  ;;  %10135 = vrot.lane.b32.xlu0 %v10134_v21, %s10529_s25 }
 0x427   : > { %v4253_v52 = vsel %vm1206_vm4, %v10133_v58, %v4246_v47  ;;  %v4254_v3 = vsel %vm1206_vm4, %v4246_v47, %v4248_v46  ;;  %v9525_v47 = vld [vmem:[%s13561_s5 + $0x28] sm:$0xff] }
 0x428   : > { %v11562_v60 = vmax.f32 %v4225_v55, %v4253_v52  ;;  %v11564_v20 = vmax.f32 %v4226_v6, %v4254_v3 }
 0x42a   : > { %v10144_v1 = vpack.i.bf16 %v11564_v20, %v11558_v27  ;;  %v10139_v28 = vpack.i.bf16 %v11562_v60, %v11560_v54  ;;  %v10174_v15 = vpack.i.bf16 %v11578_v5, %v11564_v20 }
 0x42c   : > { %10145 = vrot.lane.b32.xlu2 %v10144_v1, %s10529_s25  ;;  %10140 = vrot.lane.b32.xlu1 %v10139_v28, %s10529_s25 }
 0x42e   : > { %10150 = vrot.lane.b32.xlu0 %v10134_v21, %s10537_s24 }
 0x434   : > { %10160 = vrot.lane.b32.xlu2 %v10144_v1, %s10537_s24  ;;  %10155 = vrot.lane.b32.xlu1 %v10139_v28, %s10537_s24 }
 0x436   : > { %10165 = vrot.lane.b32.xlu0 %v10164_v30, %s10533_s16 }
 0x43c   : > { %10175 = vrot.lane.b32.xlu2 %v10174_v15, %s10533_s16  ;;  %10170 = vrot.lane.b32.xlu1 %v10169_v26, %s10533_s16 }
 0x43e   : > { %4785 = vrot.lane.b32.xlu0 %v11562_v60, %s10533_s16 }
 0x444   : > { %10185 = vrot.lane.b32.xlu2 %v10139_v28, %s10535_s30  ;;  %10180 = vrot.lane.b32.xlu1 %v10134_v21, %s10535_s30 }
 0x446   : > { %10190 = vrot.lane.b32.xlu0 %v10144_v1, %s10535_s30 }
 0x44c   : > { %4974 = vrot.lane.b32.xlu2 %v11578_v5, %s10535_s30  ;;  %10195 = vrot.lane.b32.xlu1 %v10164_v30, %s10538_s26 }
 0x44e   : > { %10200 = vrot.lane.b32.xlu0 %v10169_v26, %s10538_s26 }
 0x454   : > { %5155 = vrot.lane.b32.xlu2 %v11562_v60, %s10538_s26  ;;  %10205 = vrot.lane.b32.xlu1 %v10174_v15, %s10538_s26 }
 0x456   : > { %5492 = vrot.lane.b32.xlu0 %v11578_v5, %s10529_s25 }
 0x45c   : > { %5826 = vperm.xlu2 %10108, %v5818_v61   ;;  %5656 = vrot.lane.b32.xlu1 %v11578_v5, %s10537_s24 }
 0x486   : > { %v10146_v0 = vpop.permute.xlu2 %10145 }
 0x487   : > { %v10147_v9 = vunpack.i.l.bf16 %v10146_v0  ;;  %v11612_v34 = vunpack.i.h.bf16 %v10146_v0 }
 0x48e   : > { %v10161_v42 = vpop.permute.xlu2 %10160 }
 0x48f   : > { %v10162_v32 = vunpack.i.l.bf16 %v10161_v42  ;;  %v11673_v35 = vunpack.i.h.bf16 %v10161_v42 }
 0x496   : > { %v10176_v36 = vpop.permute.xlu2 %10175 }
 0x497   : > { %v10178_v21 = vunpack.i.h.bf16 %v10176_v36  ;;  %v10177_v16 = vunpack.i.l.bf16 %v10176_v36 }
 0x498   : > { %v10136_v18 = vpop.permute.xlu0 %10135 }
 0x499   : > { %v10138_v45 = vunpack.i.h.bf16 %v10136_v18  ;;  %v10137_v11 = vunpack.i.l.bf16 %v10136_v18  ;;  %v4796_v46 = vsel %vm1890_vm7, %v10177_v16, %v10178_v21 }
 0x49b   : > { %v4292_v19 = vsel %vm978_vm3, %v10137_v11, %v10138_v45  ;;  %v11610_v62 = vsel %vm978_vm3, %v10138_v45, %v10147_v9 }
 0x49c   : > { %4324 = vmatpush.msrb.mxu3 %v4292_v19  ;;  %4347 = vmatpush.msrb.mxu0 %v11610_v62 }
 0x49d   : > { %9500 = vmatmul.msk.f32.vlgmr.msrb.gmra.mxu3 %vm2600_vm10, %v9498_v38  ;;  %9502 = vmatmul.msk.f32.vlgmr.msrb.gmra.mxu0 %vm2600_vm10, %v9498_v38 }
 0x49e   : > { %4439 = vmatpush.msra.mxu0 %v11612_v34  ;;  %v10141_v53 = vpop.permute.xlu1 %10140  ;;  %v10186_v15 = vpop.permute.xlu2 %10185 }
 0x49f   : > { %v10143_v12 = vunpack.i.h.bf16 %v10141_v53  ;;  %v10142_v7 = vunpack.i.l.bf16 %v10141_v53  ;;  %v10188_v0 = vunpack.i.h.bf16 %v10186_v15  ;;  %v10187_v18 = vunpack.i.l.bf16 %v10186_v15 }
 0x4a0   : > { %4537 = vmatpush.msrb.mxu0 %v11560_v54  ;;  %v10151_v48 = vpop.permute.xlu0 %10150 }
 0x4a1   : > { %v11620_v13 = vsel %vm978_vm3, %v10147_v9, %v10142_v7  ;;  %v11623_v31 = vsel %vm978_vm3, %v10142_v7, %v10143_v12  ;;  %v11629_v40 = vsel %vm978_vm3, %v10143_v12, %v11612_v34  ;;  %v10153_v49 = vunpack.i.h.bf16 %v10151_v48  ;;  %v9538_v9 = vld [vmem:[%s13561_s5 + $0x30] sm:$0xff] }
 0x4a2   : > { %4370 = vmatpush.msra.mxu1 %v11620_v13  ;;  %4393 = vmatpush.msrb.mxu2 %v11623_v31  ;;  %v10152_v43 = vunpack.i.l.bf16 %v10151_v48  ;;  %v4979_v11 = vsel %vm2346_vm9, %v10187_v18, %v10188_v0 }
 0x4a3   : > { %4416 = vmatpush.msra.mxu3 %v11629_v40  ;;  %9504 = vmatmul.msk.f32.vlgmr.msra.gmra.mxu1 %vm2600_vm10, %v9498_v38  ;;  %v11650_v10 = vsel %vm4185_vm11, %v10153_v49, %v10162_v32 }
 0x4a4   : > { %9506 = vmatmul.msk.f32.vlgmr.msrb.gmra.mxu2 %vm2600_vm10, %v9498_v38  ;;  %4468 = vmatpush.msrb.mxu1 %v11549_v44  ;;  %v4606_v63 = vsel %vm4185_vm11, %v10152_v43, %v10153_v49 }
 0x4a5   : > { %4491 = vmatpush.msra.mxu2 %v11547_v23  ;;  %4514 = vmatpush.msrb.mxu3 %v11558_v27 }
 0x4a6   : > { %4560 = vmatpush.msra.mxu1 %v11562_v60  ;;  %9501 = vmatmul.msk.f32.gmra.mxu3 %vm2600_vm10, %v9499_v41  ;;  %v10156_v55 = vpop.permute.xlu1 %10155  ;;  %v4975_v7 = vpop.permute.xlu2 %4974 }
 0x4a7   : > { %4583 = vmatpush.msrb.mxu2 %v11564_v20  ;;  %9503 = vmatmul.msk.f32.gmra.mxu0 %vm2600_vm10, %v9499_v41  ;;  %v10157_v2 = vunpack.i.l.bf16 %v10156_v55  ;;  %v10158_v51 = vunpack.i.h.bf16 %v10156_v55 }
 0x4a8   : > { %v10166_v37 = vpop.permute.xlu0 %10165 }
 0x4a9   : > { %v11658_v56 = vsel %vm4185_vm11, %v10162_v32, %v10157_v2  ;;  %v11663_v59 = vsel %vm4185_vm11, %v10157_v2, %v10158_v51  ;;  %v11679_v6 = vsel %vm4185_vm11, %v10158_v51, %v11673_v35  ;;  %v10168_v57 = vunpack.i.h.bf16 %v10166_v37  ;;  %v9552_v51 = vld [vmem:[%s13561_s5 + $0x40] sm:$0xff] }
 0x4aa   : > { %v10167_v8 = vunpack.i.l.bf16 %v10166_v37 }
 0x4ab   : > { %9505 = vmatmul.msk.f32.gmra.mxu1 %vm2600_vm10, %v9499_v41 }
 0x4ac   : > { %9507 = vmatmul.msk.f32.gmra.mxu2 %vm2600_vm10, %v9499_v41  ;;  %v4792_v25 = vsel %vm1890_vm7, %v10167_v8, %v10168_v57 }
 0x4ae   : > { %9508 = vmatmul.msk.f32.vlgmr.msra.gmra.mxu3 %vm2600_vm10, %v9498_v38  ;;  %v10171_v4 = vpop.permute.xlu1 %10170 }
 0x4af   : > { %9510 = vmatmul.msk.f32.vlgmr.msra.gmra.mxu0 %vm2600_vm10, %v9498_v38  ;;  %4638 = vmatpush.msra.mxu3 %v4606_v63  ;;  %v10172_v50 = vunpack.i.l.bf16 %v10171_v4  ;;  %v10173_v29 = vunpack.i.h.bf16 %v10171_v4  ;;  %v9539_v38 = vld [vmem:[%s13561_s5 + $0x38] sm:$0xff] }
 0x4b0   : > { %4661 = vmatpush.msra.mxu0 %v11650_v10  ;;  %v4786_v58 = vpop.permute.xlu0 %4785 }
 0x4b1   : > { %v4791_v14 = vsel %vm1890_vm7, %v10172_v50, %v10167_v8  ;;  %v4794_v22 = vsel %vm1890_vm7, %v10173_v29, %v4786_v58  ;;  %v4793_v44 = vsel %vm1890_vm7, %v10168_v57, %v10173_v29  ;;  %v4795_v24 = vsel %vm1890_vm7, %v4786_v58, %v10177_v16 }
 0x4b3   : > { %9512 = vmatmul.msk.f32.vlgmr.msrb.gmra.mxu1 %vm2600_vm10, %v4269_v33 }
 0x4b4   : > { %9514 = vmatmul.msk.f32.vlgmr.msra.gmra.mxu2 %vm2600_vm10, %v4269_v33  ;;  %4684 = vmatpush.msrb.mxu1 %v11658_v56 }
 0x4b5   : > { %4707 = vmatpush.msra.mxu2 %v11663_v59 }
 0x4b6   : > { %9509 = vmatmul.msk.f32.gmra.mxu3 %vm2600_vm10, %v9499_v41  ;;  %v10181_v52 = vpop.permute.xlu1 %10180 }
 0x4b7   : > { %9511 = vmatmul.msk.f32.gmra.mxu0 %vm2600_vm10, %v9499_v41  ;;  %v10183_v1 = vunpack.i.h.bf16 %v10181_v52  ;;  %v10182_v28 = vunpack.i.l.bf16 %v10181_v52 }
 0x4b8   : > { %v10191_v3 = vpop.permute.xlu0 %10190 }
 0x4b9   : > { %v10192_v30 = vunpack.i.l.bf16 %v10191_v3  ;;  %v4976_v26 = vsel %vm2346_vm9, %v10182_v28, %v10183_v1  ;;  %v10193_v19 = vunpack.i.h.bf16 %v10191_v3  ;;  %v9594_v3 = vld [vmem:[%s13561_s5 + $0x70] sm:$0xff] }
 0x4bb   : > { %9513 = vmatmul.msk.f32.gmra.mxu1 %vm2600_vm10, %v4270_v39  ;;  %v4977_v61 = vsel %vm2346_vm9, %v10183_v1, %v10192_v30  ;;  %v4978_v45 = vsel %vm2346_vm9, %v10192_v30, %v10187_v18  ;;  %v4980_v48 = vsel %vm2346_vm9, %v10188_v0, %v10193_v19  ;;  %v4981_v42 = vsel %vm2346_vm9, %v10193_v19, %v4975_v7  ;;  %v9595_v30 = vld [vmem:[%s13561_s5 + $0x78] sm:$0xff] }
 0x4bc   : > { %9515 = vmatmul.msk.f32.gmra.mxu2 %vm2600_vm10, %v4270_v39 }
 0x4be   : > { %9516 = vmatmul.msk.f32.vlgmr.msrb.gmra.mxu3 %vm2600_vm10, %v4269_v33  ;;  %v10196_v12 = vpop.permute.xlu1 %10195 }
 0x4bf   : > { %9518 = vmatmul.msk.f32.vlgmr.msrb.gmra.mxu0 %vm2600_vm10, %v4269_v33  ;;  %4730 = vmatpush.msrb.mxu3 %v11679_v6  ;;  %v10198_v49 = vunpack.i.h.bf16 %v10196_v12  ;;  %v10197_v43 = vunpack.i.l.bf16 %v10196_v12 }
 0x4c0   : > { %4753 = vmatpush.msrb.mxu0 %v11673_v35  ;;  %v10201_v53 = vpop.permute.xlu0 %10200 }
 0x4c1   : > { %v10202_v41 = vunpack.i.l.bf16 %v10201_v53  ;;  %v5163_v32 = vsel %vm5161_vm12, %v10197_v43, %v10198_v49  ;;  %v10203_v2 = vunpack.i.h.bf16 %v10201_v53  ;;  %v9608_v53 = vld [vmem:[%s13561_s5 + $0x80] sm:$0xff] }
 0x4c3   : > { %9520 = vmatmul.msk.f32.vlgmr.msra.gmra.mxu1 %vm2600_vm10, %v4269_v33  ;;  %v5162_v55 = vsel %vm5161_vm12, %v10202_v41, %v10197_v43  ;;  %v5164_v4 = vsel %vm5161_vm12, %v10198_v49, %v10203_v2 }
 0x4c4   : > { %9522 = vmatmul.msk.f32.vlgmr.msrb.gmra.mxu2 %vm2600_vm10, %v4269_v33  ;;  %4824 = vmatpush.msra.mxu1 %v4791_v14  ;;  %v5156_v33 = vpop.permute.xlu2 %5155  ;;  %v9553_v14 = vld [vmem:[%s13561_s5 + $0x48] sm:$0xff] }
 0x4c5   : > { %4847 = vmatpush.msrb.mxu2 %v4792_v25  ;;  %v5165_v37 = vsel %vm5161_vm12, %v10203_v2, %v5156_v33  ;;  %v9566_v25 = vld [vmem:[%s13561_s5 + $0x50] sm:$0xff] }
 0x4c6   : > { %9517 = vmatmul.msk.f32.gmra.mxu3 %vm2600_vm10, %v4270_v39  ;;  %v10206_v63 = vpop.permute.xlu1 %10205 }
 0x4c7   : > { %9519 = vmatmul.msk.f32.gmra.mxu0 %vm2600_vm10, %v4270_v39  ;;  %v10208_v50 = vunpack.i.h.bf16 %v10206_v63 }
 0x4c8   : > { %v5493_v36 = vpop.permute.xlu0 %5492 }
 0x4c9   : > { %v5494_v21 = vsel %vm978_vm3, %v11612_v34, %v5493_v36 }
 0x4cb   : > { %9521 = vmatmul.msk.f32.gmra.mxu1 %vm2600_vm10, %v4270_v39 }
 0x4cc   : > { %9523 = vmatmul.msk.f32.gmra.mxu2 %vm2600_vm10, %v4270_v39  ;;  %v10207_v39 = vunpack.i.l.bf16 %v10206_v63 }
 0x4ce   : > { %9526 = vmatmul.msk.f32.vlgmr.msra.gmra.mxu3 %vm2600_vm10, %v9524_v17  ;;  %v5166_v57 = vsel %vm5161_vm12, %v5156_v33, %v10207_v39  ;;  %v5167_v8 = vsel %vm5161_vm12, %v10207_v39, %v10208_v50 }
 0x4cf   : > { %9528 = vmatmul.msk.f32.vlgmr.msra.gmra.mxu0 %vm2600_vm10, %v9524_v17  ;;  %4870 = vmatpush.msra.mxu3 %v4793_v44 }
 0x4d0   : > { %4893 = vmatpush.msra.mxu0 %v4794_v22 }
 0x4d3   : > { %9530 = vmatmul.msk.f32.vlgmr.msrb.gmra.mxu1 %vm2600_vm10, %v9524_v17 }
 0x4d4   : > { %9532 = vmatmul.msk.f32.vlgmr.msra.gmra.mxu2 %vm2600_vm10, %v9524_v17  ;;  %4916 = vmatpush.msrb.mxu1 %v4795_v24 }
 0x4d5   : > { %4939 = vmatpush.msra.mxu2 %v4796_v46 }
 0x4d6   : > { %9527 = vmatmul.msk.f32.gmra.mxu3 %vm2600_vm10, %v9525_v47 }
 0x4d7   : > { %9529 = vmatmul.msk.f32.gmra.mxu0 %vm2600_vm10, %v9525_v47 }
 0x4db   : > { %9531 = vmatmul.msk.f32.gmra.mxu1 %vm2600_vm10, %v9525_v47 }
 0x4dc   : > { %9533 = vmatmul.msk.f32.gmra.mxu2 %vm2600_vm10, %v9525_v47 }
 0x4de   : > { %9534 = vmatmul.msk.f32.vlgmr.msrb.gmra.mxu3 %vm2600_vm10, %v9524_v17 }
 0x4df   : > { %9536 = vmatmul.msk.f32.vlgmr.msrb.gmra.mxu0 %vm2600_vm10, %v9524_v17  ;;  %5009 = vmatpush.msrb.mxu3 %v4976_v26 }
 0x4e0   : > { %5032 = vmatpush.msrb.mxu0 %v4977_v61 }
 0x4e3   : > { %9540 = vmatmul.msk.f32.vlgmr.msra.gmra.mxu1 %vm2600_vm10, %v9538_v9 }
 0x4e4   : > { %9542 = vmatmul.msk.f32.vlgmr.msrb.gmra.mxu2 %vm2600_vm10, %v9538_v9  ;;  %5055 = vmatpush.msra.mxu1 %v4978_v45 }
 0x4e5   : > { %5078 = vmatpush.msrb.mxu2 %v4979_v11 }
 0x4e6   : > { %9535 = vmatmul.msk.f32.gmra.mxu3 %vm2600_vm10, %v9525_v47 }
 0x4e7   : > { %9537 = vmatmul.msk.f32.gmra.mxu0 %vm2600_vm10, %v9525_v47 }
 0x4eb   : > { %9541 = vmatmul.msk.f32.gmra.mxu1 %vm2600_vm10, %v9539_v38 }
 0x4ec   : > { %9543 = vmatmul.msk.f32.gmra.mxu2 %vm2600_vm10, %v9539_v38 }
 0x4ee   : > { %9544 = vmatmul.msk.f32.vlgmr.msra.gmra.mxu3 %vm2600_vm10, %v9538_v9 }
 0x4ef   : > { %9546 = vmatmul.msk.f32.vlgmr.msra.gmra.mxu0 %vm2600_vm10, %v9538_v9  ;;  %5101 = vmatpush.msra.mxu3 %v4980_v48 }
 0x4f0   : > { %5124 = vmatpush.msra.mxu0 %v4981_v42  ;;  %v9609_v42 = vld [vmem:[%s13561_s5 + $0x88] sm:$0xff] }
 0x4f3   : > { %9548 = vmatmul.msk.f32.vlgmr.msrb.gmra.mxu1 %vm2600_vm10, %v9538_v9 }
 0x4f4   : > { %9550 = vmatmul.msk.f32.vlgmr.msra.gmra.mxu2 %vm2600_vm10, %v9538_v9  ;;  %5195 = vmatpush.msrb.mxu1 %v5162_v55 }
 0x4f5   : > { %5218 = vmatpush.msra.mxu2 %v5163_v32 }
 0x4f6   : > { %9545 = vmatmul.msk.f32.gmra.mxu3 %vm2600_vm10, %v9539_v38 }
 0x4f7   : > { %9547 = vmatmul.msk.f32.gmra.mxu0 %vm2600_vm10, %v9539_v38 }
 0x4fb   : > { %9549 = vmatmul.msk.f32.gmra.mxu1 %vm2600_vm10, %v9539_v38 }
 0x4fc   : > { %9551 = vmatmul.msk.f32.gmra.mxu2 %vm2600_vm10, %v9539_v38 }
 0x4fe   : > { %9554 = vmatmul.msk.f32.vlgmr.msrb.gmra.mxu3 %vm2600_vm10, %v9552_v51 }
 0x4ff   : > { %9556 = vmatmul.msk.f32.vlgmr.msrb.gmra.mxu0 %vm2600_vm10, %v9552_v51  ;;  %5241 = vmatpush.msrb.mxu3 %v5164_v4 }
 0x500   : > { %5264 = vmatpush.msrb.mxu0 %v5165_v37 }
 0x503   : > { %9558 = vmatmul.msk.f32.vlgmr.msra.gmra.mxu1 %vm2600_vm10, %v9552_v51 }
 0x504   : > { %9560 = vmatmul.msk.f32.vlgmr.msrb.gmra.mxu2 %vm2600_vm10, %v9552_v51  ;;  %5287 = vmatpush.msra.mxu1 %v5166_v57 }
 0x505   : > { %5310 = vmatpush.msrb.mxu2 %v5167_v8 }
 0x506   : > { %9555 = vmatmul.msk.f32.gmra.mxu3 %vm2600_vm10, %v9553_v14 }
 0x507   : > { %9557 = vmatmul.msk.f32.gmra.mxu0 %vm2600_vm10, %v9553_v14 }
 0x50b   : > { %9559 = vmatmul.msk.f32.gmra.mxu1 %vm2600_vm10, %v9553_v14 }
 0x50c   : > { %9561 = vmatmul.msk.f32.gmra.mxu2 %vm2600_vm10, %v9553_v14 }
 0x50e   : > { %9562 = vmatmul.msk.f32.vlgmr.msra.gmra.mxu3 %vm2600_vm10, %v9552_v51 }
 0x50f   : > { %9564 = vmatmul.msk.f32.vlgmr.msra.gmra.mxu0 %vm2600_vm10, %v9552_v51  ;;  %5354 = vmatpush.msra.mxu3 %v11547_v23  ;;  %v9567_v23 = vld [vmem:[%s13561_s5 + $0x58] sm:$0xff] }
 0x510   : > { %5377 = vmatpush.msra.mxu0 %v11558_v27 }
 0x513   : > { %9568 = vmatmul.msk.f32.vlgmr.msrb.gmra.mxu1 %vm2600_vm10, %v9566_v25 }
 0x514   : > { %9570 = vmatmul.msk.f32.vlgmr.msra.gmra.mxu2 %vm2600_vm10, %v9566_v25  ;;  %5400 = vmatpush.msrb.mxu1 %v11560_v54 }
 0x515   : > { %5423 = vmatpush.msra.mxu2 %v11562_v60 }
 0x516   : > { %9563 = vmatmul.msk.f32.gmra.mxu3 %vm2600_vm10, %v9553_v14 }
 0x517   : > { %9565 = vmatmul.msk.f32.gmra.mxu0 %vm2600_vm10, %v9553_v14 }
 0x51a   : > { %v11773_v27 = vpop.f32.mrf.mxu0 }
 0x51b   : > { %9569 = vmatmul.msk.f32.gmra.mxu1 %vm2600_vm10, %v9567_v23 }
 0x51c   : > { %9571 = vmatmul.msk.f32.gmra.mxu2 %vm2600_vm10, %v9567_v23 }
 0x51e   : > { %9572 = vmatmul.msk.f32.vlgmr.msrb.gmra.mxu3 %vm2600_vm10, %v9566_v25 }
 0x51f   : > { %9574 = vmatmul.msk.f32.vlgmr.msrb.gmra.mxu0 %vm2600_vm10, %v9566_v25  ;;  %5446 = vmatpush.msrb.mxu3 %v11564_v20 }
 0x520   : > { %5469 = vmatpush.msrb.mxu0 %v11578_v5  ;;  %v11781_v54 = vpop.f32.mrf.mxu3  ;;  %v11783_v60 = vpop.f32.mrf.mxu1 }
 0x523   : > { %9576 = vmatmul.msk.f32.vlgmr.msra.gmra.mxu1 %vm2600_vm10, %v9566_v25 }
 0x524   : > { %v11786_v29 = vpop.f32.mrf.mxu0  ;;  %9578 = vmatmul.msk.f32.vlgmr.msrb.gmra.mxu2 %vm2600_vm10, %v9566_v25  ;;  %5518 = vmatpush.msra.mxu1 %v11610_v62  ;;  %v9580_v62 = vld [vmem:[%s13561_s5 + $0x60] sm:$0xff] }
 0x525   : > { %5541 = vmatpush.msrb.mxu2 %v11620_v13 }
 0x526   : > { %9573 = vmatmul.msk.f32.gmra.mxu3 %vm2600_vm10, %v9567_v23 }
 0x527   : > { %9575 = vmatmul.msk.f32.gmra.mxu0 %vm2600_vm10, %v9567_v23  ;;  %v11793_v20 = vpop.f32.mrf.mxu2 }
 0x528   : > { %v11795_v5 = vpop.f32.mrf.mxu1 }
 0x529   : > { %v11797_v58 = vpop.f32.mrf.mxu3 }
 0x52b   : > { %9577 = vmatmul.msk.f32.gmra.mxu1 %vm2600_vm10, %v9567_v23 }
 0x52c   : > { %v11800_v17 = vpop.f32.mrf.mxu0  ;;  %9579 = vmatmul.msk.f32.gmra.mxu2 %vm2600_vm10, %v9567_v23 }
 0x52d   : > { %13600 = vst [vmem:[#allocation5_spill] sm:$0xff] %v11800_v17 }
 0x52e   : > { %9582 = vmatmul.msk.f32.vlgmr.msra.gmra.mxu3 %vm2600_vm10, %v9580_v62 }
 0x52f   : > { %9584 = vmatmul.msk.f32.vlgmr.msra.gmra.mxu0 %vm2600_vm10, %v9580_v62  ;;  %v11808_v13 = vpop.f32.mrf.mxu2  ;;  %5564 = vmatpush.msra.mxu3 %v11623_v31  ;;  %v9581_v31 = vld [vmem:[%s13561_s5 + $0x68] sm:$0xff] }
 0x530   : > { %5587 = vmatpush.msra.mxu0 %v11629_v40  ;;  %v11812_v22 = vpop.f32.mrf.mxu1 }
 0x531   : > { %v11814_v44 = vpop.f32.mrf.mxu3 }
 0x533   : > { %9586 = vmatmul.msk.f32.vlgmr.msrb.gmra.mxu1 %vm2600_vm10, %v9580_v62 }
 0x534   : > { %v11819_v16 = vpop.f32.mrf.mxu0  ;;  %9588 = vmatmul.msk.f32.vlgmr.msra.gmra.mxu2 %vm2600_vm10, %v9580_v62  ;;  %5610 = vmatpush.msrb.mxu1 %v5494_v21 }
 0x535   : > { %13601 = vst [vmem:[#allocation6_spill] sm:$0xff] %v11819_v16  ;;  %5633 = vmatpush.msra.mxu2 %v5493_v36 }
 0x536   : > { %9583 = vmatmul.msk.f32.gmra.mxu3 %vm2600_vm10, %v9581_v31 }
 0x537   : > { %9585 = vmatmul.msk.f32.gmra.mxu0 %vm2600_vm10, %v9581_v31  ;;  %v11827_v40 = vpop.f32.mrf.mxu2 }
 0x538   : > { %v11829_v24 = vpop.f32.mrf.mxu1 }
 0x539   : > { %v11831_v34 = vpop.f32.mrf.mxu3 }
 0x53b   : > { %9587 = vmatmul.msk.f32.gmra.mxu1 %vm2600_vm10, %v9581_v31 }
 0x53c   : > { %v11834_v46 = vpop.f32.mrf.mxu0  ;;  %9589 = vmatmul.msk.f32.gmra.mxu2 %vm2600_vm10, %v9581_v31 }
 0x53e   : > { %9590 = vmatmul.msk.f32.vlgmr.msrb.gmra.mxu3 %vm2600_vm10, %v9580_v62 }
 0x53f   : > { %9592 = vmatmul.msk.f32.vlgmr.msrb.gmra.mxu0 %vm2600_vm10, %v9580_v62  ;;  %v11839_v47 = vpop.f32.mrf.mxu2  ;;  %5682 = vmatpush.msrb.mxu3 %v11650_v10 }
 0x540   : > { %5705 = vmatpush.msrb.mxu0 %v11658_v56  ;;  %v11843_v52 = vpop.f32.mrf.mxu1 }
 0x541   : > { %v11848_v1 = vpop.f32.mrf.mxu3 }
 0x543   : > { %9596 = vmatmul.msk.f32.vlgmr.msra.gmra.mxu1 %vm2600_vm10, %v9594_v3 }
 0x544   : > { %v11851_v28 = vpop.f32.mrf.mxu0  ;;  %9598 = vmatmul.msk.f32.vlgmr.msrb.gmra.mxu2 %vm2600_vm10, %v9594_v3  ;;  %5728 = vmatpush.msra.mxu1 %v11663_v59  ;;  %v5817_v59 = vld [vmem:[%s13562_s6] sm:$0xff] }
 0x545   : > { %5751 = vmatpush.msrb.mxu2 %v11679_v6  ;;  %v5657_v6 = vpop.permute.xlu1 %5656  ;;  %5821 = vperm.xlu0 %10209, %v5817_v59  }
 0x546   : > { %9591 = vmatmul.msk.f32.gmra.mxu3 %vm2600_vm10, %v9581_v31  ;;  %v5658_v61 = vsel %vm4185_vm11, %v11673_v35, %v5657_v6 }
 0x547   : > { %9593 = vmatmul.msk.f32.gmra.mxu0 %vm2600_vm10, %v9581_v31  ;;  %v11858_v10 = vpop.f32.mrf.mxu2 }
 0x548   : > { %13602 = vst [vmem:[#allocation7_spill] sm:$0xff] %v11858_v10  ;;  %v11860_v56 = vpop.f32.mrf.mxu1 }
 0x549   : > { %v11865_v15 = vpop.f32.mrf.mxu3 }
 0x54b   : > { %9597 = vmatmul.msk.f32.gmra.mxu1 %vm2600_vm10, %v9595_v30 }
 0x54c   : > { %v11871_v26 = vpop.f32.mrf.mxu0  ;;  %9599 = vmatmul.msk.f32.gmra.mxu2 %vm2600_vm10, %v9595_v30 }
 0x54e   : > { %9600 = vmatmul.msk.f32.vlgmr.msra.gmra.mxu3 %vm2600_vm10, %v9594_v3 }
 0x54f   : > { %9602 = vmatmul.msk.f32.vlgmr.msra.gmra.mxu0 %vm2600_vm10, %v9594_v3  ;;  %v11878_v0 = vpop.f32.mrf.mxu2  ;;  %5774 = vmatpush.msra.mxu3 %v5658_v61 }
 0x550   : > { %13603 = vst [vmem:[#allocation10_spill] sm:$0xff] %v11878_v0  ;;  %5797 = vmatpush.msra.mxu0 %v5657_v6  ;;  %v11880_v18 = vpop.f32.mrf.mxu1 }
 0x551   : > { %v11882_v9 = vpop.f32.mrf.mxu3 }
 0x553   : > { %9604 = vmatmul.msk.f32.vlgmr.msrb.gmra.mxu1 %vm2600_vm10, %v9594_v3 }
 0x554   : > { %v11885_v45 = vpop.f32.mrf.mxu0  ;;  %9606 = vmatmul.msk.f32.vlgmr.msra.gmra.mxu2 %vm2600_vm10, %v9594_v3 }
 0x556   : > { %9601 = vmatmul.msk.f32.gmra.mxu3 %vm2600_vm10, %v9595_v30 }
 0x557   : > { %9603 = vmatmul.msk.f32.gmra.mxu0 %vm2600_vm10, %v9595_v30  ;;  %v11890_v35 = vpop.f32.mrf.mxu2 }
 0x558   : > { %v11892_v11 = vpop.f32.mrf.mxu1 }
 0x559   : > { %v11894_v38 = vpop.f32.mrf.mxu3 }
 0x55b   : > { %9605 = vmatmul.msk.f32.gmra.mxu1 %vm2600_vm10, %v9595_v30 }
 0x55c   : > { %v11897_v19 = vpop.f32.mrf.mxu0  ;;  %9607 = vmatmul.msk.f32.gmra.mxu2 %vm2600_vm10, %v9595_v30 }
 0x55d   : > { %13604 = vst [vmem:[#allocation8_spill] sm:$0xff] %v11897_v19 }
 0x55e   : > { %9610 = vmatmul.msk.f32.vlgmr.msrb.gmra.mxu3 %vm2600_vm10, %v9608_v53 }
 0x55f   : > { %9612 = vmatmul.msk.f32.vlgmr.msrb.gmra.mxu0 %vm2600_vm10, %v9608_v53  ;;  %v11905_v12 = vpop.f32.mrf.mxu2 }
 0x560   : > { %v11907_v7 = vpop.f32.mrf.mxu1 }
 0x561   : > { %v11909_v41 = vpop.f32.mrf.mxu3 }
 0x563   : > { %9614 = vmatmul.msk.f32.vlgmr.msra.gmra.mxu1 %vm2600_vm10, %v9608_v53 }
 0x564   : > { %v11912_v48 = vpop.f32.mrf.mxu0  ;;  %9616 = vmatmul.msk.f32.vlgmr.msrb.gmra.mxu2 %vm2600_vm10, %v9608_v53 }
 0x565   : > { %13605 = vst [vmem:[#allocation2_spill] sm:$0xff] %v11912_v48 }
 0x566   : > { %9611 = vmatmul.msk.f32.gmra.mxu3 %vm2600_vm10, %v9609_v42 }
 0x567   : > { %9613 = vmatmul.msk.f32.gmra.mxu0 %vm2600_vm10, %v9609_v42  ;;  %v11920_v49 = vpop.f32.mrf.mxu2 }
 0x568   : > { %v11922_v43 = vpop.f32.mrf.mxu1 }
 0x569   : > { %v11924_v55 = vpop.f32.mrf.mxu3 }
 0x56a   : > { %13606 = vst [vmem:[#allocation9_spill] sm:$0xff] %v11924_v55 }
 0x56b   : > { %9615 = vmatmul.msk.f32.gmra.mxu1 %vm2600_vm10, %v9609_v42 }
 0x56c   : > { %v11927_v32 = vpop.f32.mrf.mxu0  ;;  %9617 = vmatmul.msk.f32.gmra.mxu2 %vm2600_vm10, %v9609_v42 }
 0x56e   : > { %9618 = vmatmul.msk.f32.vlgmr.msra.gmra.mxu3 %vm2600_vm10, %v9608_v53 }
 0x56f   : > { %9620 = vmatmul.msk.f32.vlgmr.msra.gmra.mxu0 %vm2600_vm10, %v9608_v53  ;;  %v4852_v2 = vpop.f32.mrf.mxu2 }
 0x570   : > { %v11932_v63 = vpop.f32.mrf.mxu1 }
 0x571   : > { %v11934_v51 = vpop.f32.mrf.mxu3 }
 0x574   : > { %v11936_v33 = vpop.f32.mrf.mxu0 }
 0x576   : > { %9619 = vmatmul.msk.f32.gmra.mxu3 %vm2600_vm10, %v9609_v42 }
 0x577   : > { %9621 = vmatmul.msk.f32.gmra.mxu0 %vm2600_vm10, %v9609_v42  ;;  %v11940_v39 = vpop.f32.mrf.mxu2 }
 0x578   : > { %13607 = vst [vmem:[#allocation4_spill] sm:$0xff] %v11940_v39  ;;  %v11942_v4 = vpop.f32.mrf.mxu1 }
 0x579   : > { %13608 = vst [vmem:[#allocation3_spill] sm:$0xff] %v11942_v4  ;;  %v4875_v37 = vpop.f32.mrf.mxu3 }
 0x57c   : > { %v11944_v50 = vpop.f32.mrf.mxu0 }
 0x57f   : > { %v11946_v57 = vpop.f32.mrf.mxu2 }
 0x580   : > { %13609 = vst [vmem:[#allocation11_spill] sm:$0xff] %v11946_v57  ;;  %v11948_v8 = vpop.f32.mrf.mxu1 }
 0x581   : > { %v11950_v14 = vpop.f32.mrf.mxu3 }
 0x584   : > { %v5037_v25 = vpop.f32.mrf.mxu0 }
 0x587   : > { %v11952_v23 = vpop.f32.mrf.mxu2 }
 0x588   : > { %v11954_v62 = vpop.f32.mrf.mxu1 }
 0x589   : > { %v11956_v36 = vpop.f32.mrf.mxu3 }
 0x58a   : > { %13610 = vst [vmem:[#allocation12_spill] sm:$0xff] %v11956_v36 }
 0x58c   : > { %v11958_v21 = vpop.f32.mrf.mxu0 }
 0x58d   : > { %13611 = vst [vmem:[#allocation13_spill] sm:$0xff] %v11958_v21 }
 0x58f   : > { %v11960_v31 = vpop.f32.mrf.mxu2 }
 0x590   : > { %13612 = vst [vmem:[#allocation14_spill] sm:$0xff] %v11960_v31  ;;  %v11962_v3 = vpop.f32.mrf.mxu1 }
 0x591   : > { %13613 = vst [vmem:[#allocation15_spill] sm:$0xff] %v11962_v3  ;;  %v11964_v30 = vpop.f32.mrf.mxu3 }
 0x592   : > { %13614 = vst [vmem:[#allocation16_spill] sm:$0xff] %v11964_v30 }
 0x594   : > { %v11966_v59 = vpop.f32.mrf.mxu0 }
 0x595   : > { %13615 = vst [vmem:[#allocation17_spill] sm:$0xff] %v11966_v59 }
 0x597   : > { %v11968_v6 = vpop.f32.mrf.mxu2 }
 0x598   : > { %v11970_v61 = vpop.f32.mrf.mxu1 }
 0x599   : > { %13616 = vst [vmem:[#allocation18_spill] sm:$0xff] %v11970_v61  ;;  %v11972_v53 = vpop.f32.mrf.mxu3 }
 0x59a   : > { %13617 = vst [vmem:[#allocation19_spill] sm:$0xff] %v11972_v53 }
 0x59c   : > { %v11974_v42 = vpop.f32.mrf.mxu0 }
 0x59f   : > { %v5223_v39 = vpop.f32.mrf.mxu2 }
 0x5a0   : > { %v11976_v57 = vpop.f32.mrf.mxu1 }
 0x5a1   : > { %13618 = vst [vmem:[#allocation20_spill] sm:$0xff] %v11976_v57  ;;  %v11978_v21 = vpop.f32.mrf.mxu3 }
 0x5a4   : > { %v11980_v19 = vpop.f32.mrf.mxu0 }
 0x5a5   : > { %13619 = vst [vmem:[#allocation21_spill] sm:$0xff] %v11980_v19 }
 0x5a7   : > { %v11982_v48 = vpop.f32.mrf.mxu2 }
 0x5a8   : > { %13620 = vst [vmem:[#allocation22_spill] sm:$0xff] %v11982_v48  ;;  %v11984_v10 = vpop.f32.mrf.mxu1 }
 0x5a9   : > { %13621 = vst [vmem:[#allocation23_spill] sm:$0xff] %v11984_v10  ;;  %v5246_v59 = vpop.f32.mrf.mxu3 }
 0x5ac   : > { %v11986_v17 = vpop.f32.mrf.mxu0 }
 0x5ad   : > { %13622 = vst [vmem:[#allocation24_spill] sm:$0xff] %v11986_v17 }
 0x5af   : > { %v11988_v0 = vpop.f32.mrf.mxu2 }
 0x5b0   : > { %13623 = vst [vmem:[#allocation25_spill] sm:$0xff] %v11988_v0  ;;  %v11990_v16 = vpop.f32.mrf.mxu1 }
 0x5b1   : > { %13624 = vst [vmem:[#allocation26_spill] sm:$0xff] %v11990_v16  ;;  %v11992_v53 = vpop.f32.mrf.mxu3 }
 0x5b2   : > { %13625 = vst [vmem:[#allocation27_spill] sm:$0xff] %v11992_v53 }
 0x5b4   : > { %v5382_v4 = vpop.f32.mrf.mxu0 }
 0x5b7   : > { %v11994_v55 = vpop.f32.mrf.mxu2 }
 0x5b8   : > { %v5405_v57 = vpop.f32.mrf.mxu1 }
 0x5b9   : > { %v11996_v61 = vpop.f32.mrf.mxu3 }
 0x5ba   : > { %13626 = vst [vmem:[#allocation28_spill] sm:$0xff] %v11996_v61 }
 0x5bc   : > { %v11998_v19 = vpop.f32.mrf.mxu0 }
 0x5bd   : > { %13627 = vst [vmem:[#allocation29_spill] sm:$0xff] %v11998_v19 }
 0x5bf   : > { %v12000_v48 = vpop.f32.mrf.mxu2 }
 0x5c0   : > { %13628 = vst [vmem:[#allocation30_spill] sm:$0xff] %v12000_v48  ;;  %v12002_v10 = vpop.f32.mrf.mxu1 }
 0x5c1   : > { %13629 = vst [vmem:[#allocation31_spill] sm:$0xff] %v12002_v10  ;;  %v12004_v30 = vpop.f32.mrf.mxu3 }
 0x5c2   : > { %13630 = vst [vmem:[#allocation32_spill] sm:$0xff] %v12004_v30  ;;  %v4497_v30 = vadd.f32 %v11839_v47, %v11786_v29  ;;  %v4494_v29 = vadd.f32 %v11827_v40, %v11773_v27  ;;  %v4517_v47 = vadd.f32 %v11848_v1, %v11783_v60 }
 0x5c4   : > { %v12006_v36 = vpop.f32.mrf.mxu0  ;;  %v4762_v27 = vadd.f32 %v11871_v26, %v4494_v29  ;;  %v4763_v60 = vadd.f32 %v11880_v18, %v4517_v47 }
 0x5c5   : > { %13631 = vst [vmem:[#allocation33_spill] sm:$0xff] %v12006_v36 }
 0x5c7   : > { %v12008_v0 = vpop.f32.mrf.mxu2 }
 0x5c8   : > { %13632 = vst [vmem:[#allocation34_spill] sm:$0xff] %v12008_v0  ;;  %v12010_v16 = vpop.f32.mrf.mxu1 }
 0x5c9   : > { %13633 = vst [vmem:[#allocation35_spill] sm:$0xff] %v12010_v16  ;;  %v12012_v53 = vpop.f32.mrf.mxu3  ;;  %v4768_v16 = vadd.f32 %v11885_v45, %v4497_v30 }
 0x5ca   : > { %13634 = vst [vmem:[#allocation36_spill] sm:$0xff] %v12012_v53  ;;  %v4520_v53 = vadd.f32 %v11865_v15, %v11795_v5 }
 0x5cc   : > { %v12014_v17 = vpop.f32.mrf.mxu0 }
 0x5cd   : > { %13635 = vst [vmem:[#allocation37_spill] sm:$0xff] %v12014_v17  ;;  %v4954_v17 = vadd.f32 %v4852_v2, %v4768_v16  ;;  %v4471_v16 = vadd.f32 %v11812_v22, %v11781_v54  ;;  %v4566_v54 = vadd.f32 %v11860_v56, %v11831_v34  ;;  %v4948_v22 = vadd.f32 %v11920_v49, %v4762_v27 }
 0x5cf   : > { %v5546_v3 = vpop.f32.mrf.mxu2  ;;  %v13648_v29 = vld [vmem:[#allocation34_spill] sm:$0xff] }
 0x5d0   : > { %v12016_v61 = vpop.f32.mrf.mxu1 }
 0x5d1   : > { %13636 = vst [vmem:[#allocation38_spill] sm:$0xff] %v12016_v61  ;;  %v12018_v19 = vpop.f32.mrf.mxu3  ;;  %v4540_v61 = vadd.f32 %v11834_v46, %v11793_v20  ;;  %v4474_v20 = vadd.f32 %v11829_v24, %v11797_v58  ;;  %v4761_v58 = vadd.f32 %v11882_v9, %v4471_v16  ;;  %v4949_v24 = vadd.f32 %v11934_v51, %v4763_v60 }
 0x5d2   : > { %13637 = vst [vmem:[#allocation39_spill] sm:$0xff] %v12018_v19  ;;  %v5139_v19 = vadd.f32 %v5037_v25, %v4954_v17  ;;  %v4563_v17 = vadd.f32 %v11843_v52, %v11814_v44  ;;  %v13642_v25 = vld [vmem:[#allocation24_spill] sm:$0xff] }
 0x5d3   : > { %v4764_v45 = vadd.f32 %v11890_v35, %v4540_v61  ;;  %v4543_v35 = vadd.f32 %v11851_v28, %v11808_v13  ;;  %v4947_v13 = vadd.f32 %v11907_v7, %v4761_v58  ;;  %v5133_v28 = vadd.f32 %v11944_v50, %v4948_v22  ;;  %v13646_v61 = vld [vmem:[#allocation16_spill] sm:$0xff]  ;;  %v13653_v58 = vld [vmem:[#allocation30_spill] sm:$0xff] }
 0x5d4   : > { %v12020_v48 = vpop.f32.mrf.mxu0  ;;  %v5134_v56 = vadd.f32 %v11948_v8, %v4949_v24  ;;  %v4765_v49 = vadd.f32 %v11909_v41, %v4563_v17  ;;  %v13641_v8 = vld [vmem:[#allocation15_spill] sm:$0xff] }
 0x5d5   : > { %13638 = vst [vmem:[#allocation40_spill] sm:$0xff] %v12020_v48  ;;  %v4769_v48 = vadd.f32 %v11892_v11, %v4520_v53  ;;  %v4950_v46 = vadd.f32 %v11927_v32, %v4764_v45  ;;  %v4767_v11 = vadd.f32 %v11894_v38, %v4474_v20  ;;  %v5132_v2 = vadd.f32 %v11950_v14, %v4947_v13 }
 0x5d6   : > { %v5319_v38 = vadd.f32 %v11968_v6, %v5133_v28  ;;  %v5320_v7 = vadd.f32 %v11978_v21, %v5134_v56  ;;  %v4951_v50 = vadd.f32 %v11932_v63, %v4765_v49  ;;  %v13655_v28 = vld [vmem:[#allocation9_spill] sm:$0xff]  ;;  %v13656_v56 = vld [vmem:[#allocation28_spill] sm:$0xff] }
 0x5d7   : > { %v12024_v10 = vpop.f32.mrf.mxu2  ;;  %v4955_v30 = vadd.f32 %v4875_v37, %v4769_v48  ;;  %v5135_v52 = vadd.f32 %v11952_v23, %v4950_v46  ;;  %v12074_v37 = vpop.permute.xlu2 %5826  ;;  %v13651_v46 = vld [vmem:[#allocation18_spill] sm:$0xff]  ;;  %v13658_v49 = vld [vmem:[#allocation32_spill] sm:$0xff] }
 0x5d8   : > { %13639 = vst [vmem:[#allocation41_spill] sm:$0xff] %v12024_v10  ;;  %v12026_v36 = vpop.f32.mrf.mxu1  ;;  %v5325_v10 = vadd.f32 %v5223_v39, %v5139_v19  ;;  %v5478_v14 = vadd.f32 %v13642_v25, %v5319_v38  ;;  %v5136_v53 = vadd.f32 %v13646_v61, %v4951_v50  ;;  %v13661_v50 = vld [vmem:[#allocation38_spill] sm:$0xff]  ;;  %v13664_v61 = vld [vmem:[#allocation36_spill] sm:$0xff] }
 0x5d9   : > { %v5569_v0 = vpop.f32.mrf.mxu3  ;;  %v5140_v1 = vadd.f32 %v11954_v62, %v4955_v30  ;;  %v5321_v9 = vadd.f32 %v11974_v42, %v5135_v52  ;;  %v13643_v62 = vld [vmem:[#allocation26_spill] sm:$0xff]  ;;  %v13647_v42 = vld [vmem:[#allocation21_spill] sm:$0xff]  ;;  %v13649_v30 = vld [vmem:[#allocation27_spill] sm:$0xff] }
 0x5da   : > { %v5484_v15 = vadd.f32 %v5382_v4, %v5325_v10  ;;  %v4770_v10 = vadd.f32 %v11905_v12, %v4543_v35  ;;  %v4953_v12 = vadd.f32 %v11922_v43, %v4767_v11  ;;  %v13644_v43 = vld [vmem:[#allocation37_spill] sm:$0xff]  ;;  %v5642_v47 = vadd.f32 %v13648_v29, %v5478_v14  ;;  %v13650_v20 = vld [vmem:[#allocation39_spill] sm:$0xff] }
 0x5db   : > { %v5326_v26 = vadd.f32 %v5246_v59, %v5140_v1  ;;  %v5480_v51 = vadd.f32 %v11994_v55, %v5321_v9  ;;  %v13654_v52 = vld [vmem:[#allocation31_spill] sm:$0xff] }
 0x5dc   : > { %v12031_v31 = vpop.f32.mrf.mxu0  ;;  %v5648_v18 = vadd.f32 %v5546_v3, %v5484_v15  ;;  %v4956_v32 = vadd.f32 %v11936_v33, %v4770_v10  ;;  %v5318_v33 = vadd.f32 %v13641_v8, %v5132_v2  ;;  %v5479_v3 = vadd.f32 %v13643_v62, %v5320_v7  ;;  %v13652_v15 = vld [vmem:[#allocation20_spill] sm:$0xff] }
 0x5dd   : > { %v5485_v19 = vadd.f32 %v5405_v57, %v5326_v26  ;;  %v13640_v57 = vld [vmem:[#allocation14_spill] sm:$0xff]  ;;  %v5644_v59 = vadd.f32 %v13644_v43, %v5480_v51  ;;  %v5322_v35 = vadd.f32 %v13652_v15, %v5136_v53  ;;  %v5806_v24 = vadd.f32 %v12031_v31, %v5642_v47  ;;  %v13663_v43 = vld [vmem:[#allocation23_spill] sm:$0xff] }
 0x5de   : > { %v5141_v41 = vadd.f32 %v13640_v57, %v4956_v32  ;;  %v5477_v16 = vadd.f32 %v13649_v30, %v5318_v33  ;;  %v5643_v17 = vadd.f32 %v13650_v20, %v5479_v3 }
 0x5df   : > { %v12041_v5 = vpop.f32.mrf.mxu2  ;;  %v5649_v39 = vadd.f32 %v5569_v0, %v5485_v19  ;;  %v13645_v0 = vld [vmem:[#allocation12_spill] sm:$0xff]  ;;  %v5481_v32 = vadd.f32 %v13658_v49, %v5322_v35  ;;  %v13665_v35 = vld [vmem:[#allocation6_spill] sm:$0xff]  ;;  %v13671_v49 = vld [vmem:[#allocation11_spill] sm:$0xff] }
 0x5e0   : > { %v5730_v40 = vpop.f32.mrf.mxu1  ;;  %v5138_v6 = vadd.f32 %v13645_v0, %v4953_v12  ;;  %v5327_v63 = vadd.f32 %v13647_v42, %v5141_v41  ;;  %v5641_v26 = vadd.f32 %v13654_v52, %v5477_v16  ;;  %v13657_v19 = vld [vmem:[#allocation40_spill] sm:$0xff] }
 0x5e1   : > { %v5684_v44 = vpop.f32.mrf.mxu3  ;;  %v5807_v11 = vadd.f32 %v5730_v40, %v5643_v17  ;;  %v13659_v40 = vld [vmem:[#allocation3_spill] sm:$0xff]  ;;  %v5645_v57 = vadd.f32 %v13661_v50, %v5481_v32 }
 0x5e2   : > { %v5324_v1 = vadd.f32 %v13651_v46, %v5138_v6  ;;  %v5486_v22 = vadd.f32 %v13653_v58, %v5327_v63  ;;  %v5805_v2 = vadd.f32 %v5684_v44, %v5641_v26  ;;  %v13662_v44 = vld [vmem:[#allocation19_spill] sm:$0xff]  ;;  %v13666_v58 = vld [vmem:[#allocation10_spill] sm:$0xff]  ;;  %v13667_v26 = vld [vmem:[#allocation5_spill] sm:$0xff] }
 0x5e4   : > { %v5710_v34 = vpop.f32.mrf.mxu0  ;;  %v5483_v9 = vadd.f32 %v13656_v56, %v5324_v1 }
 0x5e5   : > { %v5812_v48 = vadd.f32 %v5710_v34, %v5648_v18  ;;  %v12095_v18 = vpop.permute.xlu0 %5821  ;;  %v4771_v34 = vadd.f32 %v13655_v28, %v4566_v54  ;;  %v13660_v54 = vld [vmem:[#allocation35_spill] sm:$0xff] }
 0x5e6   : > { %v5830_v51 = vadd.f32 %v12095_v18, %v5806_v24  ;;  %v5831_v41 = vadd.f32 %v12095_v18, %v5807_v11  ;;  %v5829_v14 = vadd.f32 %v12095_v18, %v5805_v2  ;;  %v13668_v11 = vld [vmem:[#allocation7_spill] sm:$0xff]  ;;  %v13672_v2 = vld [vmem:[#allocation4_spill] sm:$0xff] }
 0x5e7   : > { %v5753_v4 = vpop.f32.mrf.mxu2  ;;  %v5836_v21 = vadd.f32 %v12074_v37, %v5812_v48  ;;  %v5650_v48 = vadd.f32 %v13657_v19, %v5486_v22  ;;  %v4957_v7 = vadd.f32 %v13659_v40, %v4771_v34  ;;  %v4589_v22 = vadd.f32 %v13666_v58, %v13665_v35  ;;  %v13669_v34 = vld [vmem:[#allocation2_spill] sm:$0xff]  ;;  %v13670_v19 = vld [vmem:[#allocation8_spill] sm:$0xff] }
 0x5e8   : > { %v5733_v23 = vpop.f32.mrf.mxu1  ;;  %v5808_v27 = vadd.f32 %v5753_v4, %v5644_v59  ;;  %v5647_v4 = vadd.f32 %v13660_v54, %v5483_v9  ;;  %v12127_v0 = vmax.f32 %v5831_v41, 0.0  ;;  %v12133_v63 = vmax.f32 %v5829_v14, 0.0 }
 0x5e9   : > { %v5813_v55 = vadd.f32 %v5733_v23, %v5649_v39  ;;  %v5687_v45 = vpop.f32.mrf.mxu3  ;;  %v12097_v10 = vmax.f32 %v5836_v21, 0.0  ;;  %v5142_v8 = vadd.f32 %v13662_v44, %v4957_v7  ;;  %v12123_v21 = vmax.f32 %v5830_v51, 0.0  ;;  %v13674_v7 = vld [vmem:[#allocation13_spill] sm:$0xff] }
 0x5ea   : > { %v5832_v31 = vadd.f32 %v12095_v18, %v5808_v27  ;;  %v5811_v62 = vadd.f32 %v5687_v45, %v5647_v4  ;;  %v4586_v28 = vadd.f32 %v13668_v11, %v13667_v26  ;;  %v4772_v56 = vadd.f32 %v13669_v34, %v4589_v22  ;;  %v13676_v4 = vld [vmem:[#allocation22_spill] sm:$0xff] }
 0x5eb   : > { %v5837_v60 = vadd.f32 %v12074_v37, %v5813_v55  ;;  %v5328_v59 = vadd.f32 %v13663_v43, %v5142_v8  ;;  %v10240_v9 = vpack.i.bf16 %v12123_v21, %v12133_v63 }
 0x5ec   : > { %v12120_v23 = vmax.f32 %v5832_v31, 0.0  ;;  %v5835_v29 = vadd.f32 %v12074_v37, %v5811_v62  ;;  %v5799_v52 = vpop.f32.mrf.mxu0  ;;  %v4958_v32 = vadd.f32 %v13671_v49, %v4772_v56 }
 0x5ed   : > { %v12099_v13 = vmax.f32 %v5837_v60, 0.0  ;;  %v5487_v53 = vadd.f32 %v13664_v61, %v5328_v59 }
 0x5ee   : > { %v10215_v45 = vpack.i.bf16 %v12120_v23, %v12127_v0  ;;  %v12145_v17 = vmax.f32 %v5835_v29, 0.0 }
 0x5ef   : > { %v5756_v38 = vpop.f32.mrf.mxu2  ;;  %v12108_v12 = vpack.i.bf16 %v12099_v13, %v12097_v10  ;;  %v5651_v30 = vadd.f32 %v12026_v36, %v5487_v53  ;;  %v10245_v15 = vpack.i.bf16 %v12127_v0, %v12099_v13 }
 0x5f0   : > { %v5814_v39 = vadd.f32 %v5756_v38, %v5650_v48  ;;  %v10235_v1 = vpack.i.bf16 %v12097_v10, %v12145_v17  ;;  %v4766_v48 = vadd.f32 %v13670_v19, %v4586_v28  ;;  %v13673_v38 = vld [vmem:[#allocation17_spill] sm:$0xff] }
 0x5f1   : > { %10211 = vrot.lane.b32.xlu1 %v12108_v12, %s10529_s25  ;;  %v5776_v25 = vpop.f32.mrf.mxu3  ;;  %v5143_v40 = vadd.f32 %v13673_v38, %v4958_v32  ;;  %v9622_v38 = vld [vmem:[%s13563_s7 + $0x10] sm:$0xff] }
 0x5f2   : > { %v5838_v33 = vadd.f32 %v12074_v37, %v5814_v39  ;;  %v5809_v3 = vadd.f32 %v5776_v25, %v5645_v57  ;;  %v4952_v31 = vadd.f32 %v13672_v2, %v4766_v48  ;;  %v13675_v39 = vld [vmem:[#allocation25_spill] sm:$0xff] }
 0x5f3   : > { %v5329_v54 = vadd.f32 %v13675_v39, %v5143_v40  ;;  %v13677_v57 = vld [vmem:[#allocation33_spill] sm:$0xff] }
 0x5f4   : > { %v12125_v55 = vmax.f32 %v5838_v33, 0.0  ;;  %v5833_v6 = vadd.f32 %v12095_v18, %v5809_v3  ;;  %v5137_v51 = vadd.f32 %v13674_v7, %v4952_v31  ;;  %v5802_v33 = vpop.f32.mrf.mxu0  ;;  %v13678_v25 = vld [vmem:[#allocation29_spill] sm:$0xff] }
 0x5f5   : > { %v5488_v41 = vadd.f32 %v13677_v57, %v5329_v54  ;;  %v13679_v3 = vld [vmem:[#allocation41_spill] sm:$0xff] }
 0x5f6   : > { %v10220_v42 = vpack.i.bf16 %v12123_v21, %v12125_v55  ;;  %v12136_v47 = vmax.f32 %v5833_v6, 0.0  ;;  %v5323_v50 = vadd.f32 %v13676_v4, %v5137_v51  ;;  %v10270_v53 = vpack.i.bf16 %v12125_v55, %v12099_v13 }
 0x5f7   : > { %v5652_v62 = vadd.f32 %v12041_v5, %v5488_v41 }
 0x5f8   : > { %10221 = vrot.lane.b32.xlu2 %v10220_v42, %s10529_s25  ;;  %v10230_v16 = vpack.i.bf16 %v12136_v47, %v12133_v63  ;;  %v10250_v44 = vpack.i.bf16 %v12136_v47, %v12120_v23  ;;  %v5482_v14 = vadd.f32 %v13678_v25, %v5323_v50 }
 0x5f9   : > { %10216 = vrot.lane.b32.xlu1 %v10215_v45, %s10529_s25  ;;  %v5779_v20 = vpop.f32.mrf.mxu3  ;;  %v5816_v59 = vadd.f32 %v5802_v33, %v5652_v62 }
 0x5fa   : > { %v5815_v27 = vadd.f32 %v5779_v20, %v5651_v30  ;;  %10231 = vrot.lane.b32.xlu0 %v10230_v16, %s10529_s25  ;;  %v5646_v43 = vadd.f32 %v13679_v3, %v5482_v14 }
 0x5fb   : > { %v5840_v61 = vadd.f32 %v12074_v37, %v5816_v59 }
 0x5fc   : > { %v5839_v60 = vadd.f32 %v12074_v37, %v5815_v27  ;;  %v5810_v6 = vadd.f32 %v5799_v52, %v5646_v43  ;;  %v7280_v27 = vld [vmem:[%s13564_s8 + $0x8] sm:$0xff] }
 0x5fd   : > { %v12198_v5 = vmax.f32 %v5840_v61, 0.0 }
 0x5fe   : > { %v12149_v46 = vmax.f32 %v5839_v60, 0.0  ;;  %v5834_v29 = vadd.f32 %v12095_v18, %v5810_v6  ;;  %v10320_v18 = vpack.i.bf16 %v12133_v63, %v12099_v13 }
 0x600   : > { %v10225_v36 = vpack.i.bf16 %v12149_v46, %v12145_v17  ;;  %v10260_v24 = vpack.i.bf16 %v12149_v46, %v12125_v55  ;;  %v10275_v8 = vpack.i.bf16 %v12127_v0, %v12149_v46  ;;  %v12200_v30 = vmax.f32 %v5834_v29, 0.0  ;;  %v5853_v29 = vld [vmem:[%s13563_s7] sm:$0xff] }
 0x601   : > { %10236 = vrot.lane.b32.xlu1 %v10235_v1, %s10537_s24 }
 0x602   : > { %10226 = vrot.lane.b32.xlu2 %v10225_v36, %s10529_s25  ;;  %10246 = vrot.lane.b32.xlu0 %v10245_v15, %s10537_s24  ;;  %v10285_v37 = vpack.i.bf16 %v12200_v30, %v12198_v5  ;;  %v10345_v20 = vpack.i.bf16 %v12200_v30, %v12136_v47 }
 0x609   : > { %10261 = vrot.lane.b32.xlu1 %v10260_v24, %s10537_s24 }
 0x60a   : > { %10241 = vrot.lane.b32.xlu2 %v10240_v9, %s10537_s24  ;;  %10256 = vrot.lane.b32.xlu0 %v10235_v1, %s10533_s16 }
 0x611   : > { %10266 = vrot.lane.b32.xlu1 %v10240_v9, %s10533_s16 }
 0x612   : > { %10251 = vrot.lane.b32.xlu2 %v10250_v44, %s10537_s24  ;;  %10276 = vrot.lane.b32.xlu0 %v10275_v8, %s10533_s16 }
 0x619   : > { %10281 = vrot.lane.b32.xlu1 %v10250_v44, %s10533_s16 }
 0x61a   : > { %10271 = vrot.lane.b32.xlu2 %v10270_v53, %s10533_s16  ;;  %10291 = vrot.lane.b32.xlu0 %v12108_v12, %s10535_s30  ;;  %v10325_v12 = vpack.i.bf16 %v12127_v0, %v12123_v21 }
 0x621   : > { %10296 = vrot.lane.b32.xlu1 %v10220_v42, %s10535_s30  ;;  %v10335_v42 = vpack.i.bf16 %v12120_v23, %v12125_v55 }
 0x622   : > { %10286 = vrot.lane.b32.xlu2 %v10285_v37, %s10533_s16  ;;  %10316 = vrot.lane.b32.xlu0 %v10225_v36, %s10535_s30 }
 0x629   : > { %10306 = vrot.lane.b32.xlu1 %v10230_v16, %s10535_s30  ;;  %v10340_v16 = vpack.i.bf16 %v12198_v5, %v12149_v46 }
 0x62a   : > { %10301 = vrot.lane.b32.xlu2 %v10215_v45, %s10535_s30  ;;  %10321 = vrot.lane.b32.xlu0 %v10320_v18, %s10538_s26  ;;  %v7279_v45 = vld [vmem:[%s13564_s8] sm:$0xff] }
 0x631   : > { %10326 = vrot.lane.b32.xlu1 %v10325_v12, %s10538_s26 }
 0x632   : > { %10311 = vrot.lane.b32.xlu2 %v10235_v1, %s10538_s26  ;;  %10336 = vrot.lane.b32.xlu0 %v10335_v42, %s10538_s26 }
 0x639   : > { %10341 = vrot.lane.b32.xlu1 %v10340_v16, %s10538_s26 }
 0x63a   : > { %10331 = vrot.lane.b32.xlu2 %v10285_v37, %s10535_s30  ;;  %10351 = vrot.lane.b32.xlu0 %v10285_v37, %s10529_s25  ;;  %s9941_s30 = smul.u32 80, %s13725_s19 }
 0x63c   : > { %s12700_s21 = scalar_lea.vmem %s13571_s15, %s9941_s30 }
 0x641   : > { %10356 = vrot.lane.b32.xlu1 %v10285_v37, %s10537_s24 }
 0x642   : > { %10346 = vrot.lane.b32.xlu2 %v10345_v20, %s10538_s26  ;;  %7283 = vperm.xlu0 %10209, %v7279_v45  }
 0x64a   : > { %7288 = vperm.xlu2 %10108, %v7280_v27  }
 0x652   : > { %v10222_v60 = vpop.permute.xlu2 %10221 }
 0x653   : > { %v10223_v36 = vunpack.i.l.bf16 %v10222_v60  ;;  %v10224_v19 = vunpack.i.h.bf16 %v10222_v60 }
 0x65c   : > { %v10227_v1 = vpop.permute.xlu2 %10226 }
 0x65d   : > { %v12234_v15 = vunpack.i.h.bf16 %v10227_v1  ;;  %v10228_v22 = vunpack.i.l.bf16 %v10227_v1 }
 0x65f   : > { %v12238_v35 = vsel %vm978_vm3, %v10223_v36, %v12234_v15 }
 0x660   : > { %5996 = vmatpush.msrb.mxu0 %v12238_v35 }
 0x663   : > { %v10212_v58 = vpop.permute.xlu1 %10211 }
 0x664   : > { %v10214_v24 = vunpack.i.h.bf16 %v10212_v58  ;;  %v10213_v52 = vunpack.i.l.bf16 %v10212_v58  ;;  %v10242_v51 = vpop.permute.xlu2 %10241 }
 0x665   : > { %v10244_v44 = vunpack.i.h.bf16 %v10242_v51 }
 0x666   : > { %v5892_v26 = vsel %vm978_vm3, %v10228_v22, %v10213_v52  ;;  %v12243_v11 = vsel %vm978_vm3, %v10213_v52, %v10214_v24  ;;  %v12247_v28 = vsel %vm978_vm3, %v10214_v24, %v10223_v36  ;;  %v5854_v24 = vld [vmem:[%s13563_s7 + $0x8] sm:$0xff] }
 0x667   : > { %5927 = vmatpush.msrb.mxu1 %v5892_v26  ;;  %5950 = vmatpush.msra.mxu2 %v12243_v11 }
 0x668   : > { %5973 = vmatpush.msrb.mxu3 %v12247_v28 }
 0x66b   : > { %v10217_v34 = vpop.permute.xlu1 %10216 }
 0x66c   : > { %v10219_v56 = vunpack.i.h.bf16 %v10217_v34  ;;  %v10218_v9 = vunpack.i.l.bf16 %v10217_v34  ;;  %v10232_v48 = vpop.permute.xlu0 %10231  ;;  %v10252_v25 = vpop.permute.xlu2 %10251 }
 0x66d   : > { %v12250_v49 = vunpack.i.h.bf16 %v10232_v48  ;;  %v10233_v32 = vunpack.i.l.bf16 %v10232_v48  ;;  %v12307_v37 = vunpack.i.h.bf16 %v10252_v25  ;;  %v10253_v18 = vunpack.i.l.bf16 %v10252_v25  ;;  %v9644_v48 = vld [vmem:[%s13563_s7 + $0x20] sm:$0xff] }
 0x66e   : > { %v12253_v2 = vsel %vm978_vm3, %v10224_v19, %v10218_v9  ;;  %v12256_v31 = vsel %vm978_vm3, %v10218_v9, %v10219_v56 }
 0x66f   : > { %v5888_v40 = vsel %vm978_vm3, %v10233_v32, %v10224_v19  ;;  %5951 = vmatpush.msra.mxu2 %v12253_v2  ;;  %5974 = vmatpush.msrb.mxu3 %v12256_v31  ;;  %v12266_v7 = vsel %vm978_vm3, %v10219_v56, %v12250_v49  ;;  %v12329_v36 = vsel %vm4185_vm11, %v10253_v18, %v12307_v37 }
 0x670   : > { %5928 = vmatpush.msrb.mxu1 %v5888_v40  ;;  %5997 = vmatpush.msrb.mxu0 %v12266_v7 }
 0x671   : > { %9624 = vmatmul.msk.f32.vlgmr.msrb.gmra.mxu1 %vm5906_vm13, %v9622_v38  ;;  %9626 = vmatmul.msk.f32.vlgmr.msra.gmra.mxu2 %vm5906_vm13, %v9622_v38 }
 0x672   : > { %9628 = vmatmul.msk.f32.vlgmr.msrb.gmra.mxu3 %vm5906_vm13, %v9622_v38  ;;  %9630 = vmatmul.msk.f32.vlgmr.msrb.gmra.mxu0 %vm5906_vm13, %v9622_v38 }
 0x673   : > { %v10237_v39 = vpop.permute.xlu1 %10236  ;;  %6019 = vmatpush.msra.mxu1 %v12234_v15  ;;  %6048 = vmatpush.msrb.mxu2 %v12145_v17  ;;  %v10243_v17 = vunpack.i.l.bf16 %v10242_v51 }
 0x674   : > { %v10239_v54 = vunpack.i.h.bf16 %v10237_v39  ;;  %v10238_v4 = vunpack.i.l.bf16 %v10237_v39  ;;  %6071 = vmatpush.msra.mxu3 %v12097_v10  ;;  %6094 = vmatpush.msra.mxu0 %v12099_v13  ;;  %v10247_v50 = vpop.permute.xlu0 %10246  ;;  %v10272_v60 = vpop.permute.xlu2 %10271 }
 0x675   : > { %6020 = vmatpush.msra.mxu1 %v12250_v49  ;;  %6049 = vmatpush.msrb.mxu2 %v12133_v63  ;;  %v10248_v57 = vunpack.i.l.bf16 %v10247_v50  ;;  %v10249_v8 = vunpack.i.h.bf16 %v10247_v50  ;;  %v9623_v63 = vld [vmem:[%s13563_s7 + $0x18] sm:$0xff]  ;;  %v6172_v62 = vsel %vm4185_vm11, %v10243_v17, %v10244_v44  ;;  %v10274_v34 = vunpack.i.h.bf16 %v10272_v60 }
 0x676   : > { %6072 = vmatpush.msra.mxu3 %v12123_v21  ;;  %6095 = vmatpush.msra.mxu0 %v12127_v0  ;;  %v6176_v41 = vsel %vm4185_vm11, %v10238_v4, %v10239_v54  ;;  %v10273_v56 = vunpack.i.l.bf16 %v10272_v60 }
 0x677   : > { %6117 = vmatpush.msrb.mxu1 %v12125_v55  ;;  %6140 = vmatpush.msra.mxu2 %v12149_v46  ;;  %v12285_v33 = vsel %vm4185_vm11, %v10239_v54, %v10248_v57  ;;  %v12299_v3 = vsel %vm4185_vm11, %v10244_v44, %v10249_v8  ;;  %v12325_v1 = vsel %vm4185_vm11, %v10249_v8, %v10253_v18 }
 0x678   : > { %6210 = vmatpush.msrb.mxu3 %v6176_v41  ;;  %6233 = vmatpush.msrb.mxu0 %v12285_v33  ;;  %v6357_v54 = vsel %vm1890_vm7, %v10273_v56, %v10274_v34 }
 0x679   : > { %6118 = vmatpush.msrb.mxu1 %v12120_v23  ;;  %6141 = vmatpush.msra.mxu2 %v12136_v47 }
 0x67a   : > { %9625 = vmatmul.msk.f32.gmra.mxu1 %vm5906_vm13, %v9623_v63  ;;  %9627 = vmatmul.msk.f32.gmra.mxu2 %vm5906_vm13, %v9623_v63 }
 0x67b   : > { %v10262_v14 = vpop.permute.xlu1 %10261  ;;  %9629 = vmatmul.msk.f32.gmra.mxu3 %vm5906_vm13, %v9623_v63  ;;  %9631 = vmatmul.msk.f32.gmra.mxu0 %vm5906_vm13, %v9623_v63 }
 0x67c   : > { %6211 = vmatpush.msrb.mxu3 %v6172_v62  ;;  %6234 = vmatpush.msrb.mxu0 %v12299_v3  ;;  %v10257_v43 = vpop.permute.xlu0 %10256  ;;  %v12302_v59 = vunpack.i.h.bf16 %v10262_v14  ;;  %v10263_v6 = vunpack.i.l.bf16 %v10262_v14  ;;  %v10287_v26 = vpop.permute.xlu2 %10286  ;;  %v9645_v14 = vld [vmem:[%s13563_s7 + $0x28] sm:$0xff] }
 0x67d   : > { %v10259_v61 = vunpack.i.h.bf16 %v10257_v43  ;;  %v10258_v53 = vunpack.i.l.bf16 %v10257_v43  ;;  %v10288_v40 = vunpack.i.l.bf16 %v10287_v26  ;;  %v10289_v4 = vunpack.i.h.bf16 %v10287_v26 }
 0x67e   : > { %v12310_v12 = vsel %vm4185_vm11, %v10248_v57, %v10263_v6  ;;  %v12314_v42 = vsel %vm4185_vm11, %v10263_v6, %v12302_v59 }
 0x67f   : > { %v6355_v16 = vsel %vm1890_vm7, %v10258_v53, %v10259_v61  ;;  %v6356_v39 = vsel %vm1890_vm7, %v10259_v61, %v10273_v56 }
 0x682   : > { %9632 = vmatmul.msk.f32.vlgmr.msra.gmra.mxu1 %vm5906_vm13, %v9622_v38  ;;  %9634 = vmatmul.msk.f32.vlgmr.msrb.gmra.mxu2 %vm5906_vm13, %v5853_v29 }
 0x683   : > { %v10267_v45 = vpop.permute.xlu1 %10266  ;;  %9636 = vmatmul.msk.f32.vlgmr.msra.gmra.mxu3 %vm5906_vm13, %v5853_v29  ;;  %9638 = vmatmul.msk.f32.vlgmr.msra.gmra.mxu0 %vm5906_vm13, %v5853_v29 }
 0x684   : > { %v10269_v20 = vunpack.i.h.bf16 %v10267_v45  ;;  %v10268_v27 = vunpack.i.l.bf16 %v10267_v45  ;;  %6256 = vmatpush.msra.mxu1 %v12310_v12  ;;  %6279 = vmatpush.msrb.mxu2 %v12314_v42  ;;  %v10277_v58 = vpop.permute.xlu0 %10276  ;;  %v10302_v25 = vpop.permute.xlu2 %10301 }
 0x685   : > { %6302 = vmatpush.msra.mxu3 %v12302_v59  ;;  %6390 = vmatpush.msra.mxu0 %v6355_v16  ;;  %v10278_v19 = vunpack.i.l.bf16 %v10277_v58  ;;  %v10279_v32 = vunpack.i.h.bf16 %v10277_v58  ;;  %v9656_v16 = vld [vmem:[%s13563_s7 + $0x30] sm:$0xff]  ;;  %v10303_v60 = vunpack.i.l.bf16 %v10302_v25 }
 0x686   : > { %6257 = vmatpush.msra.mxu1 %v12325_v1  ;;  %6280 = vmatpush.msrb.mxu2 %v12329_v36  ;;  %v6350_v22 = vsel %vm1890_vm7, %v10268_v27, %v10269_v20  ;;  %v10304_v27 = vunpack.i.h.bf16 %v10302_v25 }
 0x687   : > { %6303 = vmatpush.msra.mxu3 %v12307_v37  ;;  %6391 = vmatpush.msra.mxu0 %v6350_v22  ;;  %v6358_v50 = vsel %vm1890_vm7, %v10274_v34, %v10278_v19  ;;  %v6359_v57 = vsel %vm1890_vm7, %v10278_v19, %v10288_v40  ;;  %v6351_v44 = vsel %vm1890_vm7, %v10269_v20, %v10279_v32 }
 0x68a   : > { %9633 = vmatmul.msk.f32.gmra.mxu1 %vm5906_vm13, %v9623_v63  ;;  %9635 = vmatmul.msk.f32.gmra.mxu2 %vm5906_vm13, %v5854_v24 }
 0x68b   : > { %v10282_v52 = vpop.permute.xlu1 %10281  ;;  %9637 = vmatmul.msk.f32.gmra.mxu3 %vm5906_vm13, %v5854_v24  ;;  %9639 = vmatmul.msk.f32.gmra.mxu0 %vm5906_vm13, %v5854_v24 }
 0x68c   : > { %v10292_v9 = vpop.permute.xlu0 %10291  ;;  %v10283_v38 = vunpack.i.l.bf16 %v10282_v52  ;;  %v10284_v51 = vunpack.i.h.bf16 %v10282_v52  ;;  %v10312_v58 = vpop.permute.xlu2 %10311 }
 0x68d   : > { %v10294_v6 = vunpack.i.h.bf16 %v10292_v9  ;;  %v10293_v61 = vunpack.i.l.bf16 %v10292_v9 }
 0x68e   : > { %v6352_v17 = vsel %vm1890_vm7, %v10279_v32, %v10283_v38  ;;  %v6353_v8 = vsel %vm1890_vm7, %v10283_v38, %v10284_v51  ;;  %v6354_v63 = vsel %vm1890_vm7, %v10284_v51, %v10289_v4  ;;  %v9657_v38 = vld [vmem:[%s13563_s7 + $0x38] sm:$0xff]  ;;  %v10313_v4 = vunpack.i.l.bf16 %v10312_v58 }
 0x68f   : > { %v6534_v26 = vsel %vm2346_vm9, %v10293_v61, %v10294_v6 }
 0x692   : > { %9640 = vmatmul.msk.f32.vlgmr.msrb.gmra.mxu1 %vm5906_vm13, %v5853_v29  ;;  %9642 = vmatmul.msk.f32.vlgmr.msra.gmra.mxu2 %vm5906_vm13, %v5853_v29 }
 0x693   : > { %9646 = vmatmul.msk.f32.vlgmr.msrb.gmra.mxu3 %vm5906_vm13, %v9644_v48  ;;  %9648 = vmatmul.msk.f32.vlgmr.msrb.gmra.mxu0 %vm5906_vm13, %v9644_v48  ;;  %v10297_v41 = vpop.permute.xlu1 %10296 }
 0x694   : > { %6413 = vmatpush.msrb.mxu1 %v6356_v39  ;;  %6436 = vmatpush.msra.mxu2 %v6357_v54  ;;  %v12360_v62 = vpop.permute.xlu0 %10316  ;;  %v10298_v29 = vunpack.i.l.bf16 %v10297_v41  ;;  %v10299_v45 = vunpack.i.h.bf16 %v10297_v41  ;;  %v10332_v40 = vpop.permute.xlu2 %10331  ;;  %v10314_v54 = vunpack.i.h.bf16 %v10312_v58 }
 0x695   : > { %6459 = vmatpush.msrb.mxu3 %v6358_v50  ;;  %6482 = vmatpush.msrb.mxu0 %v6359_v57  ;;  %v10318_v53 = vunpack.i.l.bf16 %v12360_v62  ;;  %v10319_v18 = vunpack.i.h.bf16 %v12360_v62  ;;  %v10333_v50 = vunpack.i.l.bf16 %v10332_v40 }
 0x696   : > { %6414 = vmatpush.msrb.mxu1 %v6351_v44  ;;  %6437 = vmatpush.msra.mxu2 %v6352_v17  ;;  %v6535_v34 = vsel %vm2346_vm9, %v10294_v6, %v10298_v29  ;;  %v6529_v19 = vsel %vm2346_vm9, %v10299_v45, %v10303_v60  ;;  %v6711_v62 = vsel %vm5161_vm12, %v10313_v4, %v10314_v54 }
 0x697   : > { %6460 = vmatpush.msrb.mxu3 %v6353_v8  ;;  %6483 = vmatpush.msrb.mxu0 %v6354_v63  ;;  %v6533_v52 = vsel %vm2346_vm9, %v10318_v53, %v10293_v61  ;;  %v6536_v56 = vsel %vm2346_vm9, %v10298_v29, %v10319_v18  ;;  %v10334_v63 = vunpack.i.h.bf16 %v10332_v40 }
 0x69a   : > { %9641 = vmatmul.msk.f32.gmra.mxu1 %vm5906_vm13, %v5854_v24  ;;  %9643 = vmatmul.msk.f32.gmra.mxu2 %vm5906_vm13, %v5854_v24 }
 0x69b   : > { %9647 = vmatmul.msk.f32.gmra.mxu3 %vm5906_vm13, %v9645_v14  ;;  %9649 = vmatmul.msk.f32.gmra.mxu0 %vm5906_vm13, %v9645_v14  ;;  %v12366_v43 = vpop.permute.xlu1 %10306 }
 0x69c   : > { %v10308_v20 = vunpack.i.l.bf16 %v12366_v43  ;;  %v10309_v22 = vunpack.i.h.bf16 %v12366_v43  ;;  %v10322_v24 = vpop.permute.xlu0 %10321 }
 0x69d   : > { %v10323_v57 = vunpack.i.l.bf16 %v10322_v24  ;;  %v10324_v25 = vunpack.i.h.bf16 %v10322_v24 }
 0x69e   : > { %v6528_v9 = vsel %vm2346_vm9, %v10308_v20, %v10299_v45  ;;  %v6531_v32 = vsel %vm2346_vm9, %v10304_v27, %v10309_v22  ;;  %v6532_v61 = vsel %vm2346_vm9, %v10309_v22, %v10334_v63  ;;  %v10347_v45 = vpop.permute.xlu2 %10346 }
 0x69f   : > { %v6712_v43 = vsel %vm5161_vm12, %v10314_v54, %v10323_v57  ;;  %v10349_v58 = vunpack.i.h.bf16 %v10347_v45  ;;  %v10348_v22 = vunpack.i.l.bf16 %v10347_v45 }
 0x6a2   : > { %9650 = vmatmul.msk.f32.vlgmr.msra.gmra.mxu1 %vm5906_vm13, %v9644_v48  ;;  %9652 = vmatmul.msk.f32.vlgmr.msrb.gmra.mxu2 %vm5906_vm13, %v9644_v48 }
 0x6a3   : > { %9654 = vmatmul.msk.f32.vlgmr.msra.gmra.mxu3 %vm5906_vm13, %v9644_v48  ;;  %9658 = vmatmul.msk.f32.vlgmr.msra.gmra.mxu0 %vm5906_vm13, %v9656_v16  ;;  %v6530_v48 = vsel %vm2346_vm9, %v10303_v60, %v10304_v27  ;;  %v10327_v39 = vpop.permute.xlu1 %10326  ;;  %v9668_v60 = vld [vmem:[%s13563_s7 + $0x40] sm:$0xff] }
 0x6a4   : > { %6568 = vmatpush.msra.mxu1 %v6533_v52  ;;  %6591 = vmatpush.msrb.mxu2 %v6534_v26  ;;  %v10337_v51 = vpop.permute.xlu0 %10336  ;;  %v10328_v44 = vunpack.i.l.bf16 %v10327_v39  ;;  %v10329_v17 = vunpack.i.h.bf16 %v10327_v39  ;;  %v9716_v39 = vld [vmem:[%s13563_s7 + $0x80] sm:$0xff] }
 0x6a5   : > { %6614 = vmatpush.msra.mxu3 %v6535_v34  ;;  %6637 = vmatpush.msra.mxu0 %v6536_v56  ;;  %v10338_v41 = vunpack.i.l.bf16 %v10337_v51  ;;  %v10339_v8 = vunpack.i.h.bf16 %v10337_v51  ;;  %v6710_v34 = vsel %vm5161_vm12, %v10348_v22, %v10349_v58  ;;  %v9669_v56 = vld [vmem:[%s13563_s7 + $0x48] sm:$0xff] }
 0x6a6   : > { %6569 = vmatpush.msra.mxu1 %v6528_v9  ;;  %6592 = vmatpush.msrb.mxu2 %v6529_v19  ;;  %v6706_v53 = vsel %vm5161_vm12, %v10324_v25, %v10328_v44  ;;  %v6707_v29 = vsel %vm5161_vm12, %v10328_v44, %v10329_v17 }
 0x6a7   : > { %6615 = vmatpush.msra.mxu3 %v6530_v48  ;;  %6638 = vmatpush.msra.mxu0 %v6531_v32  ;;  %v6713_v6 = vsel %vm5161_vm12, %v10323_v57, %v10338_v41  ;;  %v6709_v26 = vsel %vm5161_vm12, %v10339_v8, %v10348_v22 }
 0x6aa   : > { %9651 = vmatmul.msk.f32.gmra.mxu1 %vm5906_vm13, %v9645_v14  ;;  %9653 = vmatmul.msk.f32.gmra.mxu2 %vm5906_vm13, %v9645_v14 }
 0x6ab   : > { %9655 = vmatmul.msk.f32.gmra.mxu3 %vm5906_vm13, %v9645_v14  ;;  %9659 = vmatmul.msk.f32.gmra.mxu0 %vm5906_vm13, %v9657_v38  ;;  %v6537_v14 = vsel %vm2346_vm9, %v10319_v18, %v10333_v50  ;;  %v6708_v18 = vsel %vm5161_vm12, %v10329_v17, %v10339_v8 }
 0x6b2   : > { %9660 = vmatmul.msk.f32.vlgmr.msrb.gmra.mxu1 %vm5906_vm13, %v9656_v16  ;;  %9662 = vmatmul.msk.f32.vlgmr.msra.gmra.mxu2 %vm5906_vm13, %v9656_v16 }
 0x6b3   : > { %9664 = vmatmul.msk.f32.vlgmr.msrb.gmra.mxu3 %vm5906_vm13, %v9656_v16  ;;  %9666 = vmatmul.msk.f32.vlgmr.msrb.gmra.mxu0 %vm5906_vm13, %v9656_v16  ;;  %v10342_v16 = vpop.permute.xlu1 %10341 }
 0x6b4   : > { %6660 = vmatpush.msrb.mxu1 %v6537_v14  ;;  %6746 = vmatpush.msra.mxu2 %v6711_v62  ;;  %v10344_v20 = vunpack.i.h.bf16 %v10342_v16  ;;  %v10343_v27 = vunpack.i.l.bf16 %v10342_v16 }
 0x6b5   : > { %6769 = vmatpush.msrb.mxu3 %v6712_v43  ;;  %6792 = vmatpush.msrb.mxu0 %v6713_v6 }
 0x6b6   : > { %6661 = vmatpush.msrb.mxu1 %v6532_v61  ;;  %6747 = vmatpush.msra.mxu2 %v6706_v53  ;;  %v6714_v24 = vsel %vm5161_vm12, %v10338_v41, %v10343_v27  ;;  %v6715_v52 = vsel %vm5161_vm12, %v10343_v27, %v10344_v20  ;;  %v9717_v41 = vld [vmem:[%s13563_s7 + $0x88] sm:$0xff] }
 0x6b7   : > { %6770 = vmatpush.msrb.mxu3 %v6707_v29  ;;  %6793 = vmatpush.msrb.mxu0 %v6708_v18 }
 0x6ba   : > { %9661 = vmatmul.msk.f32.gmra.mxu1 %vm5906_vm13, %v9657_v38  ;;  %9663 = vmatmul.msk.f32.gmra.mxu2 %vm5906_vm13, %v9657_v38 }
 0x6bb   : > { %9665 = vmatmul.msk.f32.gmra.mxu3 %vm5906_vm13, %v9657_v38  ;;  %9667 = vmatmul.msk.f32.gmra.mxu0 %vm5906_vm13, %v9657_v38 }
 0x6c2   : > { %9670 = vmatmul.msk.f32.vlgmr.msra.gmra.mxu1 %vm5906_vm13, %v9668_v60  ;;  %9672 = vmatmul.msk.f32.vlgmr.msrb.gmra.mxu2 %vm5906_vm13, %v9668_v60 }
 0x6c3   : > { %9674 = vmatmul.msk.f32.vlgmr.msra.gmra.mxu3 %vm5906_vm13, %v9668_v60  ;;  %9676 = vmatmul.msk.f32.vlgmr.msra.gmra.mxu0 %vm5906_vm13, %v9668_v60 }
 0x6c4   : > { %6815 = vmatpush.msra.mxu1 %v6714_v24  ;;  %6838 = vmatpush.msrb.mxu2 %v6715_v52 }
 0x6c5   : > { %6880 = vmatpush.msra.mxu3 %v12097_v10  ;;  %6903 = vmatpush.msra.mxu0 %v12099_v13  ;;  %v9680_v10 = vld [vmem:[%s13563_s7 + $0x50] sm:$0xff]  ;;  %v9681_v13 = vld [vmem:[%s13563_s7 + $0x58] sm:$0xff] }
 0x6c6   : > { %6816 = vmatpush.msra.mxu1 %v6709_v26  ;;  %6839 = vmatpush.msrb.mxu2 %v6710_v34 }
 0x6c7   : > { %6881 = vmatpush.msra.mxu3 %v12123_v21  ;;  %6904 = vmatpush.msra.mxu0 %v12127_v0  ;;  %v10352_v21 = vpop.permute.xlu0 %10351 }
 0x6c8   : > { %v10354_v0 = vunpack.i.h.bf16 %v10352_v21 }
 0x6ca   : > { %9671 = vmatmul.msk.f32.gmra.mxu1 %vm5906_vm13, %v9669_v56  ;;  %9673 = vmatmul.msk.f32.gmra.mxu2 %vm5906_vm13, %v9669_v56 }
 0x6cb   : > { %9675 = vmatmul.msk.f32.gmra.mxu3 %vm5906_vm13, %v9669_v56  ;;  %9677 = vmatmul.msk.f32.gmra.mxu0 %vm5906_vm13, %v9669_v56 }
 0x6d2   : > { %9678 = vmatmul.msk.f32.vlgmr.msrb.gmra.mxu1 %vm5906_vm13, %v9668_v60  ;;  %9682 = vmatmul.msk.f32.vlgmr.msra.gmra.mxu2 %vm5906_vm13, %v9680_v10 }
 0x6d3   : > { %9684 = vmatmul.msk.f32.vlgmr.msrb.gmra.mxu3 %vm5906_vm13, %v9680_v10  ;;  %9686 = vmatmul.msk.f32.vlgmr.msrb.gmra.mxu0 %vm5906_vm13, %v9680_v10 }
 0x6d4   : > { %6926 = vmatpush.msrb.mxu1 %v12125_v55  ;;  %6949 = vmatpush.msra.mxu2 %v12149_v46  ;;  %v9692_v55 = vld [vmem:[%s13563_s7 + $0x60] sm:$0xff]  ;;  %v6998_v46 = vsel %vm978_vm3, %v12250_v49, %v10354_v0 }
 0x6d5   : > { %6972 = vmatpush.msrb.mxu3 %v12198_v5  ;;  %7024 = vmatpush.msrb.mxu0 %v12243_v11  ;;  %v9693_v5 = vld [vmem:[%s13563_s7 + $0x68] sm:$0xff] }
 0x6d6   : > { %6927 = vmatpush.msrb.mxu1 %v12120_v23  ;;  %6950 = vmatpush.msra.mxu2 %v12136_v47  ;;  %v10353_v23 = vunpack.i.l.bf16 %v10352_v21 }
 0x6d7   : > { %6973 = vmatpush.msrb.mxu3 %v12200_v30  ;;  %7025 = vmatpush.msrb.mxu0 %v12253_v2  ;;  %v10357_v30 = vpop.permute.xlu1 %10356 }
 0x6d8   : > { %v6999_v47 = vsel %vm978_vm3, %v12234_v15, %v10353_v23  ;;  %v10358_v11 = vunpack.i.l.bf16 %v10357_v30  ;;  %v10359_v49 = vunpack.i.h.bf16 %v10357_v30 }
 0x6da   : > { %9679 = vmatmul.msk.f32.gmra.mxu1 %vm5906_vm13, %v9669_v56  ;;  %9683 = vmatmul.msk.f32.gmra.mxu2 %vm5906_vm13, %v9681_v13  ;;  %v7143_v2 = vsel %vm4185_vm11, %v12302_v59, %v10358_v11  ;;  %v7142_v9 = vsel %vm4185_vm11, %v12307_v37, %v10359_v49 }
 0x6db   : > { %9685 = vmatmul.msk.f32.gmra.mxu3 %vm5906_vm13, %v9681_v13  ;;  %9687 = vmatmul.msk.f32.gmra.mxu0 %vm5906_vm13, %v9681_v13 }
 0x6e2   : > { %9688 = vmatmul.msk.f32.vlgmr.msra.gmra.mxu1 %vm5906_vm13, %v9680_v10  ;;  %9690 = vmatmul.msk.f32.vlgmr.msrb.gmra.mxu2 %vm5906_vm13, %v9680_v10 }
 0x6e3   : > { %9694 = vmatmul.msk.f32.vlgmr.msra.gmra.mxu3 %vm5906_vm13, %v9692_v55  ;;  %9696 = vmatmul.msk.f32.vlgmr.msra.gmra.mxu0 %vm5906_vm13, %v9692_v55 }
 0x6e4   : > { %7047 = vmatpush.msra.mxu1 %v12247_v28  ;;  %7070 = vmatpush.msrb.mxu2 %v12238_v35  ;;  %v9704_v28 = vld [vmem:[%s13563_s7 + $0x70] sm:$0xff] }
 0x6e5   : > { %7093 = vmatpush.msra.mxu3 %v6999_v47  ;;  %7116 = vmatpush.msra.mxu0 %v10353_v23 }
 0x6e6   : > { %7048 = vmatpush.msra.mxu1 %v12256_v31  ;;  %7071 = vmatpush.msrb.mxu2 %v12266_v7 }
 0x6e7   : > { %7094 = vmatpush.msra.mxu3 %v6998_v46  ;;  %7117 = vmatpush.msra.mxu0 %v10354_v0 }
 0x6ea   : > { %9689 = vmatmul.msk.f32.gmra.mxu1 %vm5906_vm13, %v9681_v13  ;;  %9691 = vmatmul.msk.f32.gmra.mxu2 %vm5906_vm13, %v9681_v13 }
 0x6eb   : > { %9695 = vmatmul.msk.f32.gmra.mxu3 %vm5906_vm13, %v9693_v5  ;;  %9697 = vmatmul.msk.f32.gmra.mxu0 %vm5906_vm13, %v9693_v5 }
 0x6ee   : > { %v12476_v15 = vpop.f32.mrf.mxu1 }
 0x6ef   : > { %v12478_v35 = vpop.f32.mrf.mxu0 }
 0x6f2   : > { %9698 = vmatmul.msk.f32.vlgmr.msrb.gmra.mxu1 %vm5906_vm13, %v9692_v55  ;;  %9700 = vmatmul.msk.f32.vlgmr.msra.gmra.mxu2 %vm5906_vm13, %v9692_v55 }
 0x6f3   : > { %9702 = vmatmul.msk.f32.vlgmr.msrb.gmra.mxu3 %vm5906_vm13, %v9692_v55  ;;  %9706 = vmatmul.msk.f32.vlgmr.msrb.gmra.mxu0 %vm5906_vm13, %v9704_v28 }
 0x6f4   : > { %7168 = vmatpush.msrb.mxu1 %v12285_v33  ;;  %7191 = vmatpush.msra.mxu2 %v12310_v12  ;;  %v12491_v31 = vpop.f32.mrf.mxu2  ;;  %v9705_v12 = vld [vmem:[%s13563_s7 + $0x78] sm:$0xff] }
 0x6f5   : > { %7214 = vmatpush.msrb.mxu3 %v12314_v42  ;;  %7237 = vmatpush.msrb.mxu0 %v7143_v2  ;;  %v12494_v7 = vpop.f32.mrf.mxu3 }
 0x6f6   : > { %7169 = vmatpush.msrb.mxu1 %v12299_v3  ;;  %7192 = vmatpush.msra.mxu2 %v12325_v1 }
 0x6f7   : > { %7215 = vmatpush.msrb.mxu3 %v12329_v36  ;;  %7238 = vmatpush.msrb.mxu0 %v7142_v9  ;;  %v12501_v33 = vpop.f32.mrf.mxu1 }
 0x6f8   : > { %v12503_v59 = vpop.f32.mrf.mxu0 }
 0x6fa   : > { %9699 = vmatmul.msk.f32.gmra.mxu1 %vm5906_vm13, %v9693_v5  ;;  %9701 = vmatmul.msk.f32.gmra.mxu2 %vm5906_vm13, %v9693_v5 }
 0x6fb   : > { %9703 = vmatmul.msk.f32.gmra.mxu3 %vm5906_vm13, %v9693_v5  ;;  %9707 = vmatmul.msk.f32.gmra.mxu0 %vm5906_vm13, %v9705_v12 }
 0x6fd   : > { %v12512_v3 = vpop.f32.mrf.mxu2 }
 0x6fe   : > { %v12514_v37 = vpop.f32.mrf.mxu3 }
 0x6ff   : > { %v12516_v42 = vpop.f32.mrf.mxu1 }
 0x700   : > { %v12518_v1 = vpop.f32.mrf.mxu0 }
 0x702   : > { %9708 = vmatmul.msk.f32.vlgmr.msra.gmra.mxu1 %vm5906_vm13, %v9704_v28  ;;  %9710 = vmatmul.msk.f32.vlgmr.msrb.gmra.mxu2 %vm5906_vm13, %v9704_v28 }
 0x703   : > { %9712 = vmatmul.msk.f32.vlgmr.msra.gmra.mxu3 %vm5906_vm13, %v9704_v28  ;;  %9714 = vmatmul.msk.f32.vlgmr.msra.gmra.mxu0 %vm5906_vm13, %v9704_v28 }
 0x704   : > { %7260 = vmatpush.msra.mxu1 %v10358_v11 }
 0x705   : > { %v12524_v36 = vpop.f32.mrf.mxu2 }
 0x706   : > { %7261 = vmatpush.msra.mxu1 %v10359_v49  ;;  %v12526_v19 = vpop.f32.mrf.mxu3 }
 0x707   : > { %v12528_v48 = vpop.f32.mrf.mxu1 }
 0x708   : > { %13680 = vst [vmem:[#allocation14_spill] sm:$0xff] %v12528_v48  ;;  %v12530_v32 = vpop.f32.mrf.mxu0 }
 0x70a   : > { %9709 = vmatmul.msk.f32.gmra.mxu1 %vm5906_vm13, %v9705_v12  ;;  %9711 = vmatmul.msk.f32.gmra.mxu2 %vm5906_vm13, %v9705_v12 }
 0x70b   : > { %9713 = vmatmul.msk.f32.gmra.mxu3 %vm5906_vm13, %v9705_v12  ;;  %9715 = vmatmul.msk.f32.gmra.mxu0 %vm5906_vm13, %v9705_v12 }
 0x70d   : > { %v12536_v38 = vpop.f32.mrf.mxu2 }
 0x70e   : > { %v12538_v40 = vpop.f32.mrf.mxu3 }
 0x70f   : > { %v12540_v51 = vpop.f32.mrf.mxu1 }
 0x710   : > { %v12545_v54 = vpop.f32.mrf.mxu0 }
 0x712   : > { %9718 = vmatmul.msk.f32.vlgmr.msrb.gmra.mxu1 %vm5906_vm13, %v9716_v39  ;;  %9720 = vmatmul.msk.f32.vlgmr.msra.gmra.mxu2 %vm5906_vm13, %v9716_v39 }
 0x713   : > { %9722 = vmatmul.msk.f32.vlgmr.msrb.gmra.mxu3 %vm5906_vm13, %v9716_v39  ;;  %9724 = vmatmul.msk.f32.vlgmr.msrb.gmra.mxu0 %vm5906_vm13, %v9716_v39 }
 0x715   : > { %v12551_v4 = vpop.f32.mrf.mxu2 }
 0x716   : > { %v12553_v50 = vpop.f32.mrf.mxu3 }
 0x717   : > { %v12555_v57 = vpop.f32.mrf.mxu1 }
 0x718   : > { %v12560_v44 = vpop.f32.mrf.mxu0 }
 0x71a   : > { %9719 = vmatmul.msk.f32.gmra.mxu1 %vm5906_vm13, %v9717_v41  ;;  %9721 = vmatmul.msk.f32.gmra.mxu2 %vm5906_vm13, %v9717_v41 }
 0x71b   : > { %9723 = vmatmul.msk.f32.gmra.mxu3 %vm5906_vm13, %v9717_v41  ;;  %9725 = vmatmul.msk.f32.gmra.mxu0 %vm5906_vm13, %v9717_v41 }
 0x71d   : > { %v12566_v17 = vpop.f32.mrf.mxu2 }
 0x71e   : > { %13681 = vst [vmem:[#allocation15_spill] sm:$0xff] %v12566_v17  ;;  %v12568_v8 = vpop.f32.mrf.mxu3 }
 0x71f   : > { %v12570_v63 = vpop.f32.mrf.mxu1 }
 0x720   : > { %v6393_v25 = vpop.f32.mrf.mxu0 }
 0x722   : > { %9726 = vmatmul.msk.f32.vlgmr.msra.gmra.mxu1 %vm5906_vm13, %v9716_v39 }
 0x725   : > { %v6282_v14 = vpop.f32.mrf.mxu2 }
 0x726   : > { %v12573_v62 = vpop.f32.mrf.mxu3 }
 0x727   : > { %v12575_v43 = vpop.f32.mrf.mxu1 }
 0x728   : > { %v12577_v6 = vpop.f32.mrf.mxu0 }
 0x72a   : > { %9727 = vmatmul.msk.f32.gmra.mxu1 %vm5906_vm13, %v9717_v41 }
 0x72d   : > { %v12580_v61 = vpop.f32.mrf.mxu2 }
 0x72e   : > { %v12582_v53 = vpop.f32.mrf.mxu3 }
 0x72f   : > { %13682 = vst [vmem:[#allocation24_spill] sm:$0xff] %v12582_v53  ;;  %v12584_v29 = vpop.f32.mrf.mxu1 }
 0x730   : > { %v12586_v18 = vpop.f32.mrf.mxu0 }
 0x731   : > { %13683 = vst [vmem:[#allocation26_spill] sm:$0xff] %v12586_v18 }
 0x735   : > { %v12588_v16 = vpop.f32.mrf.mxu2 }
 0x736   : > { %v6462_v45 = vpop.f32.mrf.mxu3 }
 0x737   : > { %v12590_v20 = vpop.f32.mrf.mxu1 }
 0x738   : > { %v12592_v27 = vpop.f32.mrf.mxu0 }
 0x739   : > { %13684 = vst [vmem:[#allocation37_spill] sm:$0xff] %v12592_v27 }
 0x73d   : > { %v12594_v60 = vpop.f32.mrf.mxu2 }
 0x73e   : > { %13685 = vst [vmem:[#allocation12_spill] sm:$0xff] %v12594_v60  ;;  %v12596_v58 = vpop.f32.mrf.mxu3 }
 0x73f   : > { %v6571_v22 = vpop.f32.mrf.mxu1 }
 0x740   : > { %v6640_v24 = vpop.f32.mrf.mxu0 }
 0x745   : > { %v6594_v52 = vpop.f32.mrf.mxu2 }
 0x746   : > { %v12598_v26 = vpop.f32.mrf.mxu3 }
 0x747   : > { %v12600_v34 = vpop.f32.mrf.mxu1 }
 0x748   : > { %v12602_v56 = vpop.f32.mrf.mxu0 }
 0x74d   : > { %v12604_v10 = vpop.f32.mrf.mxu2 }
 0x74e   : > { %13686 = vst [vmem:[#allocation16_spill] sm:$0xff] %v12604_v10  ;;  %v12606_v13 = vpop.f32.mrf.mxu3 }
 0x74f   : > { %13687 = vst [vmem:[#allocation21_spill] sm:$0xff] %v12606_v13  ;;  %v12608_v21 = vpop.f32.mrf.mxu1  ;;  %v6121_v13 = vadd.f32 %v12540_v51, %v12478_v35  ;;  %v6055_v35 = vadd.f32 %v12536_v38, %v12501_v33  ;;  %v6101_v38 = vadd.f32 %v12530_v32, %v12514_v37 }
 0x750   : > { %13688 = vst [vmem:[#allocation34_spill] sm:$0xff] %v12608_v21  ;;  %v12610_v23 = vpop.f32.mrf.mxu0 }
 0x755   : > { %v6749_v55 = vpop.f32.mrf.mxu2 }
 0x756   : > { %v12612_v0 = vpop.f32.mrf.mxu3 }
 0x757   : > { %v12614_v47 = vpop.f32.mrf.mxu1 }
 0x758   : > { %13689 = vst [vmem:[#allocation27_spill] sm:$0xff] %v12614_v47  ;;  %v12616_v46 = vpop.f32.mrf.mxu0 }
 0x759   : > { %13690 = vst [vmem:[#allocation39_spill] sm:$0xff] %v12616_v46 }
 0x75d   : > { %v12618_v5 = vpop.f32.mrf.mxu2 }
 0x75e   : > { %v12620_v30 = vpop.f32.mrf.mxu3 }
 0x75f   : > { %13691 = vst [vmem:[#allocation18_spill] sm:$0xff] %v12620_v30  ;;  %v6818_v11 = vpop.f32.mrf.mxu1 }
 0x760   : > { %v12622_v28 = vpop.f32.mrf.mxu0 }
 0x765   : > { %v12624_v49 = vpop.f32.mrf.mxu2 }
 0x766   : > { %13692 = vst [vmem:[#allocation20_spill] sm:$0xff] %v12624_v49  ;;  %v6883_v2 = vpop.f32.mrf.mxu3 }
 0x767   : > { %v12626_v9 = vpop.f32.mrf.mxu1 }
 0x768   : > { %v12628_v12 = vpop.f32.mrf.mxu0 }
 0x769   : > { %13693 = vst [vmem:[#allocation30_spill] sm:$0xff] %v12628_v12 }
 0x76d   : > { %v12630_v39 = vpop.f32.mrf.mxu2 }
 0x76e   : > { %13694 = vst [vmem:[#allocation31_spill] sm:$0xff] %v12630_v39  ;;  %v12632_v41 = vpop.f32.mrf.mxu3  ;;  %v6052_v39 = vadd.f32 %v12524_v36, %v12476_v15  ;;  %v6098_v15 = vadd.f32 %v12518_v1, %v12494_v7 }
 0x76f   : > { %13695 = vst [vmem:[#allocation9_spill] sm:$0xff] %v12632_v41  ;;  %v12634_v47 = vpop.f32.mrf.mxu1 }
 0x770   : > { %v7027_v27 = vpop.f32.mrf.mxu0  ;;  %v6311_v10 = vadd.f32 %v12553_v50, %v6052_v39 }
 0x775   : > { %v6952_v53 = vpop.f32.mrf.mxu2 }
 0x776   : > { %v12636_v46 = vpop.f32.mrf.mxu3 }
 0x777   : > { %13696 = vst [vmem:[#allocation28_spill] sm:$0xff] %v12636_v46  ;;  %v12638_v17 = vpop.f32.mrf.mxu1  ;;  %v6314_v46 = vadd.f32 %v6282_v14, %v6121_v13  ;;  %v6313_v14 = vadd.f32 %v12570_v63, %v6098_v15 }
 0x778   : > { %13697 = vst [vmem:[#allocation40_spill] sm:$0xff] %v12638_v17  ;;  %v12640_v48 = vpop.f32.mrf.mxu0  ;;  %v6491_v17 = vadd.f32 %v6393_v25, %v6311_v10  ;;  %v6124_v25 = vadd.f32 %v12555_v57, %v12503_v59 }
 0x779   : > { %13698 = vst [vmem:[#allocation32_spill] sm:$0xff] %v12640_v48  ;;  %v6494_v48 = vadd.f32 %v6462_v45, %v6314_v46  ;;  %v6493_v1 = vadd.f32 %v12588_v16, %v6313_v14  ;;  %v6144_v16 = vadd.f32 %v12551_v4, %v12516_v42  ;;  %v13709_v14 = vld [vmem:[#allocation34_spill] sm:$0xff] }
 0x77a   : > { %v6319_v7 = vadd.f32 %v12580_v61, %v6124_v25 }
 0x77b   : > { %v6672_v36 = vadd.f32 %v6640_v24, %v6494_v48  ;;  %v6671_v61 = vadd.f32 %v12598_v26, %v6493_v1  ;;  %v12685_v24 = vpop.permute.xlu0 %7283 }
 0x77d   : > { %v12642_v49 = vpop.f32.mrf.mxu2  ;;  %v6850_v45 = vadd.f32 %v6818_v11, %v6672_v36 }
 0x77e   : > { %13699 = vst [vmem:[#allocation3_spill] sm:$0xff] %v12642_v49  ;;  %v12644_v30 = vpop.f32.mrf.mxu3  ;;  %v6669_v49 = vadd.f32 %v6571_v22, %v6491_v17 }
 0x77f   : > { %13700 = vst [vmem:[#allocation35_spill] sm:$0xff] %v12644_v30  ;;  %v7050_v21 = vpop.f32.mrf.mxu1  ;;  %v6075_v30 = vadd.f32 %v12526_v19, %v12491_v31  ;;  %v6316_v31 = vadd.f32 %v12568_v8, %v6055_v35  ;;  %v6984_v33 = vadd.f32 %v6952_v53, %v6850_v45  ;;  %v6078_v8 = vadd.f32 %v12538_v40, %v12512_v3  ;;  %v13708_v35 = vld [vmem:[#allocation21_spill] sm:$0xff] }
 0x780   : > { %v12646_v12 = vpop.f32.mrf.mxu0  ;;  %v6847_v50 = vadd.f32 %v6749_v55, %v6669_v49  ;;  %v13705_v49 = vld [vmem:[#allocation26_spill] sm:$0xff]  ;;  %v13707_v15 = vld [vmem:[#allocation32_spill] sm:$0xff] }
 0x781   : > { %13701 = vst [vmem:[#allocation38_spill] sm:$0xff] %v12646_v12  ;;  %v6312_v51 = vadd.f32 %v12545_v54, %v6075_v30  ;;  %v6496_v59 = vadd.f32 %v12577_v6, %v6316_v31  ;;  %v6317_v3 = vadd.f32 %v12560_v44, %v6078_v8  ;;  %v13710_v31 = vld [vmem:[#allocation18_spill] sm:$0xff] }
 0x782   : > { %v6981_v17 = vadd.f32 %v6883_v2, %v6847_v50 }
 0x783   : > { %v6492_v19 = vadd.f32 %v12584_v29, %v6312_v51  ;;  %v6499_v29 = vadd.f32 %v12596_v58, %v6319_v7  ;;  %v6674_v37 = vadd.f32 %v12600_v34, %v6496_v59  ;;  %v6849_v58 = vadd.f32 %v12610_v23, %v6671_v61  ;;  %v13712_v59 = vld [vmem:[#allocation15_spill] sm:$0xff]  ;;  %v13714_v61 = vld [vmem:[#allocation20_spill] sm:$0xff] }
 0x784   : > { %v7125_v57 = vadd.f32 %v7027_v27, %v6981_v17  ;;  %v6318_v34 = vadd.f32 %v12575_v43, %v6101_v38  ;;  %v13703_v43 = vld [vmem:[#allocation12_spill] sm:$0xff]  ;;  %v13711_v38 = vld [vmem:[#allocation14_spill] sm:$0xff] }
 0x785   : > { %v7073_v18 = vpop.f32.mrf.mxu2  ;;  %v6670_v54 = vadd.f32 %v6594_v52, %v6492_v19  ;;  %v6677_v40 = vadd.f32 %v12602_v56, %v6499_v29  ;;  %v6315_v52 = vadd.f32 %v12573_v62, %v6144_v16  ;;  %v6852_v26 = vadd.f32 %v12618_v5, %v6674_v37  ;;  %v13702_v56 = vld [vmem:[#allocation9_spill] sm:$0xff]  ;;  %v13704_v5 = vld [vmem:[#allocation3_spill] sm:$0xff] }
 0x786   : > { %v7096_v60 = vpop.f32.mrf.mxu3  ;;  %v6983_v13 = vadd.f32 %v12634_v47, %v6849_v58  ;;  %v6497_v62 = vadd.f32 %v12590_v20, %v6317_v3  ;;  %v6498_v46 = vadd.f32 %v13703_v43, %v6318_v34  ;;  %v13717_v3 = vld [vmem:[#allocation40_spill] sm:$0xff] }
 0x787   : > { %v12653_v41 = vpop.f32.mrf.mxu1  ;;  %v7128_v22 = vadd.f32 %v7096_v60, %v6984_v33  ;;  %v6848_v32 = vadd.f32 %v12612_v0, %v6670_v54  ;;  %v6855_v10 = vadd.f32 %v12626_v9, %v6677_v40  ;;  %v6986_v23 = vadd.f32 %v13702_v56, %v6852_v26  ;;  %v13706_v9 = vld [vmem:[#allocation16_spill] sm:$0xff]  ;;  %v7289_v33 = vpop.permute.xlu2 %7288 }
 0x788   : > { %v12657_v12 = vpop.f32.mrf.mxu0  ;;  %v7127_v30 = vadd.f32 %v7073_v18, %v6983_v13  ;;  %v6495_v2 = vadd.f32 %v13705_v49, %v6315_v52  ;;  %v6675_v39 = vadd.f32 %v13706_v9, %v6497_v62  ;;  %v6676_v51 = vadd.f32 %v13708_v35, %v6498_v46  ;;  %v13718_v52 = vld [vmem:[#allocation28_spill] sm:$0xff]  ;;  %v13719_v62 = vld [vmem:[#allocation37_spill] sm:$0xff] }
 0x789   : > { %v6982_v42 = vadd.f32 %v12622_v28, %v6848_v32  ;;  %v6989_v47 = vadd.f32 %v13704_v5, %v6855_v10  ;;  %v7130_v20 = vadd.f32 %v13707_v15, %v6986_v23  ;;  %v6147_v54 = vadd.f32 %v13712_v59, %v13711_v38  ;;  %v13720_v23 = vld [vmem:[#allocation38_spill] sm:$0xff]  ;;  %v13721_v5 = vld [vmem:[#allocation27_spill] sm:$0xff] }
 0x78a   : > { %v6673_v45 = vadd.f32 %v13709_v14, %v6495_v2  ;;  %v6853_v19 = vadd.f32 %v13710_v31, %v6675_v39  ;;  %v13722_v2 = vld [vmem:[#allocation31_spill] sm:$0xff] }
 0x78b   : > { %v7126_v55 = vadd.f32 %v7050_v21, %v6982_v42 }
 0x78d   : > { %v12671_v48 = vpop.f32.mrf.mxu2 }
 0x78e   : > { %v7099_v63 = vpop.f32.mrf.mxu3 }
 0x78f   : > { %v7171_v53 = vpop.f32.mrf.mxu1  ;;  %v7133_v50 = vadd.f32 %v7099_v63, %v6989_v47 }
 0x790   : > { %v7269_v6 = vadd.f32 %v7171_v53, %v7125_v57  ;;  %v7240_v27 = vpop.f32.mrf.mxu0  ;;  %v13713_v57 = vld [vmem:[#allocation39_spill] sm:$0xff]  ;;  %v13715_v53 = vld [vmem:[#allocation30_spill] sm:$0xff] }
 0x791   : > { %v7272_v60 = vadd.f32 %v7240_v27, %v7128_v22  ;;  %v6854_v8 = vadd.f32 %v13713_v57, %v6676_v51  ;;  %v6851_v22 = vadd.f32 %v13714_v61, %v6673_v45  ;;  %v6987_v16 = vadd.f32 %v13715_v53, %v6853_v19 }
 0x792   : > { %v7291_v4 = vadd.f32 %v12685_v24, %v7269_v6  ;;  %v13716_v6 = vld [vmem:[#allocation24_spill] sm:$0xff] }
 0x793   : > { %v7294_v44 = vadd.f32 %v12685_v24, %v7272_v60  ;;  %v6320_v27 = vadd.f32 %v13716_v6, %v6147_v54  ;;  %v6988_v40 = vadd.f32 %v13717_v3, %v6854_v8  ;;  %v6985_v26 = vadd.f32 %v13718_v52, %v6851_v22 }
 0x794   : > { %v12705_v0 = vmax.f32 %v7291_v4, 0.0  ;;  %v7131_v42 = vadd.f32 %v12653_v41, %v6987_v16 }
 0x795   : > { %v12709_v11 = vmax.f32 %v7294_v44, 0.0  ;;  %v7194_v28 = vpop.f32.mrf.mxu2  ;;  %v7132_v10 = vadd.f32 %v12671_v48, %v6988_v40  ;;  %v6500_v56 = vadd.f32 %v13719_v62, %v6320_v27 }
 0x796   : > { %7311 = vst [vmem:[%s12700_s21] sm:$0xff] %v12705_v0  ;;  %v7270_v36 = vadd.f32 %v7194_v28, %v7126_v55  ;;  %v7217_v21 = vpop.f32.mrf.mxu3  ;;  %v7129_v55 = vadd.f32 %v13720_v23, %v6985_v26 }
 0x797   : > { %7314 = vst [vmem:[%s12700_s21 + $0x18] sm:$0xff] %v12709_v11  ;;  %v7271_v25 = vadd.f32 %v7217_v21, %v7127_v30  ;;  %v7174_v18 = vpop.f32.mrf.mxu1  ;;  %v6678_v47 = vadd.f32 %v13721_v5, %v6500_v56 }
 0x798   : > { %v7292_v17 = vadd.f32 %v12685_v24, %v7270_v36  ;;  %v7274_v7 = vadd.f32 %v7174_v18, %v7130_v20  ;;  %v7243_v1 = vpop.f32.mrf.mxu0  ;;  %v13723_v36 = vld [vmem:[#allocation35_spill] sm:$0xff] }
 0x799   : > { %v7293_v63 = vadd.f32 %v12685_v24, %v7271_v25  ;;  %v7277_v29 = vadd.f32 %v7243_v1, %v7133_v50  ;;  %v6856_v9 = vadd.f32 %v13722_v2, %v6678_v47 }
 0x79a   : > { %v12728_v37 = vmax.f32 %v7292_v17, 0.0  ;;  %v7296_v32 = vadd.f32 %v7289_v33, %v7274_v7 }
 0x79b   : > { %v12732_v58 = vmax.f32 %v7293_v63, 0.0  ;;  %v7299_v60 = vadd.f32 %v7289_v33, %v7277_v29  ;;  %v6990_v21 = vadd.f32 %v13723_v36, %v6856_v9 }
 0x79c   : > { %7312 = vst [vmem:[%s12700_s21 + $0x8] sm:$0xff] %v12728_v37  ;;  %v7306_v4 = vmax.f32 %v7296_v32, 0.0  ;;  %v10370_v34 = vpack.i.bf16 %v12728_v37, %v12705_v0 }
 0x79d   : > { %7313 = vst [vmem:[%s12700_s21 + $0x10] sm:$0xff] %v12732_v58  ;;  %v12743_v13 = vmax.f32 %v7299_v60, 0.0  ;;  %v7197_v44 = vpop.f32.mrf.mxu2  ;;  %v7134_v25 = vadd.f32 %v12657_v12, %v6990_v21  ;;  %v10375_v31 = vpack.i.bf16 %v12709_v11, %v12732_v58 }
 0x79e   : > { %7317 = vst [vmem:[%s12700_s21 + $0x28] sm:$0xff] %v7306_v4  ;;  %v7275_v43 = vadd.f32 %v7197_v44, %v7131_v42  ;;  %v7220_v41 = vpop.f32.mrf.mxu3  ;;  %10371 = vrot.lane.b32.xlu0 %v10370_v34, %s10529_s25 }
 0x79f   : > { %7320 = vst [vmem:[%s12700_s21 + $0x40] sm:$0xff] %v12743_v13  ;;  %v7276_v46 = vadd.f32 %v7220_v41, %v7132_v10  ;;  %v7263_v48 = vpop.f32.mrf.mxu1 }
 0x7a0   : > { %v7297_v30 = vadd.f32 %v7289_v33, %v7275_v43  ;;  %v7273_v28 = vadd.f32 %v7263_v48, %v7129_v55 }
 0x7a1   : > { %v7298_v49 = vadd.f32 %v7289_v33, %v7276_v46 }
 0x7a2   : > { %v7307_v39 = vmax.f32 %v7297_v30, 0.0  ;;  %v7295_v15 = vadd.f32 %v12685_v24, %v7273_v28 }
 0x7a3   : > { %v7308_v20 = vmax.f32 %v7298_v49, 0.0 }
 0x7a4   : > { %7318 = vst [vmem:[%s12700_s21 + $0x30] sm:$0xff] %v7307_v39  ;;  %v12756_v35 = vmax.f32 %v7295_v15, 0.0  ;;  %v10360_v51 = vpack.i.bf16 %v7307_v39, %v7306_v4 }
 0x7a5   : > { %7319 = vst [vmem:[%s12700_s21 + $0x38] sm:$0xff] %v7308_v20  ;;  %v10365_v50 = vpack.i.bf16 %v12743_v13, %v7308_v20 }
 0x7a6   : > { %7316 = vst.msk [vmem:[%s12700_s21 + $0x20] sm:$0xff] %vm7315_vm14, %v12756_v35  ;;  %10361 = vrot.lane.b32.xlu1 %v10360_v51, %s10529_s25 }
 0x7a7   : > { %10366 = vrot.lane.b32.xlu2 %v10365_v50, %s10529_s25  ;;  %v7266_v24 = vpop.f32.mrf.mxu1 }
 0x7a8   : > { %v7278_v18 = vadd.f32 %v7266_v24, %v7134_v25 }
 0x7aa   : > { %v7300_v14 = vadd.f32 %v7289_v33, %v7278_v18 }
 0x7ac   : > { %v7310_v45 = vmax.f32 %v7300_v14, 0.0 }
 0x7ae   : > { %7321 = vst.msk [vmem:[%s12700_s21 + $0x48] sm:$0xff] %vm7315_vm14, %v7310_v45  ;;  %10376 = vrot.lane.b32.xlu1 %v10375_v31, %s10529_s25  ;;  %v10380_v12 = vpack.i.bf16 %v12756_v35, %v7310_v45 }
 0x7b0   : > { %10381 = vrot.lane.b32.xlu2 %v10380_v12, %s10529_s25  ;;  %s10539_s25 = smov 120  }
 0x801   : > { %v10367_v19 = vpop.permute.xlu2 %10366 }
 0x802   : > { %v10369_v17 = vunpack.i.h.bf16 %v10367_v19  ;;  %v10368_v7 = vunpack.i.l.bf16 %v10367_v19 }
 0x804   : > { %v7358_v38 = vsel %vm978_vm3, %v10368_v7, %v10369_v17 }
 0x805   : > { %v12775_v57 = vmax.f32 %v7308_v20, %v7358_v38 }
 0x80a   : > { %v10382_v53 = vpop.permute.xlu2 %10381 }
 0x80b   : > { %v10383_v3 = vunpack.i.l.bf16 %v10382_v53 }
 0x80d   : > { %v7359_v52 = vsel %vm978_vm3, %v10369_v17, %v10383_v3  ;;  %v7379_v15 = vmax.f32 %v7310_v45, %v10383_v3  ;;  %v12826_v17 = vld [vmem:[%s13565_s9] sm:$0xff]  ;;  %v8553_v3 = vld [vmem:[%s13566_s10 + $0x8] sm:$0xff] }
 0x80e   : > { %v12788_v62 = vmax.f32 %v12743_v13, %v7359_v52 }
 0x810   : > { %v10372_v1 = vpop.permute.xlu0 %10371 }
 0x811   : > { %v10374_v59 = vunpack.i.h.bf16 %v10372_v1  ;;  %v10373_v33 = vunpack.i.l.bf16 %v10372_v1 }
 0x813   : > { %v7352_v54 = vsel %vm978_vm3, %v10373_v33, %v10374_v59 }
 0x814   : > { %v7370_v8 = vmax.f32 %v12705_v0, %v7352_v54  ;;  %v10384_v0 = vunpack.i.h.bf16 %v10382_v53 }
 0x816   : > { %v10390_v63 = vpack.i.bf16 %v7370_v8, %v12775_v57 }
 0x818   : > { %v10362_v29 = vpop.permute.xlu1 %10361  ;;  %10391 = vrot.lane.b32.xlu1 %v10390_v63, %s10533_s16 }
 0x819   : > { %v10364_v61 = vunpack.i.h.bf16 %v10362_v29  ;;  %v10363_v22 = vunpack.i.l.bf16 %v10362_v29 }
 0x81b   : > { %v7357_v16 = vsel %vm978_vm3, %v10364_v61, %v10368_v7  ;;  %v7356_v32 = vsel %vm978_vm3, %v10363_v22, %v10364_v61  ;;  %v12833_v7 = vld [vmem:[%s13565_s9 + $0x8] sm:$0xff] }
 0x81c   : > { %v7376_v6 = vmax.f32 %v7307_v39, %v7357_v16  ;;  %v7375_v27 = vmax.f32 %v7306_v4, %v7356_v32  ;;  %v7374_v39 = vmax.f32 %v12756_v35, %v10384_v0  ;;  %v12865_v32 = vld [vmem:[%s13565_s9 + $0x18] sm:$0xff] }
 0x81e   : > { %v10385_v40 = vpack.i.bf16 %v7376_v6, %v7375_v27  ;;  %v10425_v50 = vpack.i.bf16 %v7374_v39, %v7379_v15 }
 0x820   : > { %v10377_v60 = vpop.permute.xlu1 %10376  ;;  %10386 = vrot.lane.b32.xlu0 %v10385_v40, %s10533_s16  ;;  %v8552_v40 = vld [vmem:[%s13566_s10] sm:$0xff] }
 0x821   : > { %v10379_v26 = vunpack.i.h.bf16 %v10377_v60  ;;  %v10378_v42 = vunpack.i.l.bf16 %v10377_v60 }
 0x823   : > { %v7355_v34 = vsel %vm978_vm3, %v10379_v26, %v10384_v0  ;;  %v7353_v10 = vsel %vm978_vm3, %v10374_v59, %v10378_v42  ;;  %v7354_v44 = vsel %vm978_vm3, %v10378_v42, %v10379_v26  ;;  %v12840_v59 = vld [vmem:[%s13565_s9 + $0x10] sm:$0xff] }
 0x824   : > { %v7373_v4 = vmax.f32 %v12709_v11, %v7355_v34  ;;  %v7371_v56 = vmax.f32 %v12728_v37, %v7353_v10  ;;  %v7372_v23 = vmax.f32 %v12732_v58, %v7354_v44  ;;  %v9728_v10 = vld [vmem:[%s13565_s9 + $0x20] sm:$0xff] }
 0x826   : > { %v10400_v55 = vpack.i.bf16 %v7373_v4, %v12788_v62  ;;  %v10395_v43 = vpack.i.bf16 %v7372_v23, %v7371_v56 }
 0x828   : > { %10401 = vrot.lane.b32.xlu0 %v10400_v55, %s10533_s16  ;;  %10396 = vrot.lane.b32.xlu2 %v10395_v43, %s10533_s16 }
 0x882   : > { %v10397_v41 = vpop.permute.xlu2 %10396 }
 0x883   : > { %v10399_v46 = vunpack.i.h.bf16 %v10397_v41  ;;  %v10398_v48 = vunpack.i.l.bf16 %v10397_v41 }
 0x885   : > { %v7411_v13 = vsel %vm1890_vm7, %v10398_v48, %v10399_v46 }
 0x886   : > { %v12798_v30 = vmax.f32 %v7371_v56, %v7411_v13 }
 0x88a   : > { %v10392_v5 = vpop.permute.xlu1 %10391 }
 0x88b   : > { %v10394_v47 = vunpack.i.h.bf16 %v10392_v5  ;;  %v10393_v49 = vunpack.i.l.bf16 %v10392_v5 }
 0x88d   : > { %v7410_v11 = vsel %vm1890_vm7, %v10394_v47, %v10398_v48  ;;  %v9729_v48 = vld [vmem:[%s13565_s9 + $0x28] sm:$0xff] }
 0x88e   : > { %v7428_v37 = vmax.f32 %v7370_v8, %v7410_v11 }
 0x890   : > { %v10410_v58 = vpack.i.bf16 %v12798_v30, %v7428_v37 }
 0x892   : > { %v10387_v28 = vpop.permute.xlu0 %10386  ;;  %10411 = vrot.lane.b32.xlu2 %v10410_v58, %s10537_s24 }
 0x893   : > { %v10389_v2 = vunpack.i.h.bf16 %v10387_v28  ;;  %v10388_v9 = vunpack.i.l.bf16 %v10387_v28 }
 0x895   : > { %v7414_v20 = vsel %vm1890_vm7, %v10388_v9, %v10389_v2  ;;  %v7415_v36 = vsel %vm1890_vm7, %v10389_v2, %v10393_v49 }
 0x896   : > { %v7433_v21 = vmax.f32 %v7375_v27, %v7414_v20  ;;  %v12805_v51 = vmax.f32 %v7376_v6, %v7415_v36  ;;  %v8554_v6 = vld [vmem:[%s13566_s10 + $0x10] sm:$0xff]  ;;  %v8555_v27 = vld [vmem:[%s13566_s10 + $0x18] sm:$0xff]  ;;  %v9757_v20 = vld [vmem:[%s13565_s9 + $0x48] sm:$0xff] }
 0x897   : > { %v9758_v36 = vld [vmem:[%s13565_s9 + $0x50] sm:$0xff] }
 0x898   : > { %7600 = vmatpush.msrb.mxu1 %v7433_v21  ;;  %v10405_v25 = vpack.i.bf16 %v12805_v51, %v7433_v21  ;;  %v9759_v21 = vld [vmem:[%s13565_s9 + $0x58] sm:$0xff] }
 0x89a   : > { %v10402_v24 = vpop.permute.xlu0 %10401  ;;  %10426 = vrot.lane.b32.xlu2 %v10425_v50, %s10533_s16  ;;  %7601 = vmatpush.msrb.mxu1 %v7428_v37  ;;  %v9773_v50 = vld [vmem:[%s13565_s9 + $0x68] sm:$0xff] }
 0x89b   : > { %v10404_v18 = vunpack.i.h.bf16 %v10402_v24  ;;  %v10403_v14 = vunpack.i.l.bf16 %v10402_v24  ;;  %10406 = vrot.lane.b32.xlu1 %v10405_v25, %s10537_s24  ;;  %9744 = vmatmul.msk.f32.vlgmr.msrb.gmra.mxu1 %vm5906_vm13, %v12826_v17 }
 0x89d   : > { %v7412_v35 = vsel %vm1890_vm7, %v10399_v46, %v10404_v18  ;;  %v7416_v45 = vsel %vm1890_vm7, %v10393_v49, %v10403_v14 }
 0x89e   : > { %v12812_v31 = vmax.f32 %v7372_v23, %v7412_v35  ;;  %v12815_v12 = vmax.f32 %v12775_v57, %v7416_v45  ;;  %v9775_v45 = vld [vmem:[%s13565_s9 + $0x78] sm:$0xff] }
 0x8a0   : > { %v10415_v19 = vpack.i.bf16 %v12812_v31, %v12815_v12 }
 0x8a2   : > { %10416 = vrot.lane.b32.xlu0 %v10415_v19, %s10537_s24 }
 0x8a3   : > { %10421 = vrot.lane.b32.xlu1 %v10415_v19, %s10539_s25  ;;  %9745 = vmatmul.msk.f32.gmra.mxu1 %vm5906_vm13, %v12833_v7 }
 0x8aa   : > { %10431 = vrot.lane.b32.xlu0 %v10405_v25, %s10539_s25  ;;  %v9774_v25 = vld [vmem:[%s13565_s9 + $0x70] sm:$0xff] }
 0x8ab   : > { %10436 = vrot.lane.b32.xlu1 %v10410_v58, %s10539_s25  ;;  %9746 = vmatmul.msk.f32.gmra.mxu1 %vm5906_vm13, %v12840_v59 }
 0x8b3   : > { %9747 = vmatmul.msk.f32.gmra.mxu1 %vm5906_vm13, %v12865_v32 }
 0x8ec   : > { %v10412_v1 = vpop.permute.xlu2 %10411 }
 0x8ed   : > { %v10414_v0 = vunpack.i.h.bf16 %v10412_v1  ;;  %v10413_v52 = vunpack.i.l.bf16 %v10412_v1 }
 0x8ef   : > { %v7465_v44 = vsel %vm4185_vm11, %v10413_v52, %v10414_v0 }
 0x8f4   : > { %v10427_v38 = vpop.permute.xlu2 %10426 }
 0x8f5   : > { %v10429_v33 = vunpack.i.h.bf16 %v10427_v38  ;;  %v10428_v54 = vunpack.i.l.bf16 %v10427_v38 }
 0x8f7   : > { %v7413_v57 = vsel %vm1890_vm7, %v10404_v18, %v10429_v33  ;;  %v12845_v8 = vmax.f32 %v7374_v39, %v10429_v33  ;;  %v7417_v63 = vsel %vm1890_vm7, %v10403_v14, %v10428_v54  ;;  %v12848_v29 = vmax.f32 %v7379_v15, %v10428_v54  ;;  %v9730_v39 = vld [vmem:[%s13565_s9 + $0x30] sm:$0xff]  ;;  %v9756_v15 = vld [vmem:[%s13565_s9 + $0x40] sm:$0xff] }
 0x8f8   : > { %v12850_v61 = vmax.f32 %v7373_v4, %v7413_v57  ;;  %v12853_v22 = vmax.f32 %v12788_v62, %v7417_v63  ;;  %v9788_v57 = vld [vmem:[%s13565_s9 + $0x80] sm:$0xff]  ;;  %v13034_v63 = vld [vmem:[%s13565_s9 + $0xb0] sm:$0xff] }
 0x8f9   : > { %v10450_v53 = vpack.i.bf16 %v12845_v8, %v12848_v29 }
 0x8fa   : > { %v10440_v16 = vpack.i.bf16 %v12850_v61, %v12853_v22 }
 0x8fb   : > { %10451 = vrot.lane.b32.xlu1 %v10450_v53, %s10539_s25 }
 0x8fc   : > { %10441 = vrot.lane.b32.xlu2 %v10440_v16, %s10537_s24  ;;  %10446 = vrot.lane.b32.xlu0 %v10440_v16, %s10539_s25 }
 0x903   : > { %8568 = vperm.xlu1 %9962, %v8554_v6   ;;  %v9791_v6 = vld [vmem:[%s13565_s9 + $0x98] sm:$0xff] }
 0x904   : > { %10456 = vrot.lane.b32.xlu2 %v10450_v53, %s10537_s24  ;;  %8573 = vperm.xlu0 %10209, %v8555_v27   ;;  %v13053_v53 = vld [vmem:[%s13565_s9 + $0xb8] sm:$0xff]  ;;  %v13078_v27 = vld [vmem:[%s13565_s9 + $0xc8] sm:$0xff] }
 0x90c   : > { %8563 = vperm.xlu2 %10108, %v8553_v3   ;;  %8558 = vperm.xlu0 %10209, %v8552_v40   ;;  %v13090_v40 = vld [vmem:[%s13565_s9 + $0xd0] sm:$0xff] }
 0x90d   : > { %v10407_v60 = vpop.permute.xlu1 %10406 }
 0x90e   : > { %v10409_v26 = vunpack.i.h.bf16 %v10407_v60  ;;  %v10408_v42 = vunpack.i.l.bf16 %v10407_v60 }
 0x910   : > { %v7467_v34 = vsel %vm4185_vm11, %v10408_v42, %v10409_v26 }
 0x911   : > { %7501 = vmatpush.msrb.mxu2 %v7467_v34  ;;  %v9823_v34 = vld [vmem:[%s13565_s9 + $0xd8] sm:$0xff] }
 0x913   : > { %7502 = vmatpush.msrb.mxu2 %v7465_v44 }
 0x914   : > { %9732 = vmatmul.msk.f32.vlgmr.msrb.gmra.mxu2 %vm5906_vm13, %v9728_v10  ;;  %v10417_v62 = vpop.permute.xlu0 %10416 }
 0x915   : > { %7629 = vmatpush.msra.mxu2 %v12805_v51  ;;  %v12889_v4 = vunpack.i.h.bf16 %v10417_v62  ;;  %v12891_v56 = vunpack.i.l.bf16 %v10417_v62  ;;  %v10422_v23 = vpop.permute.xlu1 %10421 }
 0x916   : > { %v12893_v55 = vunpack.i.l.bf16 %v10422_v23  ;;  %v12899_v41 = vunpack.i.h.bf16 %v10422_v23 }
 0x917   : > { %7630 = vmatpush.msra.mxu2 %v12798_v30  ;;  %7559 = vmatpush.msra.mxu0 %v12891_v56  ;;  %v7468_v43 = vsel %vm4185_vm11, %v10409_v26, %v12891_v56  ;;  %v7466_v46 = vsel %vm4185_vm11, %v10414_v0, %v12889_v4 }
 0x918   : > { %7530 = vmatpush.msra.mxu3 %v7468_v43  ;;  %v13085_v3 = vpop.f32.mrf.mxu1 }
 0x919   : > { %7785 = vmatpush.msrb.mxu2 %v12893_v55  ;;  %7560 = vmatpush.msra.mxu0 %v12889_v4 }
 0x91a   : > { %7531 = vmatpush.msra.mxu3 %v7466_v46  ;;  %9740 = vmatmul.msk.f32.vlgmr.msra.gmra.mxu0 %vm5906_vm13, %v9728_v10 }
 0x91b   : > { %7786 = vmatpush.msrb.mxu2 %v12899_v41  ;;  %9736 = vmatmul.msk.f32.vlgmr.msra.gmra.mxu3 %vm5906_vm13, %v9728_v10 }
 0x91c   : > { %9733 = vmatmul.msk.f32.gmra.mxu2 %vm5906_vm13, %v9729_v48  ;;  %7658 = vmatpush.msrb.mxu3 %v12815_v12  ;;  %v10432_v5 = vpop.permute.xlu0 %10431 }
 0x91d   : > { %v10434_v13 = vunpack.i.h.bf16 %v10432_v5  ;;  %v10433_v47 = vunpack.i.l.bf16 %v10432_v5  ;;  %v10437_v11 = vpop.permute.xlu1 %10436  ;;  %v9837_v5 = vld [vmem:[%s13565_s9 + $0xe8] sm:$0xff] }
 0x91e   : > { %v10439_v37 = vunpack.i.h.bf16 %v10437_v11  ;;  %v10438_v58 = vunpack.i.l.bf16 %v10437_v11  ;;  %7659 = vmatpush.msrb.mxu3 %v12812_v31 }
 0x91f   : > { %v7693_v28 = vsel %vm7690_vm15, %v10433_v47, %v10434_v13  ;;  %v7694_v49 = vsel %vm7690_vm15, %v10434_v13, %v12893_v55 }
 0x920   : > { %7843 = vmatpush.msra.mxu3 %v12805_v51  ;;  %7727 = vmatpush.msrb.mxu0 %v7693_v28  ;;  %v7691_v2 = vsel %vm7690_vm15, %v10438_v58, %v10439_v37  ;;  %v7692_v9 = vsel %vm7690_vm15, %v10439_v37, %v12899_v41  ;;  %v9772_v51 = vld [vmem:[%s13565_s9 + $0x60] sm:$0xff]  ;;  %v13108_v10 = vpop.f32.mrf.mxu1  ;;  %v9838_v58 = vld [vmem:[%s13565_s9 + $0xf0] sm:$0xff] }
 0x921   : > { %7756 = vmatpush.msra.mxu1 %v7694_v49 }
 0x922   : > { %7844 = vmatpush.msra.mxu3 %v12798_v30  ;;  %7728 = vmatpush.msrb.mxu0 %v7691_v2  ;;  %v9731_v30 = vld [vmem:[%s13565_s9 + $0x38] sm:$0xff] }
 0x923   : > { %7757 = vmatpush.msra.mxu1 %v7692_v9  ;;  %9741 = vmatmul.msk.f32.gmra.mxu0 %vm5906_vm13, %v9729_v48 }
 0x924   : > { %9737 = vmatmul.msk.f32.gmra.mxu3 %vm5906_vm13, %v9729_v48  ;;  %9734 = vmatmul.msk.f32.gmra.mxu2 %vm5906_vm13, %v9730_v39 }
 0x925   : > { %9764 = vmatmul.msk.f32.vlgmr.msra.gmra.mxu1 %vm5906_vm13, %v9756_v15  ;;  %7872 = vmatpush.msra.mxu0 %v12815_v12 }
 0x926   : > { %7901 = vmatpush.msrb.mxu1 %v12853_v22 }
 0x927   : > { %7873 = vmatpush.msra.mxu0 %v12812_v31 }
 0x928   : > { %7902 = vmatpush.msrb.mxu1 %v12850_v61 }
 0x92a   : > { %8097 = vmatpush.msra.mxu1 %v7694_v49 }
 0x92b   : > { %9742 = vmatmul.msk.f32.gmra.mxu0 %vm5906_vm13, %v9730_v39 }
 0x92c   : > { %8098 = vmatpush.msra.mxu1 %v7692_v9  ;;  %9738 = vmatmul.msk.f32.gmra.mxu3 %vm5906_vm13, %v9730_v39  ;;  %v9839_v39 = vld [vmem:[%s13565_s9 + $0xf8] sm:$0xff] }
 0x92d   : > { %9735 = vmatmul.msk.f32.gmra.mxu2 %vm5906_vm13, %v9731_v30  ;;  %9765 = vmatmul.msk.f32.gmra.mxu1 %vm5906_vm13, %v9757_v20 }
 0x933   : > { %9743 = vmatmul.msk.f32.gmra.mxu0 %vm5906_vm13, %v9731_v30 }
 0x934   : > { %9739 = vmatmul.msk.f32.gmra.mxu3 %vm5906_vm13, %v9731_v30 }
 0x935   : > { %9748 = vmatmul.msk.f32.vlgmr.msra.gmra.mxu2 %vm5906_vm13, %v12826_v17  ;;  %9766 = vmatmul.msk.f32.gmra.mxu1 %vm5906_vm13, %v9758_v36 }
 0x936   : > { %7971 = vmatpush.msra.mxu2 %v7468_v43  ;;  %v13131_v43 = vpop.f32.mrf.mxu1 }
 0x938   : > { %7972 = vmatpush.msra.mxu2 %v7466_v46 }
 0x93b   : > { %9760 = vmatmul.msk.f32.vlgmr.msrb.gmra.mxu0 %vm5906_vm13, %v9756_v15 }
 0x93c   : > { %9752 = vmatmul.msk.f32.vlgmr.msrb.gmra.mxu3 %vm5906_vm13, %v12826_v17 }
 0x93d   : > { %9749 = vmatmul.msk.f32.gmra.mxu2 %vm5906_vm13, %v12833_v7  ;;  %9767 = vmatmul.msk.f32.gmra.mxu1 %vm5906_vm13, %v9759_v21 }
 0x93e   : > { %v13154_v11 = vpop.f32.mrf.mxu1 }
 0x943   : > { %9761 = vmatmul.msk.f32.gmra.mxu0 %vm5906_vm13, %v9757_v20 }
 0x944   : > { %9753 = vmatmul.msk.f32.gmra.mxu3 %vm5906_vm13, %v12833_v7  ;;  %v13007_v7 = vld [vmem:[%s13565_s9 + $0xa0] sm:$0xff] }
 0x945   : > { %9750 = vmatmul.msk.f32.gmra.mxu2 %vm5906_vm13, %v12840_v59  ;;  %9784 = vmatmul.msk.f32.vlgmr.msrb.gmra.mxu1 %vm5906_vm13, %v9772_v51 }
 0x946   : > { %8242 = vmatpush.msrb.mxu1 %v12853_v22  ;;  %v9789_v22 = vld [vmem:[%s13565_s9 + $0x88] sm:$0xff] }
 0x948   : > { %8243 = vmatpush.msrb.mxu1 %v12850_v61 }
 0x94b   : > { %9762 = vmatmul.msk.f32.gmra.mxu0 %vm5906_vm13, %v9758_v36 }
 0x94c   : > { %9754 = vmatmul.msk.f32.gmra.mxu3 %vm5906_vm13, %v12840_v59 }
 0x94d   : > { %9751 = vmatmul.msk.f32.gmra.mxu2 %vm5906_vm13, %v12865_v32  ;;  %9785 = vmatmul.msk.f32.gmra.mxu1 %vm5906_vm13, %v9773_v50 }
 0x953   : > { %9763 = vmatmul.msk.f32.gmra.mxu0 %vm5906_vm13, %v9759_v21 }
 0x954   : > { %9755 = vmatmul.msk.f32.gmra.mxu3 %vm5906_vm13, %v12865_v32  ;;  %v9820_v32 = vld [vmem:[%s13565_s9 + $0xc0] sm:$0xff] }
 0x955   : > { %9768 = vmatmul.msk.f32.vlgmr.msrb.gmra.mxu2 %vm5906_vm13, %v9756_v15  ;;  %9786 = vmatmul.msk.f32.gmra.mxu1 %vm5906_vm13, %v9774_v25 }
 0x956   : > { %v10442_v24 = vpop.permute.xlu2 %10441 }
 0x957   : > { %v10443_v18 = vunpack.i.l.bf16 %v10442_v24  ;;  %v10444_v14 = vunpack.i.h.bf16 %v10442_v24 }
 0x959   : > { %8029 = vmatpush.msrb.mxu0 %v10443_v18  ;;  %v7940_v35 = vsel %vm4185_vm11, %v12891_v56, %v10443_v18  ;;  %v7939_v19 = vsel %vm4185_vm11, %v12889_v4, %v10444_v14 }
 0x95a   : > { %8000 = vmatpush.msrb.mxu3 %v7940_v35 }
 0x95b   : > { %9780 = vmatmul.msk.f32.vlgmr.msra.gmra.mxu0 %vm5906_vm13, %v9772_v51 }
 0x95c   : > { %9776 = vmatmul.msk.f32.vlgmr.msra.gmra.mxu3 %vm5906_vm13, %v9772_v51  ;;  %8030 = vmatpush.msrb.mxu0 %v10444_v14 }
 0x95d   : > { %9769 = vmatmul.msk.f32.gmra.mxu2 %vm5906_vm13, %v9757_v20  ;;  %9787 = vmatmul.msk.f32.gmra.mxu1 %vm5906_vm13, %v9775_v45 }
 0x95e   : > { %8001 = vmatpush.msrb.mxu3 %v7939_v19  ;;  %8213 = vmatpush.msra.mxu0 %v12815_v12  ;;  %v10457_v17 = vpop.permute.xlu2 %10456 }
 0x95f   : > { %v10458_v1 = vunpack.i.l.bf16 %v10457_v17  ;;  %v10459_v38 = vunpack.i.h.bf16 %v10457_v17 }
 0x960   : > { %8214 = vmatpush.msra.mxu0 %v12812_v31  ;;  %v13017_v31 = vld [vmem:[%s13565_s9 + $0xa8] sm:$0xff] }
 0x961   : > { %v8310_v16 = vsel %vm4185_vm11, %v10443_v18, %v10458_v1 }
 0x963   : > { %9781 = vmatmul.msk.f32.gmra.mxu0 %vm5906_vm13, %v9773_v50 }
 0x964   : > { %9777 = vmatmul.msk.f32.gmra.mxu3 %vm5906_vm13, %v9773_v50 }
 0x965   : > { %9770 = vmatmul.msk.f32.gmra.mxu2 %vm5906_vm13, %v9758_v36  ;;  %9808 = vmatmul.msk.f32.vlgmr.msra.gmra.mxu1 %vm5906_vm13, %v13007_v7 }
 0x966   : > { %8399 = vmatpush.msra.mxu1 %v10458_v1  ;;  %v9853_v1 = vld [vmem:[%s13565_s9 + $0x108] sm:$0xff] }
 0x968   : > { %8400 = vmatpush.msra.mxu1 %v10459_v38 }
 0x96b   : > { %9782 = vmatmul.msk.f32.gmra.mxu0 %vm5906_vm13, %v9774_v25 }
 0x96c   : > { %9778 = vmatmul.msk.f32.gmra.mxu3 %vm5906_vm13, %v9774_v25 }
 0x96d   : > { %9771 = vmatmul.msk.f32.gmra.mxu2 %vm5906_vm13, %v9759_v21  ;;  %9809 = vmatmul.msk.f32.gmra.mxu1 %vm5906_vm13, %v13017_v31  ;;  %v10452_v60 = vpop.permute.xlu1 %10451 }
 0x96e   : > { %v10447_v12 = vpop.permute.xlu0 %10446  ;;  %v10453_v52 = vunpack.i.l.bf16 %v10452_v60  ;;  %v10454_v42 = vunpack.i.h.bf16 %v10452_v60 }
 0x96f   : > { %v10448_v59 = vunpack.i.l.bf16 %v10447_v12  ;;  %v13024_v33 = vunpack.i.h.bf16 %v10447_v12 }
 0x971   : > { %8155 = vmatpush.msra.mxu3 %v10448_v59  ;;  %v8066_v54 = vsel %vm7690_vm15, %v12893_v55, %v10448_v59  ;;  %v8065_v61 = vsel %vm7690_vm15, %v12899_v41, %v13024_v33  ;;  %v8436_v44 = vsel %vm7690_vm15, %v10448_v59, %v10453_v52  ;;  %v8435_v62 = vsel %vm7690_vm15, %v13024_v33, %v10454_v42  ;;  %v9836_v55 = vld [vmem:[%s13565_s9 + $0xe0] sm:$0xff] }
 0x972   : > { %8126 = vmatpush.msrb.mxu2 %v8066_v54 }
 0x973   : > { %9783 = vmatmul.msk.f32.gmra.mxu0 %vm5906_vm13, %v9775_v45  ;;  %8156 = vmatpush.msra.mxu3 %v13024_v33  ;;  %v9854_v33 = vld [vmem:[%s13565_s9 + $0x110] sm:$0xff] }
 0x974   : > { %9779 = vmatmul.msk.f32.gmra.mxu3 %vm5906_vm13, %v9775_v45  ;;  %8127 = vmatpush.msrb.mxu2 %v8065_v61 }
 0x975   : > { %9792 = vmatmul.msk.f32.vlgmr.msra.gmra.mxu2 %vm5906_vm13, %v9788_v57  ;;  %9810 = vmatmul.msk.f32.gmra.mxu1 %vm5906_vm13, %v13034_v63 }
 0x976   : > { %8271 = vmatpush.msra.mxu2 %v12848_v29  ;;  %v9790_v29 = vld [vmem:[%s13565_s9 + $0x90] sm:$0xff] }
 0x978   : > { %8272 = vmatpush.msra.mxu2 %v12845_v8  ;;  %v8309_v8 = vsel %vm4185_vm11, %v10444_v14, %v10459_v38 }
 0x97b   : > { %9800 = vmatmul.msk.f32.vlgmr.msrb.gmra.mxu0 %vm5906_vm13, %v9788_v57 }
 0x97c   : > { %9796 = vmatmul.msk.f32.vlgmr.msrb.gmra.mxu3 %vm5906_vm13, %v9788_v57  ;;  %8370 = vmatpush.msrb.mxu0 %v8310_v16 }
 0x97d   : > { %9793 = vmatmul.msk.f32.gmra.mxu2 %vm5906_vm13, %v9789_v22  ;;  %8341 = vmatpush.msrb.mxu3 %v7940_v35  ;;  %v9852_v35 = vld [vmem:[%s13565_s9 + $0x100] sm:$0xff] }
 0x97e   : > { %9811 = vmatmul.msk.f32.gmra.mxu1 %vm5906_vm13, %v13053_v53  ;;  %8371 = vmatpush.msrb.mxu0 %v8309_v8 }
 0x97f   : > { %8342 = vmatpush.msrb.mxu3 %v7939_v19 }
 0x983   : > { %9801 = vmatmul.msk.f32.gmra.mxu0 %vm5906_vm13, %v9789_v22 }
 0x984   : > { %9797 = vmatmul.msk.f32.gmra.mxu3 %vm5906_vm13, %v9789_v22  ;;  %v9855_v22 = vld [vmem:[%s13565_s9 + $0x118] sm:$0xff] }
 0x985   : > { %9794 = vmatmul.msk.f32.gmra.mxu2 %vm5906_vm13, %v9790_v29 }
 0x986   : > { %9828 = vmatmul.msk.f32.vlgmr.msrb.gmra.mxu1 %vm5906_vm13, %v9820_v32 }
 0x98b   : > { %9802 = vmatmul.msk.f32.gmra.mxu0 %vm5906_vm13, %v9790_v29 }
 0x98c   : > { %9798 = vmatmul.msk.f32.gmra.mxu3 %vm5906_vm13, %v9790_v29 }
 0x98d   : > { %9795 = vmatmul.msk.f32.gmra.mxu2 %vm5906_vm13, %v9791_v6 }
 0x98e   : > { %9829 = vmatmul.msk.f32.gmra.mxu1 %vm5906_vm13, %v13078_v27 }
 0x993   : > { %9803 = vmatmul.msk.f32.gmra.mxu0 %vm5906_vm13, %v9791_v6 }
 0x994   : > { %9799 = vmatmul.msk.f32.gmra.mxu3 %vm5906_vm13, %v9791_v6 }
 0x995   : > { %9812 = vmatmul.msk.f32.vlgmr.msrb.gmra.mxu2 %vm5906_vm13, %v13007_v7 }
 0x996   : > { %8467 = vmatpush.msrb.mxu2 %v8066_v54  ;;  %9830 = vmatmul.msk.f32.gmra.mxu1 %vm5906_vm13, %v13090_v40 }
 0x997   : > { %v13098_v0 = vpop.f32.mrf.mxu2  ;;  %v13100_v26 = vpop.f32.mrf.mxu0 }
 0x998   : > { %8468 = vmatpush.msrb.mxu2 %v8065_v61 }
 0x99b   : > { %9824 = vmatmul.msk.f32.vlgmr.msra.gmra.mxu0 %vm5906_vm13, %v9820_v32 }
 0x99c   : > { %9816 = vmatmul.msk.f32.vlgmr.msra.gmra.mxu3 %vm5906_vm13, %v13007_v7  ;;  %8525 = vmatpush.msra.mxu0 %v10453_v52 }
 0x99d   : > { %9813 = vmatmul.msk.f32.gmra.mxu2 %vm5906_vm13, %v13017_v31  ;;  %8496 = vmatpush.msra.mxu3 %v8436_v44 }
 0x99e   : > { %9831 = vmatmul.msk.f32.gmra.mxu1 %vm5906_vm13, %v9823_v34  ;;  %8526 = vmatpush.msra.mxu0 %v10454_v42  ;;  %v13116_v4 = vpop.f32.mrf.mxu3 }
 0x99f   : > { %8497 = vmatpush.msra.mxu3 %v8435_v62  ;;  %v13118_v56 = vpop.f32.mrf.mxu2 }
 0x9a0   : > { %v13120_v23 = vpop.f32.mrf.mxu0 }
 0x9a2   : > { %v13170_v2 = vpop.f32.mrf.mxu1 }
 0x9a3   : > { %9825 = vmatmul.msk.f32.gmra.mxu0 %vm5906_vm13, %v13078_v27 }
 0x9a4   : > { %9817 = vmatmul.msk.f32.gmra.mxu3 %vm5906_vm13, %v13017_v31 }
 0x9a5   : > { %9814 = vmatmul.msk.f32.gmra.mxu2 %vm5906_vm13, %v13034_v63 }
 0x9a6   : > { %9848 = vmatmul.msk.f32.vlgmr.msra.gmra.mxu1 %vm5906_vm13, %v9836_v55 }
 0x9a7   : > { %v13134_v41 = vpop.f32.mrf.mxu3  ;;  %v13136_v46 = vpop.f32.mrf.mxu2 }
 0x9a8   : > { %v13138_v48 = vpop.f32.mrf.mxu0 }
 0x9aa   : > { %v13184_v36 = vpop.f32.mrf.mxu1 }
 0x9ab   : > { %9826 = vmatmul.msk.f32.gmra.mxu0 %vm5906_vm13, %v13090_v40 }
 0x9ac   : > { %9818 = vmatmul.msk.f32.gmra.mxu3 %vm5906_vm13, %v13034_v63 }
 0x9ad   : > { %9815 = vmatmul.msk.f32.gmra.mxu2 %vm5906_vm13, %v13053_v53 }
 0x9ae   : > { %9849 = vmatmul.msk.f32.gmra.mxu1 %vm5906_vm13, %v9837_v5 }
 0x9af   : > { %v13150_v13 = vpop.f32.mrf.mxu3 }
 0x9b0   : > { %v13152_v47 = vpop.f32.mrf.mxu2  ;;  %v13156_v37 = vpop.f32.mrf.mxu0 }
 0x9b2   : > { %v13194_v25 = vpop.f32.mrf.mxu1 }
 0x9b3   : > { %9827 = vmatmul.msk.f32.gmra.mxu0 %vm5906_vm13, %v9823_v34 }
 0x9b4   : > { %9819 = vmatmul.msk.f32.gmra.mxu3 %vm5906_vm13, %v13053_v53 }
 0x9b5   : > { %9832 = vmatmul.msk.f32.vlgmr.msra.gmra.mxu2 %vm5906_vm13, %v9820_v32  ;;  %v7604_v32 = vadd.f32 %v13085_v3, %v13098_v0  ;;  %v7607_v0 = vadd.f32 %v13108_v10, %v13118_v56 }
 0x9b6   : > { %9850 = vmatmul.msk.f32.gmra.mxu1 %vm5906_vm13, %v9838_v58 }
 0x9b7   : > { %v13166_v28 = vpop.f32.mrf.mxu3 }
 0x9b8   : > { %v13168_v49 = vpop.f32.mrf.mxu2  ;;  %v7730_v9 = vpop.f32.mrf.mxu0 }
 0x9b9   : > { %v7633_v42 = vadd.f32 %v13168_v49, %v13116_v4 }
 0x9ba   : > { %v13211_v45 = vpop.f32.mrf.mxu1 }
 0x9bb   : > { %9844 = vmatmul.msk.f32.vlgmr.msrb.gmra.mxu0 %vm5906_vm13, %v9836_v55 }
 0x9bc   : > { %9840 = vmatmul.msk.f32.vlgmr.msrb.gmra.mxu3 %vm5906_vm13, %v9836_v55 }
 0x9bd   : > { %9833 = vmatmul.msk.f32.gmra.mxu2 %vm5906_vm13, %v13078_v27 }
 0x9be   : > { %9851 = vmatmul.msk.f32.gmra.mxu1 %vm5906_vm13, %v9839_v39 }
 0x9bf   : > { %v7661_v15 = vpop.f32.mrf.mxu3 }
 0x9c0   : > { %v13180_v30 = vpop.f32.mrf.mxu2  ;;  %v13182_v20 = vpop.f32.mrf.mxu0  ;;  %v7662_v29 = vadd.f32 %v7661_v15, %v13100_v26 }
 0x9c1   : > { %v7636_v49 = vadd.f32 %v13180_v30, %v13134_v41 }
 0x9c2   : > { %v7904_v31 = vpop.f32.mrf.mxu1 }
 0x9c3   : > { %9845 = vmatmul.msk.f32.gmra.mxu0 %vm5906_vm13, %v9837_v5 }
 0x9c4   : > { %9841 = vmatmul.msk.f32.gmra.mxu3 %vm5906_vm13, %v9837_v5  ;;  %v7801_v5 = vadd.f32 %v13170_v2, %v7633_v42  ;;  %v7610_v2 = vadd.f32 %v13131_v43, %v13136_v46 }
 0x9c5   : > { %9834 = vmatmul.msk.f32.gmra.mxu2 %vm5906_vm13, %v13090_v40  ;;  %v7800_v40 = vadd.f32 %v7730_v9, %v7604_v32  ;;  %v7803_v9 = vadd.f32 %v13182_v20, %v7607_v0  ;;  %v7804_v20 = vadd.f32 %v13184_v36, %v7636_v49  ;;  %v7613_v36 = vadd.f32 %v13154_v11, %v13152_v47 }
 0x9c7   : > { %v7664_v21 = vpop.f32.mrf.mxu3 }
 0x9c8   : > { %v13190_v51 = vpop.f32.mrf.mxu2  ;;  %v13192_v50 = vpop.f32.mrf.mxu0  ;;  %v7665_v55 = vadd.f32 %v7664_v21, %v13120_v23 }
 0x9ca   : > { %v7907_v61 = vpop.f32.mrf.mxu1 }
 0x9cb   : > { %9846 = vmatmul.msk.f32.gmra.mxu0 %vm5906_vm13, %v9838_v58 }
 0x9cc   : > { %9842 = vmatmul.msk.f32.gmra.mxu3 %vm5906_vm13, %v9838_v58 }
 0x9cd   : > { %9835 = vmatmul.msk.f32.gmra.mxu2 %vm5906_vm13, %v9823_v34 }
 0x9cf   : > { %v13199_v24 = vpop.f32.mrf.mxu3 }
 0x9d0   : > { %v13201_v18 = vpop.f32.mrf.mxu2  ;;  %v13203_v14 = vpop.f32.mrf.mxu0  ;;  %v7668_v10 = vadd.f32 %v13199_v24, %v13138_v48 }
 0x9d1   : > { %v7642_v32 = vadd.f32 %v13201_v18, %v13166_v28 }
 0x9d2   : > { %v7910_v27 = vpop.f32.mrf.mxu1 }
 0x9d3   : > { %9847 = vmatmul.msk.f32.gmra.mxu0 %vm5906_vm13, %v9839_v39  ;;  %v7810_v47 = vadd.f32 %v13211_v45, %v7642_v32 }
 0x9d4   : > { %9843 = vmatmul.msk.f32.gmra.mxu3 %vm5906_vm13, %v9839_v39 }
 0x9d5   : > { %9856 = vmatmul.msk.f32.vlgmr.msrb.gmra.mxu2 %vm5906_vm13, %v9852_v35 }
 0x9d7   : > { %v13213_v19 = vpop.f32.mrf.mxu3 }
 0x9d8   : > { %v7788_v17 = vpop.f32.mrf.mxu2  ;;  %v7875_v7 = vpop.f32.mrf.mxu0  ;;  %v7671_v43 = vadd.f32 %v13213_v19, %v13156_v37 }
 0x9d9   : > { %v7802_v6 = vadd.f32 %v7788_v17, %v7662_v29  ;;  %v7917_v39 = vadd.f32 %v7875_v7, %v7801_v5 }
 0x9da   : > { %v7913_v15 = vpop.f32.mrf.mxu1 }
 0x9db   : > { %9864 = vmatmul.msk.f32.vlgmr.msra.gmra.mxu0 %vm5906_vm13, %v9852_v35  ;;  %v7918_v34 = vadd.f32 %v7904_v31, %v7802_v6  ;;  %v7806_v31 = vadd.f32 %v13192_v50, %v7610_v2 }
 0x9dc   : > { %9860 = vmatmul.msk.f32.vlgmr.msra.gmra.mxu3 %vm5906_vm13, %v9852_v35 }
 0x9dd   : > { %9857 = vmatmul.msk.f32.gmra.mxu2 %vm5906_vm13, %v9853_v1 }
 0x9df   : > { %v7846_v38 = vpop.f32.mrf.mxu3 }
 0x9e0   : > { %v7791_v12 = vpop.f32.mrf.mxu2  ;;  %v7878_v59 = vpop.f32.mrf.mxu0  ;;  %v7916_v60 = vadd.f32 %v7846_v38, %v7800_v40 }
 0x9e1   : > { %v7805_v58 = vadd.f32 %v7791_v12, %v7665_v55  ;;  %v7920_v12 = vadd.f32 %v7878_v59, %v7804_v20 }
 0x9e3   : > { %9865 = vmatmul.msk.f32.gmra.mxu0 %vm5906_vm13, %v9853_v1  ;;  %v7921_v17 = vadd.f32 %v7907_v61, %v7805_v58  ;;  %v13261_v61 = vpop.f32.mrf.mxu1 }
 0x9e4   : > { %9861 = vmatmul.msk.f32.gmra.mxu3 %vm5906_vm13, %v9853_v1 }
 0x9e5   : > { %9858 = vmatmul.msk.f32.gmra.mxu2 %vm5906_vm13, %v9854_v33 }
 0x9e7   : > { %v7849_v54 = vpop.f32.mrf.mxu3 }
 0x9e8   : > { %v7794_v57 = vpop.f32.mrf.mxu2  ;;  %v7881_v63 = vpop.f32.mrf.mxu0  ;;  %v7919_v35 = vadd.f32 %v7849_v54, %v7803_v9 }
 0x9e9   : > { %v7808_v7 = vadd.f32 %v7794_v57, %v7668_v10 }
 0x9eb   : > { %9866 = vmatmul.msk.f32.gmra.mxu0 %vm5906_vm13, %v9854_v33  ;;  %v7924_v54 = vadd.f32 %v7910_v27, %v7808_v7  ;;  %v8103_v19 = vpop.f32.mrf.mxu1 }
 0x9ec   : > { %9862 = vmatmul.msk.f32.gmra.mxu3 %vm5906_vm13, %v9854_v33  ;;  %v7639_v33 = vadd.f32 %v13190_v51, %v13150_v13  ;;  %v7809_v13 = vadd.f32 %v13203_v14, %v7613_v36 }
 0x9ed   : > { %9859 = vmatmul.msk.f32.gmra.mxu2 %vm5906_vm13, %v9855_v22 }
 0x9ee   : > { %v7807_v50 = vadd.f32 %v13194_v25, %v7639_v33 }
 0x9ef   : > { %v7852_v53 = vpop.f32.mrf.mxu3 }
 0x9f0   : > { %v7797_v16 = vpop.f32.mrf.mxu2  ;;  %v13233_v8 = vpop.f32.mrf.mxu0  ;;  %v7922_v41 = vadd.f32 %v7852_v53, %v7806_v31  ;;  %v7923_v51 = vadd.f32 %v7881_v63, %v7807_v50 }
 0x9f1   : > { %v7811_v59 = vadd.f32 %v7797_v16, %v7671_v43  ;;  %v7926_v11 = vadd.f32 %v13233_v8, %v7810_v47  ;;  %v13295_v43 = vpop.permute.xlu0 %8573 }
 0x9f3   : > { %9867 = vmatmul.msk.f32.gmra.mxu0 %vm5906_vm13, %v9855_v22  ;;  %v7927_v6 = vadd.f32 %v7913_v15, %v7811_v59 }
 0x9f4   : > { %9863 = vmatmul.msk.f32.gmra.mxu3 %vm5906_vm13, %v9855_v22 }
 0x9f7   : > { %v7855_v52 = vpop.f32.mrf.mxu3 }
 0x9f8   : > { %v7974_v44 = vpop.f32.mrf.mxu2  ;;  %v8032_v26 = vpop.f32.mrf.mxu0  ;;  %v7925_v57 = vadd.f32 %v7855_v52, %v7809_v13 }
 0x9f9   : > { %v13242_v62 = vadd.f32 %v7974_v44, %v7916_v60  ;;  %v8046_v3 = vadd.f32 %v8032_v26, %v7918_v34  ;;  %v13277_v34 = vpop.f32.mrf.mxu1 }
 0x9ff   : > { %v8003_v4 = vpop.f32.mrf.mxu3 }
 0xa00   : > { %v7977_v1 = vpop.f32.mrf.mxu2  ;;  %v8045_v38 = vadd.f32 %v8003_v4, %v7917_v39  ;;  %v8035_v21 = vpop.f32.mrf.mxu0 }
 0xa01   : > { %v13251_v23 = vadd.f32 %v7977_v1, %v7919_v35  ;;  %v8049_v56 = vadd.f32 %v8035_v21, %v7921_v17  ;;  %v13279_v0 = vpop.f32.mrf.mxu1 }
 0xa07   : > { %v8006_v30 = vpop.f32.mrf.mxu3 }
 0xa08   : > { %v7980_v22 = vpop.f32.mrf.mxu2  ;;  %v8048_v48 = vadd.f32 %v8006_v30, %v7920_v12  ;;  %v8038_v29 = vpop.f32.mrf.mxu0 }
 0xa09   : > { %v13263_v24 = vadd.f32 %v7980_v22, %v7922_v41  ;;  %v8052_v46 = vadd.f32 %v8038_v29, %v7924_v54  ;;  %v8245_v15 = vpop.f32.mrf.mxu1 }
 0xa0f   : > { %v8009_v53 = vpop.f32.mrf.mxu3 }
 0xa10   : > { %v7983_v27 = vpop.f32.mrf.mxu2  ;;  %v8051_v40 = vadd.f32 %v8009_v53, %v7923_v51  ;;  %v8041_v37 = vpop.f32.mrf.mxu0 }
 0xa11   : > { %v13273_v60 = vadd.f32 %v7983_v27, %v7925_v57  ;;  %v8055_v42 = vadd.f32 %v8041_v37, %v7927_v6  ;;  %v8248_v2 = vpop.f32.mrf.mxu1  ;;  %v8173_v57 = vadd.f32 %v8103_v19, %v13251_v23  ;;  %v13304_v37 = vpop.permute.xlu0 %8558 }
 0xa17   : > { %v8012_v25 = vpop.f32.mrf.mxu3 }
 0xa18   : > { %v8054_v14 = vadd.f32 %v8012_v25, %v7926_v11  ;;  %v8129_v63 = vpop.f32.mrf.mxu2  ;;  %v8216_v52 = vpop.f32.mrf.mxu0 }
 0xa19   : > { %v8171_v16 = vadd.f32 %v8129_v63, %v8045_v38  ;;  %v8251_v12 = vpop.f32.mrf.mxu1  ;;  %v13309_v11 = vpop.permute.xlu2 %8563 }
 0xa1f   : > { %v8158_v28 = vpop.f32.mrf.mxu3 }
 0xa20   : > { %v8132_v18 = vpop.f32.mrf.mxu2  ;;  %v8172_v44 = vadd.f32 %v8158_v28, %v8046_v3  ;;  %v8219_v55 = vpop.f32.mrf.mxu0 }
 0xa21   : > { %v8174_v26 = vadd.f32 %v8132_v18, %v8048_v48  ;;  %v8254_v54 = vpop.f32.mrf.mxu1  ;;  %v8289_v32 = vadd.f32 %v8219_v55, %v8173_v57 }
 0xa23   : > { %v8290_v19 = vadd.f32 %v8248_v2, %v8174_v26 }
 0xa27   : > { %v8161_v5 = vpop.f32.mrf.mxu3 }
 0xa28   : > { %v8135_v58 = vpop.f32.mrf.mxu2  ;;  %v8175_v9 = vadd.f32 %v8161_v5, %v8049_v56  ;;  %v8222_v8 = vpop.f32.mrf.mxu0 }
 0xa29   : > { %v13281_v45 = vadd.f32 %v8135_v58, %v8051_v40  ;;  %v13299_v50 = vpop.f32.mrf.mxu1 }
 0xa2f   : > { %v8164_v39 = vpop.f32.mrf.mxu3 }
 0xa30   : > { %v8138_v35 = vpop.f32.mrf.mxu2  ;;  %v13283_v4 = vadd.f32 %v8164_v39, %v8052_v46  ;;  %v8225_v17 = vpop.f32.mrf.mxu0  ;;  %v8170_v46 = vadd.f32 %v13261_v61, %v13242_v62 }
 0xa31   : > { %v13285_v49 = vadd.f32 %v8138_v35, %v8054_v14  ;;  %v13311_v14 = vpop.f32.mrf.mxu1  ;;  %v8179_v35 = vadd.f32 %v13279_v0, %v13273_v60 }
 0xa32   : > { %v8286_v13 = vadd.f32 %v8216_v52, %v8170_v46  ;;  %v8569_v46 = vpop.permute.xlu1 %8568 }
 0xa33   : > { %v8296_v0 = vadd.f32 %v8254_v54, %v13285_v49 }
 0xa37   : > { %v8167_v1 = vpop.f32.mrf.mxu3 }
 0xa38   : > { %v13287_v3 = vadd.f32 %v8167_v1, %v8055_v42  ;;  %v8274_v38 = vpop.f32.mrf.mxu2  ;;  %v8373_v10 = vpop.f32.mrf.mxu0  ;;  %v8287_v42 = vadd.f32 %v8245_v15, %v8171_v16 }
 0xa39   : > { %v13289_v21 = vadd.f32 %v8274_v38, %v8172_v44  ;;  %v8176_v44 = vadd.f32 %v13277_v34, %v13263_v24  ;;  %v8408_v38 = vpop.f32.mrf.mxu1  ;;  %v8295_v34 = vadd.f32 %v8225_v17, %v8179_v35 }
 0xa3a   : > { %v8415_v25 = vadd.f32 %v8373_v10, %v8287_v42 }
 0xa3b   : > { %v8292_v15 = vadd.f32 %v8222_v8, %v8176_v44  ;;  %v8293_v8 = vadd.f32 %v8251_v12, %v13281_v45  ;;  %v9888_v44 = vld [vmem:[%s13567_s11 + $0x60] sm:$0xff] }
 0xa3f   : > { %v8344_v56 = vpop.f32.mrf.mxu3 }
 0xa40   : > { %v8277_v20 = vpop.f32.mrf.mxu2  ;;  %v8376_v31 = vpop.f32.mrf.mxu0  ;;  %v8414_v53 = vadd.f32 %v8344_v56, %v8286_v13 }
 0xa41   : > { %v13291_v7 = vadd.f32 %v8277_v20, %v8175_v9  ;;  %v8418_v16 = vadd.f32 %v8376_v31, %v8290_v19  ;;  %v8416_v19 = vadd.f32 %v13299_v50, %v13289_v21 }
 0xa47   : > { %v8347_v41 = vpop.f32.mrf.mxu3 }
 0xa48   : > { %v13293_v30 = vpop.f32.mrf.mxu2  ;;  %v8379_v33 = vpop.f32.mrf.mxu0  ;;  %v8417_v27 = vadd.f32 %v8347_v41, %v8289_v32 }
 0xa4f   : > { %v8350_v22 = vpop.f32.mrf.mxu3 }
 0xa50   : > { %v8283_v48 = vpop.f32.mrf.mxu2  ;;  %v8382_v29 = vpop.f32.mrf.mxu0  ;;  %v8420_v1 = vadd.f32 %v8350_v22, %v8292_v15 }
 0xa51   : > { %v8297_v32 = vadd.f32 %v8283_v48, %v13287_v3 }
 0xa57   : > { %v8353_v36 = vpop.f32.mrf.mxu3 }
 0xa58   : > { %v8470_v59 = vpop.f32.mrf.mxu2  ;;  %v13301_v51 = vpop.f32.mrf.mxu0  ;;  %v8423_v31 = vadd.f32 %v8353_v36, %v8295_v34  ;;  %v8294_v36 = vadd.f32 %v13293_v30, %v13283_v4 }
 0xa59   : > { %v8540_v6 = vadd.f32 %v8470_v59, %v8414_v53  ;;  %v8421_v53 = vadd.f32 %v8379_v33, %v8293_v8 }
 0xa5a   : > { %v8422_v3 = vadd.f32 %v8408_v38, %v8294_v36  ;;  %v9881_v36 = vld [vmem:[%s13567_s11 + $0x48] sm:$0xff] }
 0xa5b   : > { %v13307_v62 = vadd.f32 %v13304_v37, %v8540_v6 }
 0xa5d   : > { %v8588_v28 = vmax.f32 %v13307_v62, 0.0 }
 0xa5f   : > { %v8499_v40 = vpop.f32.mrf.mxu3 }
 0xa60   : > { %v8473_v47 = vpop.f32.mrf.mxu2  ;;  %v8541_v63 = vadd.f32 %v8499_v40, %v8415_v25  ;;  %v13314_v52 = vpop.f32.mrf.mxu0  ;;  %v8419_v25 = vadd.f32 %v13311_v14, %v13291_v7 }
 0xa61   : > { %v8543_v61 = vadd.f32 %v8473_v47, %v8417_v27  ;;  %v8424_v27 = vadd.f32 %v8382_v29, %v8296_v0  ;;  %v8411_v40 = vpop.f32.mrf.mxu1  ;;  %v9869_v0 = vld [vmem:[%s13567_s11 + $0x28] sm:$0xff] }
 0xa62   : > { %v13320_v58 = vadd.f32 %v13304_v37, %v8541_v63  ;;  %v8425_v62 = vadd.f32 %v8411_v40, %v8297_v32  ;;  %v8545_v63 = vadd.f32 %v13314_v52, %v8419_v25  ;;  %v8601_v52 = vld [vmem:[%s13567_s11 + $0x8] sm:$0xff] }
 0xa63   : > { %v8579_v23 = vadd.f32 %v13309_v11, %v8543_v61 }
 0xa64   : > { %v8589_v10 = vmax.f32 %v13320_v58, 0.0  ;;  %v13353_v14 = vadd.f32 %v13309_v11, %v8545_v63  ;;  %v9889_v58 = vld [vmem:[%s13567_s11 + $0x68] sm:$0xff] }
 0xa65   : > { %v8591_v18 = vmax.f32 %v8579_v23, 0.0  ;;  %v9921_v63 = vld [vmem:[%s13567_s11 + $0xe8] sm:$0xff] }
 0xa66   : > { %v8593_v50 = vmax.f32 %v13353_v14, 0.0  ;;  %v9922_v14 = vld [vmem:[%s13567_s11 + $0xf0] sm:$0xff] }
 0xa67   : > { %v8502_v55 = vpop.f32.mrf.mxu3  ;;  %v10465_v5 = vpack.i.bf16 %v8588_v28, %v8591_v18 }
 0xa68   : > { %v8476_v9 = vpop.f32.mrf.mxu2  ;;  %v8544_v39 = vadd.f32 %v8502_v55, %v8418_v16  ;;  %v8534_v56 = vpop.f32.mrf.mxu0  ;;  %v8602_v16 = vld [vmem:[%s13567_s11 + $0x10] sm:$0xff] }
 0xa69   : > { %10466 = vrot.lane.b32.xlu2 %v10465_v5, %s10537_s24  ;;  %v8546_v2 = vadd.f32 %v8476_v9, %v8420_v1  ;;  %v8548_v4 = vadd.f32 %v8534_v56, %v8422_v3  ;;  %v9904_v3 = vld [vmem:[%s13567_s11 + $0xa0] sm:$0xff] }
 0xa6a   : > { %v8580_v26 = vadd.f32 %v13309_v11, %v8544_v39 }
 0xa6b   : > { %v8582_v13 = vadd.f32 %v8569_v46, %v8546_v2  ;;  %v13342_v23 = vadd.f32 %v8569_v46, %v8548_v4  ;;  %v9868_v2 = vld [vmem:[%s13567_s11 + $0x20] sm:$0xff] }
 0xa6c   : > { %v8592_v24 = vmax.f32 %v8580_v26, 0.0 }
 0xa6d   : > { %v8594_v17 = vmax.f32 %v8582_v13, 0.0  ;;  %v8596_v7 = vmax.f32 %v13342_v23, 0.0  ;;  %v9880_v13 = vld [vmem:[%s13567_s11 + $0x40] sm:$0xff]  ;;  %v9871_v23 = vld [vmem:[%s13567_s11 + $0x38] sm:$0xff] }
 0xa6e   : > { %v10485_v20 = vpack.i.bf16 %v8589_v10, %v8592_v24 }
 0xa6f   : > { %v8505_v41 = vpop.f32.mrf.mxu3 }
 0xa70   : > { %v8479_v59 = vpop.f32.mrf.mxu2  ;;  %v8547_v22 = vadd.f32 %v8505_v41, %v8421_v53  ;;  %v8537_v47 = vpop.f32.mrf.mxu0  ;;  %v9891_v53 = vld [vmem:[%s13567_s11 + $0x78] sm:$0xff] }
 0xa71   : > { %v8549_v57 = vadd.f32 %v8479_v59, %v8423_v31  ;;  %v8551_v54 = vadd.f32 %v8537_v47, %v8425_v62 }
 0xa72   : > { %v8583_v42 = vadd.f32 %v8569_v46, %v8547_v22 }
 0xa73   : > { %v8585_v60 = vadd.f32 %v13295_v43, %v8549_v57  ;;  %v13337_v61 = vadd.f32 %v13295_v43, %v8551_v54 }
 0xa74   : > { %v8595_v48 = vmax.f32 %v8583_v42, 0.0 }
 0xa75   : > { %v8597_v6 = vmax.f32 %v8585_v60, 0.0 }
 0xa77   : > { %8691 = vmatpush.msra.mxu2 %v8597_v6  ;;  %v8508_v45 = vpop.f32.mrf.mxu3  ;;  %v10470_v12 = vpack.i.bf16 %v8594_v17, %v8597_v6 }
 0xa78   : > { %v8550_v33 = vadd.f32 %v8508_v45, %v8424_v27 }
 0xa79   : > { %10471 = vrot.lane.b32.xlu0 %v10470_v12, %s10539_s25  ;;  %10461 = vrot.lane.b32.xlu1 %v10470_v12, %s10537_s24 }
 0xa7a   : > { %v8586_v49 = vadd.f32 %v13295_v43, %v8550_v33  ;;  %8692 = vmatpush.msra.mxu2 %v8594_v17  ;;  %v8599_v43 = vmax.f32 %v13337_v61, 0.0  ;;  %v9870_v33 = vld [vmem:[%s13567_s11 + $0x30] sm:$0xff] }
 0xa7c   : > { %v8598_v29 = vmax.f32 %v8586_v49, 0.0  ;;  %8693 = vmatpush.msra.mxu2 %v8591_v18  ;;  %v10500_v18 = vpack.i.bf16 %v8596_v7, %v8599_v43 }
 0xa7e   : > { %8694 = vmatpush.msra.mxu2 %v8588_v28  ;;  %8799 = vmatpush.msrb.mxu0 %v8598_v29  ;;  %v10480_v30 = vpack.i.bf16 %v8595_v48, %v8598_v29  ;;  %v8542_v28 = vadd.f32 %v13301_v51, %v8416_v19  ;;  %v9905_v19 = vld [vmem:[%s13567_s11 + $0xa8] sm:$0xff] }
 0xa80   : > { %10481 = vrot.lane.b32.xlu2 %v10480_v30, %s10537_s24  ;;  %8800 = vmatpush.msrb.mxu0 %v8595_v48  ;;  %v13360_v21 = vadd.f32 %v13304_v37, %v8542_v28  ;;  %v8600_v37 = vld [vmem:[%s13567_s11] sm:$0xff] }
 0xa81   : > { %10486 = vrot.lane.b32.xlu0 %v10485_v20, %s10537_s24  ;;  %10476 = vrot.lane.b32.xlu1 %v10465_v5, %s10539_s25  ;;  %v8603_v5 = vld [vmem:[%s13567_s11 + $0x18] sm:$0xff]  ;;  %v9920_v48 = vld [vmem:[%s13567_s11 + $0xe0] sm:$0xff] }
 0xa82   : > { %8801 = vmatpush.msrb.mxu0 %v8592_v24  ;;  %v8590_v51 = vmax.f32 %v13360_v21, 0.0  ;;  %9876 = vmatmul.msk.f32.vlgmr.msra.gmra.mxu2 %vm8625_vm0, %v8600_v37  ;;  %v9890_v24 = vld [vmem:[%s13567_s11 + $0x70] sm:$0xff]  ;;  %v9896_v28 = vld [vmem:[%s13567_s11 + $0x80] sm:$0xff]  ;;  %v9897_v21 = vld [vmem:[%s13567_s11 + $0x88] sm:$0xff] }
 0xa83   : > { %v9898_v37 = vld [vmem:[%s13567_s11 + $0x90] sm:$0xff] }
 0xa84   : > { %8802 = vmatpush.msrb.mxu0 %v8589_v10  ;;  %v10510_v11 = vpack.i.bf16 %v8590_v51, %v8593_v50 }
 0xa85   : > { %9892 = vmatmul.msk.f32.vlgmr.msrb.gmra.mxu0 %vm8625_vm0, %v9888_v44  ;;  %v9915_v44 = vld [vmem:[%s13567_s11 + $0xd8] sm:$0xff] }
 0xa88   : > { %10496 = vrot.lane.b32.xlu2 %v10485_v20, %s10539_s25 }
 0xa89   : > { %10501 = vrot.lane.b32.xlu0 %v10500_v18, %s10537_s24  ;;  %10491 = vrot.lane.b32.xlu1 %v10480_v30, %s10539_s25  ;;  %v9882_v30 = vld [vmem:[%s13567_s11 + $0x50] sm:$0xff] }
 0xa8a   : > { %9877 = vmatmul.msk.f32.gmra.mxu2 %vm8625_vm0, %v8601_v52  ;;  %v9914_v52 = vld [vmem:[%s13567_s11 + $0xd0] sm:$0xff] }
 0xa8d   : > { %9893 = vmatmul.msk.f32.gmra.mxu0 %vm8625_vm0, %v9889_v58  ;;  %v9930_v58 = vld [vmem:[%s13567_s11 + $0x110] sm:$0xff] }
 0xa90   : > { %10511 = vrot.lane.b32.xlu2 %v10510_v11, %s10537_s24 }
 0xa91   : > { %10516 = vrot.lane.b32.xlu0 %v10510_v11, %s10539_s25  ;;  %10506 = vrot.lane.b32.xlu1 %v10500_v18, %s10539_s25  ;;  %v9912_v18 = vld [vmem:[%s13567_s11 + $0xc0] sm:$0xff]  ;;  %v9913_v11 = vld [vmem:[%s13567_s11 + $0xc8] sm:$0xff] }
 0xa92   : > { %9878 = vmatmul.msk.f32.gmra.mxu2 %vm8625_vm0, %v8602_v16  ;;  %v9899_v16 = vld [vmem:[%s13567_s11 + $0x98] sm:$0xff] }
 0xa95   : > { %9894 = vmatmul.msk.f32.gmra.mxu0 %vm8625_vm0, %v9890_v24 }
 0xa9a   : > { %9879 = vmatmul.msk.f32.gmra.mxu2 %vm8625_vm0, %v8603_v5  ;;  %v9929_v5 = vld [vmem:[%s13567_s11 + $0x108] sm:$0xff] }
 0xa9d   : > { %9895 = vmatmul.msk.f32.gmra.mxu0 %vm8625_vm0, %v9891_v53 }
 0xac3   : > { %v10467_v55 = vpop.permute.xlu2 %10466 }
 0xac4   : > { %v10468_v10 = vunpack.i.l.bf16 %v10467_v55  ;;  %v10469_v34 = vunpack.i.h.bf16 %v10467_v55  ;;  %v9928_v55 = vld [vmem:[%s13567_s11 + $0x100] sm:$0xff] }
 0xada   : > { %v10482_v9 = vpop.permute.xlu2 %10481 }
 0xadb   : > { %v10483_v31 = vunpack.i.l.bf16 %v10482_v9  ;;  %v10484_v8 = vunpack.i.h.bf16 %v10482_v9  ;;  %v9931_v9 = vld [vmem:[%s13567_s11 + $0x118] sm:$0xff] }
 0xae2   : > { %v10497_v41 = vpop.permute.xlu2 %10496 }
 0xae3   : > { %v10498_v12 = vunpack.i.l.bf16 %v10497_v41  ;;  %v10499_v47 = vunpack.i.h.bf16 %v10497_v41 }
 0xaea   : > { %v10512_v27 = vpop.permute.xlu2 %10511 }
 0xaeb   : > { %v10472_v39 = vpop.permute.xlu0 %10471  ;;  %v10462_v15 = vpop.permute.xlu1 %10461  ;;  %v10513_v42 = vunpack.i.l.bf16 %v10512_v27  ;;  %v10514_v62 = vunpack.i.h.bf16 %v10512_v27 }
 0xaec   : > { %v10473_v26 = vunpack.i.l.bf16 %v10472_v39  ;;  %v10463_v35 = vunpack.i.l.bf16 %v10462_v15  ;;  %v10474_v1 = vunpack.i.h.bf16 %v10472_v39  ;;  %v10464_v38 = vunpack.i.h.bf16 %v10462_v15 }
 0xaee   : > { %8650 = vmatpush.msrb.mxu1 %v10463_v35  ;;  %8749 = vmatpush.msrb.mxu3 %v10473_v26 }
 0xaf0   : > { %8651 = vmatpush.msrb.mxu1 %v10464_v38  ;;  %8750 = vmatpush.msrb.mxu3 %v10474_v1 }
 0xaf2   : > { %8652 = vmatpush.msrb.mxu1 %v10468_v10 }
 0xaf3   : > { %v10487_v56 = vpop.permute.xlu0 %10486  ;;  %v10477_v20 = vpop.permute.xlu1 %10476 }
 0xaf4   : > { %v10478_v46 = vunpack.i.l.bf16 %v10477_v20  ;;  %8653 = vmatpush.msrb.mxu1 %v10469_v34  ;;  %v10479_v59 = vunpack.i.h.bf16 %v10477_v20  ;;  %v10488_v57 = vunpack.i.l.bf16 %v10487_v56  ;;  %v10489_v60 = vunpack.i.h.bf16 %v10487_v56 }
 0xaf5   : > { %9872 = vmatmul.msk.f32.vlgmr.msrb.gmra.mxu1 %vm8625_vm0, %v9868_v2 }
 0xaf6   : > { %8865 = vmatpush.msra.mxu1 %v10483_v31  ;;  %8751 = vmatpush.msrb.mxu3 %v10478_v46 }
 0xaf8   : > { %8866 = vmatpush.msra.mxu1 %v10484_v8  ;;  %8752 = vmatpush.msrb.mxu3 %v10479_v59 }
 0xaf9   : > { %9884 = vmatmul.msk.f32.vlgmr.msrb.gmra.mxu3 %vm8625_vm0, %v9880_v13 }
 0xafa   : > { %8867 = vmatpush.msra.mxu1 %v10488_v57  ;;  %8977 = vmatpush.msra.mxu3 %v8599_v43  ;;  %v9883_v43 = vld [vmem:[%s13567_s11 + $0x58] sm:$0xff] }
 0xafb   : > { %v10502_v22 = vpop.permute.xlu0 %10501  ;;  %v10492_v32 = vpop.permute.xlu1 %10491 }
 0xafc   : > { %v10503_v17 = vunpack.i.l.bf16 %v10502_v22  ;;  %v10493_v6 = vunpack.i.l.bf16 %v10492_v32  ;;  %8868 = vmatpush.msra.mxu1 %v10489_v60  ;;  %8978 = vmatpush.msra.mxu3 %v8596_v7  ;;  %v10494_v40 = vunpack.i.h.bf16 %v10492_v32  ;;  %v10504_v45 = vunpack.i.h.bf16 %v10502_v22  ;;  %v9906_v7 = vld [vmem:[%s13567_s11 + $0xb0] sm:$0xff] }
 0xafd   : > { %9873 = vmatmul.msk.f32.gmra.mxu1 %vm8625_vm0, %v9869_v0 }
 0xafe   : > { %8979 = vmatpush.msra.mxu3 %v8593_v50  ;;  %8927 = vmatpush.msrb.mxu2 %v10493_v6  ;;  %v9907_v50 = vld [vmem:[%s13567_s11 + $0xb8] sm:$0xff] }
 0xaff   : > { %9043 = vmatpush.msra.mxu0 %v10503_v17 }
 0xb00   : > { %8980 = vmatpush.msra.mxu3 %v8590_v51  ;;  %8928 = vmatpush.msrb.mxu2 %v10494_v40  ;;  %v9923_v51 = vld [vmem:[%s13567_s11 + $0xf8] sm:$0xff] }
 0xb01   : > { %9044 = vmatpush.msra.mxu0 %v10504_v45  ;;  %9885 = vmatmul.msk.f32.gmra.mxu3 %vm8625_vm0, %v9881_v36 }
 0xb02   : > { %8929 = vmatpush.msrb.mxu2 %v10498_v12  ;;  %v8804_v1 = vpop.f32.mrf.mxu0 }
 0xb03   : > { %9045 = vmatpush.msra.mxu0 %v10513_v42  ;;  %v10507_v49 = vpop.permute.xlu1 %10506  ;;  %v10517_v29 = vpop.permute.xlu0 %10516 }
 0xb04   : > { %v10508_v54 = vunpack.i.l.bf16 %v10507_v49  ;;  %8930 = vmatpush.msrb.mxu2 %v10499_v47  ;;  %v10509_v4 = vunpack.i.h.bf16 %v10507_v49  ;;  %v10518_v61 = vunpack.i.l.bf16 %v10517_v29  ;;  %v10519_v25 = vunpack.i.h.bf16 %v10517_v29 }
 0xb05   : > { %9046 = vmatpush.msra.mxu0 %v10514_v62  ;;  %9874 = vmatmul.msk.f32.gmra.mxu1 %vm8625_vm0, %v9870_v33  ;;  %v8696_v26 = vpop.f32.mrf.mxu2 }
 0xb06   : > { %9105 = vmatpush.msrb.mxu1 %v10508_v54  ;;  %9908 = vmatmul.msk.f32.vlgmr.msrb.gmra.mxu2 %vm8625_vm0, %v9904_v3 }
 0xb07   : > { %9924 = vmatmul.msk.f32.vlgmr.msra.gmra.mxu0 %vm8625_vm0, %v9920_v48 }
 0xb08   : > { %9106 = vmatpush.msrb.mxu1 %v10509_v4  ;;  %v9126_v4 = vld [vmem:[%s13568_s12] sm:$0xff] }
 0xb09   : > { %9886 = vmatmul.msk.f32.gmra.mxu3 %vm8625_vm0, %v9882_v30 }
 0xb0a   : > { %9107 = vmatpush.msrb.mxu1 %v10518_v61  ;;  %v8807_v34 = vpop.f32.mrf.mxu0 }
 0xb0c   : > { %9108 = vmatpush.msrb.mxu1 %v10519_v25 }
 0xb0d   : > { %9875 = vmatmul.msk.f32.gmra.mxu1 %vm8625_vm0, %v9871_v23  ;;  %v8699_v10 = vpop.f32.mrf.mxu2 }
 0xb0e   : > { %9909 = vmatmul.msk.f32.gmra.mxu2 %vm8625_vm0, %v9905_v19 }
 0xb0f   : > { %9925 = vmatmul.msk.f32.gmra.mxu0 %vm8625_vm0, %v9921_v63 }
 0xb11   : > { %9887 = vmatmul.msk.f32.gmra.mxu3 %vm8625_vm0, %v9883_v43 }
 0xb12   : > { %v8810_v41 = vpop.f32.mrf.mxu0 }
 0xb15   : > { %9900 = vmatmul.msk.f32.vlgmr.msra.gmra.mxu1 %vm8625_vm0, %v9896_v28  ;;  %v8702_v56 = vpop.f32.mrf.mxu2 }
 0xb16   : > { %9910 = vmatmul.msk.f32.gmra.mxu2 %vm8625_vm0, %v9906_v7 }
 0xb17   : > { %9926 = vmatmul.msk.f32.gmra.mxu0 %vm8625_vm0, %v9922_v14 }
 0xb19   : > { %9916 = vmatmul.msk.f32.vlgmr.msra.gmra.mxu3 %vm8625_vm0, %v9912_v18 }
 0xb1a   : > { %v8813_v13 = vpop.f32.mrf.mxu0 }
 0xb1d   : > { %9901 = vmatmul.msk.f32.gmra.mxu1 %vm8625_vm0, %v9897_v21  ;;  %v8705_v46 = vpop.f32.mrf.mxu2 }
 0xb1e   : > { %9911 = vmatmul.msk.f32.gmra.mxu2 %vm8625_vm0, %v9907_v50 }
 0xb1f   : > { %9927 = vmatmul.msk.f32.gmra.mxu0 %vm8625_vm0, %v9923_v51  ;;  %v9127_v51 = vld [vmem:[%s13568_s12 + $0x8] sm:$0xff] }
 0xb21   : > { %9917 = vmatmul.msk.f32.gmra.mxu3 %vm8625_vm0, %v9913_v11 }
 0xb25   : > { %9902 = vmatmul.msk.f32.gmra.mxu1 %vm8625_vm0, %v9898_v37 }
 0xb29   : > { %9918 = vmatmul.msk.f32.gmra.mxu3 %vm8625_vm0, %v9914_v52 }
 0xb2d   : > { %9903 = vmatmul.msk.f32.gmra.mxu1 %vm8625_vm0, %v9899_v16 }
 0xb31   : > { %9919 = vmatmul.msk.f32.gmra.mxu3 %vm8625_vm0, %v9915_v44 }
 0xb35   : > { %9932 = vmatmul.msk.f32.vlgmr.msrb.gmra.mxu1 %vm8625_vm0, %v9928_v55 }
 0xb3d   : > { %9933 = vmatmul.msk.f32.gmra.mxu1 %vm8625_vm0, %v9929_v5 }
 0xb45   : > { %9934 = vmatmul.msk.f32.gmra.mxu1 %vm8625_vm0, %v9930_v58 }
 0xb4d   : > { %9935 = vmatmul.msk.f32.gmra.mxu1 %vm8625_vm0, %v9931_v9 }
 0xb72   : > { %v8655_v39 = vpop.f32.mrf.mxu1 }
 0xb73   : > { %v8697_v57 = vadd.f32 %v8696_v26, %v8655_v39 }
 0xb7a   : > { %v8658_v15 = vpop.f32.mrf.mxu1 }
 0xb7b   : > { %v8700_v17 = vadd.f32 %v8699_v10, %v8658_v15 }
 0xb7c   : > { %v8754_v35 = vpop.f32.mrf.mxu3 }
 0xb7d   : > { %v8766_v53 = vadd.f32 %v8754_v35, %v8697_v57  ;;  %v9128_v35 = vld [vmem:[%s13568_s12 + $0x10] sm:$0xff] }
 0xb7f   : > { %v8816_v32 = vadd.f32 %v8804_v1, %v8766_v53 }
 0xb82   : > { %v8661_v38 = vpop.f32.mrf.mxu1 }
 0xb83   : > { %v8703_v62 = vadd.f32 %v8702_v56, %v8661_v38 }
 0xb84   : > { %v8757_v24 = vpop.f32.mrf.mxu3  ;;  %v9048_v27 = vpop.f32.mrf.mxu0 }
 0xb85   : > { %v8767_v40 = vadd.f32 %v8757_v24, %v8700_v17 }
 0xb87   : > { %v8817_v42 = vadd.f32 %v8807_v34, %v8767_v40 }
 0xb89   : > { %v8932_v60 = vpop.f32.mrf.mxu2 }
 0xb8a   : > { %v8664_v2 = vpop.f32.mrf.mxu1 }
 0xb8b   : > { %v8706_v43 = vadd.f32 %v8705_v46, %v8664_v2 }
 0xb8c   : > { %v8760_v20 = vpop.f32.mrf.mxu3  ;;  %v9051_v48 = vpop.f32.mrf.mxu0 }
 0xb8d   : > { %v8768_v3 = vadd.f32 %v8760_v20, %v8703_v62 }
 0xb8f   : > { %v8818_v25 = vadd.f32 %v8810_v41, %v8768_v3 }
 0xb91   : > { %v8935_v12 = vpop.f32.mrf.mxu2 }
 0xb92   : > { %v8870_v31 = vpop.f32.mrf.mxu1 }
 0xb93   : > { %v8882_v6 = vadd.f32 %v8870_v31, %v8816_v32  ;;  %v9129_v31 = vld [vmem:[%s13568_s12 + $0x18] sm:$0xff] }
 0xb94   : > { %v8763_v8 = vpop.f32.mrf.mxu3  ;;  %v9054_v52 = vpop.f32.mrf.mxu0 }
 0xb95   : > { %v8944_v45 = vadd.f32 %v8932_v60, %v8882_v6  ;;  %v8769_v18 = vadd.f32 %v8763_v8, %v8706_v43 }
 0xb97   : > { %v8819_v16 = vadd.f32 %v8813_v13, %v8769_v18 }
 0xb99   : > { %v8938_v63 = vpop.f32.mrf.mxu2 }
 0xb9a   : > { %v8873_v59 = vpop.f32.mrf.mxu1 }
 0xb9b   : > { %v8883_v49 = vadd.f32 %v8873_v59, %v8817_v42 }
 0xb9c   : > { %v8982_v22 = vpop.f32.mrf.mxu3  ;;  %v9057_v34 = vpop.f32.mrf.mxu0 }
 0xb9d   : > { %v8994_v47 = vadd.f32 %v8982_v22, %v8944_v45  ;;  %v8945_v30 = vadd.f32 %v8935_v12, %v8883_v49 }
 0xb9f   : > { %v9060_v54 = vadd.f32 %v9048_v27, %v8994_v47 }
 0xba1   : > { %v8941_v9 = vpop.f32.mrf.mxu2 }
 0xba2   : > { %v8876_v0 = vpop.f32.mrf.mxu1 }
 0xba3   : > { %v8884_v28 = vadd.f32 %v8876_v0, %v8818_v25 }
 0xba4   : > { %v8985_v33 = vpop.f32.mrf.mxu3 }
 0xba5   : > { %v8995_v23 = vadd.f32 %v8985_v33, %v8945_v30  ;;  %v8946_v11 = vadd.f32 %v8938_v63, %v8884_v28 }
 0xba7   : > { %v9061_v21 = vadd.f32 %v9051_v48, %v8995_v23 }
 0xbaa   : > { %v8879_v36 = vpop.f32.mrf.mxu1 }
 0xbab   : > { %v8885_v5 = vadd.f32 %v8879_v36, %v8819_v16 }
 0xbac   : > { %v8988_v14 = vpop.f32.mrf.mxu3 }
 0xbad   : > { %v8996_v44 = vadd.f32 %v8988_v14, %v8946_v11  ;;  %v8947_v1 = vadd.f32 %v8941_v9, %v8885_v5 }
 0xbaf   : > { %v9062_v39 = vadd.f32 %v9054_v52, %v8996_v44 }
 0xbb2   : > { %v9110_v29 = vpop.f32.mrf.mxu1 }
 0xbb3   : > { %v9122_v61 = vadd.f32 %v9110_v29, %v9060_v54 }
 0xbb4   : > { %v8991_v15 = vpop.f32.mrf.mxu3 }
 0xbb5   : > { %v9130_v19 = vadd.f32 %v9126_v4, %v9122_v61  ;;  %v8997_v10 = vadd.f32 %v8991_v15, %v8947_v1 }
 0xbb7   : > { %v9134_v7 = vmax.f32 %v9130_v19, 0.0  ;;  %v9063_v56 = vadd.f32 %v9057_v34, %v8997_v10 }
 0xbb9   : > { %9139 = vst.msk [vmem:[%s13534_s23] sm:$0xff] %vm9138_vm1, %v9134_v7 }
 0xbba   : > { %v9113_v50 = vpop.f32.mrf.mxu1 }
 0xbbb   : > { %v9123_v37 = vadd.f32 %v9113_v50, %v9061_v21 }
 0xbbd   : > { %v9131_v55 = vadd.f32 %v9127_v51, %v9123_v37 }
 0xbbf   : > { %v9135_v58 = vmax.f32 %v9131_v55, 0.0 }
 0xbc1   : > { %9140 = vst.msk [vmem:[%s13534_s23 + $0x8] sm:$0xff] %vm9138_vm1, %v9135_v58 }
 0xbc2   : > { %v9116_v26 = vpop.f32.mrf.mxu1 }
 0xbc3   : > { %v9124_v38 = vadd.f32 %v9116_v26, %v9062_v39 }
 0xbc5   : > { %v9132_v24 = vadd.f32 %v9128_v35, %v9124_v38 }
 0xbc7   : > { %v9136_v2 = vmax.f32 %v9132_v24, 0.0 }
 0xbc9   : > { %9141 = vst.msk [vmem:[%s13534_s23 + $0x10] sm:$0xff] %vm9138_vm1, %v9136_v2 }
 0xbca   : > { %v9119_v20 = vpop.f32.mrf.mxu1 }
 0xbcb   : > { %v9125_v41 = vadd.f32 %v9119_v20, %v9063_v56 }
 0xbcd   : > { %v9133_v46 = vadd.f32 %v9129_v31, %v9125_v41 }
 0xbcf   : > { %v9137_v8 = vmax.f32 %v9133_v46, 0.0 }
 0xbd1   : > { %9142 = vst.msk [vmem:[%s13534_s23 + $0x18] sm:$0xff] %vm9138_vm1, %v9137_v8 }
 0xbd2 PF: > { %s26_s18 = sadd.s32 1, %s10526_s18  }
 0xbd3   : > { %p23_p4 = scmp.ge.s32.totalorder %s26_s18, 4  }
 0xbd5   :  { %25 = sbr.rel (!%p23_p4) target bundleno = 1 (0x1), region = 201 }

</bundles_post_ra>
